<compile_context>
chip_gen: v7x
topology: tpu7x:2x2x1
jax: 0.10.0
libtpu: 0.0.40
codegen_flags: <defaults>
</compile_context>

<pallas_src>
import functools

import jax
import jax.numpy as jnp
from jax import lax
from jax.experimental import pallas as pl
from jax.experimental.pallas import tpu as pltpu


# ---------------------------------------------------------------------------
# In-kernel helpers
# ---------------------------------------------------------------------------
def _gn_swish(xf, gamma, beta, gmask, n_per_group, eps):
    """Centered two-pass GroupNorm + swish on a flattened (H*W, C) f32 tile.

    gmask is a (C, G) 0/1 group-membership matrix; group reductions are tiny
    MXU dots so no lane-axis reshapes are needed.
    """
    dn_fwd = (((1,), (0,)), ((), ()))        # (1,C) x (C,G)   -> (1,G)
    dn_bwd = (((1,), (1,)), ((), ()))        # (1,G) x (C,G)^T -> (1,C)
    s = jnp.sum(xf, axis=0, keepdims=True)                        # (1, C)
    mean_g = lax.dot_general(s, gmask, dn_fwd,
                             preferred_element_type=jnp.float32) / n_per_group
    mean_c = lax.dot_general(mean_g, gmask, dn_bwd,
                             preferred_element_type=jnp.float32)  # (1, C)
    d = xf - mean_c
    ss = jnp.sum(d * d, axis=0, keepdims=True)                    # (1, C)
    var_g = lax.dot_general(ss, gmask, dn_fwd,
                            preferred_element_type=jnp.float32) / n_per_group
    inv_c = lax.dot_general(lax.rsqrt(var_g + eps), gmask, dn_bwd,
                            preferred_element_type=jnp.float32)   # (1, C)
    y = d * inv_c * gamma + beta
    return y * jax.nn.sigmoid(y)                                  # swish


def _tap_masks(H, W):
    """Output-position validity masks for the 9 taps of a padding=1 3x3 conv.

    Built once per invocation from iotas (no int div/rem, no padded scratch);
    masks[k] is None when tap k is valid everywhere (center row/col)."""
    HW = H * W
    p = lax.broadcasted_iota(jnp.int32, (HW, 1), 0)                    # flat idx
    ci = lax.broadcasted_iota(jnp.int32, (H, W, 1), 1).reshape(HW, 1)  # col j
    row_lo = p >= W                    # source row i-1 valid   (kh == 0)
    row_hi = p < (H - 1) * W           # source row i+1 valid   (kh == 2)
    col_lo = ci >= 1                   # source col j-1 valid   (kw == 0)
    col_hi = ci <= W - 2               # source col j+1 valid   (kw == 2)
    masks = []
    for k in range(9):
        kh, kw = k // 3, k % 3
        conds = []
        if kh == 0:
            conds.append(row_lo)
        elif kh == 2:
            conds.append(row_hi)
        if kw == 0:
            conds.append(col_lo)
        elif kw == 2:
            conds.append(col_hi)
        m = None
        for c in conds:
            m = c if m is None else jnp.logical_and(m, c)
        masks.append(m)
    return masks


def _conv3x3(hf, w_ref, masks, H, W, Cout):
    """3x3 'same' conv as 9 accumulated K=C dots (f32 accumulation).

    Shifted operands come from pltpu.roll along the flattened H*W (sublane)
    axis (XLU slot) + border masks (VPU); operands are cast to bf16 right
    before the MXU dot. No pad buffer, no im2col patch buffer.
    """
    HW = H * W
    acc = jnp.zeros((HW, Cout), jnp.float32)
    for k in range(9):
        kh, kw = k // 3, k % 3
        d = (kh - 1) * W + (kw - 1)                    # flat source offset
        tap = hf if d == 0 else pltpu.roll(hf, shift=(-d) % HW, axis=0)
        if masks[k] is not None:
            tap = jnp.where(masks[k], tap, 0.0)
        acc = acc + jnp.dot(tap.astype(jnp.bfloat16), w_ref[k],
                            preferred_element_type=jnp.float32)
    return acc


# ---------------------------------------------------------------------------
# Fused ResBlock kernel (one batch element per grid step)
# ---------------------------------------------------------------------------
def _resblock_kernel(*refs, H, W, Cin, Cout, groups, eps, use_shortcut):
    if use_shortcut:
        (x_ref, g1_ref, b1_ref, g2_ref, b2_ref, w1_ref, w2_ref, wsc_ref,
         gm1_ref, gm2_ref, o_ref) = refs
    else:
        (x_ref, g1_ref, b1_ref, g2_ref, b2_ref, w1_ref, w2_ref,
         gm1_ref, gm2_ref, o_ref) = refs
        wsc_ref = None

    xf = x_ref[0].astype(jnp.float32)                  # (H*W, Cin) f32
    masks = _tap_masks(H, W)                           # shared by both convs

    # norm1 + swish (f32 stats) -> conv1
    h1 = _gn_swish(xf, g1_ref[...], b1_ref[...], gm1_ref[...],
                   float(H * W * (Cin // groups)), eps)
    c1 = _conv3x3(h1, w1_ref, masks, H, W, Cout)       # (H*W, Cout) f32

    # norm2 + swish (f32 stats on the f32 accumulator) -> conv2
    h2 = _gn_swish(c1, g2_ref[...], b2_ref[...], gm2_ref[...],
                   float(H * W * (Cout // groups)), eps)
    c2 = _conv3x3(h2, w2_ref, masks, H, W, Cout)       # (H*W, Cout) f32

    # residual path (1x1 nin_shortcut iff Cin != Cout); add stays in f32
    if use_shortcut:
        res = jnp.dot(xf.astype(jnp.bfloat16), wsc_ref[...],
                      preferred_element_type=jnp.float32)
    else:
        res = xf

    o_ref[0] = (c2 + res).astype(o_ref.dtype)


# ---------------------------------------------------------------------------
# Wrappers (parameter plumbing, BlockSpecs, VMEM budget, cost estimate)
# ---------------------------------------------------------------------------
def resblock_forward_nhwc(x_nhwc, params, *, groups=32, eps=1e-6, io_dtype=None):
    """Fused ResBlock forward on an NHWC input (params hold HWIO conv weights)."""
    N, H, W, Cin = x_nhwc.shape
    Cout = params["w1"].shape[-1]
    if (Cin % groups) or (Cout % groups):
        raise ValueError(f"GroupNorm({groups}) requires channels % {groups} == 0, "
                         f"got Cin={Cin}, Cout={Cout}")
    use_shortcut = Cin != Cout
    HW = H * W

    in_dtype = jnp.dtype(io_dtype) if io_dtype is not None else x_nhwc.dtype
    out_dtype = in_dtype
    x_flat = x_nhwc.astype(in_dtype).reshape(N, HW, Cin)

    def gmask(C):
        cpg = C // groups
        return (jnp.arange(C)[:, None] // cpg
                == jnp.arange(groups)[None, :]).astype(jnp.float32)

    g1 = params["gamma1"].reshape(1, Cin).astype(jnp.float32)
    b1 = params["beta1"].reshape(1, Cin).astype(jnp.float32)
    g2 = params["gamma2"].reshape(1, Cout).astype(jnp.float32)
    b2 = params["beta2"].reshape(1, Cout).astype(jnp.float32)
    # HWIO (3,3,C,Cout) -> (9, C, Cout), kh-major / kw-minor, bf16 for the MXU.
    w1 = params["w1"].reshape(9, Cin, Cout).astype(jnp.bfloat16)
    w2 = params["w2"].reshape(9, Cout, Cout).astype(jnp.bfloat16)
    gm1, gm2 = gmask(Cin), gmask(Cout)

    param_args = [g1, b1, g2, b2, w1, w2]
    if use_shortcut:                                   # only DMA wsc if used
        param_args.append(params["wsc"].astype(jnp.bfloat16))
    param_args += [gm1, gm2]

    kernel = functools.partial(
        _resblock_kernel, H=H, W=W, Cin=Cin, Cout=Cout,
        groups=groups, eps=eps, use_shortcut=use_shortcut)

    # --- exact VMEM budget: x/out blocks (double-buffered) + params + the main
    #     in-kernel f32 temporaries (h1, c1, h2, c2, taps, acc) + headroom.
    ibytes = jnp.dtype(in_dtype).itemsize
    obytes = jnp.dtype(out_dtype).itemsize
    w_bytes = sum(int(a.size) * a.dtype.itemsize for a in param_args)
    tmp_bytes = HW * (2 * Cin + 4 * Cout + 2 * max(Cin, Cout)) * 4
    est = (2 * HW * Cin * ibytes + 2 * HW * Cout * obytes
           + 2 * w_bytes + tmp_bytes)
    phys = 128 << 20
    try:
        phys = int(pltpu.get_tpu_info().vmem_capacity_bytes)
    except Exception:
        pass
    if est > int(0.85 * phys):
        # TODO(synk): spatial row tiling + two-phase GroupNorm for big maps.
        raise ValueError(f"ResBlock working set ~{est >> 20} MiB exceeds usable "
                         f"VMEM ({phys >> 20} MiB); spatial tiling not implemented")
    vmem_limit = int(min(max(int(1.5 * est) + (4 << 20), 32 << 20),
                         int(0.85 * phys)))

    flops_per_img = (2 * HW * 9 * Cin * Cout + 2 * HW * 9 * Cout * Cout
                     + (2 * HW * Cin * Cout if use_shortcut else 0)
                     + 12 * HW * (Cin + Cout))
    cost = pl.CostEstimate(
        flops=int(N * flops_per_img),
        transcendentals=int(2 * N * HW * (Cin + Cout)),
        bytes_accessed=int(N * HW * Cin * ibytes + N * HW * Cout * obytes
                           + w_bytes))

    out_shape = jax.ShapeDtypeStruct((N, HW, Cout), out_dtype)

    def build(single_buffer_params):
        def const_spec(shape):
            rank = len(shape)

            def idx(n):
                return (0,) * rank

            if single_buffer_params and hasattr(pl, "Buffered"):
                try:   # constant index_map -> one VMEM buffer is enough
                    return pl.BlockSpec(shape, idx, pipeline_mode=pl.Buffered(1))
                except TypeError:
                    pass
            return pl.BlockSpec(shape, idx)

        in_specs = [pl.BlockSpec((1, HW, Cin), lambda n: (n, 0, 0))]
        in_specs += [const_spec(tuple(a.shape)) for a in param_args]

        return pl.pallas_call(
            kernel,
            out_shape=out_shape,
            grid_spec=pltpu.PrefetchScalarGridSpec(
                num_scalar_prefetch=0,
                grid=(N,),
                in_specs=in_specs,
                out_specs=pl.BlockSpec((1, HW, Cout), lambda n: (n, 0, 0)),
            ),
            compiler_params=pltpu.CompilerParams(
                dimension_semantics=("parallel",),
                vmem_limit_bytes=vmem_limit),
            cost_estimate=cost,
        )

    args = [x_flat] + param_args
    try:
        out = jax.block_until_ready(build(True)(*args))
    except Exception:
        # pl.Buffered(1) not supported by this JAX version -> default buffering.
        out = build(False)(*args)

    return out.reshape(N, H, W, Cout)


def resblock_forward(x_nchw, params, *, groups=32, eps=1e-6, io_dtype=None):
    """NCHW entry point matching the PyTorch module.

    NOTE: if the surrounding model is NHWC, call resblock_forward_nhwc directly
    and hoist these two HBM-bound transposes out of the per-block path."""
    x = jnp.transpose(x_nchw, (0, 2, 3, 1))            # NCHW -> NHWC
    out = resblock_forward_nhwc(x, params, groups=groups, eps=eps,
                                io_dtype=io_dtype)
    return jnp.transpose(out, (0, 3, 1, 2))            # NHWC -> NCHW


# ---------------------------------------------------------------------------
# Pure-JAX reference (f32, for correctness check only)
# ---------------------------------------------------------------------------
def _gn_ref(x_nhwc, gamma, beta, groups, eps):
    N, H, W, C = x_nhwc.shape
    xg = x_nhwc.reshape(N, H, W, groups, C // groups)
    mean = xg.mean(axis=(1, 2, 4), keepdims=True)
    var = ((xg - mean) ** 2).mean(axis=(1, 2, 4), keepdims=True)
    xn = ((xg - mean) / jnp.sqrt(var + eps)).reshape(N, H, W, C)
    return xn * gamma.reshape(1, 1, 1, C) + beta.reshape(1, 1, 1, C)


def resblock_ref(x_nchw, params, *, groups=32, eps=1e-6):
    Cin = x_nchw.shape[1]
    Cout = params["w1"].shape[-1]
    x = jnp.transpose(x_nchw, (0, 2, 3, 1)).astype(jnp.float32)
    dn = ("NHWC", "HWIO", "NHWC")

    def swish(t):
        return t * jax.nn.sigmoid(t)

    h = swish(_gn_ref(x, params["gamma1"], params["beta1"], groups, eps))
    h = lax.conv_general_dilated(h, params["w1"], (1, 1), "SAME",
                                 dimension_numbers=dn)
    h = swish(_gn_ref(h, params["gamma2"], params["beta2"], groups, eps))
    h = lax.conv_general_dilated(h, params["w2"], (1, 1), "SAME",
                                 dimension_numbers=dn)
    if Cin != Cout:
        res = jnp.einsum("nhwc,cf->nhwf", x, params["wsc"])
    else:
        res = x
    return jnp.transpose(h + res, (0, 3, 1, 2))


# ---------------------------------------------------------------------------
if __name__ == "__main__":
    # GroupNorm(32, C) requires C % 32 == 0 -> smallest sensible sizes:
    N, Cin, Cout, H, W = 2, 32, 64, 16, 16
    key = jax.random.PRNGKey(0)
    kx, k1, k2, k3, kg1, kb1, kg2, kb2 = jax.random.split(key, 8)

    x = jax.random.normal(kx, (N, Cin, H, W), jnp.float32)

    params = {
        "gamma1": 1.0 + 0.1 * jax.random.normal(kg1, (Cin,), jnp.float32),
        "beta1":  0.1 * jax.random.normal(kb1, (Cin,), jnp.float32),
        "gamma2": 1.0 + 0.1 * jax.random.normal(kg2, (Cout,), jnp.float32),
        "beta2":  0.1 * jax.random.normal(kb2, (Cout,), jnp.float32),
        # HWIO conv weights, scaled ~1/sqrt(fan_in)
        "w1": jax.random.normal(k1, (3, 3, Cin, Cout), jnp.float32)
              / jnp.sqrt(9.0 * Cin),
        "w2": jax.random.normal(k2, (3, 3, Cout, Cout), jnp.float32)
              / jnp.sqrt(9.0 * Cout),
        "wsc": jax.random.normal(k3, (Cin, Cout), jnp.float32)
               / jnp.sqrt(1.0 * Cin),
    }

    out = jax.block_until_ready(resblock_forward(x, params))
    ref = jax.block_until_ready(resblock_ref(x, params))

    assert out.shape == (N, Cout, H, W), out.shape
    # bf16 matmul operands -> compare with a scaled tolerance against the f32 ref
    err = jnp.max(jnp.abs(out - ref) / (jnp.abs(ref) + 1.0))
    assert bool(jnp.isfinite(err)) and float(err) < 5e-2, float(err)

    print("KERNEL_OK")
</pallas_src>

<mosaic_0001>
module attributes {stable_mosaic.version = 11 : i64} {
  func.func @_resblock_kernel(%arg0: i32, %arg1: memref<1x256x32xf32, #tpu.memory_space<vmem>>, %arg2: memref<1x32xf32, #tpu.memory_space<vmem>>, %arg3: memref<1x32xf32, #tpu.memory_space<vmem>>, %arg4: memref<1x64xf32, #tpu.memory_space<vmem>>, %arg5: memref<1x64xf32, #tpu.memory_space<vmem>>, %arg6: memref<9x32x64xbf16, #tpu.memory_space<vmem>>, %arg7: memref<9x64x64xbf16, #tpu.memory_space<vmem>>, %arg8: memref<32x64xbf16, #tpu.memory_space<vmem>>, %arg9: memref<32x32xf32, #tpu.memory_space<vmem>>, %arg10: memref<64x32xf32, #tpu.memory_space<vmem>>, %arg11: memref<1x256x64xf32, #tpu.memory_space<vmem>>) attributes {dimension_semantics = [#tpu.dimension_semantics<parallel>], iteration_bounds = array<i64: 2>, scalar_prefetch = 0 : i64, scratch_operands = 0 : i64, tpu.core_type = #tpu.core_type<tc>, window_params = [{transform_indices = @transform_0, window_bounds = array<i64: 1, 256, 32>}, {pipeline_mode = #tpu.pipeline_mode<synchronous>, transform_indices = @transform_1, window_bounds = array<i64: 1, 32>}, {pipeline_mode = #tpu.pipeline_mode<synchronous>, transform_indices = @transform_2, window_bounds = array<i64: 1, 32>}, {pipeline_mode = #tpu.pipeline_mode<synchronous>, transform_indices = @transform_3, window_bounds = array<i64: 1, 64>}, {pipeline_mode = #tpu.pipeline_mode<synchronous>, transform_indices = @transform_4, window_bounds = array<i64: 1, 64>}, {pipeline_mode = #tpu.pipeline_mode<synchronous>, transform_indices = @transform_5, window_bounds = array<i64: 9, 32, 64>}, {pipeline_mode = #tpu.pipeline_mode<synchronous>, transform_indices = @transform_6, window_bounds = array<i64: 9, 64, 64>}, {pipeline_mode = #tpu.pipeline_mode<synchronous>, transform_indices = @transform_7, window_bounds = array<i64: 32, 64>}, {pipeline_mode = #tpu.pipeline_mode<synchronous>, transform_indices = @transform_8, window_bounds = array<i64: 32, 32>}, {pipeline_mode = #tpu.pipeline_mode<synchronous>, transform_indices = @transform_9, window_bounds = array<i64: 64, 32>}, {transform_indices = @transform_10, window_bounds = array<i64: 1, 256, 64>}]} {
    %c0 = arith.constant 0 : index
    %c0_0 = arith.constant 0 : index
    %c0_1 = arith.constant 0 : index
    %0 = vector.load %arg1[%c0, %c0_0, %c0_1] : memref<1x256x32xf32, #tpu.memory_space<vmem>>, vector<1x256x32xf32>
    %1 = vector.shape_cast %0 : vector<1x256x32xf32> to vector<256x32xf32>
    %2 = tpu.iota {dimensions = array<i32: 0>} : vector<256x1xi32>
    %3 = tpu.iota {dimensions = array<i32: 1>} : vector<16x16x1xi32>
    %4 = vector.shape_cast %3 : vector<16x16x1xi32> to vector<256x1xi32>
    %c16_i32 = arith.constant 16 : i32
    %5 = vector.broadcast %c16_i32 : i32 to vector<256x1xi32>
    %6 = arith.cmpi sge, %2, %5 : vector<256x1xi32>
    %c240_i32 = arith.constant 240 : i32
    %7 = vector.broadcast %c240_i32 : i32 to vector<256x1xi32>
    %8 = arith.cmpi slt, %2, %7 : vector<256x1xi32>
    %c1_i32 = arith.constant 1 : i32
    %9 = vector.broadcast %c1_i32 : i32 to vector<256x1xi32>
    %10 = arith.cmpi sge, %4, %9 : vector<256x1xi32>
    %c14_i32 = arith.constant 14 : i32
    %11 = vector.broadcast %c14_i32 : i32 to vector<256x1xi32>
    %12 = arith.cmpi sle, %4, %11 : vector<256x1xi32>
    %13 = arith.andi %6, %10 : vector<256x1xi1>
    %14 = arith.andi %6, %12 : vector<256x1xi1>
    %15 = arith.andi %8, %10 : vector<256x1xi1>
    %16 = arith.andi %8, %12 : vector<256x1xi1>
    %c0_2 = arith.constant 0 : index
    %c0_3 = arith.constant 0 : index
    %17 = vector.load %arg2[%c0_2, %c0_3] : memref<1x32xf32, #tpu.memory_space<vmem>>, vector<1x32xf32>
    %c0_4 = arith.constant 0 : index
    %c0_5 = arith.constant 0 : index
    %18 = vector.load %arg3[%c0_4, %c0_5] : memref<1x32xf32, #tpu.memory_space<vmem>>, vector<1x32xf32>
    %c0_6 = arith.constant 0 : index
    %c0_7 = arith.constant 0 : index
    %19 = vector.load %arg9[%c0_6, %c0_7] : memref<32x32xf32, #tpu.memory_space<vmem>>, vector<32x32xf32>
    %cst = arith.constant dense<0.000000e+00> : vector<32xf32>
    %20 = vector.multi_reduction <add>, %1, %cst [0] : vector<256x32xf32> to vector<32xf32>
    %21 = vector.shape_cast %20 : vector<32xf32> to vector<1x32xf32>
    %cst_8 = arith.constant dense<0.000000e+00> : vector<1x32xf32>
    %22 = tpu.matmul %21, %19, %cst_8 {dimension_numbers = #tpu.dot_dimension_numbers<[1], [0], [0], [1], [0, 0, 1, 1], [], []>} : vector<1x32xf32>, vector<32x32xf32>, vector<1x32xf32> -> vector<1x32xf32>
    %cst_9 = arith.constant 2.560000e+02 : f32
    %23 = vector.broadcast %cst_9 : f32 to vector<1x32xf32>
    %24 = arith.divf %22, %23 : vector<1x32xf32>
    %cst_10 = arith.constant dense<0.000000e+00> : vector<1x32xf32>
    %25 = tpu.matmul %24, %19, %cst_10 {dimension_numbers = #tpu.dot_dimension_numbers<[1], [1], [0], [0], [0, 0, 1, 0], [], []>} : vector<1x32xf32>, vector<32x32xf32>, vector<1x32xf32> -> vector<1x32xf32>
    %26 = vector.broadcast %25 : vector<1x32xf32> to vector<256x32xf32>
    %27 = arith.subf %1, %26 : vector<256x32xf32>
    %28 = arith.mulf %27, %27 : vector<256x32xf32>
    %cst_11 = arith.constant dense<0.000000e+00> : vector<32xf32>
    %29 = vector.multi_reduction <add>, %28, %cst_11 [0] : vector<256x32xf32> to vector<32xf32>
    %30 = vector.shape_cast %29 : vector<32xf32> to vector<1x32xf32>
    %cst_12 = arith.constant dense<0.000000e+00> : vector<1x32xf32>
    %31 = tpu.matmul %30, %19, %cst_12 {dimension_numbers = #tpu.dot_dimension_numbers<[1], [0], [0], [1], [0, 0, 1, 1], [], []>} : vector<1x32xf32>, vector<32x32xf32>, vector<1x32xf32> -> vector<1x32xf32>
    %cst_13 = arith.constant 2.560000e+02 : f32
    %32 = vector.broadcast %cst_13 : f32 to vector<1x32xf32>
    %33 = arith.divf %31, %32 : vector<1x32xf32>
    %cst_14 = arith.constant 9.99999997E-7 : f32
    %34 = vector.broadcast %cst_14 : f32 to vector<1x32xf32>
    %35 = arith.addf %33, %34 : vector<1x32xf32>
    %36 = math.rsqrt %35 : vector<1x32xf32>
    %cst_15 = arith.constant dense<0.000000e+00> : vector<1x32xf32>
    %37 = tpu.matmul %36, %19, %cst_15 {dimension_numbers = #tpu.dot_dimension_numbers<[1], [1], [0], [0], [0, 0, 1, 0], [], []>} : vector<1x32xf32>, vector<32x32xf32>, vector<1x32xf32> -> vector<1x32xf32>
    %38 = vector.broadcast %37 : vector<1x32xf32> to vector<256x32xf32>
    %39 = arith.mulf %27, %38 : vector<256x32xf32>
    %40 = vector.broadcast %17 : vector<1x32xf32> to vector<256x32xf32>
    %41 = arith.mulf %39, %40 : vector<256x32xf32>
    %42 = vector.broadcast %18 : vector<1x32xf32> to vector<256x32xf32>
    %43 = arith.addf %41, %42 : vector<256x32xf32>
    %44 = arith.negf %43 : vector<256x32xf32>
    %45 = math.exp %44 : vector<256x32xf32>
    %cst_16 = arith.constant 1.000000e+00 : f32
    %46 = vector.broadcast %cst_16 : f32 to vector<256x32xf32>
    %47 = arith.addf %46, %45 : vector<256x32xf32>
    %48 = arith.divf %46, %47 : vector<256x32xf32>
    %49 = arith.mulf %43, %48 : vector<256x32xf32>
    %cst_17 = arith.constant 0.000000e+00 : f32
    %50 = vector.broadcast %cst_17 : f32 to vector<256x64xf32>
    %c17_i32 = arith.constant 17 : i32
    %51 = tpu.dynamic_rotate %49 by %c17_i32 dim 0 : vector<256x32xf32>, i32 -> vector<256x32xf32>
    %cst_18 = arith.constant 0.000000e+00 : f32
    %52 = vector.shape_cast %13 : vector<256x1xi1> to vector<256x1xi1>
    %53 = vector.broadcast %52 : vector<256x1xi1> to vector<256x32xi1>
    %54 = vector.broadcast %cst_18 : f32 to vector<256x32xf32>
    %55 = arith.select %53, %51, %54 : vector<256x32xi1>, vector<256x32xf32>
    %56 = arith.truncf %55 : vector<256x32xf32> to vector<256x32xbf16>
    %c0_19 = arith.constant 0 : index
    %c0_20 = arith.constant 0 : index
    %c0_21 = arith.constant 0 : index
    %57 = vector.load %arg6[%c0_19, %c0_20, %c0_21] : memref<9x32x64xbf16, #tpu.memory_space<vmem>>, vector<1x32x64xbf16>
    %58 = vector.shape_cast %57 : vector<1x32x64xbf16> to vector<32x64xbf16>
    %cst_22 = arith.constant dense<0.000000e+00> : vector<256x64xf32>
    %59 = tpu.matmul %56, %58, %cst_22 {dimension_numbers = #tpu.dot_dimension_numbers<[1], [0], [0], [1], [0, 0, 1, 1], [], []>} : vector<256x32xbf16>, vector<32x64xbf16>, vector<256x64xf32> -> vector<256x64xf32>
    %60 = arith.addf %50, %59 : vector<256x64xf32>
    %c16_i32_23 = arith.constant 16 : i32
    %61 = tpu.dynamic_rotate %49 by %c16_i32_23 dim 0 : vector<256x32xf32>, i32 -> vector<256x32xf32>
    %cst_24 = arith.constant 0.000000e+00 : f32
    %62 = vector.shape_cast %6 : vector<256x1xi1> to vector<256x1xi1>
    %63 = vector.broadcast %62 : vector<256x1xi1> to vector<256x32xi1>
    %64 = vector.broadcast %cst_24 : f32 to vector<256x32xf32>
    %65 = arith.select %63, %61, %64 : vector<256x32xi1>, vector<256x32xf32>
    %66 = arith.truncf %65 : vector<256x32xf32> to vector<256x32xbf16>
    %c1 = arith.constant 1 : index
    %c0_25 = arith.constant 0 : index
    %c0_26 = arith.constant 0 : index
    %67 = vector.load %arg6[%c1, %c0_25, %c0_26] : memref<9x32x64xbf16, #tpu.memory_space<vmem>>, vector<1x32x64xbf16>
    %68 = vector.shape_cast %67 : vector<1x32x64xbf16> to vector<32x64xbf16>
    %cst_27 = arith.constant dense<0.000000e+00> : vector<256x64xf32>
    %69 = tpu.matmul %66, %68, %cst_27 {dimension_numbers = #tpu.dot_dimension_numbers<[1], [0], [0], [1], [0, 0, 1, 1], [], []>} : vector<256x32xbf16>, vector<32x64xbf16>, vector<256x64xf32> -> vector<256x64xf32>
    %70 = arith.addf %60, %69 : vector<256x64xf32>
    %c15_i32 = arith.constant 15 : i32
    %71 = tpu.dynamic_rotate %49 by %c15_i32 dim 0 : vector<256x32xf32>, i32 -> vector<256x32xf32>
    %cst_28 = arith.constant 0.000000e+00 : f32
    %72 = vector.shape_cast %14 : vector<256x1xi1> to vector<256x1xi1>
    %73 = vector.broadcast %72 : vector<256x1xi1> to vector<256x32xi1>
    %74 = vector.broadcast %cst_28 : f32 to vector<256x32xf32>
    %75 = arith.select %73, %71, %74 : vector<256x32xi1>, vector<256x32xf32>
    %76 = arith.truncf %75 : vector<256x32xf32> to vector<256x32xbf16>
    %c2 = arith.constant 2 : index
    %c0_29 = arith.constant 0 : index
    %c0_30 = arith.constant 0 : index
    %77 = vector.load %arg6[%c2, %c0_29, %c0_30] : memref<9x32x64xbf16, #tpu.memory_space<vmem>>, vector<1x32x64xbf16>
    %78 = vector.shape_cast %77 : vector<1x32x64xbf16> to vector<32x64xbf16>
    %cst_31 = arith.constant dense<0.000000e+00> : vector<256x64xf32>
    %79 = tpu.matmul %76, %78, %cst_31 {dimension_numbers = #tpu.dot_dimension_numbers<[1], [0], [0], [1], [0, 0, 1, 1], [], []>} : vector<256x32xbf16>, vector<32x64xbf16>, vector<256x64xf32> -> vector<256x64xf32>
    %80 = arith.addf %70, %79 : vector<256x64xf32>
    %c1_i32_32 = arith.constant 1 : i32
    %81 = tpu.dynamic_rotate %49 by %c1_i32_32 dim 0 : vector<256x32xf32>, i32 -> vector<256x32xf32>
    %cst_33 = arith.constant 0.000000e+00 : f32
    %82 = vector.shape_cast %10 : vector<256x1xi1> to vector<256x1xi1>
    %83 = vector.broadcast %82 : vector<256x1xi1> to vector<256x32xi1>
    %84 = vector.broadcast %cst_33 : f32 to vector<256x32xf32>
    %85 = arith.select %83, %81, %84 : vector<256x32xi1>, vector<256x32xf32>
    %86 = arith.truncf %85 : vector<256x32xf32> to vector<256x32xbf16>
    %c3 = arith.constant 3 : index
    %c0_34 = arith.constant 0 : index
    %c0_35 = arith.constant 0 : index
    %87 = vector.load %arg6[%c3, %c0_34, %c0_35] : memref<9x32x64xbf16, #tpu.memory_space<vmem>>, vector<1x32x64xbf16>
    %88 = vector.shape_cast %87 : vector<1x32x64xbf16> to vector<32x64xbf16>
    %cst_36 = arith.constant dense<0.000000e+00> : vector<256x64xf32>
    %89 = tpu.matmul %86, %88, %cst_36 {dimension_numbers = #tpu.dot_dimension_numbers<[1], [0], [0], [1], [0, 0, 1, 1], [], []>} : vector<256x32xbf16>, vector<32x64xbf16>, vector<256x64xf32> -> vector<256x64xf32>
    %90 = arith.addf %80, %89 : vector<256x64xf32>
    %91 = arith.truncf %49 : vector<256x32xf32> to vector<256x32xbf16>
    %c4 = arith.constant 4 : index
    %c0_37 = arith.constant 0 : index
    %c0_38 = arith.constant 0 : index
    %92 = vector.load %arg6[%c4, %c0_37, %c0_38] : memref<9x32x64xbf16, #tpu.memory_space<vmem>>, vector<1x32x64xbf16>
    %93 = vector.shape_cast %92 : vector<1x32x64xbf16> to vector<32x64xbf16>
    %cst_39 = arith.constant dense<0.000000e+00> : vector<256x64xf32>
    %94 = tpu.matmul %91, %93, %cst_39 {dimension_numbers = #tpu.dot_dimension_numbers<[1], [0], [0], [1], [0, 0, 1, 1], [], []>} : vector<256x32xbf16>, vector<32x64xbf16>, vector<256x64xf32> -> vector<256x64xf32>
    %95 = arith.addf %90, %94 : vector<256x64xf32>
    %c255_i32 = arith.constant 255 : i32
    %96 = tpu.dynamic_rotate %49 by %c255_i32 dim 0 : vector<256x32xf32>, i32 -> vector<256x32xf32>
    %cst_40 = arith.constant 0.000000e+00 : f32
    %97 = vector.shape_cast %12 : vector<256x1xi1> to vector<256x1xi1>
    %98 = vector.broadcast %97 : vector<256x1xi1> to vector<256x32xi1>
    %99 = vector.broadcast %cst_40 : f32 to vector<256x32xf32>
    %100 = arith.select %98, %96, %99 : vector<256x32xi1>, vector<256x32xf32>
    %101 = arith.truncf %100 : vector<256x32xf32> to vector<256x32xbf16>
    %c5 = arith.constant 5 : index
    %c0_41 = arith.constant 0 : index
    %c0_42 = arith.constant 0 : index
    %102 = vector.load %arg6[%c5, %c0_41, %c0_42] : memref<9x32x64xbf16, #tpu.memory_space<vmem>>, vector<1x32x64xbf16>
    %103 = vector.shape_cast %102 : vector<1x32x64xbf16> to vector<32x64xbf16>
    %cst_43 = arith.constant dense<0.000000e+00> : vector<256x64xf32>
    %104 = tpu.matmul %101, %103, %cst_43 {dimension_numbers = #tpu.dot_dimension_numbers<[1], [0], [0], [1], [0, 0, 1, 1], [], []>} : vector<256x32xbf16>, vector<32x64xbf16>, vector<256x64xf32> -> vector<256x64xf32>
    %105 = arith.addf %95, %104 : vector<256x64xf32>
    %c241_i32 = arith.constant 241 : i32
    %106 = tpu.dynamic_rotate %49 by %c241_i32 dim 0 : vector<256x32xf32>, i32 -> vector<256x32xf32>
    %cst_44 = arith.constant 0.000000e+00 : f32
    %107 = vector.shape_cast %15 : vector<256x1xi1> to vector<256x1xi1>
    %108 = vector.broadcast %107 : vector<256x1xi1> to vector<256x32xi1>
    %109 = vector.broadcast %cst_44 : f32 to vector<256x32xf32>
    %110 = arith.select %108, %106, %109 : vector<256x32xi1>, vector<256x32xf32>
    %111 = arith.truncf %110 : vector<256x32xf32> to vector<256x32xbf16>
    %c6 = arith.constant 6 : index
    %c0_45 = arith.constant 0 : index
    %c0_46 = arith.constant 0 : index
    %112 = vector.load %arg6[%c6, %c0_45, %c0_46] : memref<9x32x64xbf16, #tpu.memory_space<vmem>>, vector<1x32x64xbf16>
    %113 = vector.shape_cast %112 : vector<1x32x64xbf16> to vector<32x64xbf16>
    %cst_47 = arith.constant dense<0.000000e+00> : vector<256x64xf32>
    %114 = tpu.matmul %111, %113, %cst_47 {dimension_numbers = #tpu.dot_dimension_numbers<[1], [0], [0], [1], [0, 0, 1, 1], [], []>} : vector<256x32xbf16>, vector<32x64xbf16>, vector<256x64xf32> -> vector<256x64xf32>
    %115 = arith.addf %105, %114 : vector<256x64xf32>
    %c240_i32_48 = arith.constant 240 : i32
    %116 = tpu.dynamic_rotate %49 by %c240_i32_48 dim 0 : vector<256x32xf32>, i32 -> vector<256x32xf32>
    %cst_49 = arith.constant 0.000000e+00 : f32
    %117 = vector.shape_cast %8 : vector<256x1xi1> to vector<256x1xi1>
    %118 = vector.broadcast %117 : vector<256x1xi1> to vector<256x32xi1>
    %119 = vector.broadcast %cst_49 : f32 to vector<256x32xf32>
    %120 = arith.select %118, %116, %119 : vector<256x32xi1>, vector<256x32xf32>
    %121 = arith.truncf %120 : vector<256x32xf32> to vector<256x32xbf16>
    %c7 = arith.constant 7 : index
    %c0_50 = arith.constant 0 : index
    %c0_51 = arith.constant 0 : index
    %122 = vector.load %arg6[%c7, %c0_50, %c0_51] : memref<9x32x64xbf16, #tpu.memory_space<vmem>>, vector<1x32x64xbf16>
    %123 = vector.shape_cast %122 : vector<1x32x64xbf16> to vector<32x64xbf16>
    %cst_52 = arith.constant dense<0.000000e+00> : vector<256x64xf32>
    %124 = tpu.matmul %121, %123, %cst_52 {dimension_numbers = #tpu.dot_dimension_numbers<[1], [0], [0], [1], [0, 0, 1, 1], [], []>} : vector<256x32xbf16>, vector<32x64xbf16>, vector<256x64xf32> -> vector<256x64xf32>
    %125 = arith.addf %115, %124 : vector<256x64xf32>
    %c239_i32 = arith.constant 239 : i32
    %126 = tpu.dynamic_rotate %49 by %c239_i32 dim 0 : vector<256x32xf32>, i32 -> vector<256x32xf32>
    %cst_53 = arith.constant 0.000000e+00 : f32
    %127 = vector.shape_cast %16 : vector<256x1xi1> to vector<256x1xi1>
    %128 = vector.broadcast %127 : vector<256x1xi1> to vector<256x32xi1>
    %129 = vector.broadcast %cst_53 : f32 to vector<256x32xf32>
    %130 = arith.select %128, %126, %129 : vector<256x32xi1>, vector<256x32xf32>
    %131 = arith.truncf %130 : vector<256x32xf32> to vector<256x32xbf16>
    %c8 = arith.constant 8 : index
    %c0_54 = arith.constant 0 : index
    %c0_55 = arith.constant 0 : index
    %132 = vector.load %arg6[%c8, %c0_54, %c0_55] : memref<9x32x64xbf16, #tpu.memory_space<vmem>>, vector<1x32x64xbf16>
    %133 = vector.shape_cast %132 : vector<1x32x64xbf16> to vector<32x64xbf16>
    %cst_56 = arith.constant dense<0.000000e+00> : vector<256x64xf32>
    %134 = tpu.matmul %131, %133, %cst_56 {dimension_numbers = #tpu.dot_dimension_numbers<[1], [0], [0], [1], [0, 0, 1, 1], [], []>} : vector<256x32xbf16>, vector<32x64xbf16>, vector<256x64xf32> -> vector<256x64xf32>
    %135 = arith.addf %125, %134 : vector<256x64xf32>
    %c0_57 = arith.constant 0 : index
    %c0_58 = arith.constant 0 : index
    %136 = vector.load %arg4[%c0_57, %c0_58] : memref<1x64xf32, #tpu.memory_space<vmem>>, vector<1x64xf32>
    %c0_59 = arith.constant 0 : index
    %c0_60 = arith.constant 0 : index
    %137 = vector.load %arg5[%c0_59, %c0_60] : memref<1x64xf32, #tpu.memory_space<vmem>>, vector<1x64xf32>
    %c0_61 = arith.constant 0 : index
    %c0_62 = arith.constant 0 : index
    %138 = vector.load %arg10[%c0_61, %c0_62] : memref<64x32xf32, #tpu.memory_space<vmem>>, vector<64x32xf32>
    %cst_63 = arith.constant dense<0.000000e+00> : vector<64xf32>
    %139 = vector.multi_reduction <add>, %135, %cst_63 [0] : vector<256x64xf32> to vector<64xf32>
    %140 = vector.shape_cast %139 : vector<64xf32> to vector<1x64xf32>
    %cst_64 = arith.constant dense<0.000000e+00> : vector<1x32xf32>
    %141 = tpu.matmul %140, %138, %cst_64 {dimension_numbers = #tpu.dot_dimension_numbers<[1], [0], [0], [1], [0, 0, 1, 1], [], []>} : vector<1x64xf32>, vector<64x32xf32>, vector<1x32xf32> -> vector<1x32xf32>
    %cst_65 = arith.constant 5.120000e+02 : f32
    %142 = vector.broadcast %cst_65 : f32 to vector<1x32xf32>
    %143 = arith.divf %141, %142 : vector<1x32xf32>
    %cst_66 = arith.constant dense<0.000000e+00> : vector<1x64xf32>
    %144 = tpu.matmul %143, %138, %cst_66 {dimension_numbers = #tpu.dot_dimension_numbers<[1], [1], [0], [0], [0, 0, 1, 0], [], []>} : vector<1x32xf32>, vector<64x32xf32>, vector<1x64xf32> -> vector<1x64xf32>
    %145 = vector.broadcast %144 : vector<1x64xf32> to vector<256x64xf32>
    %146 = arith.subf %135, %145 : vector<256x64xf32>
    %147 = arith.mulf %146, %146 : vector<256x64xf32>
    %cst_67 = arith.constant dense<0.000000e+00> : vector<64xf32>
    %148 = vector.multi_reduction <add>, %147, %cst_67 [0] : vector<256x64xf32> to vector<64xf32>
    %149 = vector.shape_cast %148 : vector<64xf32> to vector<1x64xf32>
    %cst_68 = arith.constant dense<0.000000e+00> : vector<1x32xf32>
    %150 = tpu.matmul %149, %138, %cst_68 {dimension_numbers = #tpu.dot_dimension_numbers<[1], [0], [0], [1], [0, 0, 1, 1], [], []>} : vector<1x64xf32>, vector<64x32xf32>, vector<1x32xf32> -> vector<1x32xf32>
    %cst_69 = arith.constant 5.120000e+02 : f32
    %151 = vector.broadcast %cst_69 : f32 to vector<1x32xf32>
    %152 = arith.divf %150, %151 : vector<1x32xf32>
    %cst_70 = arith.constant 9.99999997E-7 : f32
    %153 = vector.broadcast %cst_70 : f32 to vector<1x32xf32>
    %154 = arith.addf %152, %153 : vector<1x32xf32>
    %155 = math.rsqrt %154 : vector<1x32xf32>
    %cst_71 = arith.constant dense<0.000000e+00> : vector<1x64xf32>
    %156 = tpu.matmul %155, %138, %cst_71 {dimension_numbers = #tpu.dot_dimension_numbers<[1], [1], [0], [0], [0, 0, 1, 0], [], []>} : vector<1x32xf32>, vector<64x32xf32>, vector<1x64xf32> -> vector<1x64xf32>
    %157 = vector.broadcast %156 : vector<1x64xf32> to vector<256x64xf32>
    %158 = arith.mulf %146, %157 : vector<256x64xf32>
    %159 = vector.broadcast %136 : vector<1x64xf32> to vector<256x64xf32>
    %160 = arith.mulf %158, %159 : vector<256x64xf32>
    %161 = vector.broadcast %137 : vector<1x64xf32> to vector<256x64xf32>
    %162 = arith.addf %160, %161 : vector<256x64xf32>
    %163 = arith.negf %162 : vector<256x64xf32>
    %164 = math.exp %163 : vector<256x64xf32>
    %cst_72 = arith.constant 1.000000e+00 : f32
    %165 = vector.broadcast %cst_72 : f32 to vector<256x64xf32>
    %166 = arith.addf %165, %164 : vector<256x64xf32>
    %167 = arith.divf %165, %166 : vector<256x64xf32>
    %168 = arith.mulf %162, %167 : vector<256x64xf32>
    %cst_73 = arith.constant 0.000000e+00 : f32
    %169 = vector.broadcast %cst_73 : f32 to vector<256x64xf32>
    %c17_i32_74 = arith.constant 17 : i32
    %170 = tpu.dynamic_rotate %168 by %c17_i32_74 dim 0 : vector<256x64xf32>, i32 -> vector<256x64xf32>
    %cst_75 = arith.constant 0.000000e+00 : f32
    %171 = vector.shape_cast %13 : vector<256x1xi1> to vector<256x1xi1>
    %172 = vector.broadcast %171 : vector<256x1xi1> to vector<256x64xi1>
    %173 = vector.broadcast %cst_75 : f32 to vector<256x64xf32>
    %174 = arith.select %172, %170, %173 : vector<256x64xi1>, vector<256x64xf32>
    %175 = arith.truncf %174 : vector<256x64xf32> to vector<256x64xbf16>
    %c0_76 = arith.constant 0 : index
    %c0_77 = arith.constant 0 : index
    %c0_78 = arith.constant 0 : index
    %176 = vector.load %arg7[%c0_76, %c0_77, %c0_78] : memref<9x64x64xbf16, #tpu.memory_space<vmem>>, vector<1x64x64xbf16>
    %177 = vector.shape_cast %176 : vector<1x64x64xbf16> to vector<64x64xbf16>
    %cst_79 = arith.constant dense<0.000000e+00> : vector<256x64xf32>
    %178 = tpu.matmul %175, %177, %cst_79 {dimension_numbers = #tpu.dot_dimension_numbers<[1], [0], [0], [1], [0, 0, 1, 1], [], []>} : vector<256x64xbf16>, vector<64x64xbf16>, vector<256x64xf32> -> vector<256x64xf32>
    %179 = arith.addf %169, %178 : vector<256x64xf32>
    %c16_i32_80 = arith.constant 16 : i32
    %180 = tpu.dynamic_rotate %168 by %c16_i32_80 dim 0 : vector<256x64xf32>, i32 -> vector<256x64xf32>
    %cst_81 = arith.constant 0.000000e+00 : f32
    %181 = vector.shape_cast %6 : vector<256x1xi1> to vector<256x1xi1>
    %182 = vector.broadcast %181 : vector<256x1xi1> to vector<256x64xi1>
    %183 = vector.broadcast %cst_81 : f32 to vector<256x64xf32>
    %184 = arith.select %182, %180, %183 : vector<256x64xi1>, vector<256x64xf32>
    %185 = arith.truncf %184 : vector<256x64xf32> to vector<256x64xbf16>
    %c1_82 = arith.constant 1 : index
    %c0_83 = arith.constant 0 : index
    %c0_84 = arith.constant 0 : index
    %186 = vector.load %arg7[%c1_82, %c0_83, %c0_84] : memref<9x64x64xbf16, #tpu.memory_space<vmem>>, vector<1x64x64xbf16>
    %187 = vector.shape_cast %186 : vector<1x64x64xbf16> to vector<64x64xbf16>
    %cst_85 = arith.constant dense<0.000000e+00> : vector<256x64xf32>
    %188 = tpu.matmul %185, %187, %cst_85 {dimension_numbers = #tpu.dot_dimension_numbers<[1], [0], [0], [1], [0, 0, 1, 1], [], []>} : vector<256x64xbf16>, vector<64x64xbf16>, vector<256x64xf32> -> vector<256x64xf32>
    %189 = arith.addf %179, %188 : vector<256x64xf32>
    %c15_i32_86 = arith.constant 15 : i32
    %190 = tpu.dynamic_rotate %168 by %c15_i32_86 dim 0 : vector<256x64xf32>, i32 -> vector<256x64xf32>
    %cst_87 = arith.constant 0.000000e+00 : f32
    %191 = vector.shape_cast %14 : vector<256x1xi1> to vector<256x1xi1>
    %192 = vector.broadcast %191 : vector<256x1xi1> to vector<256x64xi1>
    %193 = vector.broadcast %cst_87 : f32 to vector<256x64xf32>
    %194 = arith.select %192, %190, %193 : vector<256x64xi1>, vector<256x64xf32>
    %195 = arith.truncf %194 : vector<256x64xf32> to vector<256x64xbf16>
    %c2_88 = arith.constant 2 : index
    %c0_89 = arith.constant 0 : index
    %c0_90 = arith.constant 0 : index
    %196 = vector.load %arg7[%c2_88, %c0_89, %c0_90] : memref<9x64x64xbf16, #tpu.memory_space<vmem>>, vector<1x64x64xbf16>
    %197 = vector.shape_cast %196 : vector<1x64x64xbf16> to vector<64x64xbf16>
    %cst_91 = arith.constant dense<0.000000e+00> : vector<256x64xf32>
    %198 = tpu.matmul %195, %197, %cst_91 {dimension_numbers = #tpu.dot_dimension_numbers<[1], [0], [0], [1], [0, 0, 1, 1], [], []>} : vector<256x64xbf16>, vector<64x64xbf16>, vector<256x64xf32> -> vector<256x64xf32>
    %199 = arith.addf %189, %198 : vector<256x64xf32>
    %c1_i32_92 = arith.constant 1 : i32
    %200 = tpu.dynamic_rotate %168 by %c1_i32_92 dim 0 : vector<256x64xf32>, i32 -> vector<256x64xf32>
    %cst_93 = arith.constant 0.000000e+00 : f32
    %201 = vector.shape_cast %10 : vector<256x1xi1> to vector<256x1xi1>
    %202 = vector.broadcast %201 : vector<256x1xi1> to vector<256x64xi1>
    %203 = vector.broadcast %cst_93 : f32 to vector<256x64xf32>
    %204 = arith.select %202, %200, %203 : vector<256x64xi1>, vector<256x64xf32>
    %205 = arith.truncf %204 : vector<256x64xf32> to vector<256x64xbf16>
    %c3_94 = arith.constant 3 : index
    %c0_95 = arith.constant 0 : index
    %c0_96 = arith.constant 0 : index
    %206 = vector.load %arg7[%c3_94, %c0_95, %c0_96] : memref<9x64x64xbf16, #tpu.memory_space<vmem>>, vector<1x64x64xbf16>
    %207 = vector.shape_cast %206 : vector<1x64x64xbf16> to vector<64x64xbf16>
    %cst_97 = arith.constant dense<0.000000e+00> : vector<256x64xf32>
    %208 = tpu.matmul %205, %207, %cst_97 {dimension_numbers = #tpu.dot_dimension_numbers<[1], [0], [0], [1], [0, 0, 1, 1], [], []>} : vector<256x64xbf16>, vector<64x64xbf16>, vector<256x64xf32> -> vector<256x64xf32>
    %209 = arith.addf %199, %208 : vector<256x64xf32>
    %210 = arith.truncf %168 : vector<256x64xf32> to vector<256x64xbf16>
    %c4_98 = arith.constant 4 : index
    %c0_99 = arith.constant 0 : index
    %c0_100 = arith.constant 0 : index
    %211 = vector.load %arg7[%c4_98, %c0_99, %c0_100] : memref<9x64x64xbf16, #tpu.memory_space<vmem>>, vector<1x64x64xbf16>
    %212 = vector.shape_cast %211 : vector<1x64x64xbf16> to vector<64x64xbf16>
    %cst_101 = arith.constant dense<0.000000e+00> : vector<256x64xf32>
    %213 = tpu.matmul %210, %212, %cst_101 {dimension_numbers = #tpu.dot_dimension_numbers<[1], [0], [0], [1], [0, 0, 1, 1], [], []>} : vector<256x64xbf16>, vector<64x64xbf16>, vector<256x64xf32> -> vector<256x64xf32>
    %214 = arith.addf %209, %213 : vector<256x64xf32>
    %c255_i32_102 = arith.constant 255 : i32
    %215 = tpu.dynamic_rotate %168 by %c255_i32_102 dim 0 : vector<256x64xf32>, i32 -> vector<256x64xf32>
    %cst_103 = arith.constant 0.000000e+00 : f32
    %216 = vector.shape_cast %12 : vector<256x1xi1> to vector<256x1xi1>
    %217 = vector.broadcast %216 : vector<256x1xi1> to vector<256x64xi1>
    %218 = vector.broadcast %cst_103 : f32 to vector<256x64xf32>
    %219 = arith.select %217, %215, %218 : vector<256x64xi1>, vector<256x64xf32>
    %220 = arith.truncf %219 : vector<256x64xf32> to vector<256x64xbf16>
    %c5_104 = arith.constant 5 : index
    %c0_105 = arith.constant 0 : index
    %c0_106 = arith.constant 0 : index
    %221 = vector.load %arg7[%c5_104, %c0_105, %c0_106] : memref<9x64x64xbf16, #tpu.memory_space<vmem>>, vector<1x64x64xbf16>
    %222 = vector.shape_cast %221 : vector<1x64x64xbf16> to vector<64x64xbf16>
    %cst_107 = arith.constant dense<0.000000e+00> : vector<256x64xf32>
    %223 = tpu.matmul %220, %222, %cst_107 {dimension_numbers = #tpu.dot_dimension_numbers<[1], [0], [0], [1], [0, 0, 1, 1], [], []>} : vector<256x64xbf16>, vector<64x64xbf16>, vector<256x64xf32> -> vector<256x64xf32>
    %224 = arith.addf %214, %223 : vector<256x64xf32>
    %c241_i32_108 = arith.constant 241 : i32
    %225 = tpu.dynamic_rotate %168 by %c241_i32_108 dim 0 : vector<256x64xf32>, i32 -> vector<256x64xf32>
    %cst_109 = arith.constant 0.000000e+00 : f32
    %226 = vector.shape_cast %15 : vector<256x1xi1> to vector<256x1xi1>
    %227 = vector.broadcast %226 : vector<256x1xi1> to vector<256x64xi1>
    %228 = vector.broadcast %cst_109 : f32 to vector<256x64xf32>
    %229 = arith.select %227, %225, %228 : vector<256x64xi1>, vector<256x64xf32>
    %230 = arith.truncf %229 : vector<256x64xf32> to vector<256x64xbf16>
    %c6_110 = arith.constant 6 : index
    %c0_111 = arith.constant 0 : index
    %c0_112 = arith.constant 0 : index
    %231 = vector.load %arg7[%c6_110, %c0_111, %c0_112] : memref<9x64x64xbf16, #tpu.memory_space<vmem>>, vector<1x64x64xbf16>
    %232 = vector.shape_cast %231 : vector<1x64x64xbf16> to vector<64x64xbf16>
    %cst_113 = arith.constant dense<0.000000e+00> : vector<256x64xf32>
    %233 = tpu.matmul %230, %232, %cst_113 {dimension_numbers = #tpu.dot_dimension_numbers<[1], [0], [0], [1], [0, 0, 1, 1], [], []>} : vector<256x64xbf16>, vector<64x64xbf16>, vector<256x64xf32> -> vector<256x64xf32>
    %234 = arith.addf %224, %233 : vector<256x64xf32>
    %c240_i32_114 = arith.constant 240 : i32
    %235 = tpu.dynamic_rotate %168 by %c240_i32_114 dim 0 : vector<256x64xf32>, i32 -> vector<256x64xf32>
    %cst_115 = arith.constant 0.000000e+00 : f32
    %236 = vector.shape_cast %8 : vector<256x1xi1> to vector<256x1xi1>
    %237 = vector.broadcast %236 : vector<256x1xi1> to vector<256x64xi1>
    %238 = vector.broadcast %cst_115 : f32 to vector<256x64xf32>
    %239 = arith.select %237, %235, %238 : vector<256x64xi1>, vector<256x64xf32>
    %240 = arith.truncf %239 : vector<256x64xf32> to vector<256x64xbf16>
    %c7_116 = arith.constant 7 : index
    %c0_117 = arith.constant 0 : index
    %c0_118 = arith.constant 0 : index
    %241 = vector.load %arg7[%c7_116, %c0_117, %c0_118] : memref<9x64x64xbf16, #tpu.memory_space<vmem>>, vector<1x64x64xbf16>
    %242 = vector.shape_cast %241 : vector<1x64x64xbf16> to vector<64x64xbf16>
    %cst_119 = arith.constant dense<0.000000e+00> : vector<256x64xf32>
    %243 = tpu.matmul %240, %242, %cst_119 {dimension_numbers = #tpu.dot_dimension_numbers<[1], [0], [0], [1], [0, 0, 1, 1], [], []>} : vector<256x64xbf16>, vector<64x64xbf16>, vector<256x64xf32> -> vector<256x64xf32>
    %244 = arith.addf %234, %243 : vector<256x64xf32>
    %c239_i32_120 = arith.constant 239 : i32
    %245 = tpu.dynamic_rotate %168 by %c239_i32_120 dim 0 : vector<256x64xf32>, i32 -> vector<256x64xf32>
    %cst_121 = arith.constant 0.000000e+00 : f32
    %246 = vector.shape_cast %16 : vector<256x1xi1> to vector<256x1xi1>
    %247 = vector.broadcast %246 : vector<256x1xi1> to vector<256x64xi1>
    %248 = vector.broadcast %cst_121 : f32 to vector<256x64xf32>
    %249 = arith.select %247, %245, %248 : vector<256x64xi1>, vector<256x64xf32>
    %250 = arith.truncf %249 : vector<256x64xf32> to vector<256x64xbf16>
    %c8_122 = arith.constant 8 : index
    %c0_123 = arith.constant 0 : index
    %c0_124 = arith.constant 0 : index
    %251 = vector.load %arg7[%c8_122, %c0_123, %c0_124] : memref<9x64x64xbf16, #tpu.memory_space<vmem>>, vector<1x64x64xbf16>
    %252 = vector.shape_cast %251 : vector<1x64x64xbf16> to vector<64x64xbf16>
    %cst_125 = arith.constant dense<0.000000e+00> : vector<256x64xf32>
    %253 = tpu.matmul %250, %252, %cst_125 {dimension_numbers = #tpu.dot_dimension_numbers<[1], [0], [0], [1], [0, 0, 1, 1], [], []>} : vector<256x64xbf16>, vector<64x64xbf16>, vector<256x64xf32> -> vector<256x64xf32>
    %254 = arith.addf %244, %253 : vector<256x64xf32>
    %255 = arith.truncf %1 : vector<256x32xf32> to vector<256x32xbf16>
    %c0_126 = arith.constant 0 : index
    %c0_127 = arith.constant 0 : index
    %256 = vector.load %arg8[%c0_126, %c0_127] : memref<32x64xbf16, #tpu.memory_space<vmem>>, vector<32x64xbf16>
    %cst_128 = arith.constant dense<0.000000e+00> : vector<256x64xf32>
    %257 = tpu.matmul %255, %256, %cst_128 {dimension_numbers = #tpu.dot_dimension_numbers<[1], [0], [0], [1], [0, 0, 1, 1], [], []>} : vector<256x32xbf16>, vector<32x64xbf16>, vector<256x64xf32> -> vector<256x64xf32>
    %258 = arith.addf %254, %257 : vector<256x64xf32>
    %c0_129 = arith.constant 0 : index
    %c0_130 = arith.constant 0 : index
    %c0_131 = arith.constant 0 : index
    %259 = vector.load %arg11[%c0_129, %c0_130, %c0_131] : memref<1x256x64xf32, #tpu.memory_space<vmem>>, vector<1x256x64xf32>
    %260 = vector.shape_cast %259 : vector<1x256x64xf32> to vector<256x64xf32>
    %261 = vector.shape_cast %258 : vector<256x64xf32> to vector<1x256x64xf32>
    tpu.vector_store %arg11[%c0_129, %c0_130, %c0_131], %261 {strides = array<i32>} : memref<1x256x64xf32, #tpu.memory_space<vmem>>, vector<1x256x64xf32>,
    return
  }
  func.func @transform_0(%arg0: i32) -> (i32, i32, i32) {
    %c0_i32 = arith.constant 0 : i32
    %c0_i32_0 = arith.constant 0 : i32
    %c0_i32_1 = arith.constant 0 : i32
    return %arg0, %c0_i32, %c0_i32_0 : i32, i32, i32
  }
  func.func @transform_1(%arg0: i32) -> (i32, i32) {
    %c0_i32 = arith.constant 0 : i32
    %c0_i32_0 = arith.constant 0 : i32
    %c0_i32_1 = arith.constant 0 : i32
    return %c0_i32, %c0_i32_0 : i32, i32
  }
  func.func @transform_2(%arg0: i32) -> (i32, i32) {
    %c0_i32 = arith.constant 0 : i32
    %c0_i32_0 = arith.constant 0 : i32
    %c0_i32_1 = arith.constant 0 : i32
    return %c0_i32, %c0_i32_0 : i32, i32
  }
  func.func @transform_3(%arg0: i32) -> (i32, i32) {
    %c0_i32 = arith.constant 0 : i32
    %c0_i32_0 = arith.constant 0 : i32
    %c0_i32_1 = arith.constant 0 : i32
    return %c0_i32, %c0_i32_0 : i32, i32
  }
  func.func @transform_4(%arg0: i32) -> (i32, i32) {
    %c0_i32 = arith.constant 0 : i32
    %c0_i32_0 = arith.constant 0 : i32
    %c0_i32_1 = arith.constant 0 : i32
    return %c0_i32, %c0_i32_0 : i32, i32
  }
  func.func @transform_5(%arg0: i32) -> (i32, i32, i32) {
    %c0_i32 = arith.constant 0 : i32
    %c0_i32_0 = arith.constant 0 : i32
    %c0_i32_1 = arith.constant 0 : i32
    %c0_i32_2 = arith.constant 0 : i32
    return %c0_i32, %c0_i32_0, %c0_i32_1 : i32, i32, i32
  }
  func.func @transform_6(%arg0: i32) -> (i32, i32, i32) {
    %c0_i32 = arith.constant 0 : i32
    %c0_i32_0 = arith.constant 0 : i32
    %c0_i32_1 = arith.constant 0 : i32
    %c0_i32_2 = arith.constant 0 : i32
    return %c0_i32, %c0_i32_0, %c0_i32_1 : i32, i32, i32
  }
  func.func @transform_7(%arg0: i32) -> (i32, i32) {
    %c0_i32 = arith.constant 0 : i32
    %c0_i32_0 = arith.constant 0 : i32
    %c0_i32_1 = arith.constant 0 : i32
    return %c0_i32, %c0_i32_0 : i32, i32
  }
  func.func @transform_8(%arg0: i32) -> (i32, i32) {
    %c0_i32 = arith.constant 0 : i32
    %c0_i32_0 = arith.constant 0 : i32
    %c0_i32_1 = arith.constant 0 : i32
    return %c0_i32, %c0_i32_0 : i32, i32
  }
  func.func @transform_9(%arg0: i32) -> (i32, i32) {
    %c0_i32 = arith.constant 0 : i32
    %c0_i32_0 = arith.constant 0 : i32
    %c0_i32_1 = arith.constant 0 : i32
    return %c0_i32, %c0_i32_0 : i32, i32
  }
  func.func @transform_10(%arg0: i32) -> (i32, i32, i32) {
    %c0_i32 = arith.constant 0 : i32
    %c0_i32_0 = arith.constant 0 : i32
    %c0_i32_1 = arith.constant 0 : i32
    return %arg0, %c0_i32, %c0_i32_0 : i32, i32, i32
  }
}

module attributes {stable_mosaic.version = 11 : i64} {
  func.func @_resblock_kernel(%arg0: i32, %arg1: memref<1x256x32xf32, #tpu.memory_space<vmem>>, %arg2: memref<1x32xf32, #tpu.memory_space<vmem>>, %arg3: memref<1x32xf32, #tpu.memory_space<vmem>>, %arg4: memref<1x64xf32, #tpu.memory_space<vmem>>, %arg5: memref<1x64xf32, #tpu.memory_space<vmem>>, %arg6: memref<9x32x64xbf16, #tpu.memory_space<vmem>>, %arg7: memref<9x64x64xbf16, #tpu.memory_space<vmem>>, %arg8: memref<32x64xbf16, #tpu.memory_space<vmem>>, %arg9: memref<32x32xf32, #tpu.memory_space<vmem>>, %arg10: memref<64x32xf32, #tpu.memory_space<vmem>>, %arg11: memref<1x256x64xf32, #tpu.memory_space<vmem>>) attributes {dimension_semantics = [#tpu.dimension_semantics<parallel>], iteration_bounds = array<i64: 2>, scalar_prefetch = 0 : i64, scratch_operands = 0 : i64, tpu.core_type = #tpu.core_type<tc>, window_params = [{transform_indices = @transform_0, window_bounds = array<i64: 1, 256, 32>}, {pipeline_mode = #tpu.pipeline_mode<synchronous>, transform_indices = @transform_1, window_bounds = array<i64: 1, 32>}, {pipeline_mode = #tpu.pipeline_mode<synchronous>, transform_indices = @transform_2, window_bounds = array<i64: 1, 32>}, {pipeline_mode = #tpu.pipeline_mode<synchronous>, transform_indices = @transform_3, window_bounds = array<i64: 1, 64>}, {pipeline_mode = #tpu.pipeline_mode<synchronous>, transform_indices = @transform_4, window_bounds = array<i64: 1, 64>}, {pipeline_mode = #tpu.pipeline_mode<synchronous>, transform_indices = @transform_5, window_bounds = array<i64: 9, 32, 64>}, {pipeline_mode = #tpu.pipeline_mode<synchronous>, transform_indices = @transform_6, window_bounds = array<i64: 9, 64, 64>}, {pipeline_mode = #tpu.pipeline_mode<synchronous>, transform_indices = @transform_7, window_bounds = array<i64: 32, 64>}, {pipeline_mode = #tpu.pipeline_mode<synchronous>, transform_indices = @transform_8, window_bounds = array<i64: 32, 32>}, {pipeline_mode = #tpu.pipeline_mode<synchronous>, transform_indices = @transform_9, window_bounds = array<i64: 64, 32>}, {transform_indices = @transform_10, window_bounds = array<i64: 1, 256, 64>}]} {
    %c0 = arith.constant 0 : index
    %c0_0 = arith.constant 0 : index
    %c0_1 = arith.constant 0 : index
    %0 = vector.load %arg1[%c0, %c0_0, %c0_1] : memref<1x256x32xf32, #tpu.memory_space<vmem>>, vector<1x256x32xf32>
    %1 = vector.shape_cast %0 : vector<1x256x32xf32> to vector<256x32xf32>
    %2 = tpu.iota {dimensions = array<i32: 0>} : vector<256x1xi32>
    %3 = tpu.iota {dimensions = array<i32: 1>} : vector<16x16x1xi32>
    %4 = vector.shape_cast %3 : vector<16x16x1xi32> to vector<256x1xi32>
    %c16_i32 = arith.constant 16 : i32
    %5 = vector.broadcast %c16_i32 : i32 to vector<256x1xi32>
    %6 = arith.cmpi sge, %2, %5 : vector<256x1xi32>
    %c240_i32 = arith.constant 240 : i32
    %7 = vector.broadcast %c240_i32 : i32 to vector<256x1xi32>
    %8 = arith.cmpi slt, %2, %7 : vector<256x1xi32>
    %c1_i32 = arith.constant 1 : i32
    %9 = vector.broadcast %c1_i32 : i32 to vector<256x1xi32>
    %10 = arith.cmpi sge, %4, %9 : vector<256x1xi32>
    %c14_i32 = arith.constant 14 : i32
    %11 = vector.broadcast %c14_i32 : i32 to vector<256x1xi32>
    %12 = arith.cmpi sle, %4, %11 : vector<256x1xi32>
    %13 = arith.andi %6, %10 : vector<256x1xi1>
    %14 = arith.andi %6, %12 : vector<256x1xi1>
    %15 = arith.andi %8, %10 : vector<256x1xi1>
    %16 = arith.andi %8, %12 : vector<256x1xi1>
    %c0_2 = arith.constant 0 : index
    %c0_3 = arith.constant 0 : index
    %17 = vector.load %arg2[%c0_2, %c0_3] : memref<1x32xf32, #tpu.memory_space<vmem>>, vector<1x32xf32>
    %c0_4 = arith.constant 0 : index
    %c0_5 = arith.constant 0 : index
    %18 = vector.load %arg3[%c0_4, %c0_5] : memref<1x32xf32, #tpu.memory_space<vmem>>, vector<1x32xf32>
    %c0_6 = arith.constant 0 : index
    %c0_7 = arith.constant 0 : index
    %19 = vector.load %arg9[%c0_6, %c0_7] : memref<32x32xf32, #tpu.memory_space<vmem>>, vector<32x32xf32>
    %cst = arith.constant dense<0.000000e+00> : vector<32xf32>
    %20 = vector.multi_reduction <add>, %1, %cst [0] : vector<256x32xf32> to vector<32xf32>
    %21 = vector.shape_cast %20 : vector<32xf32> to vector<1x32xf32>
    %cst_8 = arith.constant dense<0.000000e+00> : vector<1x32xf32>
    %22 = tpu.matmul %21, %19, %cst_8 {dimension_numbers = #tpu.dot_dimension_numbers<[1], [0], [0], [1], [0, 0, 1, 1], [], []>} : vector<1x32xf32>, vector<32x32xf32>, vector<1x32xf32> -> vector<1x32xf32>
    %cst_9 = arith.constant 2.560000e+02 : f32
    %23 = vector.broadcast %cst_9 : f32 to vector<1x32xf32>
    %24 = arith.divf %22, %23 : vector<1x32xf32>
    %cst_10 = arith.constant dense<0.000000e+00> : vector<1x32xf32>
    %25 = tpu.matmul %24, %19, %cst_10 {dimension_numbers = #tpu.dot_dimension_numbers<[1], [1], [0], [0], [0, 0, 1, 0], [], []>} : vector<1x32xf32>, vector<32x32xf32>, vector<1x32xf32> -> vector<1x32xf32>
    %26 = vector.broadcast %25 : vector<1x32xf32> to vector<256x32xf32>
    %27 = arith.subf %1, %26 : vector<256x32xf32>
    %28 = arith.mulf %27, %27 : vector<256x32xf32>
    %cst_11 = arith.constant dense<0.000000e+00> : vector<32xf32>
    %29 = vector.multi_reduction <add>, %28, %cst_11 [0] : vector<256x32xf32> to vector<32xf32>
    %30 = vector.shape_cast %29 : vector<32xf32> to vector<1x32xf32>
    %cst_12 = arith.constant dense<0.000000e+00> : vector<1x32xf32>
    %31 = tpu.matmul %30, %19, %cst_12 {dimension_numbers = #tpu.dot_dimension_numbers<[1], [0], [0], [1], [0, 0, 1, 1], [], []>} : vector<1x32xf32>, vector<32x32xf32>, vector<1x32xf32> -> vector<1x32xf32>
    %cst_13 = arith.constant 2.560000e+02 : f32
    %32 = vector.broadcast %cst_13 : f32 to vector<1x32xf32>
    %33 = arith.divf %31, %32 : vector<1x32xf32>
    %cst_14 = arith.constant 9.99999997E-7 : f32
    %34 = vector.broadcast %cst_14 : f32 to vector<1x32xf32>
    %35 = arith.addf %33, %34 : vector<1x32xf32>
    %36 = math.rsqrt %35 : vector<1x32xf32>
    %cst_15 = arith.constant dense<0.000000e+00> : vector<1x32xf32>
    %37 = tpu.matmul %36, %19, %cst_15 {dimension_numbers = #tpu.dot_dimension_numbers<[1], [1], [0], [0], [0, 0, 1, 0], [], []>} : vector<1x32xf32>, vector<32x32xf32>, vector<1x32xf32> -> vector<1x32xf32>
    %38 = vector.broadcast %37 : vector<1x32xf32> to vector<256x32xf32>
    %39 = arith.mulf %27, %38 : vector<256x32xf32>
    %40 = vector.broadcast %17 : vector<1x32xf32> to vector<256x32xf32>
    %41 = arith.mulf %39, %40 : vector<256x32xf32>
    %42 = vector.broadcast %18 : vector<1x32xf32> to vector<256x32xf32>
    %43 = arith.addf %41, %42 : vector<256x32xf32>
    %44 = arith.negf %43 : vector<256x32xf32>
    %45 = math.exp %44 : vector<256x32xf32>
    %cst_16 = arith.constant 1.000000e+00 : f32
    %46 = vector.broadcast %cst_16 : f32 to vector<256x32xf32>
    %47 = arith.addf %46, %45 : vector<256x32xf32>
    %48 = arith.divf %46, %47 : vector<256x32xf32>
    %49 = arith.mulf %43, %48 : vector<256x32xf32>
    %cst_17 = arith.constant 0.000000e+00 : f32
    %50 = vector.broadcast %cst_17 : f32 to vector<256x64xf32>
    %c17_i32 = arith.constant 17 : i32
    %51 = tpu.dynamic_rotate %49 by %c17_i32 dim 0 : vector<256x32xf32>, i32 -> vector<256x32xf32>
    %cst_18 = arith.constant 0.000000e+00 : f32
    %52 = vector.shape_cast %13 : vector<256x1xi1> to vector<256x1xi1>
    %53 = vector.broadcast %52 : vector<256x1xi1> to vector<256x32xi1>
    %54 = vector.broadcast %cst_18 : f32 to vector<256x32xf32>
    %55 = arith.select %53, %51, %54 : vector<256x32xi1>, vector<256x32xf32>
    %56 = arith.truncf %55 : vector<256x32xf32> to vector<256x32xbf16>
    %c0_19 = arith.constant 0 : index
    %c0_20 = arith.constant 0 : index
    %c0_21 = arith.constant 0 : index
    %57 = vector.load %arg6[%c0_19, %c0_20, %c0_21] : memref<9x32x64xbf16, #tpu.memory_space<vmem>>, vector<1x32x64xbf16>
    %58 = vector.shape_cast %57 : vector<1x32x64xbf16> to vector<32x64xbf16>
    %cst_22 = arith.constant dense<0.000000e+00> : vector<256x64xf32>
    %59 = tpu.matmul %56, %58, %cst_22 {dimension_numbers = #tpu.dot_dimension_numbers<[1], [0], [0], [1], [0, 0, 1, 1], [], []>} : vector<256x32xbf16>, vector<32x64xbf16>, vector<256x64xf32> -> vector<256x64xf32>
    %60 = arith.addf %50, %59 : vector<256x64xf32>
    %c16_i32_23 = arith.constant 16 : i32
    %61 = tpu.dynamic_rotate %49 by %c16_i32_23 dim 0 : vector<256x32xf32>, i32 -> vector<256x32xf32>
    %cst_24 = arith.constant 0.000000e+00 : f32
    %62 = vector.shape_cast %6 : vector<256x1xi1> to vector<256x1xi1>
    %63 = vector.broadcast %62 : vector<256x1xi1> to vector<256x32xi1>
    %64 = vector.broadcast %cst_24 : f32 to vector<256x32xf32>
    %65 = arith.select %63, %61, %64 : vector<256x32xi1>, vector<256x32xf32>
    %66 = arith.truncf %65 : vector<256x32xf32> to vector<256x32xbf16>
    %c1 = arith.constant 1 : index
    %c0_25 = arith.constant 0 : index
    %c0_26 = arith.constant 0 : index
    %67 = vector.load %arg6[%c1, %c0_25, %c0_26] : memref<9x32x64xbf16, #tpu.memory_space<vmem>>, vector<1x32x64xbf16>
    %68 = vector.shape_cast %67 : vector<1x32x64xbf16> to vector<32x64xbf16>
    %cst_27 = arith.constant dense<0.000000e+00> : vector<256x64xf32>
    %69 = tpu.matmul %66, %68, %cst_27 {dimension_numbers = #tpu.dot_dimension_numbers<[1], [0], [0], [1], [0, 0, 1, 1], [], []>} : vector<256x32xbf16>, vector<32x64xbf16>, vector<256x64xf32> -> vector<256x64xf32>
    %70 = arith.addf %60, %69 : vector<256x64xf32>
    %c15_i32 = arith.constant 15 : i32
    %71 = tpu.dynamic_rotate %49 by %c15_i32 dim 0 : vector<256x32xf32>, i32 -> vector<256x32xf32>
    %cst_28 = arith.constant 0.000000e+00 : f32
    %72 = vector.shape_cast %14 : vector<256x1xi1> to vector<256x1xi1>
    %73 = vector.broadcast %72 : vector<256x1xi1> to vector<256x32xi1>
    %74 = vector.broadcast %cst_28 : f32 to vector<256x32xf32>
    %75 = arith.select %73, %71, %74 : vector<256x32xi1>, vector<256x32xf32>
    %76 = arith.truncf %75 : vector<256x32xf32> to vector<256x32xbf16>
    %c2 = arith.constant 2 : index
    %c0_29 = arith.constant 0 : index
    %c0_30 = arith.constant 0 : index
    %77 = vector.load %arg6[%c2, %c0_29, %c0_30] : memref<9x32x64xbf16, #tpu.memory_space<vmem>>, vector<1x32x64xbf16>
    %78 = vector.shape_cast %77 : vector<1x32x64xbf16> to vector<32x64xbf16>
    %cst_31 = arith.constant dense<0.000000e+00> : vector<256x64xf32>
    %79 = tpu.matmul %76, %78, %cst_31 {dimension_numbers = #tpu.dot_dimension_numbers<[1], [0], [0], [1], [0, 0, 1, 1], [], []>} : vector<256x32xbf16>, vector<32x64xbf16>, vector<256x64xf32> -> vector<256x64xf32>
    %80 = arith.addf %70, %79 : vector<256x64xf32>
    %c1_i32_32 = arith.constant 1 : i32
    %81 = tpu.dynamic_rotate %49 by %c1_i32_32 dim 0 : vector<256x32xf32>, i32 -> vector<256x32xf32>
    %cst_33 = arith.constant 0.000000e+00 : f32
    %82 = vector.shape_cast %10 : vector<256x1xi1> to vector<256x1xi1>
    %83 = vector.broadcast %82 : vector<256x1xi1> to vector<256x32xi1>
    %84 = vector.broadcast %cst_33 : f32 to vector<256x32xf32>
    %85 = arith.select %83, %81, %84 : vector<256x32xi1>, vector<256x32xf32>
    %86 = arith.truncf %85 : vector<256x32xf32> to vector<256x32xbf16>
    %c3 = arith.constant 3 : index
    %c0_34 = arith.constant 0 : index
    %c0_35 = arith.constant 0 : index
    %87 = vector.load %arg6[%c3, %c0_34, %c0_35] : memref<9x32x64xbf16, #tpu.memory_space<vmem>>, vector<1x32x64xbf16>
    %88 = vector.shape_cast %87 : vector<1x32x64xbf16> to vector<32x64xbf16>
    %cst_36 = arith.constant dense<0.000000e+00> : vector<256x64xf32>
    %89 = tpu.matmul %86, %88, %cst_36 {dimension_numbers = #tpu.dot_dimension_numbers<[1], [0], [0], [1], [0, 0, 1, 1], [], []>} : vector<256x32xbf16>, vector<32x64xbf16>, vector<256x64xf32> -> vector<256x64xf32>
    %90 = arith.addf %80, %89 : vector<256x64xf32>
    %91 = arith.truncf %49 : vector<256x32xf32> to vector<256x32xbf16>
    %c4 = arith.constant 4 : index
    %c0_37 = arith.constant 0 : index
    %c0_38 = arith.constant 0 : index
    %92 = vector.load %arg6[%c4, %c0_37, %c0_38] : memref<9x32x64xbf16, #tpu.memory_space<vmem>>, vector<1x32x64xbf16>
    %93 = vector.shape_cast %92 : vector<1x32x64xbf16> to vector<32x64xbf16>
    %cst_39 = arith.constant dense<0.000000e+00> : vector<256x64xf32>
    %94 = tpu.matmul %91, %93, %cst_39 {dimension_numbers = #tpu.dot_dimension_numbers<[1], [0], [0], [1], [0, 0, 1, 1], [], []>} : vector<256x32xbf16>, vector<32x64xbf16>, vector<256x64xf32> -> vector<256x64xf32>
    %95 = arith.addf %90, %94 : vector<256x64xf32>
    %c255_i32 = arith.constant 255 : i32
    %96 = tpu.dynamic_rotate %49 by %c255_i32 dim 0 : vector<256x32xf32>, i32 -> vector<256x32xf32>
    %cst_40 = arith.constant 0.000000e+00 : f32
    %97 = vector.shape_cast %12 : vector<256x1xi1> to vector<256x1xi1>
    %98 = vector.broadcast %97 : vector<256x1xi1> to vector<256x32xi1>
    %99 = vector.broadcast %cst_40 : f32 to vector<256x32xf32>
    %100 = arith.select %98, %96, %99 : vector<256x32xi1>, vector<256x32xf32>
    %101 = arith.truncf %100 : vector<256x32xf32> to vector<256x32xbf16>
    %c5 = arith.constant 5 : index
    %c0_41 = arith.constant 0 : index
    %c0_42 = arith.constant 0 : index
    %102 = vector.load %arg6[%c5, %c0_41, %c0_42] : memref<9x32x64xbf16, #tpu.memory_space<vmem>>, vector<1x32x64xbf16>
    %103 = vector.shape_cast %102 : vector<1x32x64xbf16> to vector<32x64xbf16>
    %cst_43 = arith.constant dense<0.000000e+00> : vector<256x64xf32>
    %104 = tpu.matmul %101, %103, %cst_43 {dimension_numbers = #tpu.dot_dimension_numbers<[1], [0], [0], [1], [0, 0, 1, 1], [], []>} : vector<256x32xbf16>, vector<32x64xbf16>, vector<256x64xf32> -> vector<256x64xf32>
    %105 = arith.addf %95, %104 : vector<256x64xf32>
    %c241_i32 = arith.constant 241 : i32
    %106 = tpu.dynamic_rotate %49 by %c241_i32 dim 0 : vector<256x32xf32>, i32 -> vector<256x32xf32>
    %cst_44 = arith.constant 0.000000e+00 : f32
    %107 = vector.shape_cast %15 : vector<256x1xi1> to vector<256x1xi1>
    %108 = vector.broadcast %107 : vector<256x1xi1> to vector<256x32xi1>
    %109 = vector.broadcast %cst_44 : f32 to vector<256x32xf32>
    %110 = arith.select %108, %106, %109 : vector<256x32xi1>, vector<256x32xf32>
    %111 = arith.truncf %110 : vector<256x32xf32> to vector<256x32xbf16>
    %c6 = arith.constant 6 : index
    %c0_45 = arith.constant 0 : index
    %c0_46 = arith.constant 0 : index
    %112 = vector.load %arg6[%c6, %c0_45, %c0_46] : memref<9x32x64xbf16, #tpu.memory_space<vmem>>, vector<1x32x64xbf16>
    %113 = vector.shape_cast %112 : vector<1x32x64xbf16> to vector<32x64xbf16>
    %cst_47 = arith.constant dense<0.000000e+00> : vector<256x64xf32>
    %114 = tpu.matmul %111, %113, %cst_47 {dimension_numbers = #tpu.dot_dimension_numbers<[1], [0], [0], [1], [0, 0, 1, 1], [], []>} : vector<256x32xbf16>, vector<32x64xbf16>, vector<256x64xf32> -> vector<256x64xf32>
    %115 = arith.addf %105, %114 : vector<256x64xf32>
    %c240_i32_48 = arith.constant 240 : i32
    %116 = tpu.dynamic_rotate %49 by %c240_i32_48 dim 0 : vector<256x32xf32>, i32 -> vector<256x32xf32>
    %cst_49 = arith.constant 0.000000e+00 : f32
    %117 = vector.shape_cast %8 : vector<256x1xi1> to vector<256x1xi1>
    %118 = vector.broadcast %117 : vector<256x1xi1> to vector<256x32xi1>
    %119 = vector.broadcast %cst_49 : f32 to vector<256x32xf32>
    %120 = arith.select %118, %116, %119 : vector<256x32xi1>, vector<256x32xf32>
    %121 = arith.truncf %120 : vector<256x32xf32> to vector<256x32xbf16>
    %c7 = arith.constant 7 : index
    %c0_50 = arith.constant 0 : index
    %c0_51 = arith.constant 0 : index
    %122 = vector.load %arg6[%c7, %c0_50, %c0_51] : memref<9x32x64xbf16, #tpu.memory_space<vmem>>, vector<1x32x64xbf16>
    %123 = vector.shape_cast %122 : vector<1x32x64xbf16> to vector<32x64xbf16>
    %cst_52 = arith.constant dense<0.000000e+00> : vector<256x64xf32>
    %124 = tpu.matmul %121, %123, %cst_52 {dimension_numbers = #tpu.dot_dimension_numbers<[1], [0], [0], [1], [0, 0, 1, 1], [], []>} : vector<256x32xbf16>, vector<32x64xbf16>, vector<256x64xf32> -> vector<256x64xf32>
    %125 = arith.addf %115, %124 : vector<256x64xf32>
    %c239_i32 = arith.constant 239 : i32
    %126 = tpu.dynamic_rotate %49 by %c239_i32 dim 0 : vector<256x32xf32>, i32 -> vector<256x32xf32>
    %cst_53 = arith.constant 0.000000e+00 : f32
    %127 = vector.shape_cast %16 : vector<256x1xi1> to vector<256x1xi1>
    %128 = vector.broadcast %127 : vector<256x1xi1> to vector<256x32xi1>
    %129 = vector.broadcast %cst_53 : f32 to vector<256x32xf32>
    %130 = arith.select %128, %126, %129 : vector<256x32xi1>, vector<256x32xf32>
    %131 = arith.truncf %130 : vector<256x32xf32> to vector<256x32xbf16>
    %c8 = arith.constant 8 : index
    %c0_54 = arith.constant 0 : index
    %c0_55 = arith.constant 0 : index
    %132 = vector.load %arg6[%c8, %c0_54, %c0_55] : memref<9x32x64xbf16, #tpu.memory_space<vmem>>, vector<1x32x64xbf16>
    %133 = vector.shape_cast %132 : vector<1x32x64xbf16> to vector<32x64xbf16>
    %cst_56 = arith.constant dense<0.000000e+00> : vector<256x64xf32>
    %134 = tpu.matmul %131, %133, %cst_56 {dimension_numbers = #tpu.dot_dimension_numbers<[1], [0], [0], [1], [0, 0, 1, 1], [], []>} : vector<256x32xbf16>, vector<32x64xbf16>, vector<256x64xf32> -> vector<256x64xf32>
    %135 = arith.addf %125, %134 : vector<256x64xf32>
    %c0_57 = arith.constant 0 : index
    %c0_58 = arith.constant 0 : index
    %136 = vector.load %arg4[%c0_57, %c0_58] : memref<1x64xf32, #tpu.memory_space<vmem>>, vector<1x64xf32>
    %c0_59 = arith.constant 0 : index
    %c0_60 = arith.constant 0 : index
    %137 = vector.load %arg5[%c0_59, %c0_60] : memref<1x64xf32, #tpu.memory_space<vmem>>, vector<1x64xf32>
    %c0_61 = arith.constant 0 : index
    %c0_62 = arith.constant 0 : index
    %138 = vector.load %arg10[%c0_61, %c0_62] : memref<64x32xf32, #tpu.memory_space<vmem>>, vector<64x32xf32>
    %cst_63 = arith.constant dense<0.000000e+00> : vector<64xf32>
    %139 = vector.multi_reduction <add>, %135, %cst_63 [0] : vector<256x64xf32> to vector<64xf32>
    %140 = vector.shape_cast %139 : vector<64xf32> to vector<1x64xf32>
    %cst_64 = arith.constant dense<0.000000e+00> : vector<1x32xf32>
    %141 = tpu.matmul %140, %138, %cst_64 {dimension_numbers = #tpu.dot_dimension_numbers<[1], [0], [0], [1], [0, 0, 1, 1], [], []>} : vector<1x64xf32>, vector<64x32xf32>, vector<1x32xf32> -> vector<1x32xf32>
    %cst_65 = arith.constant 5.120000e+02 : f32
    %142 = vector.broadcast %cst_65 : f32 to vector<1x32xf32>
    %143 = arith.divf %141, %142 : vector<1x32xf32>
    %cst_66 = arith.constant dense<0.000000e+00> : vector<1x64xf32>
    %144 = tpu.matmul %143, %138, %cst_66 {dimension_numbers = #tpu.dot_dimension_numbers<[1], [1], [0], [0], [0, 0, 1, 0], [], []>} : vector<1x32xf32>, vector<64x32xf32>, vector<1x64xf32> -> vector<1x64xf32>
    %145 = vector.broadcast %144 : vector<1x64xf32> to vector<256x64xf32>
    %146 = arith.subf %135, %145 : vector<256x64xf32>
    %147 = arith.mulf %146, %146 : vector<256x64xf32>
    %cst_67 = arith.constant dense<0.000000e+00> : vector<64xf32>
    %148 = vector.multi_reduction <add>, %147, %cst_67 [0] : vector<256x64xf32> to vector<64xf32>
    %149 = vector.shape_cast %148 : vector<64xf32> to vector<1x64xf32>
    %cst_68 = arith.constant dense<0.000000e+00> : vector<1x32xf32>
    %150 = tpu.matmul %149, %138, %cst_68 {dimension_numbers = #tpu.dot_dimension_numbers<[1], [0], [0], [1], [0, 0, 1, 1], [], []>} : vector<1x64xf32>, vector<64x32xf32>, vector<1x32xf32> -> vector<1x32xf32>
    %cst_69 = arith.constant 5.120000e+02 : f32
    %151 = vector.broadcast %cst_69 : f32 to vector<1x32xf32>
    %152 = arith.divf %150, %151 : vector<1x32xf32>
    %cst_70 = arith.constant 9.99999997E-7 : f32
    %153 = vector.broadcast %cst_70 : f32 to vector<1x32xf32>
    %154 = arith.addf %152, %153 : vector<1x32xf32>
    %155 = math.rsqrt %154 : vector<1x32xf32>
    %cst_71 = arith.constant dense<0.000000e+00> : vector<1x64xf32>
    %156 = tpu.matmul %155, %138, %cst_71 {dimension_numbers = #tpu.dot_dimension_numbers<[1], [1], [0], [0], [0, 0, 1, 0], [], []>} : vector<1x32xf32>, vector<64x32xf32>, vector<1x64xf32> -> vector<1x64xf32>
    %157 = vector.broadcast %156 : vector<1x64xf32> to vector<256x64xf32>
    %158 = arith.mulf %146, %157 : vector<256x64xf32>
    %159 = vector.broadcast %136 : vector<1x64xf32> to vector<256x64xf32>
    %160 = arith.mulf %158, %159 : vector<256x64xf32>
    %161 = vector.broadcast %137 : vector<1x64xf32> to vector<256x64xf32>
    %162 = arith.addf %160, %161 : vector<256x64xf32>
    %163 = arith.negf %162 : vector<256x64xf32>
    %164 = math.exp %163 : vector<256x64xf32>
    %cst_72 = arith.constant 1.000000e+00 : f32
    %165 = vector.broadcast %cst_72 : f32 to vector<256x64xf32>
    %166 = arith.addf %165, %164 : vector<256x64xf32>
    %167 = arith.divf %165, %166 : vector<256x64xf32>
    %168 = arith.mulf %162, %167 : vector<256x64xf32>
    %cst_73 = arith.constant 0.000000e+00 : f32
    %169 = vector.broadcast %cst_73 : f32 to vector<256x64xf32>
    %c17_i32_74 = arith.constant 17 : i32
    %170 = tpu.dynamic_rotate %168 by %c17_i32_74 dim 0 : vector<256x64xf32>, i32 -> vector<256x64xf32>
    %cst_75 = arith.constant 0.000000e+00 : f32
    %171 = vector.shape_cast %13 : vector<256x1xi1> to vector<256x1xi1>
    %172 = vector.broadcast %171 : vector<256x1xi1> to vector<256x64xi1>
    %173 = vector.broadcast %cst_75 : f32 to vector<256x64xf32>
    %174 = arith.select %172, %170, %173 : vector<256x64xi1>, vector<256x64xf32>
    %175 = arith.truncf %174 : vector<256x64xf32> to vector<256x64xbf16>
    %c0_76 = arith.constant 0 : index
    %c0_77 = arith.constant 0 : index
    %c0_78 = arith.constant 0 : index
    %176 = vector.load %arg7[%c0_76, %c0_77, %c0_78] : memref<9x64x64xbf16, #tpu.memory_space<vmem>>, vector<1x64x64xbf16>
    %177 = vector.shape_cast %176 : vector<1x64x64xbf16> to vector<64x64xbf16>
    %cst_79 = arith.constant dense<0.000000e+00> : vector<256x64xf32>
    %178 = tpu.matmul %175, %177, %cst_79 {dimension_numbers = #tpu.dot_dimension_numbers<[1], [0], [0], [1], [0, 0, 1, 1], [], []>} : vector<256x64xbf16>, vector<64x64xbf16>, vector<256x64xf32> -> vector<256x64xf32>
    %179 = arith.addf %169, %178 : vector<256x64xf32>
    %c16_i32_80 = arith.constant 16 : i32
    %180 = tpu.dynamic_rotate %168 by %c16_i32_80 dim 0 : vector<256x64xf32>, i32 -> vector<256x64xf32>
    %cst_81 = arith.constant 0.000000e+00 : f32
    %181 = vector.shape_cast %6 : vector<256x1xi1> to vector<256x1xi1>
    %182 = vector.broadcast %181 : vector<256x1xi1> to vector<256x64xi1>
    %183 = vector.broadcast %cst_81 : f32 to vector<256x64xf32>
    %184 = arith.select %182, %180, %183 : vector<256x64xi1>, vector<256x64xf32>
    %185 = arith.truncf %184 : vector<256x64xf32> to vector<256x64xbf16>
    %c1_82 = arith.constant 1 : index
    %c0_83 = arith.constant 0 : index
    %c0_84 = arith.constant 0 : index
    %186 = vector.load %arg7[%c1_82, %c0_83, %c0_84] : memref<9x64x64xbf16, #tpu.memory_space<vmem>>, vector<1x64x64xbf16>
    %187 = vector.shape_cast %186 : vector<1x64x64xbf16> to vector<64x64xbf16>
    %cst_85 = arith.constant dense<0.000000e+00> : vector<256x64xf32>
    %188 = tpu.matmul %185, %187, %cst_85 {dimension_numbers = #tpu.dot_dimension_numbers<[1], [0], [0], [1], [0, 0, 1, 1], [], []>} : vector<256x64xbf16>, vector<64x64xbf16>, vector<256x64xf32> -> vector<256x64xf32>
    %189 = arith.addf %179, %188 : vector<256x64xf32>
    %c15_i32_86 = arith.constant 15 : i32
    %190 = tpu.dynamic_rotate %168 by %c15_i32_86 dim 0 : vector<256x64xf32>, i32 -> vector<256x64xf32>
    %cst_87 = arith.constant 0.000000e+00 : f32
    %191 = vector.shape_cast %14 : vector<256x1xi1> to vector<256x1xi1>
    %192 = vector.broadcast %191 : vector<256x1xi1> to vector<256x64xi1>
    %193 = vector.broadcast %cst_87 : f32 to vector<256x64xf32>
    %194 = arith.select %192, %190, %193 : vector<256x64xi1>, vector<256x64xf32>
    %195 = arith.truncf %194 : vector<256x64xf32> to vector<256x64xbf16>
    %c2_88 = arith.constant 2 : index
    %c0_89 = arith.constant 0 : index
    %c0_90 = arith.constant 0 : index
    %196 = vector.load %arg7[%c2_88, %c0_89, %c0_90] : memref<9x64x64xbf16, #tpu.memory_space<vmem>>, vector<1x64x64xbf16>
    %197 = vector.shape_cast %196 : vector<1x64x64xbf16> to vector<64x64xbf16>
    %cst_91 = arith.constant dense<0.000000e+00> : vector<256x64xf32>
    %198 = tpu.matmul %195, %197, %cst_91 {dimension_numbers = #tpu.dot_dimension_numbers<[1], [0], [0], [1], [0, 0, 1, 1], [], []>} : vector<256x64xbf16>, vector<64x64xbf16>, vector<256x64xf32> -> vector<256x64xf32>
    %199 = arith.addf %189, %198 : vector<256x64xf32>
    %c1_i32_92 = arith.constant 1 : i32
    %200 = tpu.dynamic_rotate %168 by %c1_i32_92 dim 0 : vector<256x64xf32>, i32 -> vector<256x64xf32>
    %cst_93 = arith.constant 0.000000e+00 : f32
    %201 = vector.shape_cast %10 : vector<256x1xi1> to vector<256x1xi1>
    %202 = vector.broadcast %201 : vector<256x1xi1> to vector<256x64xi1>
    %203 = vector.broadcast %cst_93 : f32 to vector<256x64xf32>
    %204 = arith.select %202, %200, %203 : vector<256x64xi1>, vector<256x64xf32>
    %205 = arith.truncf %204 : vector<256x64xf32> to vector<256x64xbf16>
    %c3_94 = arith.constant 3 : index
    %c0_95 = arith.constant 0 : index
    %c0_96 = arith.constant 0 : index
    %206 = vector.load %arg7[%c3_94, %c0_95, %c0_96] : memref<9x64x64xbf16, #tpu.memory_space<vmem>>, vector<1x64x64xbf16>
    %207 = vector.shape_cast %206 : vector<1x64x64xbf16> to vector<64x64xbf16>
    %cst_97 = arith.constant dense<0.000000e+00> : vector<256x64xf32>
    %208 = tpu.matmul %205, %207, %cst_97 {dimension_numbers = #tpu.dot_dimension_numbers<[1], [0], [0], [1], [0, 0, 1, 1], [], []>} : vector<256x64xbf16>, vector<64x64xbf16>, vector<256x64xf32> -> vector<256x64xf32>
    %209 = arith.addf %199, %208 : vector<256x64xf32>
    %210 = arith.truncf %168 : vector<256x64xf32> to vector<256x64xbf16>
    %c4_98 = arith.constant 4 : index
    %c0_99 = arith.constant 0 : index
    %c0_100 = arith.constant 0 : index
    %211 = vector.load %arg7[%c4_98, %c0_99, %c0_100] : memref<9x64x64xbf16, #tpu.memory_space<vmem>>, vector<1x64x64xbf16>
    %212 = vector.shape_cast %211 : vector<1x64x64xbf16> to vector<64x64xbf16>
    %cst_101 = arith.constant dense<0.000000e+00> : vector<256x64xf32>
    %213 = tpu.matmul %210, %212, %cst_101 {dimension_numbers = #tpu.dot_dimension_numbers<[1], [0], [0], [1], [0, 0, 1, 1], [], []>} : vector<256x64xbf16>, vector<64x64xbf16>, vector<256x64xf32> -> vector<256x64xf32>
    %214 = arith.addf %209, %213 : vector<256x64xf32>
    %c255_i32_102 = arith.constant 255 : i32
    %215 = tpu.dynamic_rotate %168 by %c255_i32_102 dim 0 : vector<256x64xf32>, i32 -> vector<256x64xf32>
    %cst_103 = arith.constant 0.000000e+00 : f32
    %216 = vector.shape_cast %12 : vector<256x1xi1> to vector<256x1xi1>
    %217 = vector.broadcast %216 : vector<256x1xi1> to vector<256x64xi1>
    %218 = vector.broadcast %cst_103 : f32 to vector<256x64xf32>
    %219 = arith.select %217, %215, %218 : vector<256x64xi1>, vector<256x64xf32>
    %220 = arith.truncf %219 : vector<256x64xf32> to vector<256x64xbf16>
    %c5_104 = arith.constant 5 : index
    %c0_105 = arith.constant 0 : index
    %c0_106 = arith.constant 0 : index
    %221 = vector.load %arg7[%c5_104, %c0_105, %c0_106] : memref<9x64x64xbf16, #tpu.memory_space<vmem>>, vector<1x64x64xbf16>
    %222 = vector.shape_cast %221 : vector<1x64x64xbf16> to vector<64x64xbf16>
    %cst_107 = arith.constant dense<0.000000e+00> : vector<256x64xf32>
    %223 = tpu.matmul %220, %222, %cst_107 {dimension_numbers = #tpu.dot_dimension_numbers<[1], [0], [0], [1], [0, 0, 1, 1], [], []>} : vector<256x64xbf16>, vector<64x64xbf16>, vector<256x64xf32> -> vector<256x64xf32>
    %224 = arith.addf %214, %223 : vector<256x64xf32>
    %c241_i32_108 = arith.constant 241 : i32
    %225 = tpu.dynamic_rotate %168 by %c241_i32_108 dim 0 : vector<256x64xf32>, i32 -> vector<256x64xf32>
    %cst_109 = arith.constant 0.000000e+00 : f32
    %226 = vector.shape_cast %15 : vector<256x1xi1> to vector<256x1xi1>
    %227 = vector.broadcast %226 : vector<256x1xi1> to vector<256x64xi1>
    %228 = vector.broadcast %cst_109 : f32 to vector<256x64xf32>
    %229 = arith.select %227, %225, %228 : vector<256x64xi1>, vector<256x64xf32>
    %230 = arith.truncf %229 : vector<256x64xf32> to vector<256x64xbf16>
    %c6_110 = arith.constant 6 : index
    %c0_111 = arith.constant 0 : index
    %c0_112 = arith.constant 0 : index
    %231 = vector.load %arg7[%c6_110, %c0_111, %c0_112] : memref<9x64x64xbf16, #tpu.memory_space<vmem>>, vector<1x64x64xbf16>
    %232 = vector.shape_cast %231 : vector<1x64x64xbf16> to vector<64x64xbf16>
    %cst_113 = arith.constant dense<0.000000e+00> : vector<256x64xf32>
    %233 = tpu.matmul %230, %232, %cst_113 {dimension_numbers = #tpu.dot_dimension_numbers<[1], [0], [0], [1], [0, 0, 1, 1], [], []>} : vector<256x64xbf16>, vector<64x64xbf16>, vector<256x64xf32> -> vector<256x64xf32>
    %234 = arith.addf %224, %233 : vector<256x64xf32>
    %c240_i32_114 = arith.constant 240 : i32
    %235 = tpu.dynamic_rotate %168 by %c240_i32_114 dim 0 : vector<256x64xf32>, i32 -> vector<256x64xf32>
    %cst_115 = arith.constant 0.000000e+00 : f32
    %236 = vector.shape_cast %8 : vector<256x1xi1> to vector<256x1xi1>
    %237 = vector.broadcast %236 : vector<256x1xi1> to vector<256x64xi1>
    %238 = vector.broadcast %cst_115 : f32 to vector<256x64xf32>
    %239 = arith.select %237, %235, %238 : vector<256x64xi1>, vector<256x64xf32>
    %240 = arith.truncf %239 : vector<256x64xf32> to vector<256x64xbf16>
    %c7_116 = arith.constant 7 : index
    %c0_117 = arith.constant 0 : index
    %c0_118 = arith.constant 0 : index
    %241 = vector.load %arg7[%c7_116, %c0_117, %c0_118] : memref<9x64x64xbf16, #tpu.memory_space<vmem>>, vector<1x64x64xbf16>
    %242 = vector.shape_cast %241 : vector<1x64x64xbf16> to vector<64x64xbf16>
    %cst_119 = arith.constant dense<0.000000e+00> : vector<256x64xf32>
    %243 = tpu.matmul %240, %242, %cst_119 {dimension_numbers = #tpu.dot_dimension_numbers<[1], [0], [0], [1], [0, 0, 1, 1], [], []>} : vector<256x64xbf16>, vector<64x64xbf16>, vector<256x64xf32> -> vector<256x64xf32>
    %244 = arith.addf %234, %243 : vector<256x64xf32>
    %c239_i32_120 = arith.constant 239 : i32
    %245 = tpu.dynamic_rotate %168 by %c239_i32_120 dim 0 : vector<256x64xf32>, i32 -> vector<256x64xf32>
    %cst_121 = arith.constant 0.000000e+00 : f32
    %246 = vector.shape_cast %16 : vector<256x1xi1> to vector<256x1xi1>
    %247 = vector.broadcast %246 : vector<256x1xi1> to vector<256x64xi1>
    %248 = vector.broadcast %cst_121 : f32 to vector<256x64xf32>
    %249 = arith.select %247, %245, %248 : vector<256x64xi1>, vector<256x64xf32>
    %250 = arith.truncf %249 : vector<256x64xf32> to vector<256x64xbf16>
    %c8_122 = arith.constant 8 : index
    %c0_123 = arith.constant 0 : index
    %c0_124 = arith.constant 0 : index
    %251 = vector.load %arg7[%c8_122, %c0_123, %c0_124] : memref<9x64x64xbf16, #tpu.memory_space<vmem>>, vector<1x64x64xbf16>
    %252 = vector.shape_cast %251 : vector<1x64x64xbf16> to vector<64x64xbf16>
    %cst_125 = arith.constant dense<0.000000e+00> : vector<256x64xf32>
    %253 = tpu.matmul %250, %252, %cst_125 {dimension_numbers = #tpu.dot_dimension_numbers<[1], [0], [0], [1], [0, 0, 1, 1], [], []>} : vector<256x64xbf16>, vector<64x64xbf16>, vector<256x64xf32> -> vector<256x64xf32>
    %254 = arith.addf %244, %253 : vector<256x64xf32>
    %255 = arith.truncf %1 : vector<256x32xf32> to vector<256x32xbf16>
    %c0_126 = arith.constant 0 : index
    %c0_127 = arith.constant 0 : index
    %256 = vector.load %arg8[%c0_126, %c0_127] : memref<32x64xbf16, #tpu.memory_space<vmem>>, vector<32x64xbf16>
    %cst_128 = arith.constant dense<0.000000e+00> : vector<256x64xf32>
    %257 = tpu.matmul %255, %256, %cst_128 {dimension_numbers = #tpu.dot_dimension_numbers<[1], [0], [0], [1], [0, 0, 1, 1], [], []>} : vector<256x32xbf16>, vector<32x64xbf16>, vector<256x64xf32> -> vector<256x64xf32>
    %258 = arith.addf %254, %257 : vector<256x64xf32>
    %c0_129 = arith.constant 0 : index
    %c0_130 = arith.constant 0 : index
    %c0_131 = arith.constant 0 : index
    %259 = vector.load %arg11[%c0_129, %c0_130, %c0_131] : memref<1x256x64xf32, #tpu.memory_space<vmem>>, vector<1x256x64xf32>
    %260 = vector.shape_cast %259 : vector<1x256x64xf32> to vector<256x64xf32>
    %261 = vector.shape_cast %258 : vector<256x64xf32> to vector<1x256x64xf32>
    tpu.vector_store %arg11[%c0_129, %c0_130, %c0_131], %261 {strides = array<i32>} : memref<1x256x64xf32, #tpu.memory_space<vmem>>, vector<1x256x64xf32>,
    return
  }
  func.func @transform_0(%arg0: i32) -> (i32, i32, i32) {
    %c0_i32 = arith.constant 0 : i32
    %c0_i32_0 = arith.constant 0 : i32
    %c0_i32_1 = arith.constant 0 : i32
    return %arg0, %c0_i32, %c0_i32_0 : i32, i32, i32
  }
  func.func @transform_1(%arg0: i32) -> (i32, i32) {
    %c0_i32 = arith.constant 0 : i32
    %c0_i32_0 = arith.constant 0 : i32
    %c0_i32_1 = arith.constant 0 : i32
    return %c0_i32, %c0_i32_0 : i32, i32
  }
  func.func @transform_2(%arg0: i32) -> (i32, i32) {
    %c0_i32 = arith.constant 0 : i32
    %c0_i32_0 = arith.constant 0 : i32
    %c0_i32_1 = arith.constant 0 : i32
    return %c0_i32, %c0_i32_0 : i32, i32
  }
  func.func @transform_3(%arg0: i32) -> (i32, i32) {
    %c0_i32 = arith.constant 0 : i32
    %c0_i32_0 = arith.constant 0 : i32
    %c0_i32_1 = arith.constant 0 : i32
    return %c0_i32, %c0_i32_0 : i32, i32
  }
  func.func @transform_4(%arg0: i32) -> (i32, i32) {
    %c0_i32 = arith.constant 0 : i32
    %c0_i32_0 = arith.constant 0 : i32
    %c0_i32_1 = arith.constant 0 : i32
    return %c0_i32, %c0_i32_0 : i32, i32
  }
  func.func @transform_5(%arg0: i32) -> (i32, i32, i32) {
    %c0_i32 = arith.constant 0 : i32
    %c0_i32_0 = arith.constant 0 : i32
    %c0_i32_1 = arith.constant 0 : i32
    %c0_i32_2 = arith.constant 0 : i32
    return %c0_i32, %c0_i32_0, %c0_i32_1 : i32, i32, i32
  }
  func.func @transform_6(%arg0: i32) -> (i32, i32, i32) {
    %c0_i32 = arith.constant 0 : i32
    %c0_i32_0 = arith.constant 0 : i32
    %c0_i32_1 = arith.constant 0 : i32
    %c0_i32_2 = arith.constant 0 : i32
    return %c0_i32, %c0_i32_0, %c0_i32_1 : i32, i32, i32
  }
  func.func @transform_7(%arg0: i32) -> (i32, i32) {
    %c0_i32 = arith.constant 0 : i32
    %c0_i32_0 = arith.constant 0 : i32
    %c0_i32_1 = arith.constant 0 : i32
    return %c0_i32, %c0_i32_0 : i32, i32
  }
  func.func @transform_8(%arg0: i32) -> (i32, i32) {
    %c0_i32 = arith.constant 0 : i32
    %c0_i32_0 = arith.constant 0 : i32
    %c0_i32_1 = arith.constant 0 : i32
    return %c0_i32, %c0_i32_0 : i32, i32
  }
  func.func @transform_9(%arg0: i32) -> (i32, i32) {
    %c0_i32 = arith.constant 0 : i32
    %c0_i32_0 = arith.constant 0 : i32
    %c0_i32_1 = arith.constant 0 : i32
    return %c0_i32, %c0_i32_0 : i32, i32
  }
  func.func @transform_10(%arg0: i32) -> (i32, i32, i32) {
    %c0_i32 = arith.constant 0 : i32
    %c0_i32_0 = arith.constant 0 : i32
    %c0_i32_1 = arith.constant 0 : i32
    return %arg0, %c0_i32, %c0_i32_0 : i32, i32, i32
  }
}

</mosaic_0001>

<bundles_post_ra>
// kernel: tpu_custom_call.1
= control target key start
LH: loop header
LB: loop body
LE: loop exit
PB: predicated region body
PF: predicated region fallthrough
CT: control target
= control target key end

     0   :  { %s11688_s13 = smov 0   ;;  %s15097_s0 = inlined_call_operand.vmem [shape: f32[2,256,32], index: 0, kind: input, shape index: {}]   ;;  %s15098_s1 = inlined_call_operand.vmem [shape: f32[1,32], index: 1, kind: input, shape index: {}]   ;;  %s15099_s2 = inlined_call_operand.vmem [shape: f32[1,32], index: 2, kind: input, shape index: {}]   ;;  %s15100_s3 = inlined_call_operand.vmem [shape: f32[1,64], index: 3, kind: input, shape index: {}]   ;;  %s15101_s4 = inlined_call_operand.vmem [shape: f32[1,64], index: 4, kind: input, shape index: {}]   ;;  %s15102_s5 = inlined_call_operand.vmem [shape: bf16[9,32,64], index: 5, kind: input, shape index: {}]   ;;  %s15103_s6 = inlined_call_operand.vmem [shape: bf16[9,64,64], index: 6, kind: input, shape index: {}]   ;;  %s15104_s7 = inlined_call_operand.vmem [shape: bf16[32,64], index: 7, kind: input, shape index: {}]   ;;  %s15105_s8 = inlined_call_operand.vmem [shape: f32[32,32], index: 8, kind: input, shape index: {}]   ;;  %s15106_s9 = inlined_call_operand.vmem [shape: f32[64,32], index: 9, kind: input, shape index: {}]   ;;  %s15107_s10 = inlined_call_operand.vmem [shape: f32[2,256,64], index: 10, kind: output, shape index: {}]  }
   0x1 LB: > { %s8822_s14 = sadd.s32 4294967295, %s11628_s13   ;;  %p8826_p0 = scmp.ge.s32.totalorder %s11628_s13, 1  ;;  %s11628_s13 = sphi %s11688_s13, %s20_s13  }
   0x2   : > { %p312_p1 = scmp.lt.s32.totalorder %s11628_s13, 3 }
   0x4   : > { %p313_p2 = pnand %p8826_p0, %p312_p1 }
   0x6   : > { %316 = sbr.rel (%p313_p2) target bundleno = 3714 (0xe82), region = 60 }
   0xd   : > { %v624_v0 = vld [vmem:[%s15105_s8] sm:$0xff]  ;;  %v625_v1 = vld [vmem:[%s15105_s8 + $0x8] sm:$0xff]  ;;  %v626_v2 = vld [vmem:[%s15105_s8 + $0x10] sm:$0xff]  ;;  %v15111_v3 = vmov 0.0|0.0   ;;  %vm11631_vm0 = vmmov 0   ;;  %v15108_v6 = vmov 0.0  }
   0xe   : > { %10635 = vmatprep.subr.bf16.mxu0 %v15111_v3  ;;  %v11706_v4 = vpack.c.bf16 %v625_v1, %v624_v0  ;;  %v627_v5 = vld [vmem:[%s15105_s8 + $0x18] sm:$0xff]  ;;  %9803 = vmatprep.mubr.msk.f32.mxu0 %vm11631_vm0, %v15108_v6  ;;  %p350_p3 = scmp.lt.s32.totalorder %s8822_s14, 1  ;;  %vm628_vm1 = vcmask 261120   ;;  %v15169_v8 = vmov 0  ;;  %vm4669_vm7 = vcmask 523264  }
   0xf   : > { %10641 = vmatprep.subr.bf16.mxu1 %v15111_v3  ;;  %9814 = vmatprep.mubr.msk.f32.mxu1 %vm11631_vm0, %v15108_v6  ;;  %v11717_v7 = vpack.c.bf16 %v627_v5, %v626_v2  ;;  %vm11723_vm2 = vmpackc.low %vm628_vm1, %vm628_vm1 }
  0x10   : > { %10637 = vmatpush3.bf16.msra.mxu0 %v11706_v4  ;;  %s15285_s14 = smov (!%p350_p3, %s8822_s14), 1  ;;  %v15170_v8 = vsel %vm11723_vm2, 4294967295, %v15169_v8  ;;  %10644 = vmatpush3.bf16.xpose.msk.msra.mxu1 %vm11723_vm2, %v11706_v4 }
  0x11   : > { %15171 = vst [vmem:[#allocation2_spill] sm:$0xff] %v15170_v8  ;;  %10638 = vmatprep.subr.bf16.mxu0 %v15111_v3  ;;  %s9377_s23 = sshll.u32 %s15285_s14, 8  ;;  %10645 = vmatprep.subr.bf16.mxu1 %v15111_v3 }
  0x12   : > { %s11738_s26 = scalar_lea.vmem %s15097_s0, %s9377_s23  ;;  %s14996_s19 = scalar_lea.vmem %s15107_s10, %s9377_s23 }
  0x13   : > { %v11742_v9 = vld [vmem:[%s11738_s26] sm:$0xff]  ;;  %v11745_v10 = vld [vmem:[%s11738_s26 + $0x8] sm:$0xff]  ;;  %v11748_v11 = vld [vmem:[%s11738_s26 + $0x10] sm:$0xff] }
  0x14   : > { %10640 = vmatpush3.bf16.msra.mxu0 %v11717_v7  ;;  %v11751_v12 = vld [vmem:[%s11738_s26 + $0x18] sm:$0xff]  ;;  %v629_v13 = vsel %vm628_vm1, %v11742_v9, 0.0  ;;  %v630_v14 = vsel %vm628_vm1, %v11745_v10, 0.0  ;;  %v632_v15 = vsel %vm628_vm1, %v11748_v11, 0.0  ;;  %v11761_v16 = vld [vmem:[%s11738_s26 + $0x20] sm:$0xff]  ;;  %v11764_v17 = vld [vmem:[%s11738_s26 + $0x28] sm:$0xff] }
  0x15   : > { %10649 = vmatprep.subr.bf16.mxu0 %v15111_v3  ;;  %v11767_v18 = vld [vmem:[%s11738_s26 + $0x30] sm:$0xff]  ;;  %v631_v19 = vadd.f32 %v630_v14, %v629_v13  ;;  %v11770_v20 = vld [vmem:[%s11738_s26 + $0x38] sm:$0xff]  ;;  %v11773_v21 = vld [vmem:[%s11738_s26 + $0x40] sm:$0xff]  ;;  %v634_v23 = vsel %vm628_vm1, %v11751_v12, 0.0  ;;  %v636_v31 = vsel %vm628_vm1, %v11761_v16, 0.0  ;;  %v638_v32 = vsel %vm628_vm1, %v11764_v17, 0.0 }
  0x16   : > { %v11776_v22 = vld [vmem:[%s11738_s26 + $0x48] sm:$0xff]  ;;  %v11781_v24 = vld [vmem:[%s11738_s26 + $0x50] sm:$0xff]  ;;  %v11784_v25 = vld [vmem:[%s11738_s26 + $0x58] sm:$0xff]  ;;  %v640_v37 = vsel %vm628_vm1, %v11767_v18, 0.0  ;;  %v642_v38 = vsel %vm628_vm1, %v11770_v20, 0.0  ;;  %v644_v39 = vsel %vm628_vm1, %v11773_v21, 0.0 }
  0x17   : > { %v11787_v26 = vld [vmem:[%s11738_s26 + $0x60] sm:$0xff]  ;;  %v633_v27 = vadd.f32 %v632_v15, %v631_v19  ;;  %v11790_v28 = vld [vmem:[%s11738_s26 + $0x68] sm:$0xff]  ;;  %v11793_v29 = vld [vmem:[%s11738_s26 + $0x70] sm:$0xff]  ;;  %v646_v43 = vsel %vm628_vm1, %v11776_v22, 0.0  ;;  %v648_v44 = vsel %vm628_vm1, %v11781_v24, 0.0  ;;  %v650_v45 = vsel %vm628_vm1, %v11784_v25, 0.0 }
  0x18   : > { %v11796_v30 = vld [vmem:[%s11738_s26 + $0x78] sm:$0xff]  ;;  %10648 = vmatpush3.bf16.xpose.msk.msra.mxu1 %vm11723_vm2, %v11717_v7  ;;  %v11806_v33 = vld [vmem:[%s11738_s26 + $0x80] sm:$0xff]  ;;  %v11809_v34 = vld [vmem:[%s11738_s26 + $0x88] sm:$0xff]  ;;  %v652_v49 = vsel %vm628_vm1, %v11787_v26, 0.0  ;;  %v654_v50 = vsel %vm628_vm1, %v11790_v28, 0.0  ;;  %v656_v51 = vsel %vm628_vm1, %v11793_v29, 0.0 }
  0x19   : > { %v11812_v35 = vld [vmem:[%s11738_s26 + $0x90] sm:$0xff]  ;;  %v635_v36 = vadd.f32 %v634_v23, %v633_v27  ;;  %v11821_v40 = vld [vmem:[%s11738_s26 + $0x98] sm:$0xff]  ;;  %v11824_v41 = vld [vmem:[%s11738_s26 + $0xa0] sm:$0xff]  ;;  %v658_v52 = vsel %vm628_vm1, %v11796_v30, 0.0  ;;  %v660_v53 = vsel %vm628_vm1, %v11806_v33, 0.0  ;;  %v662_v54 = vsel %vm628_vm1, %v11809_v34, 0.0 }
  0x1a   : > { %v11827_v42 = vld [vmem:[%s11738_s26 + $0xa8] sm:$0xff]  ;;  %v11836_v46 = vld [vmem:[%s11738_s26 + $0xb0] sm:$0xff]  ;;  %v11839_v47 = vld [vmem:[%s11738_s26 + $0xb8] sm:$0xff]  ;;  %v664_v55 = vsel %vm628_vm1, %v11812_v35, 0.0  ;;  %v666_v57 = vsel %vm628_vm1, %v11821_v40, 0.0  ;;  %v668_v58 = vsel %vm628_vm1, %v11824_v41, 0.0 }
  0x1b   : > { %v637_v48 = vadd.f32 %v636_v31, %v635_v36  ;;  %v670_v59 = vsel %vm628_vm1, %v11827_v42, 0.0  ;;  %v672_v60 = vsel %vm628_vm1, %v11836_v46, 0.0  ;;  %v674_v61 = vsel %vm628_vm1, %v11839_v47, 0.0  ;;  %v11866_v36 = vld [vmem:[%s11738_s26 + $0xc0] sm:$0xff] }
  0x1d   : > { %v639_v56 = vadd.f32 %v638_v32, %v637_v48 }
  0x1f   : > { %v641_v62 = vadd.f32 %v640_v37, %v639_v56  ;;  %v11889_v56 = vld [vmem:[%s11738_s26 + $0xe8] sm:$0xff] }
  0x21   : > { %v643_v63 = vadd.f32 %v642_v38, %v641_v62  ;;  %v11899_v62 = vld [vmem:[%s11738_s26 + $0xf8] sm:$0xff] }
  0x23   : > { %v645_v0 = vadd.f32 %v644_v39, %v643_v63  ;;  %v11869_v39 = vld [vmem:[%s11738_s26 + $0xc8] sm:$0xff] }
  0x25   : > { %v647_v1 = vadd.f32 %v646_v43, %v645_v0 }
  0x27   : > { %v649_v2 = vadd.f32 %v648_v44, %v647_v1  ;;  %v676_v44 = vsel %vm628_vm1, %v11866_v36, 0.0 }
  0x29   : > { %v651_v5 = vadd.f32 %v650_v45, %v649_v2  ;;  %v11874_v45 = vld [vmem:[%s11738_s26 + $0xd0] sm:$0xff]  ;;  %v690_v2 = vsel %vm628_vm1, %v11899_v62, 0.0 }
  0x2b   : > { %v653_v13 = vadd.f32 %v652_v49, %v651_v5  ;;  %v678_v49 = vsel %vm628_vm1, %v11869_v39, 0.0 }
  0x2d   : > { %v655_v14 = vadd.f32 %v654_v50, %v653_v13  ;;  %v11879_v50 = vld [vmem:[%s11738_s26 + $0xd8] sm:$0xff] }
  0x2f   : > { %v657_v15 = vadd.f32 %v656_v51, %v655_v14 }
  0x31   : > { %v659_v19 = vadd.f32 %v658_v52, %v657_v15  ;;  %v680_v52 = vsel %vm628_vm1, %v11874_v45, 0.0 }
  0x33   : > { %v661_v23 = vadd.f32 %v660_v53, %v659_v19  ;;  %v11884_v53 = vld [vmem:[%s11738_s26 + $0xe0] sm:$0xff] }
  0x35   : > { %v663_v27 = vadd.f32 %v662_v54, %v661_v23 }
  0x37   : > { %v665_v31 = vadd.f32 %v664_v55, %v663_v27  ;;  %v682_v55 = vsel %vm628_vm1, %v11879_v50, 0.0 }
  0x39   : > { %v667_v32 = vadd.f32 %v666_v57, %v665_v31 }
  0x3b   : > { %v669_v37 = vadd.f32 %v668_v58, %v667_v32  ;;  %v684_v58 = vsel %vm628_vm1, %v11884_v53, 0.0 }
  0x3d   : > { %v671_v38 = vadd.f32 %v670_v59, %v669_v37  ;;  %v11894_v59 = vld [vmem:[%s11738_s26 + $0xf0] sm:$0xff] }
  0x3e   : > { %v688_v0 = vsel %vm628_vm1, %v11894_v59, 0.0 }
  0x3f   : > { %v673_v43 = vadd.f32 %v672_v60, %v671_v38 }
  0x41   : > { %v675_v48 = vadd.f32 %v674_v61, %v673_v43  ;;  %v686_v61 = vsel %vm628_vm1, %v11889_v56, 0.0  ;;  %v393_v43 = vlaneseq }
  0x43   : > { %v677_v51 = vadd.f32 %v676_v44, %v675_v48  ;;  %v11914_v44 = vshrl.u32 %v393_v43, 7 }
  0x45   : > { %v679_v54 = vadd.f32 %v678_v49, %v677_v51  ;;  %v11917_v51 = vsub.s32 0, %v11914_v44  ;;  %vm1512_vm3 = vcmp.lt.s32.totalorder %v11914_v44, 1  ;;  %vm490_vm4 = vcmp.ge.s32.totalorder %v11914_v44, 1 }
  0x46   : > { %vm2252_vm5 = vcmp.lt.s32.totalorder %v11914_v44, 7 }
  0x47   : > { %v681_v57 = vadd.f32 %v680_v52, %v679_v54  ;;  %15172 = vst [vmem:[#allocation3_spill] sm:$0xff] %v11917_v51 }
  0x49   : > { %v683_v60 = vadd.f32 %v682_v55, %v681_v57 }
  0x4b   : > { %v685_v63 = vadd.f32 %v684_v58, %v683_v60 }
  0x4d   : > { %v687_v1 = vadd.f32 %v686_v61, %v685_v63 }
  0x4f   : > { %v689_v5 = vadd.f32 %v688_v0, %v687_v1 }
  0x51   : > { %v691_v13 = vadd.f32 %v690_v2, %v689_v5 }
  0x53   : > { %v692_v14 = vrot.slane %v691_v13, 4 }
  0x55   : > { %v693_v15 = vadd.f32 %v692_v14, %v691_v13 }
  0x57   : > { %v694_v19 = vrot.slane %v693_v15, 2 }
  0x59   : > { %v695_v23 = vadd.f32 %v694_v19, %v693_v15 }
  0x5b   : > { %v696_v27 = vrot.slane %v695_v23, 1 }
  0x5d   : > { %v697_v31 = vadd.f32 %v696_v27, %v695_v23 }
  0x5f   : > { %9804 = vmatmul.mubr.msk.f32.vlgmr.msra.gmra.mrb[0].mxu0 %vm628_vm1, %v697_v31 }
  0x60   : > { %10651 = vmatpush3.bf16.msra.mxu0 %v11706_v4  ;;  %9825 = vmatprep.mubr.msk.f32.mxu0 %vm11631_vm0, %v15108_v6 }
  0x61   : > { %10652 = vmatprep.subr.bf16.mxu0 %v15111_v3 }
  0x64   : > { %10654 = vmatpush3.bf16.msra.mxu0 %v11717_v7 }
  0x65   : > { %10655 = vmatprep.subr.bf16.mxu0 %v15111_v3 }
 0x132   : > { %v767_v32 = vpop.f32.mrb[0].mxu0 }
 0x133   : > { %v772_v37 = vmul.f32 0.00390625, %v767_v32  ;;  %v9805_v38 = vpop.f32.mrb[1].mxu0 }
 0x135   : > { %9815 = vmatmul.mubr.msk.f32.vlgmr.msra.gmra.mrb[0].mxu1 %vm628_vm1, %v772_v37 }
 0x136   : > { %9843 = vmatprep.mubr.bf16.mxu1 %v15111_v3 }
 0x208   : > { %v854_v48 = vpop.f32.mrb[0].mxu1 }
 0x209   : > { %v9816_v49 = vpop.f32.mrb[1].mxu1  ;;  %v11920_v52 = vrot.slane %v854_v48, %v11917_v51 }
 0x20b   : > { %v11924_v54 = vsub.f32 %v11742_v9, %v11920_v52  ;;  %v11928_v55 = vsub.f32 %v11745_v10, %v11920_v52  ;;  %v11932_v57 = vsub.f32 %v11748_v11, %v11920_v52  ;;  %v11936_v58 = vsub.f32 %v11751_v12, %v11920_v52 }
 0x20c   : > { %v11944_v9 = vsub.f32 %v11761_v16, %v11920_v52  ;;  %v11950_v11 = vsub.f32 %v11764_v17, %v11920_v52  ;;  %v11958_v2 = vsub.f32 %v11767_v18, %v11920_v52  ;;  %v11965_v17 = vsub.f32 %v11770_v20, %v11920_v52 }
 0x20d   : > { %v894_v60 = vmul.f32 %v11924_v54, %v11924_v54  ;;  %v895_v61 = vmul.f32 %v11928_v55, %v11928_v55  ;;  %v896_v10 = vmul.f32 %v11932_v57, %v11932_v57  ;;  %v897_v12 = vmul.f32 %v11936_v58, %v11936_v58 }
 0x20e   : > { %v898_v16 = vmul.f32 %v11944_v9, %v11944_v9  ;;  %v899_v14 = vmul.f32 %v11950_v11, %v11950_v11  ;;  %v11972_v18 = vsub.f32 %v11773_v21, %v11920_v52  ;;  %v900_v23 = vmul.f32 %v11958_v2, %v11958_v2 }
 0x20f   : > { %v926_v63 = vsel %vm628_vm1, %v894_v60, 0.0  ;;  %v927_v0 = vsel %vm628_vm1, %v895_v61, 0.0  ;;  %v929_v5 = vsel %vm628_vm1, %v896_v10, 0.0  ;;  %v931_v15 = vsel %vm628_vm1, %v897_v12, 0.0 }
 0x210   : > { %v928_v1 = vadd.f32 %v927_v0, %v926_v63  ;;  %v933_v27 = vsel %vm628_vm1, %v898_v16, 0.0  ;;  %v11979_v20 = vsub.f32 %v11776_v22, %v11920_v52  ;;  %v901_v32 = vmul.f32 %v11965_v17, %v11965_v17 }
 0x211   : > { %v935_v37 = vsel %vm628_vm1, %v899_v14, 0.0  ;;  %v11986_v21 = vsub.f32 %v11781_v24, %v11920_v52  ;;  %v902_v43 = vmul.f32 %v11972_v18, %v11972_v18  ;;  %v937_v48 = vsel %vm628_vm1, %v900_v23, 0.0 }
 0x212   : > { %v930_v13 = vadd.f32 %v929_v5, %v928_v1  ;;  %v11993_v22 = vsub.f32 %v11784_v25, %v11920_v52  ;;  %v903_v60 = vmul.f32 %v11979_v20, %v11979_v20  ;;  %v939_v61 = vsel %vm628_vm1, %v901_v32, 0.0 }
 0x213   : > { %v12000_v24 = vsub.f32 %v11787_v26, %v11920_v52  ;;  %v904_v12 = vmul.f32 %v11986_v21, %v11986_v21  ;;  %v941_v63 = vsel %vm628_vm1, %v902_v43, 0.0  ;;  %v12007_v25 = vsub.f32 %v11790_v28, %v11920_v52 }
 0x214   : > { %v932_v19 = vadd.f32 %v931_v15, %v930_v13  ;;  %v905_v1 = vmul.f32 %v11993_v22, %v11993_v22  ;;  %v943_v16 = vsel %vm628_vm1, %v903_v60, 0.0  ;;  %v12014_v26 = vsub.f32 %v11793_v29, %v11920_v52 }
 0x215   : > { %v906_v13 = vmul.f32 %v12000_v24, %v12000_v24  ;;  %v945_v14 = vsel %vm628_vm1, %v904_v12, 0.0  ;;  %v12021_v28 = vsub.f32 %v11796_v30, %v11920_v52  ;;  %v12028_v29 = vsub.f32 %v11806_v33, %v11920_v52 }
 0x216   : > { %v934_v31 = vadd.f32 %v933_v27, %v932_v19  ;;  %v907_v19 = vmul.f32 %v12007_v25, %v12007_v25  ;;  %v947_v23 = vsel %vm628_vm1, %v905_v1, 0.0  ;;  %v12035_v30 = vsub.f32 %v11809_v34, %v11920_v52 }
 0x217   : > { %v949_v32 = vsel %vm628_vm1, %v906_v13, 0.0  ;;  %v12042_v33 = vsub.f32 %v11812_v35, %v11920_v52  ;;  %v12049_v34 = vsub.f32 %v11821_v40, %v11920_v52  ;;  %v12056_v35 = vsub.f32 %v11824_v41, %v11920_v52 }
 0x218   : > { %v936_v38 = vadd.f32 %v935_v37, %v934_v31  ;;  %v908_v31 = vmul.f32 %v12014_v26, %v12014_v26  ;;  %v951_v43 = vsel %vm628_vm1, %v907_v19, 0.0  ;;  %v12063_v40 = vsub.f32 %v11827_v42, %v11920_v52 }
 0x219   : > { %v12070_v41 = vsub.f32 %v11836_v46, %v11920_v52  ;;  %v12077_v42 = vsub.f32 %v11839_v47, %v11920_v52  ;;  %v12084_v46 = vsub.f32 %v11866_v36, %v11920_v52  ;;  %v12091_v47 = vsub.f32 %v11869_v39, %v11920_v52 }
 0x21a   : > { %v938_v49 = vadd.f32 %v937_v48, %v936_v38  ;;  %v909_v38 = vmul.f32 %v12021_v28, %v12021_v28  ;;  %v953_v60 = vsel %vm628_vm1, %v908_v31, 0.0  ;;  %v12098_v36 = vsub.f32 %v11874_v45, %v11920_v52 }
 0x21b   : > { %v12105_v39 = vsub.f32 %v11879_v50, %v11920_v52  ;;  %v12112_v45 = vsub.f32 %v11884_v53, %v11920_v52  ;;  %v12119_v50 = vsub.f32 %v11889_v56, %v11920_v52  ;;  %v12126_v53 = vsub.f32 %v11894_v59, %v11920_v52 }
 0x21c   : > { %v940_v10 = vadd.f32 %v939_v61, %v938_v49  ;;  %v910_v49 = vmul.f32 %v12028_v29, %v12028_v29  ;;  %v955_v12 = vsel %vm628_vm1, %v909_v38, 0.0  ;;  %v893_v56 = vsub.f32 %v11899_v62, %v11920_v52 }
 0x21e   : > { %v942_v0 = vadd.f32 %v941_v63, %v940_v10  ;;  %v911_v10 = vmul.f32 %v12035_v30, %v12035_v30  ;;  %v957_v1 = vsel %vm628_vm1, %v910_v49, 0.0 }
 0x220   : > { %v944_v5 = vadd.f32 %v943_v16, %v942_v0  ;;  %v912_v0 = vmul.f32 %v12042_v33, %v12042_v33  ;;  %v959_v13 = vsel %vm628_vm1, %v911_v10, 0.0 }
 0x222   : > { %v946_v15 = vadd.f32 %v945_v14, %v944_v5  ;;  %v913_v5 = vmul.f32 %v12049_v34, %v12049_v34  ;;  %v961_v19 = vsel %vm628_vm1, %v912_v0, 0.0 }
 0x224   : > { %v948_v27 = vadd.f32 %v947_v23, %v946_v15  ;;  %v914_v15 = vmul.f32 %v12056_v35, %v12056_v35  ;;  %v963_v31 = vsel %vm628_vm1, %v913_v5, 0.0 }
 0x226   : > { %v950_v37 = vadd.f32 %v949_v32, %v948_v27  ;;  %v915_v27 = vmul.f32 %v12063_v40, %v12063_v40  ;;  %v965_v38 = vsel %vm628_vm1, %v914_v15, 0.0 }
 0x228   : > { %v952_v48 = vadd.f32 %v951_v43, %v950_v37  ;;  %v916_v37 = vmul.f32 %v12070_v41, %v12070_v41  ;;  %v967_v49 = vsel %vm628_vm1, %v915_v27, 0.0 }
 0x22a   : > { %v954_v61 = vadd.f32 %v953_v60, %v952_v48  ;;  %v917_v48 = vmul.f32 %v12077_v42, %v12077_v42  ;;  %v969_v10 = vsel %vm628_vm1, %v916_v37, 0.0 }
 0x22c   : > { %v956_v63 = vadd.f32 %v955_v12, %v954_v61  ;;  %v918_v61 = vmul.f32 %v12084_v46, %v12084_v46  ;;  %v971_v0 = vsel %vm628_vm1, %v917_v48, 0.0 }
 0x22e   : > { %v958_v16 = vadd.f32 %v957_v1, %v956_v63  ;;  %v919_v63 = vmul.f32 %v12091_v47, %v12091_v47  ;;  %v973_v5 = vsel %vm628_vm1, %v918_v61, 0.0 }
 0x230   : > { %v960_v14 = vadd.f32 %v959_v13, %v958_v16  ;;  %v920_v16 = vmul.f32 %v12098_v36, %v12098_v36  ;;  %v975_v15 = vsel %vm628_vm1, %v919_v63, 0.0 }
 0x232   : > { %v962_v23 = vadd.f32 %v961_v19, %v960_v14  ;;  %v921_v14 = vmul.f32 %v12105_v39, %v12105_v39  ;;  %v977_v27 = vsel %vm628_vm1, %v920_v16, 0.0 }
 0x234   : > { %v964_v32 = vadd.f32 %v963_v31, %v962_v23  ;;  %v922_v23 = vmul.f32 %v12112_v45, %v12112_v45  ;;  %v979_v37 = vsel %vm628_vm1, %v921_v14, 0.0 }
 0x236   : > { %v966_v43 = vadd.f32 %v965_v38, %v964_v32  ;;  %v923_v32 = vmul.f32 %v12119_v50, %v12119_v50  ;;  %v981_v59 = vsel %vm628_vm1, %v922_v23, 0.0 }
 0x238   : > { %v968_v60 = vadd.f32 %v967_v49, %v966_v43  ;;  %v924_v43 = vmul.f32 %v12126_v53, %v12126_v53  ;;  %v925_v49 = vmul.f32 %v893_v56, %v893_v56 }
 0x23a   : > { %v970_v12 = vadd.f32 %v969_v10, %v968_v60  ;;  %v983_v60 = vsel %vm628_vm1, %v923_v32, 0.0  ;;  %v985_v10 = vsel %vm628_vm1, %v924_v43, 0.0  ;;  %v987_v62 = vsel %vm628_vm1, %v925_v49, 0.0  ;;  %v12174_v43 = vld [vmem:[%s15098_s1] ss:$0 sm:$0xff] }
 0x23c   : > { %v972_v1 = vadd.f32 %v971_v0, %v970_v12 }
 0x23e   : > { %v974_v13 = vadd.f32 %v973_v5, %v972_v1 }
 0x240   : > { %v976_v19 = vadd.f32 %v975_v15, %v974_v13 }
 0x242   : > { %v978_v31 = vadd.f32 %v977_v27, %v976_v19 }
 0x244   : > { %v980_v38 = vadd.f32 %v979_v37, %v978_v31  ;;  %v12165_v31 = vld [vmem:[%s15102_s5] sm:$0xff]  }
 0x246   : > { %v982_v48 = vadd.f32 %v981_v59, %v980_v38 }
 0x248   : > { %v984_v61 = vadd.f32 %v983_v60, %v982_v48  ;;  %v12184_v60 = vld [vmem:[%s15099_s2] ss:$0 sm:$0xff] }
 0x24a   : > { %v986_v12 = vadd.f32 %v985_v10, %v984_v61 }
 0x24c   : > { %v988_v52 = vadd.f32 %v987_v62, %v986_v12 }
 0x24e   : > { %v989_v63 = vrot.slane %v988_v52, 4 }
 0x250   : > { %v990_v0 = vadd.f32 %v989_v63, %v988_v52 }
 0x252   : > { %v991_v1 = vrot.slane %v990_v0, 2 }
 0x254   : > { %v992_v16 = vadd.f32 %v991_v1, %v990_v0 }
 0x256   : > { %v993_v5 = vrot.slane %v992_v16, 1 }
 0x258   : > { %v994_v13 = vadd.f32 %v993_v5, %v992_v16 }
 0x25a   : > { %9826 = vmatmul.mubr.msk.f32.vlgmr.msra.gmra.mrb[2].mxu0 %vm628_vm1, %v994_v13 }
 0x25b   : > { %10658 = vmatpush3.bf16.xpose.msk.msra.mxu0 %vm11723_vm2, %v11706_v4  ;;  %9836 = vmatprep.mubr.msk.f32.mxu0 %vm11631_vm0, %v15108_v6  ;;  %v11274_v4 = vld [vmem:[%s15102_s5 + $0x10] sm:$0xff]  }
 0x25c   : > { %10659 = vmatprep.subr.bf16.mxu0 %v15111_v3  ;;  %9839 = vmatprep.subr.bf16.mxu1 %v11274_v4 }
 0x25d   : > { %9840 = vmatpush3.bf16.msra.mxu1 %v11274_v4 }
 0x263   : > { %10662 = vmatpush3.bf16.xpose.msk.msra.mxu0 %vm11723_vm2, %v11717_v7  ;;  %v11275_v7 = vld [vmem:[%s15102_s5 + $0x18] sm:$0xff]  }
 0x264   : > { %10663 = vmatprep.subr.bf16.mxu0 %v15111_v3  ;;  %9841 = vmatprep.subr.bf16.mxu1 %v11275_v7 }
 0x265   : > { %9842 = vmatpush3.bf16.msra.mxu1 %v11275_v7 }
 0x266   : > { %9875 = vmatprep.subr.bf16.mxu1 %v12165_v31 }
 0x32d   : > { %v1064_v14 = vpop.f32.mrb[2].mxu0 }
 0x32e   : > { %v1068_v15 = vmul.f32 0.00390625, %v1064_v14  ;;  %v9827_v19 = vpop.f32.mrb[3].mxu0 }
 0x330   : > { %v1069_v23 = vadd.f32 1e-06, %v1068_v15 }
 0x332   : > { %11330 = vrsqrt.f32 %v1069_v23 }
 0x33c   : > { %v11331_v27 = vpop.eup %11330 }
 0x33d   : > { %9837 = vmatmul.mubr.msk.f32.vlgmr.msra.gmra.mrb[4].mxu0 %vm628_vm1, %v11331_v27 }
 0x33e   : > { %10179 = vmatprep.mubr.msk.f32.mxu0 %vm11631_vm0, %v15108_v6 }
 0x410   : > { %v1140_v32 = vpop.f32.mrb[4].mxu0 }
 0x411   : > { %v12169_v37 = vrot.slane %v1140_v32, %v11917_v51  ;;  %v9838_v38 = vpop.f32.mrb[5].mxu0 }
 0x413   : > { %v1179_v59 = vmul.f32 %v12169_v37, %v893_v56  ;;  %v1148_v48 = vmul.f32 %v12169_v37, %v11924_v54  ;;  %v1149_v49 = vmul.f32 %v12169_v37, %v11928_v55  ;;  %v1150_v61 = vmul.f32 %v12169_v37, %v11932_v57 }
 0x414   : > { %v1151_v10 = vmul.f32 %v12169_v37, %v11936_v58  ;;  %v1152_v56 = vmul.f32 %v12169_v37, %v11944_v9  ;;  %v1153_v54 = vmul.f32 %v12169_v37, %v11950_v11  ;;  %v1154_v52 = vmul.f32 %v12169_v37, %v11958_v2 }
 0x415   : > { %v1217_v12 = vmul.f32 %v12174_v43, %v1179_v59  ;;  %v1186_v55 = vmul.f32 %v12174_v43, %v1148_v48  ;;  %v1187_v62 = vmul.f32 %v12174_v43, %v1149_v49  ;;  %v1188_v57 = vmul.f32 %v12174_v43, %v1150_v61 }
 0x416   : > { %v1189_v63 = vmul.f32 %v12174_v43, %v1151_v10  ;;  %v1190_v58 = vmul.f32 %v12174_v43, %v1152_v56  ;;  %v1191_v9 = vmul.f32 %v12174_v43, %v1153_v54  ;;  %v1155_v2 = vmul.f32 %v12169_v37, %v11965_v17 }
 0x417   : > { %v12204_v0 = vadd.f32 %v12184_v60, %v1217_v12  ;;  %v12207_v11 = vadd.f32 %v12184_v60, %v1186_v55  ;;  %v12210_v1 = vadd.f32 %v12184_v60, %v1187_v62  ;;  %v12215_v16 = vadd.f32 %v12184_v60, %v1188_v57 }
 0x418   : > { %v12218_v5 = vadd.f32 %v12184_v60, %v1189_v63  ;;  %v12221_v13 = vadd.f32 %v12184_v60, %v1190_v58  ;;  %v12224_v14 = vadd.f32 %v12184_v60, %v1191_v9  ;;  %v1192_v17 = vmul.f32 %v12174_v43, %v1154_v52 }
 0x419   : > { %v8876_v15 = vmul.f32 -1.442695, %v12204_v0  ;;  %v8845_v19 = vmul.f32 -1.442695, %v12207_v11  ;;  %v8846_v23 = vmul.f32 -1.442695, %v12210_v1  ;;  %v1193_v32 = vmul.f32 %v12174_v43, %v1155_v2 }
 0x41a   : > { %v8847_v27 = vmul.f32 -1.442695, %v12215_v16  ;;  %v8848_v4 = vmul.f32 -1.442695, %v12218_v5  ;;  %v8849_v7 = vmul.f32 -1.442695, %v12221_v13  ;;  %v12236_v59 = vadd.f32 %v12184_v60, %v1192_v17 }
 0x41b   : > { %11332 = vpow2.f32 %v8876_v15  ;;  %v8850_v38 = vmul.f32 -1.442695, %v12224_v14  ;;  %v1156_v48 = vmul.f32 %v12169_v37, %v11972_v18  ;;  %v12241_v49 = vadd.f32 %v12184_v60, %v1193_v32 }
 0x41c   : > { %11334 = vpow2.f32 %v8845_v19  ;;  %v1157_v61 = vmul.f32 %v12169_v37, %v11979_v20  ;;  %v1158_v10 = vmul.f32 %v12169_v37, %v11986_v21  ;;  %v8851_v56 = vmul.f32 -1.442695, %v12236_v59 }
 0x41d   : > { %11336 = vpow2.f32 %v8846_v23  ;;  %v1194_v54 = vmul.f32 %v12174_v43, %v1156_v48  ;;  %v1159_v12 = vmul.f32 %v12169_v37, %v11993_v22  ;;  %v8852_v18 = vmul.f32 -1.442695, %v12241_v49 }
 0x41e   : > { %11338 = vpow2.f32 %v8847_v27  ;;  %v1195_v55 = vmul.f32 %v12174_v43, %v1157_v61  ;;  %v1196_v62 = vmul.f32 %v12174_v43, %v1158_v10  ;;  %v1160_v52 = vmul.f32 %v12169_v37, %v12000_v24 }
 0x41f   : > { %11340 = vpow2.f32 %v8848_v4  ;;  %v12255_v20 = vadd.f32 %v12184_v60, %v1194_v54  ;;  %v1197_v21 = vmul.f32 %v12174_v43, %v1159_v12  ;;  %v1161_v63 = vmul.f32 %v12169_v37, %v12007_v25 }
 0x420   : > { %11342 = vpow2.f32 %v8849_v7  ;;  %v12261_v57 = vadd.f32 %v12184_v60, %v1195_v55  ;;  %v12264_v22 = vadd.f32 %v12184_v60, %v1196_v62  ;;  %v1198_v2 = vmul.f32 %v12174_v43, %v1160_v52 }
 0x421   : > { %11344 = vpow2.f32 %v8850_v38  ;;  %v8853_v58 = vmul.f32 -1.442695, %v12255_v20  ;;  %v12270_v9 = vadd.f32 %v12184_v60, %v1197_v21  ;;  %v1199_v19 = vmul.f32 %v12174_v43, %v1161_v63 }
 0x422   : > { %11346 = vpow2.f32 %v8851_v56  ;;  %v8854_v24 = vmul.f32 -1.442695, %v12261_v57  ;;  %v8855_v15 = vmul.f32 -1.442695, %v12264_v22  ;;  %v1162_v25 = vmul.f32 %v12169_v37, %v12014_v26 }
 0x423   : > { %11348 = vpow2.f32 %v8852_v18  ;;  %v8856_v23 = vmul.f32 -1.442695, %v12270_v9  ;;  %v1163_v17 = vmul.f32 %v12169_v37, %v12021_v28  ;;  %v1164_v27 = vmul.f32 %v12169_v37, %v12028_v29 }
 0x424   : > { %11350 = vpow2.f32 %v8853_v58  ;;  %v12284_v7 = vadd.f32 %v12184_v60, %v1198_v2  ;;  %v12287_v32 = vadd.f32 %v12184_v60, %v1199_v19  ;;  %v1200_v38 = vmul.f32 %v12174_v43, %v1162_v25 }
 0x425   : > { %v11333_v4 = vpop.eup %11332  ;;  %11352 = vpow2.f32 %v8854_v24  ;;  %v1201_v26 = vmul.f32 %v12174_v43, %v1163_v17  ;;  %v1165_v28 = vmul.f32 %v12169_v37, %v12035_v30  ;;  %v1202_v18 = vmul.f32 %v12174_v43, %v1164_v27 }
 0x426   : > { %v11335_v48 = vpop.eup %11334  ;;  %v1383_v61 = vadd.f32 1.0, %v11333_v4  ;;  %11354 = vpow2.f32 %v8855_v15  ;;  %v12294_v56 = vadd.f32 %v12184_v60, %v1200_v38  ;;  %v8857_v21 = vmul.f32 -1.442695, %v12284_v7 }
 0x427   : > { %v11337_v10 = vpop.eup %11336  ;;  %v1352_v29 = vadd.f32 1.0, %v11335_v48  ;;  %11356 = vpow2.f32 %v8856_v23  ;;  %v12299_v52 = vmul.f32 -1.442695, %v12287_v32  ;;  %v12302_v58 = vadd.f32 %v12184_v60, %v1201_v26 }
 0x428   : > { %v11339_v54 = vpop.eup %11338  ;;  %11358 = vrcp.f32 %v1383_v61  ;;  %v1353_v12 = vadd.f32 1.0, %v11337_v10  ;;  %v1203_v2 = vmul.f32 %v12174_v43, %v1165_v28  ;;  %v12306_v19 = vmul.f32 -1.442695, %v12294_v56 }
 0x429   : > { %v11341_v55 = vpop.eup %11340  ;;  %11360 = vrcp.f32 %v1352_v29  ;;  %v1354_v62 = vadd.f32 1.0, %v11339_v54  ;;  %v1166_v23 = vmul.f32 %v12169_v37, %v12042_v33  ;;  %v12311_v27 = vadd.f32 %v12184_v60, %v1202_v18 }
 0x42a   : > { %v11343_v30 = vpop.eup %11342  ;;  %11362 = vrcp.f32 %v1353_v12  ;;  %v1355_v63 = vadd.f32 1.0, %v11341_v55  ;;  %v1167_v4 = vmul.f32 %v12169_v37, %v12049_v34  ;;  %v1168_v26 = vmul.f32 %v12169_v37, %v12056_v35 }
 0x42b   : > { %v11345_v24 = vpop.eup %11344  ;;  %11364 = vrcp.f32 %v1354_v62  ;;  %v1356_v15 = vadd.f32 1.0, %v11343_v30  ;;  %v1204_v61 = vmul.f32 %v12174_v43, %v1166_v23  ;;  %v1169_v29 = vmul.f32 %v12169_v37, %v12063_v40 }
 0x42c   : > { %v11347_v25 = vpop.eup %11346  ;;  %11366 = vrcp.f32 %v1355_v63  ;;  %v1357_v17 = vadd.f32 1.0, %v11345_v24  ;;  %v1205_v10 = vmul.f32 %v12174_v43, %v1167_v4  ;;  %v12322_v34 = vadd.f32 %v12184_v60, %v1203_v2 }
 0x42d   : > { %v11349_v38 = vpop.eup %11348  ;;  %11368 = vrcp.f32 %v1356_v15  ;;  %v1358_v48 = vadd.f32 1.0, %v11347_v25  ;;  %v1206_v18 = vmul.f32 %v12174_v43, %v1168_v26  ;;  %v12326_v35 = vadd.f32 %v12184_v60, %v1204_v61 }
 0x42e   : > { %v11351_v28 = vpop.eup %11350  ;;  %11370 = vrcp.f32 %v1357_v17  ;;  %v1359_v33 = vadd.f32 1.0, %v11349_v38  ;;  %v1207_v30 = vmul.f32 %v12174_v43, %v1169_v29  ;;  %v8860_v40 = vmul.f32 -1.442695, %v12302_v58 }
 0x42f   : > { %v11353_v54 = vpop.eup %11352  ;;  %11372 = vrcp.f32 %v1358_v48  ;;  %v1360_v12 = vadd.f32 1.0, %v11351_v28  ;;  %v12331_v15 = vadd.f32 %v12184_v60, %v1205_v10  ;;  %v8861_v25 = vmul.f32 -1.442695, %v12311_v27 }
 0x430   : > { %v11355_v55 = vpop.eup %11354  ;;  %11374 = vrcp.f32 %v1359_v33  ;;  %v1361_v62 = vadd.f32 1.0, %v11353_v54  ;;  %v12335_v17 = vadd.f32 %v12184_v60, %v1206_v18  ;;  %v8862_v38 = vmul.f32 -1.442695, %v12322_v34 }
 0x431   : > { %v11357_v63 = vpop.eup %11356  ;;  %11376 = vrcp.f32 %v1360_v12  ;;  %v1362_v24 = vadd.f32 1.0, %v11355_v55  ;;  %v12339_v48 = vadd.f32 %v12184_v60, %v1207_v30  ;;  %v1170_v61 = vmul.f32 %v12169_v37, %v12070_v41 }
 0x432   : > { %v11359_v2 = vpop.eup %11358  ;;  %11378 = vrcp.f32 %v1361_v62  ;;  %v1363_v23 = vadd.f32 1.0, %v11357_v63  ;;  %v8863_v33 = vmul.f32 -1.442695, %v12326_v35  ;;  %v1171_v10 = vmul.f32 %v12169_v37, %v12077_v42 }
 0x433   : > { %v11361_v4 = vpop.eup %11360  ;;  %11380 = vrcp.f32 %v1362_v24  ;;  %v8864_v12 = vmul.f32 -1.442695, %v12331_v15  ;;  %v1208_v18 = vmul.f32 %v12174_v43, %v1170_v61  ;;  %v12355_v55 = vmul.f32 %v11359_v2, %v12204_v0  ;;  %v11277_v0 = vld [vmem:[%s15102_s5 + $0x8] sm:$0xff]  }
 0x434   : > { %v11363_v26 = vpop.eup %11362  ;;  %v12344_v28 = vmul.f32 %v11361_v4, %v12207_v11  ;;  %11382 = vrcp.f32 %v1363_v23  ;;  %v8865_v42 = vmul.f32 -1.442695, %v12335_v17  ;;  %v8866_v30 = vmul.f32 -1.442695, %v12339_v48 }
 0x435   : > { %v11365_v29 = vpop.eup %11364  ;;  %v12350_v54 = vmul.f32 %v11363_v26, %v12210_v1  ;;  %11384 = vpow2.f32 %v8857_v21  ;;  %v12391_v4 = vadd.f32 %v12184_v60, %v1208_v18  ;;  %v1173_v26 = vmul.f32 %v12169_v37, %v12091_v47  ;;  %v12415_v47 = vld [vmem:[%s15102_s5 + $0x20] sm:$0xff]  }
 0x436   : > { %v11367_v41 = vpop.eup %11366  ;;  %v12358_v11 = vmul.f32 %v11365_v29, %v12215_v16  ;;  %11386 = vpow2.f32 %v12299_v52  ;;  %v1172_v16 = vmul.f32 %v12169_v37, %v12084_v46  ;;  %v1480_v63 = vrot.slane %v12344_v28, 7 }
 0x437   : > { %v11369_v62 = vpop.eup %11368  ;;  %v12364_v1 = vpack.c.bf16 %v12350_v54, %v12344_v28  ;;  %v12367_v21 = vmul.f32 %v11367_v41, %v12218_v5  ;;  %11388 = vpow2.f32 %v12306_v19  ;;  %v1209_v5 = vmul.f32 %v12174_v43, %v1171_v10 }
 0x438   : > { %v11371_v52 = vpop.eup %11370  ;;  %v12377_v24 = vmul.f32 %v11369_v62, %v12221_v13  ;;  %11390 = vpow2.f32 %v8860_v40  ;;  %v15113_v19 = vrot.slane %v12350_v54, 7  ;;  %v8867_v18 = vmul.f32 -1.442695, %v12391_v4 }
 0x439   : > { %v11373_v2 = vpop.eup %11372  ;;  %9844 = vmatmul.mubr.msk.bf16.vlgmr.msra.gmra.mrb[4].mxu1 %vm628_vm1, %v12364_v1  ;;  %v12385_v23 = vpack.c.bf16 %v12367_v21, %v12358_v11  ;;  %v12388_v46 = vmul.f32 %v11371_v52, %v12224_v14  ;;  %11392 = vpow2.f32 %v8861_v25  ;;  %v12396_v61 = vadd.f32 %v12184_v60, %v1209_v5 }
 0x43a   : > { %v11375_v13 = vpop.eup %11374  ;;  %9876 = vmatpush3.bf16.msra.mxu1 %v12165_v31  ;;  %v12407_v40 = vmul.f32 %v11373_v2, %v12236_v59  ;;  %11394 = vpow2.f32 %v8862_v38  ;;  %v1210_v59 = vmul.f32 %v12174_v43, %v1172_v16  ;;  %v1211_v62 = vmul.f32 %v12174_v43, %v1173_v26 }
 0x43b   : > { %v11377_v10 = vpop.eup %11376  ;;  %9847 = vmatprep.mubr.msk.bf16.mxu1 %vm628_vm1, %v12385_v23  ;;  %v12404_v14 = vpack.c.bf16 %v12388_v46, %v12377_v24  ;;  %v12410_v31 = vmul.f32 %v11375_v13, %v12241_v49  ;;  %9877 = vmatprep.subr.bf16.mxu1 %v11277_v0  ;;  %11396 = vpow2.f32 %v8863_v33  ;;  %v8868_v38 = vmul.f32 -1.442695, %v12396_v61 }
 0x43c   : > { %v11379_v25 = vpop.eup %11378  ;;  %v12418_v29 = vmul.f32 %v11377_v10, %v12255_v20  ;;  %11398 = vpow2.f32 %v8864_v12  ;;  %v12432_v33 = vadd.f32 %v12184_v60, %v1210_v59  ;;  %v1174_v16 = vmul.f32 %v12169_v37, %v12098_v36 }
 0x43d   : > { %15173 = vst [vmem:[#allocation4_spill] sm:$0xff] %v12404_v14  ;;  %v11381_v41 = vpop.eup %11380  ;;  %v12424_v49 = vmul.f32 %v11379_v25, %v12261_v57  ;;  %11400 = vpow2.f32 %v8865_v42  ;;  %v12438_v57 = vpack.c.bf16 %v12410_v31, %v12407_v40  ;;  %v1175_v2 = vmul.f32 %v12169_v37, %v12105_v39 }
 0x43e   : > { %v11383_v52 = vpop.eup %11382  ;;  %v12429_v20 = vmul.f32 %v11381_v41, %v12264_v22  ;;  %9878 = vmatpush3.bf16.msra.mxu1 %v11277_v0  ;;  %11402 = vpow2.f32 %v8866_v30  ;;  %v8869_v36 = vmul.f32 -1.442695, %v12432_v33  ;;  %v12459_v13 = vadd.f32 %v12184_v60, %v1211_v62 }
 0x43f   : > { %v11385_v5 = vpop.eup %11384  ;;  %15174 = vst [vmem:[#allocation5_spill] sm:$0xff] %v12438_v57  ;;  %v12442_v12 = vpack.c.bf16 %v12424_v49, %v12418_v29  ;;  %v12445_v22 = vmul.f32 %v11383_v52, %v12270_v9  ;;  %9911 = vmatprep.subr.bf16.mxu1 %v12415_v47  ;;  %11404 = vpow2.f32 %v8867_v18  ;;  %v1212_v10 = vmul.f32 %v12174_v43, %v1174_v16 }
 0x440   : > { %v11387_v42 = vpop.eup %11386  ;;  %v1364_v0 = vadd.f32 1.0, %v11385_v5  ;;  %11406 = vpow2.f32 %v8868_v38  ;;  %v1213_v39 = vmul.f32 %v12174_v43, %v1175_v2  ;;  %v1176_v25 = vmul.f32 %v12169_v37, %v12112_v45 }
 0x441   : > { %15175 = vst [vmem:[#allocation6_spill] sm:$0xff] %v12442_v12  ;;  %9848 = vmatmul.mubr.msk.bf16.gmra.mrb[8].mxu1 %vm628_vm1, %v12404_v14  ;;  %v12456_v9 = vpack.c.bf16 %v12445_v22, %v12429_v20  ;;  %v1365_v30 = vadd.f32 1.0, %v11387_v42  ;;  %v11389_v26 = vpop.eup %11388  ;;  %v1177_v41 = vmul.f32 %v12169_v37, %v12119_v50  ;;  %v15110_v38 = vrot.slane %v12355_v55, 7 }
 0x442   : > { %9851 = vmatprep.mubr.msk.bf16.mxu1 %vm628_vm1, %v12438_v57  ;;  %11408 = vrcp.f32 %v1364_v0  ;;  %v11391_v18 = vpop.eup %11390  ;;  %v1366_v59 = vadd.f32 1.0, %v11389_v26  ;;  %v12471_v5 = vadd.f32 %v12184_v60, %v1212_v10  ;;  %v12474_v16 = vadd.f32 %v12184_v60, %v1213_v39 }
 0x443   : > { %15176 = vst [vmem:[#allocation7_spill] sm:$0xff] %v12456_v9  ;;  %11410 = vrcp.f32 %v1365_v30  ;;  %v11393_v62 = vpop.eup %11392  ;;  %v1367_v52 = vadd.f32 1.0, %v11391_v18  ;;  %v1214_v0 = vmul.f32 %v12174_v43, %v1176_v25  ;;  %v1215_v2 = vmul.f32 %v12174_v43, %v1177_v41 }
 0x444   : > { %11412 = vpow2.f32 %v8869_v36  ;;  %v11395_v42 = vpop.eup %11394  ;;  %v1368_v45 = vadd.f32 1.0, %v11393_v62  ;;  %v8870_v26 = vmul.f32 -1.442695, %v12459_v13  ;;  %v8871_v36 = vmul.f32 -1.442695, %v12471_v5 }
 0x445   : > { %11414 = vrcp.f32 %v1366_v59  ;;  %v11397_v30 = vpop.eup %11396  ;;  %v1369_v50 = vadd.f32 1.0, %v11395_v42  ;;  %v8872_v39 = vmul.f32 -1.442695, %v12474_v16  ;;  %v12482_v6 = vadd.f32 %v12184_v60, %v1214_v0 }
 0x446   : > { %11416 = vrcp.f32 %v1367_v52  ;;  %v11399_v18 = vpop.eup %11398  ;;  %v1370_v10 = vadd.f32 1.0, %v11397_v30  ;;  %v1543_v41 = vsel %vm1512_vm3, %v1480_v63, %v15113_v19  ;;  %v1544_v62 = vsel %vm1512_vm3, %v15110_v38, %v1480_v63 }
 0x447   : > { %11418 = vrcp.f32 %v1368_v45  ;;  %v11401_v59 = vpop.eup %11400  ;;  %v1371_v25 = vadd.f32 1.0, %v11399_v18  ;;  %v12499_v45 = vadd.f32 %v12184_v60, %v1215_v2  ;;  %v8873_v0 = vmul.f32 -1.442695, %v12482_v6 }
 0x448   : > { %11420 = vrcp.f32 %v1369_v50  ;;  %v11403_v52 = vpop.eup %11402  ;;  %v1372_v42 = vadd.f32 1.0, %v11401_v59  ;;  %v1611_v63 = vsel %vm490_vm4, %v1544_v62, 0.0  ;;  %v1482_v18 = vrot.slane %v12358_v11, 7 }
 0x449   : > { %9852 = vmatmul.mubr.msk.bf16.gmra.mrb[12].mxu1 %vm628_vm1, %v12442_v12  ;;  %11422 = vrcp.f32 %v1370_v10  ;;  %v11405_v30 = vpop.eup %11404  ;;  %v1373_v50 = vadd.f32 1.0, %v11403_v52  ;;  %v12507_v59 = vpack.c.bf16 %v1543_v41, %v1611_v63  ;;  %v1483_v2 = vrot.slane %v12367_v21, 7 }
 0x44a   : > { %9855 = vmatprep.mubr.msk.bf16.mxu1 %vm628_vm1, %v12456_v9  ;;  %11424 = vrcp.f32 %v1371_v25  ;;  %v11407_v38 = vpop.eup %11406  ;;  %v1374_v10 = vadd.f32 1.0, %v11405_v30  ;;  %v15177_v51 = vrot.slane %v12350_v54, 7  ;;  %v1484_v52 = vrot.slane %v12377_v24, 7 }
 0x44b   : > { %11426 = vrcp.f32 %v1372_v42  ;;  %v1375_v19 = vadd.f32 1.0, %v11407_v38  ;;  %v1541_v41 = vsel %vm1512_vm3, %v1482_v18, %v1483_v2 }
 0x44c   : > { %v11409_v3 = vpop.eup %11408  ;;  %11428 = vrcp.f32 %v1373_v50  ;;  %v1542_v25 = vsel %vm1512_vm3, %v15177_v51, %v1482_v18  ;;  %v1485_v51 = vrot.slane %v12388_v46, 7  ;;  %v1486_v18 = vrot.slane %v12407_v40, 7 }
 0x44d   : > { %v11411_v62 = vpop.eup %11410  ;;  %v12516_v8 = vmul.f32 %v11409_v3, %v12284_v7  ;;  %11430 = vrcp.f32 %v1374_v10  ;;  %v1613_v42 = vsel %vm490_vm4, %v1542_v25, 0.0  ;;  %v8874_v3 = vmul.f32 -1.442695, %v12499_v45 }
 0x44e   : > { %v11413_v30 = vpop.eup %11412  ;;  %v12523_v38 = vmul.f32 %v11411_v62, %v12287_v32  ;;  %11432 = vrcp.f32 %v1375_v19  ;;  %v12525_v50 = vpack.c.bf16 %v1541_v41, %v1613_v42  ;;  %v1540_v7 = vsel %vm1512_vm3, %v1483_v2, %v1484_v52 }
 0x44f   : > { %v11415_v63 = vpop.eup %11414  ;;  %11434 = vpow2.f32 %v8870_v26  ;;  %v1539_v19 = vsel %vm1512_vm3, %v1484_v52, %v1485_v51  ;;  %v1615_v2 = vsel %vm490_vm4, %v1540_v7, 0.0  ;;  %v1487_v41 = vrot.slane %v12410_v31, 7 }
 0x450   : > { %v11417_v10 = vpop.eup %11416  ;;  %v12534_v25 = vpack.c.bf16 %v12523_v38, %v12516_v8  ;;  %v12537_v32 = vmul.f32 %v11415_v63, %v12294_v56  ;;  %11436 = vpow2.f32 %v8871_v36  ;;  %v1376_v9 = vadd.f32 1.0, %v11413_v30 }
 0x451   : > { %v11419_v26 = vpop.eup %11418  ;;  %v12542_v62 = vmul.f32 %v11417_v10, %v12302_v58  ;;  %11438 = vpow2.f32 %v8872_v39  ;;  %v12549_v56 = vpack.c.bf16 %v1539_v19, %v1615_v2  ;;  %v1538_v36 = vsel %vm1512_vm3, %v1485_v51, %v1486_v18 }
 0x452   : > { %15178 = vst [vmem:[#allocation8_spill] sm:$0xff] %v12534_v25  ;;  %v11421_v42 = vpop.eup %11420  ;;  %9856 = vmatmul.mubr.msk.bf16.gmra.mrb[16].mxu1 %vm628_vm1, %v12534_v25  ;;  %v12558_v63 = vmul.f32 %v11419_v26, %v12311_v27  ;;  %11440 = vpow2.f32 %v8873_v0  ;;  %v1537_v7 = vsel %vm1512_vm3, %v1486_v18, %v1487_v41  ;;  %v1617_v30 = vsel %vm490_vm4, %v1538_v36, 0.0 }
 0x453   : > { %v11423_v52 = vpop.eup %11422  ;;  %v12555_v58 = vpack.c.bf16 %v12542_v62, %v12537_v32  ;;  %v12563_v39 = vmul.f32 %v11421_v42, %v12322_v34  ;;  %11442 = vpow2.f32 %v8874_v3  ;;  %v1488_v51 = vrot.slane %v12418_v29, 7 }
 0x454   : > { %v11425_v10 = vpop.eup %11424  ;;  %v12571_v27 = vmul.f32 %v11423_v52, %v12326_v35  ;;  %v12576_v18 = vpack.c.bf16 %v1537_v7, %v1617_v30  ;;  %v1489_v34 = vrot.slane %v12424_v49, 7  ;;  %v1490_v2 = vrot.slane %v12429_v20, 7 }
 0x455   : > { %15179 = vst [vmem:[#allocation9_spill] sm:$0xff] %v12555_v58  ;;  %v11427_v19 = vpop.eup %11426  ;;  %9859 = vmatprep.mubr.msk.bf16.mxu1 %vm628_vm1, %v12555_v58  ;;  %v12574_v0 = vmul.f32 %v11425_v10, %v12331_v15  ;;  %v1536_v26 = vsel %vm1512_vm3, %v1487_v41, %v1488_v51  ;;  %v1491_v42 = vrot.slane %v12445_v22, 7  ;;  %11444 = vrcp.f32 %v1376_v9 }
 0x456   : > { %v11429_v3 = vpop.eup %11428  ;;  %v1535_v35 = vsel %vm1512_vm3, %v1488_v51, %v1489_v34  ;;  %v1619_v15 = vsel %vm490_vm4, %v1536_v26, 0.0  ;;  %v12589_v7 = vpack.c.bf16 %v12563_v39, %v12558_v63  ;;  %v1534_v30 = vsel %vm1512_vm3, %v1489_v34, %v1490_v2 }
 0x457   : > { %v11431_v36 = vpop.eup %11430  ;;  %v12591_v10 = vpack.c.bf16 %v1535_v35, %v1619_v15  ;;  %v1533_v41 = vsel %vm1512_vm3, %v1490_v2, %v1491_v42  ;;  %v12599_v51 = vpack.c.bf16 %v12574_v0, %v12571_v27  ;;  %v1621_v26 = vsel %vm490_vm4, %v1534_v30, 0.0 }
 0x458   : > { %v11433_v52 = vpop.eup %11432  ;;  %v1492_v58 = vrot.slane %v12516_v8, 7  ;;  %v12606_v15 = vpack.c.bf16 %v1533_v41, %v1621_v26  ;;  %v15130_v12 = vrot.slane %v12523_v38, 7  ;;  %v12612_v34 = vmul.f32 %v11427_v19, %v12335_v17 }
 0x459   : > { %v11435_v9 = vpop.eup %11434  ;;  %v12615_v2 = vmul.f32 %v11429_v3, %v12339_v48  ;;  %v12629_v48 = vmul.f32 %v11433_v52, %v12396_v61  ;;  %v12634_v26 = vadd.s32 8, %v11914_v44  ;;  %v15131_v52 = vrot.slane %v12344_v28, 1  ;;  %v11306_v44 = vld [vmem:[%s15103_s6 + $0x70] sm:$0xff]  }
 0x45a   : > { %v11437_v25 = vpop.eup %11436  ;;  %9860 = vmatmul.mubr.msk.bf16.gmra.mrb[20].mxu1 %vm628_vm1, %v12589_v7  ;;  %v1377_v35 = vadd.f32 1.0, %v11435_v9  ;;  %v1532_v57 = vsel %vm1512_vm3, %v1491_v42, %v1492_v58  ;;  %v12620_v9 = vmul.f32 %v11431_v36, %v12391_v4  ;;  %v1531_v41 = vsel %vm1512_vm3, %v1492_v58, %v15130_v12 }
 0x45b   : > { %9863 = vmatprep.mubr.msk.bf16.mxu1 %vm628_vm1, %v12599_v51  ;;  %v1378_v30 = vadd.f32 1.0, %v11437_v25  ;;  %v11439_v14 = vpop.eup %11438  ;;  %v1623_v17 = vsel %vm490_vm4, %v1532_v57, 0.0  ;;  %15180 = vst [vmem:[#allocation10_spill] sm:$0xff] %v12634_v26  ;;  %v2221_v58 = vrot.slane %v12350_v54, 1  ;;  %v12640_v57 = vpack.c.bf16 %v12615_v2, %v12612_v34 }
 0x45c   : > { %11446 = vrcp.f32 %v1377_v35  ;;  %v11441_v19 = vpop.eup %11440  ;;  %v1379_v25 = vadd.f32 1.0, %v11439_v14  ;;  %v12631_v3 = vpack.c.bf16 %v1531_v41, %v1623_v17  ;;  %v2222_v35 = vrot.slane %v12358_v11, 1 }
 0x45d   : > { %11448 = vrcp.f32 %v1378_v30  ;;  %v11443_v42 = vpop.eup %11442  ;;  %v1380_v4 = vadd.f32 1.0, %v11441_v19  ;;  %v12645_v14 = vpack.c.bf16 %v12629_v48, %v12620_v9  ;;  %vm493_vm6 = vcmp.le.s32.totalorder %v12634_v26, 14 }
 0x45e   : > { %11450 = vrcp.f32 %v1379_v25  ;;  %v1381_v36 = vadd.f32 1.0, %v11443_v42  ;;  %v2282_v54 = vsel %vm2252_vm5, %v2221_v58, %v2222_v35  ;;  %v2283_v41 = vsel %vm2252_vm5, %v15131_v52, %v2221_v58 }
 0x45f   : > { %11452 = vrcp.f32 %v1380_v4  ;;  %v11445_v61 = vpop.eup %11444  ;;  %15181 = vst [vmem:[#allocation11_spill] sm:$0xff] %v12645_v14  ;;  %v2352_v25 = vsel %vm493_vm6, %v2282_v54, 0.0  ;;  %v2223_v42 = vrot.slane %v12367_v21, 1  ;;  %v2226_v54 = vrot.slane %v12407_v40, 1 }
 0x460   : > { %11454 = vrcp.f32 %v1381_v36  ;;  %v12656_v11 = vmul.f32 %v11445_v61, %v12432_v33  ;;  %v12671_v33 = vpack.c.bf16 %v2352_v25, %v2283_v41  ;;  %v2224_v36 = vrot.slane %v12377_v24, 1 }
 0x461   : > { %v2225_v61 = vrot.slane %v12388_v46, 1 }
 0x462   : > { %9864 = vmatmul.mubr.msk.bf16.gmra.mrb[24].mxu1 %vm628_vm1, %v12640_v57 }
 0x463   : > { %9867 = vmatprep.mubr.msk.bf16.mxu1 %vm628_vm1, %v12645_v14  ;;  %v2279_v24 = vsel %vm2252_vm5, %v2224_v36, %v2225_v61  ;;  %v2278_v40 = vsel %vm2252_vm5, %v2225_v61, %v2226_v54  ;;  %v12716_v61 = vmul.f32 %v12169_v37, %v12126_v53  ;;  %v2232_v37 = vrot.slane %v12516_v8, 1 }
 0x464   : > { %v2356_v25 = vsel %vm493_vm6, %v2278_v40, 0.0 }
 0x466   : > { %v11447_v30 = vpop.eup %11446 }
 0x467   : > { %v11449_v17 = vpop.eup %11448  ;;  %v12663_v19 = vmul.f32 %v11447_v30, %v12459_v13  ;;  %v2281_v13 = vsel %vm2252_vm5, %v2222_v35, %v2223_v42  ;;  %v2280_v30 = vsel %vm2252_vm5, %v2223_v42, %v2224_v36  ;;  %v12711_v42 = vpack.c.bf16 %v2356_v25, %v2279_v24 }
 0x468   : > { %v12669_v4 = vmul.f32 %v11449_v17, %v12471_v5  ;;  %v11451_v12 = vpop.eup %11450  ;;  %v2354_v41 = vsel %vm493_vm6, %v2280_v30, 0.0  ;;  %v2227_v36 = vrot.slane %v12410_v31, 1  ;;  %v2230_v30 = vrot.slane %v12429_v20, 1 }
 0x469   : > { %v12677_v58 = vpack.c.bf16 %v12663_v19, %v12656_v11  ;;  %v11453_v21 = vpop.eup %11452  ;;  %v12683_v5 = vmul.f32 %v11451_v12, %v12474_v16  ;;  %v12705_v17 = vpack.c.bf16 %v2354_v41, %v2281_v13  ;;  %v2231_v24 = vrot.slane %v12445_v22, 1 }
 0x46a   : > { %v11455_v46 = vpop.eup %11454  ;;  %v12700_v16 = vmul.f32 %v11453_v21, %v12482_v6  ;;  %v2228_v6 = vrot.slane %v12418_v29, 1  ;;  %v2277_v21 = vsel %vm2252_vm5, %v2226_v54, %v2227_v36  ;;  %v2233_v29 = vrot.slane %v12523_v38, 1 }
 0x46b   : > { %15182 = vst [vmem:[#allocation12_spill] sm:$0xff] %v12677_v58  ;;  %9868 = vmatmul.mubr.msk.bf16.gmra.mrb[28].mxu1 %vm628_vm1, %v12677_v58  ;;  %v12697_v12 = vpack.c.bf16 %v12683_v5, %v12669_v4  ;;  %v12703_v35 = vmul.f32 %v11455_v46, %v12499_v45  ;;  %v2229_v45 = vrot.slane %v12424_v49, 1  ;;  %v2273_v22 = vsel %vm2252_vm5, %v2230_v30, %v2231_v24 }
 0x46c   : > { %v2276_v31 = vsel %vm2252_vm5, %v2227_v36, %v2228_v6  ;;  %v2234_v54 = vrot.slane %v12537_v32, 1  ;;  %v15185_v46 = vmov 0.0|0.0   ;;  %v2272_v40 = vsel %vm2252_vm5, %v2231_v24, %v2232_v37 }
 0x46d   : > { %15183 = vst [vmem:[#allocation13_spill] sm:$0xff] %v12697_v12  ;;  %9871 = vmatprep.mubr.msk.bf16.mxu1 %vm628_vm1, %v12697_v12  ;;  %v12722_v13 = vpack.c.bf16 %v12703_v35, %v12700_v16  ;;  %v2275_v53 = vsel %vm2252_vm5, %v2228_v6, %v2229_v45  ;;  %v2358_v49 = vsel %vm493_vm6, %v2276_v31, 0.0  ;;  %v2274_v20 = vsel %vm2252_vm5, %v2229_v45, %v2230_v30 }
 0x46e   : > { %v12744_v41 = vpack.c.bf16 %v2358_v49, %v2277_v21  ;;  %v2360_v8 = vsel %vm493_vm6, %v2274_v20, 0.0  ;;  %v2271_v25 = vsel %vm2252_vm5, %v2232_v37, %v2233_v29  ;;  %v2362_v6 = vsel %vm493_vm6, %v2272_v40, 0.0 }
 0x46f   : > { %15184 = vst [vmem:[#allocation14_spill] sm:$0xff] %v12722_v13  ;;  %v12752_v36 = vpack.c.bf16 %v2360_v8, %v2275_v53  ;;  %v2270_v45 = vsel %vm2252_vm5, %v2233_v29, %v2234_v54  ;;  %v2235_v21 = vrot.slane %v12542_v62, 1  ;;  %v12759_v30 = vpack.c.bf16 %v2362_v6, %v2273_v22 }
 0x470   : > { %v2364_v31 = vsel %vm493_vm6, %v2270_v45, 0.0  ;;  %v2236_v24 = vrot.slane %v12558_v63, 1  ;;  %v2237_v49 = vrot.slane %v12563_v39, 1  ;;  %v2238_v20 = vrot.slane %v12571_v27, 1 }
 0x471   : > { %v12765_v37 = vpack.c.bf16 %v2364_v31, %v2271_v25  ;;  %v2269_v53 = vsel %vm2252_vm5, %v2234_v54, %v2235_v21  ;;  %v2239_v29 = vrot.slane %v12574_v0, 1  ;;  %v2240_v40 = vrot.slane %v12612_v34, 1  ;;  %v11279_v25 = vld [vmem:[%s15102_s5 + $0x28] sm:$0xff]  }
 0x472   : > { %v2268_v22 = vsel %vm2252_vm5, %v2235_v21, %v2236_v24  ;;  %v2267_v8 = vsel %vm2252_vm5, %v2236_v24, %v2237_v49  ;;  %v2241_v6 = vrot.slane %v12615_v2, 1  ;;  %v2266_v45 = vsel %vm2252_vm5, %v2237_v49, %v2238_v20 }
 0x473   : > { %9872 = vmatmul.mubr.msk.bf16.gmra.mrb[32].mxu1 %vm628_vm1, %v12722_v13  ;;  %v2366_v54 = vsel %vm493_vm6, %v2268_v22, 0.0  ;;  %v2265_v21 = vsel %vm2252_vm5, %v2238_v20, %v2239_v29  ;;  %v2242_v31 = vrot.slane %v12620_v9, 1  ;;  %v2368_v52 = vsel %vm493_vm6, %v2266_v45, 0.0 }
 0x474   : > { %9879 = vmatprep.mubr.bf16.mxu1 %v15185_v46  ;;  %v12787_v24 = vpack.c.bf16 %v2366_v54, %v2269_v53  ;;  %v2264_v13 = vsel %vm2252_vm5, %v2239_v29, %v2240_v40  ;;  %v2263_v12 = vsel %vm2252_vm5, %v2240_v40, %v2241_v6  ;;  %v12797_v49 = vpack.c.bf16 %v2368_v52, %v2267_v8 }
 0x475   : > { %v2370_v20 = vsel %vm493_vm6, %v2264_v13, 0.0  ;;  %v2262_v53 = vsel %vm2252_vm5, %v2241_v6, %v2242_v31  ;;  %v2243_v22 = vrot.slane %v12629_v48, 1  ;;  %v2244_v52 = vrot.slane %v12656_v11, 1  ;;  %v12816_v13 = vld [vmem:[%s15102_s5 + $0x30] sm:$0xff]  }
 0x476   : > { %v12807_v29 = vpack.c.bf16 %v2370_v20, %v2265_v21  ;;  %v2372_v40 = vsel %vm493_vm6, %v2262_v53, 0.0  ;;  %v2245_v8 = vrot.slane %v12663_v19, 1  ;;  %v2246_v54 = vrot.slane %v12669_v4, 1 }
 0x477   : > { %v12818_v6 = vpack.c.bf16 %v2372_v40, %v2263_v12  ;;  %v2247_v45 = vrot.slane %v12683_v5, 1  ;;  %v2260_v21 = vsel %vm2252_vm5, %v2243_v22, %v2244_v52  ;;  %v2248_v53 = vrot.slane %v12700_v16, 1 }
 0x478   : > { %v2259_v20 = vsel %vm2252_vm5, %v2244_v52, %v2245_v8  ;;  %v1216_v58 = vmul.f32 %v12174_v43, %v12716_v61  ;;  %v2374_v12 = vsel %vm493_vm6, %v2260_v21, 0.0  ;;  %v2249_v14 = vrot.slane %v12703_v35, 1 }
 0x479   : > { %v2257_v40 = vsel %vm2252_vm5, %v2246_v54, %v2247_v45  ;;  %v2256_v43 = vsel %vm2252_vm5, %v2247_v45, %v2248_v53  ;;  %v15186_v45 = vrot.slane %v12523_v38, 7 }
 0x47a   : > { %v1254_v61 = vadd.f32 %v12184_v60, %v1216_v58  ;;  %v1494_v60 = vrot.slane %v12537_v32, 7  ;;  %v1495_v58 = vrot.slane %v12542_v62, 7  ;;  %v1497_v62 = vrot.slane %v12563_v39, 7 }
 0x47b   : > { %9880 = vmatmul.mubr.msk.bf16.vlgmr.msra.gmra.mrb[4].mxu1 %vm628_vm1, %v12507_v59 }
 0x47c   : > { %9912 = vmatpush3.bf16.msra.mxu1 %v12415_v47  ;;  %9883 = vmatprep.mubr.msk.bf16.mxu1 %vm628_vm1, %v12525_v50  ;;  %v2261_v47 = vsel %vm2252_vm5, %v2242_v31, %v2243_v22  ;;  %v2258_v31 = vsel %vm2252_vm5, %v2245_v8, %v2246_v54  ;;  %v2378_v8 = vsel %vm493_vm6, %v2256_v43, 0.0  ;;  %v8875_v54 = vmul.f32 -1.442695, %v1254_v61 }
 0x47d   : > { %9913 = vmatprep.subr.bf16.mxu1 %v11279_v25  ;;  %v12838_v22 = vpack.c.bf16 %v2374_v12, %v2261_v47  ;;  %v2376_v52 = vsel %vm493_vm6, %v2258_v31, 0.0  ;;  %v12856_v47 = vpack.c.bf16 %v2378_v8, %v2257_v40  ;;  %v1529_v12 = vsel %vm1512_vm3, %v1494_v60, %v1495_v58 }
 0x47e   : > { %v12846_v21 = vpack.c.bf16 %v2376_v52, %v2259_v20  ;;  %11456 = vpow2.f32 %v8875_v54  ;;  %v1530_v20 = vsel %vm1512_vm3, %v15186_v45, %v1494_v60  ;;  %v1496_v31 = vrot.slane %v12558_v63, 7 }
 0x47f   : > { %v1625_v32 = vsel %vm490_vm4, %v1530_v20, 0.0  ;;  %v1498_v52 = vrot.slane %v12571_v27, 7  ;;  %v1499_v8 = vrot.slane %v12574_v0, 7  ;;  %v1500_v0 = vrot.slane %v12612_v34, 7 }
 0x480   : > { %9914 = vmatpush3.bf16.msra.mxu1 %v11279_v25  ;;  %v12854_v25 = vsel %vm2252_vm5, %v2248_v53, %v2249_v14  ;;  %v12879_v43 = vpack.c.bf16 %v1529_v12, %v1625_v32  ;;  %v1528_v38 = vsel %vm1512_vm3, %v1495_v58, %v1496_v31  ;;  %v1527_v39 = vsel %vm1512_vm3, %v1496_v31, %v1497_v62 }
 0x481   : > { %9947 = vmatprep.subr.bf16.mxu1 %v12816_v13  ;;  %v1526_v63 = vsel %vm1512_vm3, %v1497_v62, %v1498_v52  ;;  %v1627_v27 = vsel %vm490_vm4, %v1528_v38, 0.0  ;;  %v1525_v54 = vsel %vm1512_vm3, %v1498_v52, %v1499_v8  ;;  %v2251_v58 = vrot.slane %v12355_v55, 1 }
 0x482   : > { %v1629_v60 = vsel %vm490_vm4, %v1526_v63, 0.0  ;;  %v1501_v45 = vrot.slane %v12615_v2, 7  ;;  %v1502_v20 = vrot.slane %v12620_v9, 7  ;;  %v1524_v31 = vsel %vm1512_vm3, %v1499_v8, %v1500_v0 }
 0x483   : > { %9884 = vmatmul.mubr.msk.bf16.gmra.mrb[8].mxu1 %vm628_vm1, %v12549_v56  ;;  %v12904_v12 = vpack.c.bf16 %v1525_v54, %v1629_v60  ;;  %v15187_v34 = vrot.slane %v12344_v28, 1  ;;  %v1509_v62 = vrot.slane %v12703_v35, 7  ;;  %v1631_v28 = vsel %vm490_vm4, %v1524_v31, 0.0 }
 0x484   : > { %9887 = vmatprep.mubr.msk.bf16.mxu1 %vm628_vm1, %v12576_v18  ;;  %v1522_v9 = vsel %vm1512_vm3, %v1501_v45, %v1502_v20  ;;  %v1523_v38 = vsel %vm1512_vm3, %v1500_v0, %v1501_v45  ;;  %v1505_v54 = vrot.slane %v12663_v19, 7  ;;  %v15188_v0 = vrot.slane %v12355_v55, 7 }
 0x485   : > { %v2284_v2 = vsel %vm2252_vm5, %v2251_v58, %v15187_v34  ;;  %v12949_v31 = vpack.c.bf16 %v1523_v38, %v1631_v28 }
 0x488   : > { %v11457_v53 = vpop.eup %11456 }
 0x489   : > { %v1382_v40 = vadd.f32 1.0, %v11457_v53  ;;  %v12902_v53 = vpack.c.bf16 %v1527_v39, %v1627_v27  ;;  %v3274_v39 = vsel %vm493_vm6, %v2284_v2, 0.0 }
 0x48b   : > { %9888 = vmatmul.mubr.msk.bf16.gmra.mrb[12].mxu1 %vm628_vm1, %v12591_v10  ;;  %11458 = vrcp.f32 %v1382_v40  ;;  %v1503_v40 = vrot.slane %v12629_v48, 7  ;;  %v1504_v48 = vrot.slane %v12656_v11, 7  ;;  %v1506_v11 = vrot.slane %v12669_v4, 7 }
 0x48c   : > { %9891 = vmatprep.mubr.msk.bf16.mxu1 %vm628_vm1, %v12606_v15 }
 0x48d   : > { %v1521_v27 = vsel %vm1512_vm3, %v1502_v20, %v1503_v40  ;;  %v1518_v38 = vsel %vm1512_vm3, %v1505_v54, %v1506_v11 }
 0x493   : > { %9892 = vmatmul.mubr.msk.bf16.gmra.mrb[16].mxu1 %vm628_vm1, %v12631_v3 }
 0x494   : > { %9895 = vmatprep.mubr.msk.bf16.mxu1 %vm628_vm1, %v12879_v43 }
 0x495   : > { %v11459_v32 = vpop.eup %11458 }
 0x496   : > { %v12920_v52 = vmul.f32 %v11459_v32, %v1254_v61  ;;  %v1633_v61 = vsel %vm490_vm4, %v1522_v9, 0.0  ;;  %v1507_v9 = vrot.slane %v12683_v5, 7  ;;  %v1508_v5 = vrot.slane %v12700_v16, 7 }
 0x497   : > { %v12957_v35 = vpack.c.bf16 %v1521_v27, %v1633_v61 }
 0x498   : > { %v2250_v8 = vrot.slane %v12920_v52, 1  ;;  %v1510_v63 = vrot.slane %v12920_v52, 7  ;;  %v1515_v27 = vsel %vm1512_vm3, %v1508_v5, %v1509_v62 }
 0x49a   : > { %v2254_v60 = vsel %vm2252_vm5, %v2249_v14, %v2250_v8  ;;  %v1513_v45 = vsel %vm1512_vm3, %v1510_v63, %v15188_v0  ;;  %v1514_v20 = vsel %vm1512_vm3, %v1509_v62, %v1510_v63  ;;  %v2253_v32 = vsel %vm2252_vm5, %v2250_v8, %v2251_v58  ;;  %v11282_v62 = vld [vmem:[%s15102_s5 + $0x40] sm:$0xff]  }
 0x49b   : > { %9896 = vmatmul.mubr.msk.bf16.gmra.mrb[20].mxu1 %vm628_vm1, %v12902_v53  ;;  %v2380_v19 = vsel %vm493_vm6, %v2254_v60, 0.0  ;;  %v2689_v4 = vsel %vm490_vm4, %v1514_v20, 0.0  ;;  %v12955_v14 = vpack.c.bf16 %v3274_v39, %v2253_v32  ;;  %v1520_v58 = vsel %vm1512_vm3, %v1503_v40, %v1504_v48  ;;  %v15189_v60 = vld [vmem:[#allocation4_spill] sm:$0xff]  ;;  %v11286_v0 = vld [vmem:[%s15102_s5 + $0x60] sm:$0xff]   ;;  %v15192_v20 = vld [vmem:[#allocation7_spill] sm:$0xff] }
 0x49c   : > { %9899 = vmatprep.mubr.msk.bf16.mxu1 %vm628_vm1, %v12904_v12  ;;  %v12960_v34 = vpack.c.bf16 %v2380_v19, %v12854_v25  ;;  %v12962_v2 = vpack.c.bf16 %v1513_v45, %v2689_v4  ;;  %v1519_v25 = vsel %vm1512_vm3, %v1504_v48, %v1505_v54  ;;  %v1635_v28 = vsel %vm490_vm4, %v1520_v58, 0.0  ;;  %v11281_v54 = vld [vmem:[%s15102_s5 + $0x38] sm:$0xff]   ;;  %v15193_v32 = vld [vmem:[#allocation8_spill] sm:$0xff]  ;;  %v15195_v4 = vld [vmem:[#allocation11_spill] sm:$0xff] }
 0x49d   : > { %v1517_v8 = vsel %vm1512_vm3, %v1506_v11, %v1507_v9  ;;  %v1637_v40 = vsel %vm490_vm4, %v1518_v38, 0.0  ;;  %v12982_v63 = vpack.c.bf16 %v1519_v25, %v1635_v28  ;;  %v1516_v48 = vsel %vm1512_vm3, %v1507_v9, %v1508_v5  ;;  %v11284_v11 = vld [vmem:[%s15102_s5 + $0x50] sm:$0xff]   ;;  %v15190_v45 = vld [vmem:[#allocation5_spill] sm:$0xff]  ;;  %v15198_v38 = vld [vmem:[#allocation14_spill] sm:$0xff] }
 0x49e   : > { %v12984_v39 = vpack.c.bf16 %v1517_v8, %v1637_v40  ;;  %v1639_v61 = vsel %vm490_vm4, %v1516_v48, 0.0  ;;  %v15194_v19 = vld [vmem:[#allocation9_spill] sm:$0xff]  ;;  %v15196_v58 = vld [vmem:[#allocation12_spill] sm:$0xff]  ;;  %v13114_v25 = vpack.c.bf16 %v12355_v55, %v12920_v52  ;;  %v11287_v28 = vld [vmem:[%s15102_s5 + $0x68] sm:$0xff]  }
 0x49f   : > { %v12996_v16 = vpack.c.bf16 %v1515_v27, %v1639_v61  ;;  %v15197_v9 = vld [vmem:[#allocation13_spill] sm:$0xff]  ;;  %v11288_v55 = vld [vmem:[%s15102_s5 + $0x70] sm:$0xff]   ;;  %v11290_v52 = vld [vmem:[%s15102_s5 + $0x80] sm:$0xff]  }
 0x4a3   : > { %9900 = vmatmul.mubr.msk.bf16.gmra.mrb[24].mxu1 %vm628_vm1, %v12949_v31 }
 0x4a4   : > { %9903 = vmatprep.mubr.msk.bf16.mxu1 %vm628_vm1, %v12957_v35 }
 0x4ab   : > { %9904 = vmatmul.mubr.msk.bf16.gmra.mrb[28].mxu1 %vm628_vm1, %v12982_v63 }
 0x4ac   : > { %9907 = vmatprep.mubr.msk.bf16.mxu1 %vm628_vm1, %v12984_v39 }
 0x4b3   : > { %9908 = vmatmul.mubr.msk.bf16.gmra.mrb[32].mxu1 %vm628_vm1, %v12996_v16 }
 0x4b4   : > { %9915 = vmatprep.mubr.bf16.mxu1 %v15185_v46 }
 0x4bb   : > { %9916 = vmatmul.mubr.msk.bf16.vlgmr.msra.gmra.mrb[4].mxu1 %vm628_vm1, %v12671_v33 }
 0x4bc   : > { %9948 = vmatpush3.bf16.msra.mxu1 %v12816_v13  ;;  %9919 = vmatprep.mubr.msk.bf16.mxu1 %vm628_vm1, %v12705_v17  ;;  %v11283_v13 = vld [vmem:[%s15102_s5 + $0x48] sm:$0xff]  }
 0x4bd   : > { %9949 = vmatprep.subr.bf16.mxu1 %v11281_v54 }
 0x4c0   : > { %9950 = vmatpush3.bf16.msra.mxu1 %v11281_v54 }
 0x4c1   : > { %9983 = vmatprep.subr.bf16.mxu1 %v11282_v62 }
 0x4c3   : > { %9920 = vmatmul.mubr.msk.bf16.gmra.mrb[8].mxu1 %vm628_vm1, %v12711_v42 }
 0x4c4   : > { %9923 = vmatprep.mubr.msk.bf16.mxu1 %vm628_vm1, %v12744_v41 }
 0x4cb   : > { %9924 = vmatmul.mubr.msk.bf16.gmra.mrb[12].mxu1 %vm628_vm1, %v12752_v36 }
 0x4cc   : > { %9927 = vmatprep.mubr.msk.bf16.mxu1 %vm628_vm1, %v12759_v30 }
 0x4d3   : > { %9928 = vmatmul.mubr.msk.bf16.gmra.mrb[16].mxu1 %vm628_vm1, %v12765_v37 }
 0x4d4   : > { %9931 = vmatprep.mubr.msk.bf16.mxu1 %vm628_vm1, %v12787_v24 }
 0x4db   : > { %9932 = vmatmul.mubr.msk.bf16.gmra.mrb[20].mxu1 %vm628_vm1, %v12797_v49 }
 0x4dc   : > { %9935 = vmatprep.mubr.msk.bf16.mxu1 %vm628_vm1, %v12807_v29 }
 0x4e3   : > { %9936 = vmatmul.mubr.msk.bf16.gmra.mrb[24].mxu1 %vm628_vm1, %v12818_v6 }
 0x4e4   : > { %9939 = vmatprep.mubr.msk.bf16.mxu1 %vm628_vm1, %v12838_v22 }
 0x4eb   : > { %9940 = vmatmul.mubr.msk.bf16.gmra.mrb[28].mxu1 %vm628_vm1, %v12846_v21 }
 0x4ec   : > { %9943 = vmatprep.mubr.msk.bf16.mxu1 %vm628_vm1, %v12856_v47 }
 0x4f3   : > { %9944 = vmatmul.mubr.msk.bf16.gmra.mrb[32].mxu1 %vm628_vm1, %v12960_v34 }
 0x4f4   : > { %9951 = vmatprep.mubr.msk.bf16.mxu1 %vm628_vm1, %v12507_v59  ;;  %v11285_v59 = vld [vmem:[%s15102_s5 + $0x58] sm:$0xff]  }
 0x4fb   : > { %9952 = vmatmul.mubr.msk.bf16.vlgmr.msra.gmra.mrb[4].mxu1 %vm628_vm1, %v12525_v50 }
 0x4fc   : > { %9984 = vmatpush3.bf16.msra.mxu1 %v11282_v62  ;;  %9955 = vmatprep.mubr.msk.bf16.mxu1 %vm628_vm1, %v12549_v56 }
 0x4fd   : > { %9985 = vmatprep.subr.bf16.mxu1 %v11283_v13 }
 0x500   : > { %9986 = vmatpush3.bf16.msra.mxu1 %v11283_v13 }
 0x501   : > { %10019 = vmatprep.subr.bf16.mxu1 %v11284_v11 }
 0x503   : > { %9956 = vmatmul.mubr.msk.bf16.gmra.mrb[8].mxu1 %vm628_vm1, %v12576_v18 }
 0x504   : > { %9959 = vmatprep.mubr.msk.bf16.mxu1 %vm628_vm1, %v12591_v10 }
 0x50b   : > { %9960 = vmatmul.mubr.msk.bf16.gmra.mrb[12].mxu1 %vm628_vm1, %v12606_v15 }
 0x50c   : > { %9963 = vmatprep.mubr.msk.bf16.mxu1 %vm628_vm1, %v12631_v3 }
 0x513   : > { %9964 = vmatmul.mubr.msk.bf16.gmra.mrb[16].mxu1 %vm628_vm1, %v12879_v43 }
 0x514   : > { %9967 = vmatprep.mubr.msk.bf16.mxu1 %vm628_vm1, %v12902_v53 }
 0x51b   : > { %9968 = vmatmul.mubr.msk.bf16.gmra.mrb[20].mxu1 %vm628_vm1, %v12904_v12 }
 0x51c   : > { %9971 = vmatprep.mubr.msk.bf16.mxu1 %vm628_vm1, %v12949_v31 }
 0x523   : > { %9972 = vmatmul.mubr.msk.bf16.gmra.mrb[24].mxu1 %vm628_vm1, %v12957_v35 }
 0x524   : > { %9975 = vmatprep.mubr.msk.bf16.mxu1 %vm628_vm1, %v12982_v63 }
 0x52b   : > { %9976 = vmatmul.mubr.msk.bf16.gmra.mrb[28].mxu1 %vm628_vm1, %v12984_v39 }
 0x52c   : > { %9979 = vmatprep.mubr.msk.bf16.mxu1 %vm628_vm1, %v12996_v16 }
 0x533   : > { %9980 = vmatmul.mubr.msk.bf16.gmra.mrb[32].mxu1 %vm628_vm1, %v12962_v2 }
 0x534   : > { %9987 = vmatprep.mubr.msk.bf16.mxu1 %vm628_vm1, %v12364_v1  ;;  %v15191_v1 = vld [vmem:[#allocation6_spill] sm:$0xff] }
 0x53b   : > { %9988 = vmatmul.mubr.msk.bf16.vlgmr.msra.gmra.mrb[4].mxu1 %vm628_vm1, %v12385_v23 }
 0x53c   : > { %10020 = vmatpush3.bf16.msra.mxu1 %v11284_v11  ;;  %9991 = vmatprep.mubr.msk.bf16.mxu1 %vm628_vm1, %v15189_v60 }
 0x53d   : > { %10021 = vmatprep.subr.bf16.mxu1 %v11285_v59 }
 0x540   : > { %10022 = vmatpush3.bf16.msra.mxu1 %v11285_v59 }
 0x541   : > { %10055 = vmatprep.subr.bf16.mxu1 %v11286_v0 }
 0x543   : > { %9992 = vmatmul.mubr.msk.bf16.gmra.mrb[8].mxu1 %vm628_vm1, %v15190_v45 }
 0x544   : > { %9995 = vmatprep.mubr.msk.bf16.mxu1 %vm628_vm1, %v15191_v1 }
 0x54b   : > { %9996 = vmatmul.mubr.msk.bf16.gmra.mrb[12].mxu1 %vm628_vm1, %v15192_v20 }
 0x54c   : > { %9999 = vmatprep.mubr.msk.bf16.mxu1 %vm628_vm1, %v15193_v32 }
 0x553   : > { %10000 = vmatmul.mubr.msk.bf16.gmra.mrb[16].mxu1 %vm628_vm1, %v15194_v19 }
 0x554   : > { %10003 = vmatprep.mubr.msk.bf16.mxu1 %vm628_vm1, %v12589_v7 }
 0x55b   : > { %10004 = vmatmul.mubr.msk.bf16.gmra.mrb[20].mxu1 %vm628_vm1, %v12599_v51 }
 0x55c   : > { %10007 = vmatprep.mubr.msk.bf16.mxu1 %vm628_vm1, %v12640_v57 }
 0x563   : > { %10008 = vmatmul.mubr.msk.bf16.gmra.mrb[24].mxu1 %vm628_vm1, %v15195_v4 }
 0x564   : > { %10011 = vmatprep.mubr.msk.bf16.mxu1 %vm628_vm1, %v15196_v58 }
 0x56b   : > { %10012 = vmatmul.mubr.msk.bf16.gmra.mrb[28].mxu1 %vm628_vm1, %v15197_v9 }
 0x56c   : > { %10015 = vmatprep.mubr.msk.bf16.mxu1 %vm628_vm1, %v15198_v38 }
 0x573   : > { %10016 = vmatmul.mubr.msk.bf16.gmra.mrb[32].mxu1 %vm628_vm1, %v13114_v25 }
 0x574   : > { %10023 = vmatprep.mubr.msk.bf16.mxu1 %vm628_vm1, %v12671_v33  ;;  %v11289_v33 = vld [vmem:[%s15102_s5 + $0x78] sm:$0xff]  }
 0x57b   : > { %10024 = vmatmul.mubr.msk.bf16.vlgmr.msra.gmra.mrb[4].mxu1 %vm628_vm1, %v12705_v17 }
 0x57c   : > { %10056 = vmatpush3.bf16.msra.mxu1 %v11286_v0  ;;  %10027 = vmatprep.mubr.msk.bf16.mxu1 %vm628_vm1, %v12711_v42 }
 0x57d   : > { %10057 = vmatprep.subr.bf16.mxu1 %v11287_v28 }
 0x580   : > { %10058 = vmatpush3.bf16.msra.mxu1 %v11287_v28 }
 0x581   : > { %10091 = vmatprep.subr.bf16.mxu1 %v11288_v55 }
 0x583   : > { %10028 = vmatmul.mubr.msk.bf16.gmra.mrb[8].mxu1 %vm628_vm1, %v12744_v41 }
 0x584   : > { %10031 = vmatprep.mubr.msk.bf16.mxu1 %vm628_vm1, %v12752_v36 }
 0x58b   : > { %10032 = vmatmul.mubr.msk.bf16.gmra.mrb[12].mxu1 %vm628_vm1, %v12759_v30 }
 0x58c   : > { %10035 = vmatprep.mubr.msk.bf16.mxu1 %vm628_vm1, %v12765_v37 }
 0x593   : > { %10036 = vmatmul.mubr.msk.bf16.gmra.mrb[16].mxu1 %vm628_vm1, %v12787_v24 }
 0x594   : > { %10039 = vmatprep.mubr.msk.bf16.mxu1 %vm628_vm1, %v12797_v49 }
 0x59b   : > { %10040 = vmatmul.mubr.msk.bf16.gmra.mrb[20].mxu1 %vm628_vm1, %v12807_v29 }
 0x59c   : > { %10043 = vmatprep.mubr.msk.bf16.mxu1 %vm628_vm1, %v12818_v6 }
 0x5a3   : > { %10044 = vmatmul.mubr.msk.bf16.gmra.mrb[24].mxu1 %vm628_vm1, %v12838_v22 }
 0x5a4   : > { %10047 = vmatprep.mubr.msk.bf16.mxu1 %vm628_vm1, %v12846_v21 }
 0x5ab   : > { %10048 = vmatmul.mubr.msk.bf16.gmra.mrb[28].mxu1 %vm628_vm1, %v12856_v47 }
 0x5ac   : > { %10051 = vmatprep.mubr.msk.bf16.mxu1 %vm628_vm1, %v12960_v34 }
 0x5b3   : > { %10052 = vmatmul.mubr.msk.bf16.gmra.mrb[32].mxu1 %vm628_vm1, %v12955_v14 }
 0x5b4   : > { %10059 = vmatprep.mubr.msk.bf16.mxu1 %vm628_vm1, %v12525_v50  ;;  %v11291_v50 = vld [vmem:[%s15102_s5 + $0x88] sm:$0xff]  }
 0x5bb   : > { %10060 = vmatmul.mubr.msk.bf16.vlgmr.msra.gmra.mrb[4].mxu1 %vm628_vm1, %v12549_v56  ;;  %v4661_v56 = vld [vmem:[%s15106_s9] sm:$0xff] }
 0x5bc   : > { %10092 = vmatpush3.bf16.msra.mxu1 %v11288_v55  ;;  %10063 = vmatprep.mubr.msk.bf16.mxu1 %vm628_vm1, %v12576_v18  ;;  %v4662_v18 = vld [vmem:[%s15106_s9 + $0x8] sm:$0xff] }
 0x5bd   : > { %10093 = vmatprep.subr.bf16.mxu1 %v11289_v33 }
 0x5c0   : > { %10094 = vmatpush3.bf16.msra.mxu1 %v11289_v33 }
 0x5c1   : > { %10127 = vmatprep.subr.bf16.mxu1 %v11290_v52 }
 0x5c3   : > { %10064 = vmatmul.mubr.msk.bf16.gmra.mrb[8].mxu1 %vm628_vm1, %v12591_v10  ;;  %v13270_v10 = vpack.c.bf16 %v4662_v18, %v4661_v56 }
 0x5c4   : > { %10067 = vmatprep.mubr.msk.bf16.mxu1 %vm628_vm1, %v12606_v15 }
 0x5c5   : > { %10665 = vmatpush3.bf16.msra.mxu0 %v13270_v10 }
 0x5c6   : > { %10666 = vmatprep.subr.bf16.mxu0 %v15185_v46 }
 0x5cb   : > { %10068 = vmatmul.mubr.msk.bf16.gmra.mrb[12].mxu1 %vm628_vm1, %v12631_v3  ;;  %v11294_v3 = vld [vmem:[%s15103_s6 + $0x28] sm:$0xff]  }
 0x5cc   : > { %10071 = vmatprep.mubr.msk.bf16.mxu1 %vm628_vm1, %v12879_v43 }
 0x5d3   : > { %10072 = vmatmul.mubr.msk.bf16.gmra.mrb[16].mxu1 %vm628_vm1, %v12902_v53 }
 0x5d4   : > { %10075 = vmatprep.mubr.msk.bf16.mxu1 %vm628_vm1, %v12904_v12 }
 0x5db   : > { %10076 = vmatmul.mubr.msk.bf16.gmra.mrb[20].mxu1 %vm628_vm1, %v12949_v31 }
 0x5dc   : > { %10079 = vmatprep.mubr.msk.bf16.mxu1 %vm628_vm1, %v12957_v35 }
 0x5e3   : > { %10080 = vmatmul.mubr.msk.bf16.gmra.mrb[24].mxu1 %vm628_vm1, %v12982_v63 }
 0x5e4   : > { %10083 = vmatprep.mubr.msk.bf16.mxu1 %vm628_vm1, %v12984_v39 }
 0x5eb   : > { %10084 = vmatmul.mubr.msk.bf16.gmra.mrb[28].mxu1 %vm628_vm1, %v12996_v16 }
 0x5ec   : > { %10087 = vmatprep.mubr.msk.bf16.mxu1 %vm628_vm1, %v12962_v2 }
 0x5f3   : > { %10088 = vmatmul.mubr.bf16.gmra.mrb[32].mxu1 %v15185_v46 }
 0x5f4   : > { %10095 = vmatprep.mubr.msk.bf16.mxu1 %vm628_vm1, %v12385_v23  ;;  %v15199_v23 = vmov 0.0  }
 0x5fb   : > { %10096 = vmatmul.mubr.msk.bf16.vlgmr.msra.gmra.mrb[4].mxu1 %vm628_vm1, %v15189_v60 }
 0x5fc   : > { %10128 = vmatpush3.bf16.msra.mxu1 %v11290_v52  ;;  %10099 = vmatprep.mubr.msk.bf16.mxu1 %vm628_vm1, %v15190_v45 }
 0x5fd   : > { %10129 = vmatprep.subr.bf16.mxu1 %v11291_v50 }
 0x600   : > { %10130 = vmatpush3.bf16.msra.mxu1 %v11291_v50 }
 0x601   : > { %10675 = vmatprep.subr.bf16.mxu1 %v15185_v46 }
 0x603   : > { %10100 = vmatmul.mubr.msk.bf16.gmra.mrb[8].mxu1 %vm628_vm1, %v15191_v1 }
 0x604   : > { %10103 = vmatprep.mubr.msk.bf16.mxu1 %vm628_vm1, %v15192_v20 }
 0x60b   : > { %10104 = vmatmul.mubr.msk.bf16.gmra.mrb[12].mxu1 %vm628_vm1, %v15193_v32 }
 0x60c   : > { %10107 = vmatprep.mubr.msk.bf16.mxu1 %vm628_vm1, %v15194_v19 }
 0x613   : > { %10108 = vmatmul.mubr.msk.bf16.gmra.mrb[16].mxu1 %vm628_vm1, %v12589_v7  ;;  %v4663_v7 = vld [vmem:[%s15106_s9 + $0x10] sm:$0xff] }
 0x614   : > { %10111 = vmatprep.mubr.msk.bf16.mxu1 %vm628_vm1, %v12599_v51  ;;  %v4664_v51 = vld [vmem:[%s15106_s9 + $0x18] sm:$0xff] }
 0x615   : > { %v13276_v15 = vpack.c.bf16 %v4664_v51, %v4663_v7 }
 0x617   : > { %10668 = vmatpush3.bf16.msra.mxu0 %v13276_v15 }
 0x618   : > { %10669 = vmatprep.subr.bf16.mxu0 %v15185_v46 }
 0x61b   : > { %10112 = vmatmul.mubr.msk.bf16.gmra.mrb[20].mxu1 %vm628_vm1, %v12640_v57  ;;  %v4665_v57 = vld [vmem:[%s15106_s9 + $0x20] sm:$0xff] }
 0x61c   : > { %10115 = vmatprep.mubr.msk.bf16.mxu1 %vm628_vm1, %v15195_v4 }
 0x623   : > { %10116 = vmatmul.mubr.msk.bf16.gmra.mrb[24].mxu1 %vm628_vm1, %v15196_v58 }
 0x624   : > { %10119 = vmatprep.mubr.msk.bf16.mxu1 %vm628_vm1, %v15197_v9 }
 0x62b   : > { %10120 = vmatmul.mubr.msk.bf16.gmra.mrb[28].mxu1 %vm628_vm1, %v15198_v38 }
 0x62c   : > { %10123 = vmatprep.mubr.msk.bf16.mxu1 %vm628_vm1, %v13114_v25 }
 0x633   : > { %10124 = vmatmul.mubr.bf16.gmra.mrb[32].mxu1 %v15185_v46 }
 0x634   : > { %10131 = vmatprep.mubr.msk.bf16.mxu1 %vm628_vm1, %v12705_v17  ;;  %v4666_v17 = vld [vmem:[%s15106_s9 + $0x28] sm:$0xff] }
 0x63b   : > { %10132 = vmatmul.mubr.msk.bf16.vlgmr.msra.gmra.mrb[4].mxu1 %vm628_vm1, %v12711_v42  ;;  %v13290_v42 = vpack.c.bf16 %v4666_v17, %v4665_v57 }
 0x63c   : > { %10135 = vmatprep.mubr.msk.bf16.mxu1 %vm628_vm1, %v12744_v41  ;;  %10678 = vmatpush3.bf16.xpose.msk.msra.mxu1 %vm11723_vm2, %v13270_v10  ;;  %v4667_v41 = vld [vmem:[%s15106_s9 + $0x30] sm:$0xff] }
 0x63d   : > { %10679 = vmatprep.subr.bf16.mxu1 %v15185_v46  ;;  %10671 = vmatpush3.bf16.msra.mxu0 %v13290_v42 }
 0x63e   : > { %10672 = vmatprep.subr.bf16.mxu0 %v15185_v46 }
 0x643   : > { %10136 = vmatmul.mubr.msk.bf16.gmra.mrb[8].mxu1 %vm628_vm1, %v12752_v36  ;;  %v4668_v36 = vld [vmem:[%s15106_s9 + $0x38] sm:$0xff] }
 0x644   : > { %10139 = vmatprep.mubr.msk.bf16.mxu1 %vm628_vm1, %v12759_v30  ;;  %v13300_v30 = vpack.c.bf16 %v4668_v36, %v4667_v41  ;;  %10682 = vmatpush3.bf16.xpose.msk.msra.mxu1 %vm11723_vm2, %v13276_v15 }
 0x645   : > { %10683 = vmatprep.subr.bf16.mxu1 %v15185_v46 }
 0x646   : > { %10674 = vmatpush3.bf16.msra.mxu0 %v13300_v30 }
 0x647   : > { %10691 = vmatprep.subr.bf16.mxu0 %v15185_v46 }
 0x64b   : > { %10140 = vmatmul.mubr.msk.bf16.gmra.mrb[12].mxu1 %vm628_vm1, %v12765_v37 }
 0x64c   : > { %10143 = vmatprep.mubr.msk.bf16.mxu1 %vm628_vm1, %v12787_v24  ;;  %10686 = vmatpush3.bf16.xpose.msk.msra.mxu1 %vm11723_vm2, %v13290_v42 }
 0x64d   : > { %10687 = vmatprep.subr.bf16.mxu1 %v15185_v46 }
 0x653   : > { %10144 = vmatmul.mubr.msk.bf16.gmra.mrb[16].mxu1 %vm628_vm1, %v12797_v49 }
 0x654   : > { %10147 = vmatprep.mubr.msk.bf16.mxu1 %vm628_vm1, %v12807_v29  ;;  %10690 = vmatpush3.bf16.xpose.msk.msra.mxu1 %vm11723_vm2, %v13300_v30 }
 0x65b   : > { %10148 = vmatmul.mubr.msk.bf16.gmra.mrb[20].mxu1 %vm628_vm1, %v12818_v6 }
 0x65c   : > { %10151 = vmatprep.mubr.msk.bf16.mxu1 %vm628_vm1, %v12838_v22 }
 0x663   : > { %10152 = vmatmul.mubr.msk.bf16.gmra.mrb[24].mxu1 %vm628_vm1, %v12846_v21 }
 0x664   : > { %10155 = vmatprep.mubr.msk.bf16.mxu1 %vm628_vm1, %v12856_v47 }
 0x66b   : > { %10156 = vmatmul.mubr.msk.bf16.gmra.mrb[28].mxu1 %vm628_vm1, %v12960_v34 }
 0x66c   : > { %10159 = vmatprep.mubr.msk.bf16.mxu1 %vm628_vm1, %v12955_v14 }
 0x673   : > { %10160 = vmatmul.mubr.bf16.gmra.mrb[32].mxu1 %v15185_v46 }
 0x674   : > { %10198 = vmatprep.mubr.msk.f32.mxu1 %vm11631_vm0, %v15199_v23 }
 0x70e   : > { %v13316_v37 = vpop.f32.mrb[4].mxu1 }
 0x70f   : > { %v13318_v24 = vpop.f32.mrb[5].mxu1  ;;  %v4673_v47 = vsel %vm4669_vm7, %v13316_v37, 0.0 }
 0x710   : > { %v13320_v49 = vpop.f32.mrb[6].mxu1  ;;  %v4670_v6 = vsel %vm4669_vm7, %v13318_v24, 0.0 }
 0x711   : > { %v13322_v29 = vpop.f32.mrb[7].mxu1  ;;  %v4675_v53 = vsel %vm4669_vm7, %v13320_v49, 0.0 }
 0x712   : > { %v4671_v22 = vsel %vm4669_vm7, %v13322_v29, 0.0 }
 0x713   : > { %v4672_v21 = vadd.f32 %v4671_v22, %v4670_v6 }
 0x715   : > { %v4674_v43 = vadd.f32 %v4673_v47, %v4672_v21 }
 0x716   : > { %v13332_v12 = vpop.f32.mrb[8].mxu1 }
 0x717   : > { %v13334_v31 = vpop.f32.mrb[9].mxu1  ;;  %v4676_v14 = vadd.f32 %v4675_v53, %v4674_v43  ;;  %v4681_v63 = vsel %vm4669_vm7, %v13332_v12, 0.0 }
 0x718   : > { %v4677_v35 = vsel %vm4669_vm7, %v13334_v31, 0.0  ;;  %v13338_v34 = vpop.f32.mrb[10].mxu1 }
 0x719   : > { %v4678_v2 = vadd.f32 %v4677_v35, %v4676_v14  ;;  %v13340_v8 = vpop.f32.mrb[11].mxu1  ;;  %v4683_v48 = vsel %vm4669_vm7, %v13338_v34, 0.0 }
 0x71a   : > { %v4679_v40 = vsel %vm4669_vm7, %v13340_v8, 0.0 }
 0x71b   : > { %v4680_v5 = vadd.f32 %v4679_v40, %v4678_v2 }
 0x71d   : > { %v4682_v39 = vadd.f32 %v4681_v63, %v4680_v5 }
 0x71e   : > { %v13348_v27 = vpop.f32.mrb[12].mxu1 }
 0x71f   : > { %v13350_v61 = vpop.f32.mrb[13].mxu1  ;;  %v4684_v16 = vadd.f32 %v4683_v48, %v4682_v39  ;;  %v4689_v0 = vsel %vm4669_vm7, %v13348_v27, 0.0 }
 0x720   : > { %v4685_v54 = vsel %vm4669_vm7, %v13350_v61, 0.0  ;;  %v13354_v62 = vpop.f32.mrb[14].mxu1 }
 0x721   : > { %v4686_v13 = vadd.f32 %v4685_v54, %v4684_v16  ;;  %v13356_v11 = vpop.f32.mrb[15].mxu1  ;;  %v4691_v1 = vsel %vm4669_vm7, %v13354_v62, 0.0 }
 0x722   : > { %v4687_v59 = vsel %vm4669_vm7, %v13356_v11, 0.0 }
 0x723   : > { %v4688_v60 = vadd.f32 %v4687_v59, %v4686_v13 }
 0x725   : > { %v4690_v45 = vadd.f32 %v4689_v0, %v4688_v60 }
 0x726   : > { %v13364_v20 = vpop.f32.mrb[16].mxu1 }
 0x727   : > { %v13366_v32 = vpop.f32.mrb[17].mxu1  ;;  %v4692_v19 = vadd.f32 %v4691_v1, %v4690_v45  ;;  %v4697_v55 = vsel %vm4669_vm7, %v13364_v20, 0.0 }
 0x728   : > { %v4693_v4 = vsel %vm4669_vm7, %v13366_v32, 0.0  ;;  %v13370_v58 = vpop.f32.mrb[18].mxu1 }
 0x729   : > { %v4694_v9 = vadd.f32 %v4693_v4, %v4692_v19  ;;  %v13372_v38 = vpop.f32.mrb[19].mxu1  ;;  %v4699_v52 = vsel %vm4669_vm7, %v13370_v58, 0.0 }
 0x72a   : > { %v4695_v25 = vsel %vm4669_vm7, %v13372_v38, 0.0 }
 0x72b   : > { %v4696_v28 = vadd.f32 %v4695_v25, %v4694_v9 }
 0x72d   : > { %v4698_v33 = vadd.f32 %v4697_v55, %v4696_v28 }
 0x72e   : > { %v13380_v50 = vpop.f32.mrb[20].mxu1 }
 0x72f   : > { %v13382_v56 = vpop.f32.mrb[21].mxu1  ;;  %v4700_v18 = vadd.f32 %v4699_v52, %v4698_v33  ;;  %v4705_v6 = vsel %vm4669_vm7, %v13380_v50, 0.0 }
 0x730   : > { %v4701_v7 = vsel %vm4669_vm7, %v13382_v56, 0.0  ;;  %v13386_v51 = vpop.f32.mrb[22].mxu1 }
 0x731   : > { %v4702_v57 = vadd.f32 %v4701_v7, %v4700_v18  ;;  %v13388_v17 = vpop.f32.mrb[23].mxu1  ;;  %v4707_v21 = vsel %vm4669_vm7, %v13386_v51, 0.0 }
 0x732   : > { %v4703_v41 = vsel %vm4669_vm7, %v13388_v17, 0.0 }
 0x733   : > { %v4704_v36 = vadd.f32 %v4703_v41, %v4702_v57 }
 0x735   : > { %v4706_v22 = vadd.f32 %v4705_v6, %v4704_v36 }
 0x736   : > { %v13396_v47 = vpop.f32.mrb[24].mxu1 }
 0x737   : > { %v13398_v43 = vpop.f32.mrb[25].mxu1  ;;  %v4708_v53 = vadd.f32 %v4707_v21, %v4706_v22  ;;  %v4713_v39 = vsel %vm4669_vm7, %v13396_v47, 0.0 }
 0x738   : > { %v4709_v14 = vsel %vm4669_vm7, %v13398_v43, 0.0  ;;  %v13402_v35 = vpop.f32.mrb[26].mxu1 }
 0x739   : > { %v4710_v2 = vadd.f32 %v4709_v14, %v4708_v53  ;;  %v13404_v40 = vpop.f32.mrb[27].mxu1  ;;  %v4715_v16 = vsel %vm4669_vm7, %v13402_v35, 0.0 }
 0x73a   : > { %v4711_v5 = vsel %vm4669_vm7, %v13404_v40, 0.0 }
 0x73b   : > { %v4712_v63 = vadd.f32 %v4711_v5, %v4710_v2 }
 0x73d   : > { %v4714_v48 = vadd.f32 %v4713_v39, %v4712_v63 }
 0x73e   : > { %v13412_v54 = vpop.f32.mrb[28].mxu1 }
 0x73f   : > { %v13414_v13 = vpop.f32.mrb[29].mxu1  ;;  %v4716_v59 = vadd.f32 %v4715_v16, %v4714_v48  ;;  %v4721_v9 = vsel %vm4669_vm7, %v13412_v54, 0.0 }
 0x740   : > { %v4717_v60 = vsel %vm4669_vm7, %v13414_v13, 0.0  ;;  %v13418_v0 = vpop.f32.mrb[30].mxu1 }
 0x741   : > { %v4718_v45 = vadd.f32 %v4717_v60, %v4716_v59  ;;  %v13420_v1 = vpop.f32.mrb[31].mxu1  ;;  %v4723_v28 = vsel %vm4669_vm7, %v13418_v0, 0.0 }
 0x742   : > { %v4719_v19 = vsel %vm4669_vm7, %v13420_v1, 0.0 }
 0x743   : > { %v4720_v4 = vadd.f32 %v4719_v19, %v4718_v45 }
 0x745   : > { %v4722_v25 = vadd.f32 %v4721_v9, %v4720_v4  ;;  %v15201_v4 = vld [vmem:[#allocation3_spill] sm:$0xff] }
 0x746   : > { %v13428_v55 = vpop.f32.mrb[32].mxu1 }
 0x747   : > { %v13430_v33 = vpop.f32.mrb[33].mxu1  ;;  %v4724_v52 = vadd.f32 %v4723_v28, %v4722_v25  ;;  %v4729_v22 = vsel %vm4669_vm7, %v13428_v55, 0.0 }
 0x748   : > { %v4725_v18 = vsel %vm4669_vm7, %v13430_v33, 0.0  ;;  %v13434_v7 = vpop.f32.mrb[34].mxu1 }
 0x749   : > { %v4726_v57 = vadd.f32 %v4725_v18, %v4724_v52  ;;  %v4615_v41 = vpop.f32.mrb[35].mxu1  ;;  %v4731_v53 = vsel %vm4669_vm7, %v13434_v7, 0.0 }
 0x74a   : > { %v4727_v36 = vsel %vm4669_vm7, %v4615_v41, 0.0 }
 0x74b   : > { %v4728_v6 = vadd.f32 %v4727_v36, %v4726_v57 }
 0x74d   : > { %v4730_v21 = vadd.f32 %v4729_v22, %v4728_v6 }
 0x74f   : > { %v4732_v14 = vadd.f32 %v4731_v53, %v4730_v21 }
 0x751   : > { %v4733_v2 = vrot.slane %v4732_v14, 4 }
 0x753   : > { %v4734_v5 = vadd.f32 %v4733_v2, %v4732_v14 }
 0x755   : > { %v4735_v63 = vrot.slane %v4734_v5, 2 }
 0x757   : > { %v4736_v39 = vadd.f32 %v4735_v63, %v4734_v5 }
 0x759   : > { %v4737_v48 = vrot.slane %v4736_v39, 1 }
 0x75b   : > { %v4738_v16 = vadd.f32 %v4737_v48, %v4736_v39 }
 0x75d   : > { %10180 = vmatmul.mubr.msk.f32.vlgmr.msra.gmra.mrb[6].mxu0 %vm4669_vm7, %v4738_v16 }
 0x75e   : > { %10693 = vmatpush3.bf16.msra.mxu0 %v13270_v10  ;;  %10217 = vmatprep.mubr.msk.f32.mxu0 %vm11631_vm0, %v15199_v23 }
 0x75f   : > { %10694 = vmatprep.subr.bf16.mxu0 %v15185_v46 }
 0x762   : > { %10696 = vmatpush3.bf16.msra.mxu0 %v13276_v15 }
 0x763   : > { %10697 = vmatprep.subr.bf16.mxu0 %v15185_v46 }
 0x766   : > { %10699 = vmatpush3.bf16.msra.mxu0 %v13290_v42 }
 0x767   : > { %10700 = vmatprep.subr.bf16.mxu0 %v15185_v46 }
 0x76a   : > { %10702 = vmatpush3.bf16.msra.mxu0 %v13300_v30 }
 0x76b   : > { %10703 = vmatprep.subr.bf16.mxu0 %v15185_v46 }
 0x830   : > { %v4808_v59 = vpop.f32.mrb[6].mxu0 }
 0x831   : > { %v4813_v60 = vmul.f32 0.001953125, %v4808_v59  ;;  %v10181_v45 = vpop.f32.mrb[7].mxu0 }
 0x833   : > { %10199 = vmatmul.mubr.msk.f32.vlgmr.msra.gmra.mrb[2].mxu1 %vm628_vm1, %v4813_v60 }
 0x834   : > { %10247 = vmatprep.mubr.bf16.mxu1 %v15185_v46 }
 0x906   : > { %v4907_v19 = vpop.f32.mrb[2].mxu1 }
 0x907   : > { %v4914_v9 = vrot.slane %v4907_v19, %v15201_v4  ;;  %v10200_v25 = vpop.f32.mrb[3].mxu1 }
 0x909   : > { %v13456_v28 = vsub.f32 %v13318_v24, %v4914_v9  ;;  %v13459_v52 = vsub.f32 %v13322_v29, %v4914_v9  ;;  %v13462_v18 = vsub.f32 %v13316_v37, %v4914_v9  ;;  %v13465_v57 = vsub.f32 %v13320_v49, %v4914_v9 }
 0x90a   : > { %v13468_v36 = vsub.f32 %v13334_v31, %v4914_v9  ;;  %v13471_v6 = vsub.f32 %v13340_v8, %v4914_v9  ;;  %v13474_v22 = vsub.f32 %v13332_v12, %v4914_v9  ;;  %v13477_v24 = vsub.f32 %v13338_v34, %v4914_v9 }
 0x90b   : > { %v13480_v29 = vsub.f32 %v13350_v61, %v4914_v9  ;;  %v13483_v37 = vsub.f32 %v13356_v11, %v4914_v9  ;;  %v13486_v49 = vsub.f32 %v13348_v27, %v4914_v9  ;;  %v13489_v31 = vsub.f32 %v13354_v62, %v4914_v9 }
 0x90c   : > { %v13492_v8 = vsub.f32 %v13366_v32, %v4914_v9  ;;  %v13495_v12 = vsub.f32 %v13372_v38, %v4914_v9  ;;  %v13498_v34 = vsub.f32 %v13364_v20, %v4914_v9  ;;  %v13501_v61 = vsub.f32 %v13370_v58, %v4914_v9 }
 0x90d   : > { %v13504_v11 = vsub.f32 %v13382_v56, %v4914_v9  ;;  %v13507_v27 = vsub.f32 %v13388_v17, %v4914_v9  ;;  %v13510_v62 = vsub.f32 %v13380_v50, %v4914_v9  ;;  %v13513_v32 = vsub.f32 %v13386_v51, %v4914_v9 }
 0x90e   : > { %v13516_v38 = vsub.f32 %v13398_v43, %v4914_v9  ;;  %v13519_v20 = vsub.f32 %v13404_v40, %v4914_v9  ;;  %v13522_v58 = vsub.f32 %v13396_v47, %v4914_v9  ;;  %v13525_v56 = vsub.f32 %v13402_v35, %v4914_v9 }
 0x90f   : > { %v13528_v17 = vsub.f32 %v13414_v13, %v4914_v9  ;;  %v13531_v50 = vsub.f32 %v13420_v1, %v4914_v9  ;;  %v13534_v51 = vsub.f32 %v13412_v54, %v4914_v9  ;;  %v13537_v43 = vsub.f32 %v13418_v0, %v4914_v9 }
 0x910   : > { %v13540_v40 = vsub.f32 %v13430_v33, %v4914_v9  ;;  %v13542_v47 = vsub.f32 %v4615_v41, %v4914_v9  ;;  %v13545_v35 = vsub.f32 %v13428_v55, %v4914_v9  ;;  %v13548_v13 = vsub.f32 %v13434_v7, %v4914_v9 }
 0x911   : > { %v4947_v1 = vmul.f32 %v13456_v28, %v13456_v28  ;;  %v4948_v54 = vmul.f32 %v13459_v52, %v13459_v52  ;;  %v4949_v0 = vmul.f32 %v13462_v18, %v13462_v18  ;;  %v4950_v33 = vmul.f32 %v13465_v57, %v13465_v57 }
 0x912   : > { %v4951_v7 = vmul.f32 %v13468_v36, %v13468_v36  ;;  %v4952_v2 = vmul.f32 %v13471_v6, %v13471_v6  ;;  %v4953_v39 = vmul.f32 %v13474_v22, %v13474_v22  ;;  %v4954_v59 = vmul.f32 %v13477_v24, %v13477_v24 }
 0x913   : > { %v4979_v41 = vsel %vm4669_vm7, %v4947_v1, 0.0  ;;  %v4980_v55 = vsel %vm4669_vm7, %v4948_v54, 0.0  ;;  %v4982_v53 = vsel %vm4669_vm7, %v4949_v0, 0.0  ;;  %v4984_v5 = vsel %vm4669_vm7, %v4950_v33, 0.0 }
 0x914   : > { %v4981_v21 = vadd.f32 %v4980_v55, %v4979_v41  ;;  %v4986_v48 = vsel %vm4669_vm7, %v4951_v7, 0.0  ;;  %v4988_v60 = vsel %vm4669_vm7, %v4952_v2, 0.0  ;;  %v4955_v19 = vmul.f32 %v13480_v29, %v13480_v29 }
 0x915   : > { %v4990_v9 = vsel %vm4669_vm7, %v4953_v39, 0.0  ;;  %v4956_v1 = vmul.f32 %v13483_v37, %v13483_v37  ;;  %v4992_v54 = vsel %vm4669_vm7, %v4954_v59, 0.0  ;;  %v4957_v33 = vmul.f32 %v13486_v49, %v13486_v49 }
 0x916   : > { %v4983_v14 = vadd.f32 %v4982_v53, %v4981_v21  ;;  %v4994_v41 = vsel %vm4669_vm7, %v4955_v19, 0.0  ;;  %v4958_v21 = vmul.f32 %v13489_v31, %v13489_v31 }
 0x917   : > { %v4996_v7 = vsel %vm4669_vm7, %v4956_v1, 0.0  ;;  %v4998_v2 = vsel %vm4669_vm7, %v4957_v33, 0.0 }
 0x918   : > { %v4985_v63 = vadd.f32 %v4984_v5, %v4983_v14  ;;  %v4959_v14 = vmul.f32 %v13492_v8, %v13492_v8  ;;  %v5000_v39 = vsel %vm4669_vm7, %v4958_v21, 0.0 }
 0x91a   : > { %v4987_v16 = vadd.f32 %v4986_v48, %v4985_v63  ;;  %v4960_v63 = vmul.f32 %v13495_v12, %v13495_v12  ;;  %v5002_v59 = vsel %vm4669_vm7, %v4959_v14, 0.0 }
 0x91c   : > { %v4989_v45 = vadd.f32 %v4988_v60, %v4987_v16  ;;  %v4961_v16 = vmul.f32 %v13498_v34, %v13498_v34  ;;  %v5004_v19 = vsel %vm4669_vm7, %v4960_v63, 0.0 }
 0x91e   : > { %v4991_v25 = vadd.f32 %v4990_v9, %v4989_v45  ;;  %v4962_v45 = vmul.f32 %v13501_v61, %v13501_v61  ;;  %v5006_v1 = vsel %vm4669_vm7, %v4961_v16, 0.0 }
 0x920   : > { %v4993_v0 = vadd.f32 %v4992_v54, %v4991_v25  ;;  %v4963_v25 = vmul.f32 %v13504_v11, %v13504_v11  ;;  %v5008_v33 = vsel %vm4669_vm7, %v4962_v45, 0.0 }
 0x922   : > { %v4995_v55 = vadd.f32 %v4994_v41, %v4993_v0  ;;  %v4964_v0 = vmul.f32 %v13507_v27, %v13507_v27  ;;  %v5010_v21 = vsel %vm4669_vm7, %v4963_v25, 0.0 }
 0x924   : > { %v4997_v53 = vadd.f32 %v4996_v7, %v4995_v55  ;;  %v4965_v55 = vmul.f32 %v13510_v62, %v13510_v62  ;;  %v5012_v14 = vsel %vm4669_vm7, %v4964_v0, 0.0 }
 0x926   : > { %v4999_v5 = vadd.f32 %v4998_v2, %v4997_v53  ;;  %v4966_v53 = vmul.f32 %v13513_v32, %v13513_v32  ;;  %v5014_v63 = vsel %vm4669_vm7, %v4965_v55, 0.0 }
 0x928   : > { %v5001_v48 = vadd.f32 %v5000_v39, %v4999_v5  ;;  %v4967_v5 = vmul.f32 %v13516_v38, %v13516_v38  ;;  %v5016_v16 = vsel %vm4669_vm7, %v4966_v53, 0.0 }
 0x92a   : > { %v5003_v60 = vadd.f32 %v5002_v59, %v5001_v48  ;;  %v4968_v48 = vmul.f32 %v13519_v20, %v13519_v20  ;;  %v5018_v45 = vsel %vm4669_vm7, %v4967_v5, 0.0 }
 0x92c   : > { %v5005_v9 = vadd.f32 %v5004_v19, %v5003_v60  ;;  %v4969_v60 = vmul.f32 %v13522_v58, %v13522_v58  ;;  %v5020_v25 = vsel %vm4669_vm7, %v4968_v48, 0.0 }
 0x92e   : > { %v5007_v54 = vadd.f32 %v5006_v1, %v5005_v9  ;;  %v4970_v9 = vmul.f32 %v13525_v56, %v13525_v56  ;;  %v5022_v0 = vsel %vm4669_vm7, %v4969_v60, 0.0 }
 0x930   : > { %v5009_v41 = vadd.f32 %v5008_v33, %v5007_v54  ;;  %v4971_v54 = vmul.f32 %v13528_v17, %v13528_v17  ;;  %v5024_v55 = vsel %vm4669_vm7, %v4970_v9, 0.0 }
 0x932   : > { %v5011_v7 = vadd.f32 %v5010_v21, %v5009_v41  ;;  %v4972_v41 = vmul.f32 %v13531_v50, %v13531_v50  ;;  %v5026_v53 = vsel %vm4669_vm7, %v4971_v54, 0.0 }
 0x934   : > { %v5013_v2 = vadd.f32 %v5012_v14, %v5011_v7  ;;  %v4973_v7 = vmul.f32 %v13534_v51, %v13534_v51  ;;  %v5028_v5 = vsel %vm4669_vm7, %v4972_v41, 0.0 }
 0x936   : > { %v5015_v39 = vadd.f32 %v5014_v63, %v5013_v2  ;;  %v4974_v2 = vmul.f32 %v13537_v43, %v13537_v43  ;;  %v5030_v48 = vsel %vm4669_vm7, %v4973_v7, 0.0 }
 0x938   : > { %v5017_v59 = vadd.f32 %v5016_v16, %v5015_v39  ;;  %v4975_v39 = vmul.f32 %v13540_v40, %v13540_v40  ;;  %v5032_v60 = vsel %vm4669_vm7, %v4974_v2, 0.0 }
 0x93a   : > { %v5019_v19 = vadd.f32 %v5018_v45, %v5017_v59  ;;  %v4976_v59 = vmul.f32 %v13542_v47, %v13542_v47  ;;  %v5034_v9 = vsel %vm4669_vm7, %v4975_v39, 0.0 }
 0x93c   : > { %v5021_v1 = vadd.f32 %v5020_v25, %v5019_v19  ;;  %v4977_v19 = vmul.f32 %v13545_v35, %v13545_v35  ;;  %v5036_v54 = vsel %vm4669_vm7, %v4976_v59, 0.0  ;;  %v11296_v59 = vld [vmem:[%s15103_s6 + $0x30] sm:$0xff]  }
 0x93e   : > { %v5023_v33 = vadd.f32 %v5022_v0, %v5021_v1  ;;  %v4978_v1 = vmul.f32 %v13548_v13, %v13548_v13 }
 0x940   : > { %v5025_v21 = vadd.f32 %v5024_v55, %v5023_v33  ;;  %v5038_v33 = vsel %vm4669_vm7, %v4977_v19, 0.0  ;;  %v5040_v55 = vsel %vm4669_vm7, %v4978_v1, 0.0  ;;  %v11299_v19 = vld [vmem:[%s15103_s6 + $0x18] sm:$0xff]  }
 0x942   : > { %v5027_v14 = vadd.f32 %v5026_v53, %v5025_v21 }
 0x944   : > { %v5029_v63 = vadd.f32 %v5028_v5, %v5027_v14 }
 0x946   : > { %v5031_v16 = vadd.f32 %v5030_v48, %v5029_v63 }
 0x948   : > { %v5033_v45 = vadd.f32 %v5032_v60, %v5031_v16  ;;  %v11297_v60 = vld [vmem:[%s15103_s6 + $0x10] sm:$0xff]  }
 0x94a   : > { %v5035_v25 = vadd.f32 %v5034_v9, %v5033_v45  ;;  %v11298_v45 = vld [vmem:[%s15103_s6 + $0x38] sm:$0xff]   ;;  %v13693_v9 = vld [vmem:[%s15103_s6 + $0x40] sm:$0xff]  }
 0x94b   : > { %15202 = vst [vmem:[#allocation4_spill] sm:$0xff] %v13693_v9 }
 0x94c   : > { %v5037_v0 = vadd.f32 %v5036_v54, %v5035_v25 }
 0x94e   : > { %v5039_v41 = vadd.f32 %v5038_v33, %v5037_v0  ;;  %v13704_v33 = vld [vmem:[%s15100_s3] ss:$0 sm:$0xff] }
 0x950   : > { %v5041_v21 = vadd.f32 %v5040_v55, %v5039_v41 }
 0x952   : > { %v5042_v7 = vrot.slane %v5041_v21, 4 }
 0x954   : > { %v5043_v53 = vadd.f32 %v5042_v7, %v5041_v21 }
 0x956   : > { %v5044_v14 = vrot.slane %v5043_v53, 2 }
 0x958   : > { %v5045_v2 = vadd.f32 %v5044_v14, %v5043_v53 }
 0x95a   : > { %v5046_v5 = vrot.slane %v5045_v2, 1 }
 0x95c   : > { %v5047_v63 = vadd.f32 %v5046_v5, %v5045_v2 }
 0x95e   : > { %10218 = vmatmul.mubr.msk.f32.vlgmr.msra.gmra.mrb[8].mxu0 %vm4669_vm7, %v5047_v63 }
 0x95f   : > { %10706 = vmatpush3.bf16.xpose.msk.msra.mxu0 %vm11723_vm2, %v13270_v10  ;;  %10236 = vmatprep.mubr.msk.f32.mxu0 %vm11631_vm0, %v15199_v23 }
 0x960   : > { %10707 = vmatprep.subr.bf16.mxu0 %v15185_v46 }
 0x967   : > { %10710 = vmatpush3.bf16.xpose.msk.msra.mxu0 %vm11723_vm2, %v13276_v15  ;;  %v11292_v15 = vld [vmem:[%s15103_s6 + $0x20] sm:$0xff]  }
 0x968   : > { %10711 = vmatprep.subr.bf16.mxu0 %v15185_v46  ;;  %10239 = vmatprep.subr.bf16.mxu1 %v11292_v15 }
 0x969   : > { %10240 = vmatpush3.bf16.msra.mxu1 %v11292_v15 }
 0x96a   : > { %10241 = vmatprep.subr.bf16.mxu1 %v11294_v3 }
 0x96d   : > { %10242 = vmatpush3.bf16.msra.mxu1 %v11294_v3 }
 0x96e   : > { %10243 = vmatprep.subr.bf16.mxu1 %v11296_v59 }
 0x96f   : > { %10714 = vmatpush3.bf16.xpose.msk.msra.mxu0 %vm11723_vm2, %v13290_v42  ;;  %v11293_v42 = vld [vmem:[%s15103_s6] sm:$0xff]  }
 0x970   : > { %10715 = vmatprep.subr.bf16.mxu0 %v15185_v46 }
 0x971   : > { %10244 = vmatpush3.bf16.msra.mxu1 %v11296_v59 }
 0x972   : > { %10245 = vmatprep.subr.bf16.mxu1 %v11298_v45 }
 0x975   : > { %10246 = vmatpush3.bf16.msra.mxu1 %v11298_v45 }
 0x977   : > { %10718 = vmatpush3.bf16.xpose.msk.msra.mxu0 %vm11723_vm2, %v13300_v30  ;;  %v11295_v30 = vld [vmem:[%s15103_s6 + $0x8] sm:$0xff]  }
 0x978   : > { %10279 = vmatprep.subr.bf16.mxu0 %v11293_v42 }
 0xa31   : > { %v5117_v10 = vpop.f32.mrb[8].mxu0 }
 0xa32   : > { %v5121_v23 = vmul.f32 0.001953125, %v5117_v10  ;;  %v10219_v39 = vpop.f32.mrb[9].mxu0 }
 0xa34   : > { %v5122_v48 = vadd.f32 1e-06, %v5121_v23 }
 0xa36   : > { %11460 = vrsqrt.f32 %v5122_v48 }
 0xa40   : > { %v11461_v16 = vpop.eup %11460 }
 0xa41   : > { %10237 = vmatmul.mubr.msk.f32.vlgmr.msra.gmra.mrb[10].mxu0 %vm628_vm1, %v11461_v16 }
 0xa42   : > { %10287 = vmatprep.mubr.bf16.mxu0 %v15185_v46  ;;  %10280 = vmatpush3.bf16.msra.mxu0 %v11293_v42 }
 0xa43   : > { %10281 = vmatprep.subr.bf16.mxu0 %v11295_v30 }
 0xa46   : > { %10282 = vmatpush3.bf16.msra.mxu0 %v11295_v30 }
 0xa47   : > { %10283 = vmatprep.subr.bf16.mxu0 %v11297_v60 }
 0xa4a   : > { %10284 = vmatpush3.bf16.msra.mxu0 %v11297_v60 }
 0xa4b   : > { %10285 = vmatprep.subr.bf16.mxu0 %v11299_v19 }
 0xa4e   : > { %10286 = vmatpush3.bf16.msra.mxu0 %v11299_v19 }
 0xa4f   : > { %10319 = vmatprep.subr.bf16.mxu0 %v13693_v9 }
 0xb14   : > { %v5193_v25 = vpop.f32.mrb[10].mxu0 }
 0xb15   : > { %v10238_v1 = vpop.f32.mrb[11].mxu0  ;;  %v13697_v54 = vrot.slane %v5193_v25, %v15201_v4 }
 0xb17   : > { %v5231_v0 = vmul.f32 %v13697_v54, %v13545_v35  ;;  %v5201_v55 = vmul.f32 %v13697_v54, %v13456_v28  ;;  %v5202_v21 = vmul.f32 %v13697_v54, %v13459_v52  ;;  %v5203_v4 = vmul.f32 %v13697_v54, %v13462_v18  ;;  %v13718_v35 = vld [vmem:[%s15101_s4] ss:$0 sm:$0xff] }
 0xb18   : > { %v5204_v7 = vmul.f32 %v13697_v54, %v13465_v57  ;;  %v5205_v53 = vmul.f32 %v13697_v54, %v13468_v36  ;;  %v5206_v28 = vmul.f32 %v13697_v54, %v13471_v6  ;;  %v5207_v52 = vmul.f32 %v13697_v54, %v13474_v22 }
 0xb19   : > { %v5269_v41 = vmul.f32 %v13704_v33, %v5231_v0  ;;  %v5239_v14 = vmul.f32 %v13704_v33, %v5201_v55  ;;  %v5208_v18 = vmul.f32 %v13697_v54, %v13477_v24  ;;  %v5209_v57 = vmul.f32 %v13697_v54, %v13480_v29 }
 0xb1a   : > { %v5240_v2 = vmul.f32 %v13704_v33, %v5202_v21  ;;  %v5210_v5 = vmul.f32 %v13697_v54, %v13483_v37  ;;  %v5211_v36 = vmul.f32 %v13697_v54, %v13486_v49  ;;  %v5212_v6 = vmul.f32 %v13697_v54, %v13489_v31 }
 0xb1b   : > { %v5241_v63 = vmul.f32 %v13704_v33, %v5203_v4  ;;  %v5213_v22 = vmul.f32 %v13697_v54, %v13492_v8  ;;  %v5214_v24 = vmul.f32 %v13697_v54, %v13495_v12  ;;  %v5242_v29 = vmul.f32 %v13704_v33, %v5204_v7 }
 0xb1c   : > { %v13745_v10 = vadd.f32 %v13718_v35, %v5269_v41  ;;  %v5215_v37 = vmul.f32 %v13697_v54, %v13498_v34  ;;  %v5216_v49 = vmul.f32 %v13697_v54, %v13501_v61  ;;  %v5243_v31 = vmul.f32 %v13704_v33, %v5205_v53 }
 0xb1d   : > { %v13753_v23 = vadd.f32 %v13718_v35, %v5239_v14  ;;  %v5217_v8 = vmul.f32 %v13697_v54, %v13504_v11  ;;  %v5218_v12 = vmul.f32 %v13697_v54, %v13507_v27  ;;  %v5244_v39 = vmul.f32 %v13704_v33, %v5206_v28 }
 0xb1e   : > { %v13761_v48 = vadd.f32 %v13718_v35, %v5240_v2  ;;  %v5219_v34 = vmul.f32 %v13697_v54, %v13510_v62  ;;  %v5220_v61 = vmul.f32 %v13697_v54, %v13513_v32  ;;  %v5245_v16 = vmul.f32 %v13704_v33, %v5207_v52 }
 0xb1f   : > { %v13769_v15 = vadd.f32 %v13718_v35, %v5241_v63  ;;  %v5221_v11 = vmul.f32 %v13697_v54, %v13516_v38  ;;  %v5222_v27 = vmul.f32 %v13697_v54, %v13519_v20  ;;  %v5246_v42 = vmul.f32 %v13704_v33, %v5208_v18 }
 0xb20   : > { %v13777_v3 = vadd.f32 %v13718_v35, %v5242_v29  ;;  %v5223_v62 = vmul.f32 %v13697_v54, %v13522_v58  ;;  %v5247_v32 = vmul.f32 %v13704_v33, %v5209_v57  ;;  %v13783_v30 = vadd.f32 %v13718_v35, %v5243_v31 }
 0xb21   : > { %v9087_v59 = vmul.f32 -1.442695, %v13753_v23  ;;  %v5224_v38 = vmul.f32 %v13697_v54, %v13525_v56  ;;  %v5248_v20 = vmul.f32 %v13704_v33, %v5210_v5  ;;  %v13790_v60 = vadd.f32 %v13718_v35, %v5244_v39 }
 0xb22   : > { %v9088_v45 = vmul.f32 -1.442695, %v13761_v48  ;;  %v5225_v58 = vmul.f32 %v13697_v54, %v13528_v17  ;;  %v5249_v19 = vmul.f32 %v13704_v33, %v5211_v36  ;;  %v13797_v25 = vadd.f32 %v13718_v35, %v5245_v16 }
 0xb23   : > { %v9089_v1 = vmul.f32 -1.442695, %v13769_v15  ;;  %v5226_v56 = vmul.f32 %v13697_v54, %v13531_v50  ;;  %v5250_v0 = vmul.f32 %v13704_v33, %v5212_v6  ;;  %v13804_v41 = vadd.f32 %v13718_v35, %v5246_v42 }
 0xb24   : > { %v9090_v55 = vmul.f32 -1.442695, %v13777_v3  ;;  %v5251_v21 = vmul.f32 %v13704_v33, %v5213_v22  ;;  %v13809_v17 = vadd.f32 %v13718_v35, %v5247_v32  ;;  %11462 = vpow2.f32 %v9087_v59 }
 0xb25   : > { %v9091_v4 = vmul.f32 -1.442695, %v13783_v30  ;;  %v5252_v7 = vmul.f32 %v13704_v33, %v5214_v24  ;;  %v13814_v53 = vadd.f32 %v13718_v35, %v5248_v20  ;;  %11464 = vpow2.f32 %v9088_v45 }
 0xb26   : > { %v9092_v50 = vmul.f32 -1.442695, %v13790_v60  ;;  %v5253_v28 = vmul.f32 %v13704_v33, %v5215_v37  ;;  %v13819_v14 = vadd.f32 %v13718_v35, %v5249_v19  ;;  %11466 = vpow2.f32 %v9089_v1 }
 0xb27   : > { %v9093_v52 = vmul.f32 -1.442695, %v13797_v25  ;;  %v5254_v18 = vmul.f32 %v13704_v33, %v5216_v49  ;;  %v13824_v57 = vadd.f32 %v13718_v35, %v5250_v0  ;;  %11468 = vpow2.f32 %v9090_v55 }
 0xb28   : > { %v9094_v2 = vmul.f32 -1.442695, %v13804_v41  ;;  %v5255_v5 = vmul.f32 %v13704_v33, %v5217_v8  ;;  %v13829_v36 = vadd.f32 %v13718_v35, %v5251_v21  ;;  %11470 = vpow2.f32 %v9091_v4 }
 0xb29   : > { %v9095_v6 = vmul.f32 -1.442695, %v13809_v17  ;;  %v5256_v63 = vmul.f32 %v13704_v33, %v5218_v12  ;;  %v13834_v22 = vadd.f32 %v13718_v35, %v5252_v7  ;;  %11472 = vpow2.f32 %v9092_v50 }
 0xb2a   : > { %v9096_v24 = vmul.f32 -1.442695, %v13814_v53  ;;  %v5257_v29 = vmul.f32 %v13704_v33, %v5219_v34  ;;  %v13839_v37 = vadd.f32 %v13718_v35, %v5253_v28  ;;  %11474 = vpow2.f32 %v9093_v52 }
 0xb2b   : > { %v9097_v49 = vmul.f32 -1.442695, %v13819_v14  ;;  %v5258_v31 = vmul.f32 %v13704_v33, %v5220_v61  ;;  %v13844_v8 = vadd.f32 %v13718_v35, %v5254_v18  ;;  %11476 = vpow2.f32 %v9094_v2 }
 0xb2c   : > { %v9098_v12 = vmul.f32 -1.442695, %v13824_v57  ;;  %v5259_v39 = vmul.f32 %v13704_v33, %v5221_v11  ;;  %v13849_v16 = vadd.f32 %v13718_v35, %v5255_v5  ;;  %11478 = vpow2.f32 %v9095_v6 }
 0xb2d   : > { %v9099_v34 = vmul.f32 -1.442695, %v13829_v36  ;;  %v5260_v42 = vmul.f32 %v13704_v33, %v5222_v27  ;;  %v13854_v32 = vadd.f32 %v13718_v35, %v5256_v63  ;;  %11480 = vpow2.f32 %v9096_v24 }
 0xb2e   : > { %v9100_v61 = vmul.f32 -1.442695, %v13834_v22  ;;  %v11463_v59 = vpop.eup %11462  ;;  %v5261_v20 = vmul.f32 %v13704_v33, %v5223_v62  ;;  %v13859_v45 = vadd.f32 %v13718_v35, %v5257_v29  ;;  %11482 = vpow2.f32 %v9097_v49 }
 0xb2f   : > { %v9101_v11 = vmul.f32 -1.442695, %v13839_v37  ;;  %v11465_v19 = vpop.eup %11464  ;;  %v5262_v1 = vmul.f32 %v13704_v33, %v5224_v38  ;;  %v13864_v27 = vadd.f32 %v13718_v35, %v5258_v31  ;;  %11484 = vpow2.f32 %v9098_v12 }
 0xb30   : > { %v9102_v0 = vmul.f32 -1.442695, %v13844_v8  ;;  %v11467_v55 = vpop.eup %11466  ;;  %v5263_v21 = vmul.f32 %v13704_v33, %v5225_v58  ;;  %v13869_v62 = vadd.f32 %v13718_v35, %v5259_v39  ;;  %11486 = vpow2.f32 %v9099_v34 }
 0xb31   : > { %v9103_v4 = vmul.f32 -1.442695, %v13849_v16  ;;  %v11469_v7 = vpop.eup %11468  ;;  %v5264_v50 = vmul.f32 %v13704_v33, %v5226_v56  ;;  %v13874_v38 = vadd.f32 %v13718_v35, %v5260_v42  ;;  %11488 = vpow2.f32 %v9100_v61 }
 0xb32   : > { %v9104_v28 = vmul.f32 -1.442695, %v13854_v32  ;;  %v11471_v52 = vpop.eup %11470  ;;  %v13878_v18 = vadd.f32 %v13718_v35, %v5261_v20  ;;  %11490 = vpow2.f32 %v9101_v11  ;;  %v9105_v58 = vmul.f32 -1.442695, %v13859_v45 }
 0xb33   : > { %v11473_v2 = vpop.eup %11472  ;;  %v13882_v5 = vadd.f32 %v13718_v35, %v5262_v1  ;;  %11492 = vpow2.f32 %v9102_v0  ;;  %v9106_v56 = vmul.f32 -1.442695, %v13864_v27  ;;  %v13886_v63 = vadd.f32 %v13718_v35, %v5263_v21 }
 0xb34   : > { %v11475_v6 = vpop.eup %11474  ;;  %11494 = vpow2.f32 %v9103_v4  ;;  %v9107_v24 = vmul.f32 -1.442695, %v13869_v62  ;;  %v13890_v49 = vadd.f32 %v13718_v35, %v5264_v50  ;;  %v9108_v31 = vmul.f32 -1.442695, %v13874_v38 }
 0xb35   : > { %v11477_v29 = vpop.eup %11476  ;;  %11496 = vpow2.f32 %v9104_v28  ;;  %v5227_v39 = vmul.f32 %v13697_v54, %v13534_v51  ;;  %v9109_v34 = vmul.f32 -1.442695, %v13878_v18  ;;  %v5228_v61 = vmul.f32 %v13697_v54, %v13537_v43 }
 0xb36   : > { %v13893_v12 = vpop.eup %11478  ;;  %11498 = vpow2.f32 %v9105_v58  ;;  %v9110_v20 = vmul.f32 -1.442695, %v13882_v5  ;;  %v5229_v1 = vmul.f32 %v13697_v54, %v13540_v40  ;;  %v9111_v0 = vmul.f32 -1.442695, %v13886_v63 }
 0xb37   : > { %v13898_v42 = vpop.eup %11480  ;;  %11500 = vpow2.f32 %v9106_v56  ;;  %v5232_v51 = vmul.f32 %v13697_v54, %v13548_v13  ;;  %v9112_v4 = vmul.f32 -1.442695, %v13890_v49  ;;  %v5265_v43 = vmul.f32 %v13704_v33, %v5227_v39 }
 0xb38   : > { %v11483_v11 = vpop.eup %11482  ;;  %11502 = vpow2.f32 %v9107_v24  ;;  %v5405_v28 = vadd.f32 1.0, %v11463_v59  ;;  %v5266_v40 = vmul.f32 %v13704_v33, %v5228_v61  ;;  %v5406_v56 = vadd.f32 1.0, %v11465_v19 }
 0xb39   : > { %v11485_v21 = vpop.eup %11484  ;;  %11504 = vpow2.f32 %v9108_v31  ;;  %v5267_v46 = vmul.f32 %v13704_v33, %v5229_v1  ;;  %v5407_v13 = vadd.f32 1.0, %v11467_v55  ;;  %v5270_v26 = vmul.f32 %v13704_v33, %v5232_v51 }
 0xb3a   : > { %v13909_v50 = vpop.eup %11486  ;;  %11506 = vpow2.f32 %v9109_v34  ;;  %v5408_v39 = vadd.f32 1.0, %v11469_v7  ;;  %v5230_v59 = vmul.f32 %v13697_v54, %v13542_v47  ;;  %v13926_v61 = vadd.f32 %v13718_v35, %v5265_v43 }
 0xb3b   : > { %v13912_v58 = vpop.eup %11488  ;;  %11508 = vpow2.f32 %v9110_v20  ;;  %v5409_v19 = vadd.f32 1.0, %v11471_v52  ;;  %v13931_v55 = vadd.f32 %v13718_v35, %v5266_v40  ;;  %v5410_v1 = vadd.f32 1.0, %v11473_v2 }
 0xb3c   : > { %v13915_v24 = vpop.eup %11490  ;;  %11510 = vpow2.f32 %v9111_v0  ;;  %v13936_v7 = vadd.f32 %v13718_v35, %v5267_v46  ;;  %v5411_v51 = vadd.f32 1.0, %v11475_v6  ;;  %v13941_v54 = vadd.f32 %v13718_v35, %v5270_v26 }
 0xb3d   : > { %v13918_v31 = vpop.eup %11492  ;;  %11512 = vpow2.f32 %v9112_v4  ;;  %v5412_v52 = vadd.f32 1.0, %v11477_v29  ;;  %v5268_v43 = vmul.f32 %v13704_v33, %v5230_v59  ;;  %v9113_v2 = vmul.f32 -1.442695, %v13926_v61 }
 0xb3e   : > { %v13921_v34 = vpop.eup %11494  ;;  %11514 = vrcp.f32 %v5405_v28  ;;  %15203 = vst [vmem:[#allocation5_spill] sm:$0xff] %v13936_v7  ;;  %v9114_v46 = vmul.f32 -1.442695, %v13931_v55  ;;  %v9115_v40 = vmul.f32 -1.442695, %v13936_v7  ;;  %v5414_v59 = vadd.f32 1.0, %v13898_v42 }
 0xb3f   : > { %v13928_v20 = vpop.eup %11496  ;;  %11516 = vrcp.f32 %v5406_v56  ;;  %v9118_v29 = vmul.f32 -1.442695, %v13941_v54  ;;  %v13959_v33 = vadd.f32 %v13718_v35, %v5268_v43  ;;  %v5416_v9 = vadd.f32 1.0, %v11485_v21 }
 0xb40   : > { %v13933_v0 = vpop.eup %11498  ;;  %11518 = vrcp.f32 %v5407_v13  ;;  %v5413_v13 = vadd.f32 1.0, %v13893_v12  ;;  %v5417_v21 = vadd.f32 1.0, %v13909_v50  ;;  %v5419_v50 = vadd.f32 1.0, %v13915_v24 }
 0xb41   : > { %v13938_v47 = vpop.eup %11500  ;;  %11520 = vrcp.f32 %v5408_v39  ;;  %v9116_v35 = vmul.f32 -1.442695, %v13959_v33  ;;  %v5421_v24 = vadd.f32 1.0, %v13921_v34 }
 0xb42   : > { %v13943_v4 = vpop.eup %11502  ;;  %11522 = vrcp.f32 %v5409_v19 }
 0xb43   : > { %v13947_v28 = vpop.eup %11504  ;;  %11524 = vrcp.f32 %v5410_v1  ;;  %v5415_v1 = vadd.f32 1.0, %v11483_v11 }
 0xb44   : > { %v13950_v6 = vpop.eup %11506  ;;  %11526 = vrcp.f32 %v5411_v51 }
 0xb45   : > { %v13953_v26 = vpop.eup %11508  ;;  %11528 = vrcp.f32 %v5412_v52 }
 0xb46   : > { %v13956_v56 = vpop.eup %11510  ;;  %11530 = vpow2.f32 %v9113_v2  ;;  %v9117_v2 = vmul.f32 -1.442695, %v13745_v10 }
 0xb47   : > { %v13962_v39 = vpop.eup %11512  ;;  %11532 = vpow2.f32 %v9114_v46 }
 0xb48   : > { %v11515_v19 = vpop.eup %11514  ;;  %11534 = vpow2.f32 %v9115_v40 }
 0xb49   : > { %v11517_v51 = vpop.eup %11516  ;;  %11536 = vpow2.f32 %v9118_v29  ;;  %v13966_v52 = vmul.f32 %v11515_v19, %v13753_v23 }
 0xb4a   : > { %v11519_v7 = vpop.eup %11518  ;;  %11538 = vrcp.f32 %v5413_v13  ;;  %v13970_v12 = vmul.f32 %v11517_v51, %v13761_v48  ;;  %v5418_v48 = vadd.f32 1.0, %v13912_v58 }
 0xb4b   : > { %v11521_v43 = vpop.eup %11520  ;;  %11540 = vrcp.f32 %v5414_v59  ;;  %v13974_v42 = vmul.f32 %v11519_v7, %v13769_v15  ;;  %v5420_v59 = vadd.f32 1.0, %v13918_v31  ;;  %v5422_v31 = vadd.f32 1.0, %v13928_v20 }
 0xb4c   : > { %v11523_v11 = vpop.eup %11522  ;;  %11542 = vrcp.f32 %v5415_v1  ;;  %v13978_v23 = vmul.f32 %v11521_v43, %v13777_v3  ;;  %v15146_v46 = vrot.slane %v13970_v12, 1  ;;  %v13985_v13 = vpack.c.bf16 %v13970_v12, %v13966_v52 }
 0xb4d   : > { %v11525_v40 = vpop.eup %11524  ;;  %11544 = vrcp.f32 %v5416_v9  ;;  %v15145_v29 = vrot.slane %v13974_v42, 1  ;;  %v14008_v1 = vmul.f32 %v11523_v11, %v13783_v30  ;;  %v5423_v43 = vadd.f32 1.0, %v13933_v0 }
 0xb4e   : > { %15204 = vst [vmem:[#allocation6_spill] sm:$0xff] %v13985_v13  ;;  %v11527_v15 = vpop.eup %11526  ;;  %11546 = vpow2.f32 %v9116_v35  ;;  %v13990_v3 = vpack.c.bf16 %v13978_v23, %v13974_v42  ;;  %10248 = vmatmul.mubr.msk.bf16.vlgmr.msra.gmra.mrb[36].mxu1 %vm4669_vm7, %v13985_v13  ;;  %v14011_v51 = vmul.f32 %v11525_v40, %v13790_v60  ;;  %v5424_v20 = vadd.f32 1.0, %v13938_v47 }
 0xb4f   : > { %v11529_v7 = vpop.eup %11528  ;;  %11548 = vpow2.f32 %v9117_v2  ;;  %v13999_v9 = vsel %vm2252_vm5, %v15146_v46, %v15145_v29  ;;  %v14015_v34 = vmul.f32 %v11527_v15, %v13797_v25  ;;  %v5425_v30 = vadd.f32 1.0, %v13943_v4 }
 0xb50   : > { %15205 = vst [vmem:[#allocation7_spill] sm:$0xff] %v13990_v3  ;;  %v11531_v58 = vpop.eup %11530  ;;  %11550 = vrcp.f32 %v5417_v21  ;;  %10251 = vmatprep.mubr.msk.bf16.mxu1 %vm4669_vm7, %v13990_v3  ;;  %v14018_v2 = vmul.f32 %v11529_v7, %v13804_v41  ;;  %v5426_v11 = vadd.f32 1.0, %v13947_v28  ;;  %v5427_v0 = vadd.f32 1.0, %v13950_v6 }
 0xb51   : > { %v11533_v19 = vpop.eup %11532  ;;  %11552 = vrcp.f32 %v5418_v48  ;;  %v14026_v25 = vpack.c.bf16 %v14011_v51, %v14008_v1  ;;  %v5428_v40 = vadd.f32 1.0, %v13953_v26  ;;  %v5429_v47 = vadd.f32 1.0, %v13956_v56 }
 0xb52   : > { %v11535_v35 = vpop.eup %11534  ;;  %11554 = vrcp.f32 %v5419_v50  ;;  %v14032_v4 = vpack.c.bf16 %v14018_v2, %v14015_v34  ;;  %v5430_v28 = vadd.f32 1.0, %v13962_v39  ;;  %v5534_v6 = vrot.slane %v13970_v12, 7 }
 0xb53   : > { %v11537_v21 = vpop.eup %11536  ;;  %11556 = vrcp.f32 %v5420_v59  ;;  %15206 = vst [vmem:[#allocation8_spill] sm:$0xff] %v14026_v25  ;;  %v5535_v50 = vrot.slane %v13974_v42, 7  ;;  %v5431_v26 = vadd.f32 1.0, %v11531_v58  ;;  %v5432_v59 = vadd.f32 1.0, %v11533_v19 }
 0xb54   : > { %v11539_v48 = vpop.eup %11538  ;;  %11558 = vrcp.f32 %v5421_v24  ;;  %15207 = vst [vmem:[#allocation9_spill] sm:$0xff] %v14032_v4  ;;  %v5433_v56 = vadd.f32 1.0, %v11535_v35  ;;  %v5536_v19 = vrot.slane %v13978_v23, 7 }
 0xb55   : > { %v11541_v60 = vpop.eup %11540  ;;  %11560 = vrcp.f32 %v5422_v31  ;;  %v5436_v31 = vadd.f32 1.0, %v11537_v21  ;;  %v14042_v39 = vmul.f32 %v11539_v48, %v13809_v17  ;;  %v5594_v17 = vsel %vm1512_vm3, %v5534_v6, %v5535_v50 }
 0xb56   : > { %v11543_v41 = vpop.eup %11542  ;;  %11562 = vrcp.f32 %v5423_v43  ;;  %10252 = vmatmul.mubr.msk.bf16.gmra.mrb[40].mxu1 %vm4669_vm7, %v14026_v25  ;;  %v14045_v43 = vmul.f32 %v11541_v60, %v13814_v53  ;;  %v5537_v21 = vrot.slane %v14008_v1, 7  ;;  %v5538_v60 = vrot.slane %v14011_v51, 7 }
 0xb57   : > { %v11545_v15 = vpop.eup %11544  ;;  %11564 = vrcp.f32 %v5424_v20  ;;  %10255 = vmatprep.mubr.msk.bf16.mxu1 %vm4669_vm7, %v14032_v4  ;;  %v14048_v29 = vmul.f32 %v11543_v41, %v13819_v14  ;;  %v5539_v14 = vrot.slane %v14015_v34, 7 }
 0xb58   : > { %v11547_v7 = vpop.eup %11546  ;;  %11566 = vrcp.f32 %v5425_v30  ;;  %v14051_v58 = vmul.f32 %v11545_v15, %v13824_v57  ;;  %v14063_v41 = vpack.c.bf16 %v14045_v43, %v14042_v39  ;;  %v5593_v15 = vsel %vm1512_vm3, %v5535_v50, %v5536_v19 }
 0xb59   : > { %v11549_v24 = vpop.eup %11548  ;;  %11568 = vrcp.f32 %v5426_v11  ;;  %v5434_v30 = vadd.f32 1.0, %v11547_v7  ;;  %v5590_v46 = vsel %vm1512_vm3, %v5538_v60, %v5539_v14 }
 0xb5a   : > { %v11551_v20 = vpop.eup %11550  ;;  %11570 = vrcp.f32 %v5427_v0  ;;  %v5435_v48 = vadd.f32 1.0, %v11549_v24  ;;  %15208 = vst [vmem:[#allocation11_spill] sm:$0xff] %v14063_v41  ;;  %v14071_v7 = vpack.c.bf16 %v14051_v58, %v14048_v29  ;;  %v5592_v0 = vsel %vm1512_vm3, %v5536_v19, %v5537_v21 }
 0xb5b   : > { %v11553_v35 = vpop.eup %11552  ;;  %11572 = vrcp.f32 %v5428_v40  ;;  %v5542_v19 = vrot.slane %v14045_v43, 7 }
 0xb5c   : > { %v11555_v53 = vpop.eup %11554  ;;  %11574 = vrcp.f32 %v5429_v47  ;;  %v5601_v47 = vsel %vm490_vm4, %v5594_v17, 0.0  ;;  %15209 = vst [vmem:[#allocation12_spill] sm:$0xff] %v14071_v7  ;;  %v14082_v17 = vmul.f32 %v11553_v35, %v13834_v22  ;;  %v15212_v35 = vrot.slane %v13966_v52, 7 }
 0xb5d   : > { %v11557_v11 = vpop.eup %11556  ;;  %11576 = vrcp.f32 %v5436_v31  ;;  %v14074_v31 = vmul.f32 %v11551_v20, %v13829_v36  ;;  %v5541_v36 = vrot.slane %v14042_v39, 7  ;;  %v14090_v20 = vmul.f32 %v11555_v53, %v13839_v37 }
 0xb5e   : > { %v11559_v40 = vpop.eup %11558  ;;  %11578 = vrcp.f32 %v5430_v28  ;;  %v5540_v28 = vrot.slane %v14018_v2, 7  ;;  %10256 = vmatmul.mubr.msk.bf16.gmra.mrb[44].mxu1 %vm4669_vm7, %v14063_v41  ;;  %15211 = vst [vmem:[#allocation14_spill] sm:$0xff] %v14082_v17  ;;  %v14095_v22 = vmul.f32 %v11557_v11, %v13844_v8  ;;  %v5591_v37 = vsel %vm1512_vm3, %v5537_v21, %v5538_v60 }
 0xb5f   : > { %v11561_v24 = vpop.eup %11560  ;;  %11580 = vrcp.f32 %v5431_v26  ;;  %15210 = vst [vmem:[#allocation13_spill] sm:$0xff] %v14074_v31  ;;  %10259 = vmatprep.mubr.msk.bf16.mxu1 %vm4669_vm7, %v14071_v7  ;;  %v5595_v7 = vsel %vm1512_vm3, %v15212_v35, %v5534_v6  ;;  %v5544_v8 = vrot.slane %v14051_v58, 7  ;;  %v14110_v4 = vpack.c.bf16 %v5593_v15, %v5601_v47 }
 0xb60   : > { %v11563_v50 = vpop.eup %11562  ;;  %11582 = vrcp.f32 %v5432_v59  ;;  %v5543_v59 = vrot.slane %v14048_v29, 7  ;;  %v5589_v53 = vsel %vm1512_vm3, %v5539_v14, %v5540_v28  ;;  %v5588_v6 = vsel %vm1512_vm3, %v5540_v28, %v5541_v36 }
 0xb61   : > { %v11565_v26 = vpop.eup %11564  ;;  %11584 = vrcp.f32 %v5433_v56  ;;  %v5603_v56 = vsel %vm490_vm4, %v5592_v0, 0.0  ;;  %v5545_v0 = vrot.slane %v14074_v31, 7  ;;  %v14119_v60 = vpack.c.bf16 %v14082_v17, %v14074_v31 }
 0xb62   : > { %v11567_v57 = vpop.eup %11566  ;;  %11586 = vrcp.f32 %v5434_v30  ;;  %v5605_v30 = vsel %vm490_vm4, %v5590_v46, 0.0  ;;  %v5586_v21 = vsel %vm1512_vm3, %v5542_v19, %v5543_v59  ;;  %v5546_v46 = vrot.slane %v14082_v17, 7 }
 0xb63   : > { %v11569_v41 = vpop.eup %11568  ;;  %11588 = vrcp.f32 %v5435_v48  ;;  %v5547_v14 = vrot.slane %v14090_v20, 7  ;;  %v14124_v15 = vmul.f32 %v11559_v40, %v13849_v16  ;;  %v14126_v47 = vpack.c.bf16 %v5591_v37, %v5603_v56 }
 0xb64   : > { %v11571_v11 = vpop.eup %11570  ;;  %v14128_v28 = vpack.c.bf16 %v5589_v53, %v5605_v30  ;;  %v14132_v25 = vpack.c.bf16 %v14095_v22, %v14090_v20  ;;  %v14135_v13 = vmul.f32 %v11561_v24, %v13854_v32  ;;  %v5587_v17 = vsel %vm1512_vm3, %v5541_v36, %v5542_v19 }
 0xb65   : > { %v11573_v35 = vpop.eup %11572  ;;  %v5607_v31 = vsel %vm490_vm4, %v5588_v6, 0.0  ;;  %v5585_v16 = vsel %vm1512_vm3, %v5543_v59, %v5544_v8  ;;  %v5609_v32 = vsel %vm490_vm4, %v5586_v21, 0.0  ;;  %v5584_v24 = vsel %vm1512_vm3, %v5544_v8, %v5545_v0 }
 0xb66   : > { %v11575_v48 = vpop.eup %11574  ;;  %10260 = vmatmul.mubr.msk.bf16.gmra.mrb[48].mxu1 %vm4669_vm7, %v14119_v60  ;;  %v5548_v36 = vrot.slane %v14095_v22, 7  ;;  %v14156_v59 = vmul.f32 %v11563_v50, %v13859_v45  ;;  %v14159_v37 = vmul.f32 %v11565_v26, %v13864_v27  ;;  %v14167_v30 = vmul.f32 %v11569_v41, %v13874_v38 }
 0xb67   : > { %v11577_v3 = vpop.eup %11576  ;;  %10263 = vmatprep.mubr.msk.bf16.mxu1 %vm4669_vm7, %v14132_v25  ;;  %v14170_v8 = vmul.f32 %v11571_v11, %v13878_v18  ;;  %v14173_v45 = vpack.c.bf16 %v5587_v17, %v5607_v31  ;;  %v14176_v27 = vmul.f32 %v11573_v35, %v13882_v5  ;;  %v5611_v38 = vsel %vm490_vm4, %v5584_v24, 0.0 }
 0xb68   : > { %v11579_v40 = vpop.eup %11578  ;;  %v14146_v56 = vmul.f32 %v11577_v3, %v13941_v54  ;;  %v14162_v54 = vmul.f32 %v11567_v57, %v13869_v62  ;;  %v5582_v3 = vsel %vm1512_vm3, %v5546_v46, %v5547_v14  ;;  %v14178_v62 = vpack.c.bf16 %v5585_v16, %v5609_v32 }
 0xb69   : > { %v11581_v19 = vpop.eup %11580  ;;  %v5583_v57 = vsel %vm1512_vm3, %v5545_v0, %v5546_v46  ;;  %v15213_v18 = vrot.slane %v13966_v52, 7  ;;  %v5581_v5 = vsel %vm1512_vm3, %v5547_v14, %v5548_v36  ;;  %v5613_v17 = vsel %vm490_vm4, %v5582_v3, 0.0 }
 0xb6a   : > { %v11583_v53 = vpop.eup %11582  ;;  %v15161_v6 = vrot.slane %v14146_v56, 7  ;;  %v15160_v26 = vrot.slane %v14124_v15, 7  ;;  %v14196_v11 = vmul.f32 %v11575_v48, %v13886_v63  ;;  %v14199_v0 = vmul.f32 %v11579_v40, %v13890_v49  ;;  %v11301_v63 = vld [vmem:[%s15103_s6 + $0x48] sm:$0xff]   ;;  %v15214_v48 = vld [vmem:[#allocation5_spill] sm:$0xff] }
 0xb6b   : > { %v11585_v50 = vpop.eup %11584  ;;  %v14205_v21 = vpack.c.bf16 %v14135_v13, %v14124_v15  ;;  %v14208_v14 = vmul.f32 %v11581_v19, %v13926_v61  ;;  %v14211_v16 = vmul.f32 %v11583_v53, %v13931_v55  ;;  %v14220_v49 = vpack.c.bf16 %v14159_v37, %v14156_v59 }
 0xb6c   : > { %v11587_v41 = vpop.eup %11586  ;;  %v5596_v31 = vsel %vm1512_vm3, %v15161_v6, %v15213_v18  ;;  %v14223_v40 = vmul.f32 %v11585_v50, %v15214_v48  ;;  %v14228_v61 = vpack.c.bf16 %v5583_v57, %v5611_v38  ;;  %v14230_v55 = vpack.c.bf16 %v5581_v5, %v5613_v17  ;;  %v15215_v50 = vld [vmem:[#allocation4_spill] sm:$0xff] }
 0xb6d   : > { %v5599_v35 = vsel %vm490_vm4, %v5596_v31, 0.0  ;;  %v11589_v46 = vpop.eup %11588  ;;  %v14226_v24 = vmul.f32 %v11587_v41, %v13959_v33  ;;  %v14243_v33 = vsel %vm1512_vm3, %v5548_v36, %v15160_v26  ;;  %v14255_v57 = vpack.c.bf16 %v14167_v30, %v14162_v54  ;;  %v11302_v31 = vld [vmem:[%s15103_s6 + $0x50] sm:$0xff]  }
 0xb6e   : > { %v14213_v32 = vpack.c.bf16 %v5595_v7, %v5599_v35  ;;  %10264 = vmatmul.mubr.msk.bf16.gmra.mrb[52].mxu1 %vm4669_vm7, %v14205_v21  ;;  %v14248_v53 = vmul.f32 %v11589_v46, %v13745_v10  ;;  %v15216_v38 = vrot.slane %v13970_v12, 1  ;;  %v15217_v36 = vrot.slane %v13966_v52, 1 }
 0xb6f   : > { %10267 = vmatprep.mubr.msk.bf16.mxu1 %vm4669_vm7, %v14220_v49  ;;  %v6243_v10 = vsel %vm493_vm6, %v13999_v9, 0.0  ;;  %v14271_v5 = vpack.c.bf16 %v14176_v27, %v14170_v8  ;;  %v14275_v12 = vpack.c.bf16 %v14199_v0, %v14196_v11  ;;  %v14279_v17 = vpack.c.bf16 %v14211_v16, %v14208_v14 }
 0xb70   : > { %10288 = vmatmul.mubr.msk.bf16.vlgmr.msra.gmra.mrb[12].mxu0 %vm4669_vm7, %v14213_v32  ;;  %v6238_v41 = vsel %vm2252_vm5, %v15217_v36, %v15216_v38  ;;  %v14285_v9 = vpack.c.bf16 %v14226_v24, %v14223_v40  ;;  %v6179_v46 = vrot.slane %v13978_v23, 1  ;;  %v6180_v48 = vrot.slane %v14008_v1, 1 }
 0xb71   : > { %10320 = vmatpush3.bf16.msra.mxu0 %v15215_v50  ;;  %10291 = vmatprep.mubr.msk.bf16.mxu0 %vm4669_vm7, %v14110_v4  ;;  %15219 = vst [vmem:[#allocation2_spill] sm:$0xff] %v14275_v12  ;;  %15220 = vst [vmem:[#allocation3_spill] sm:$0xff] %v14279_v17  ;;  %v14281_v35 = vpack.c.bf16 %v6243_v10, %v6238_v41  ;;  %v6181_v50 = vrot.slane %v14011_v51, 1  ;;  %v6182_v36 = vrot.slane %v14015_v34, 1  ;;  %v6183_v3 = vrot.slane %v14018_v2, 1  ;;  %v11303_v34 = vld [vmem:[%s15103_s6 + $0x58] sm:$0xff]  }
 0xb72   : > { %10321 = vmatprep.subr.bf16.mxu0 %v11301_v63  ;;  %15221 = vst [vmem:[#allocation5_spill] sm:$0xff] %v14285_v9  ;;  %v6184_v26 = vrot.slane %v14042_v39, 1  ;;  %v6235_v41 = vsel %vm2252_vm5, %v6179_v46, %v6180_v48  ;;  %v15222_v10 = vrot.slane %v13974_v42, 1  ;;  %v6185_v51 = vrot.slane %v14045_v43, 1 }
 0xb73   : > { %v6234_v1 = vsel %vm2252_vm5, %v6180_v48, %v6181_v50  ;;  %v6245_v2 = vsel %vm493_vm6, %v6235_v41, 0.0  ;;  %v6233_v39 = vsel %vm2252_vm5, %v6181_v50, %v6182_v36  ;;  %v6186_v41 = vrot.slane %v14048_v29, 1 }
 0xb74   : > { %v6236_v23 = vsel %vm2252_vm5, %v15222_v10, %v6179_v46  ;;  %v6231_v42 = vsel %vm2252_vm5, %v6183_v3, %v6184_v26  ;;  %v6247_v46 = vsel %vm493_vm6, %v6233_v39, 0.0  ;;  %v6187_v10 = vrot.slane %v14051_v58, 1  ;;  %v15224_v39 = vld [vmem:[#allocation14_spill] sm:$0xff] }
 0xb75   : > { %10322 = vmatpush3.bf16.msra.mxu0 %v11301_v63  ;;  %v6232_v63 = vsel %vm2252_vm5, %v6182_v36, %v6183_v3  ;;  %v14316_v43 = vpack.c.bf16 %v6245_v2, %v6236_v23  ;;  %v6249_v48 = vsel %vm493_vm6, %v6231_v42, 0.0  ;;  %v14327_v3 = vpack.c.bf16 %v6247_v46, %v6234_v1  ;;  %v15223_v23 = vld [vmem:[#allocation13_spill] sm:$0xff] }
 0xb76   : > { %10323 = vmatprep.subr.bf16.mxu0 %v11302_v31  ;;  %10268 = vmatmul.mubr.msk.bf16.gmra.mrb[56].mxu1 %vm4669_vm7, %v14255_v57  ;;  %v14329_v50 = vpack.c.bf16 %v6249_v48, %v6232_v63  ;;  %v6230_v36 = vsel %vm2252_vm5, %v6184_v26, %v6185_v51  ;;  %v6229_v29 = vsel %vm2252_vm5, %v6185_v51, %v6186_v41  ;;  %v6188_v2 = vrot.slane %v15223_v23, 1  ;;  %v14344_v26 = vld [vmem:[%s15103_s6 + $0x60] sm:$0xff]  }
 0xb77   : > { %10271 = vmatprep.mubr.msk.bf16.mxu1 %vm4669_vm7, %v14271_v5  ;;  %v6189_v42 = vrot.slane %v15224_v39, 1  ;;  %v6190_v1 = vrot.slane %v14090_v20, 1  ;;  %v6251_v58 = vsel %vm493_vm6, %v6229_v29, 0.0  ;;  %v6191_v51 = vrot.slane %v14095_v22, 1 }
 0xb78   : > { %10292 = vmatmul.mubr.msk.bf16.gmra.mrb[16].mxu0 %vm4669_vm7, %v14126_v47  ;;  %v6192_v63 = vrot.slane %v14124_v15, 1  ;;  %v14352_v46 = vpack.c.bf16 %v6251_v58, %v6230_v36  ;;  %v6227_v20 = vsel %vm2252_vm5, %v6187_v10, %v6188_v2  ;;  %v5556_v18 = vrot.slane %v14176_v27, 7 }
 0xb79   : > { %10295 = vmatprep.mubr.msk.bf16.mxu0 %vm4669_vm7, %v14128_v28  ;;  %10324 = vmatpush3.bf16.msra.mxu0 %v11302_v31  ;;  %v6228_v31 = vsel %vm2252_vm5, %v6186_v41, %v6187_v10  ;;  %v6225_v48 = vsel %vm2252_vm5, %v6189_v42, %v6190_v1  ;;  %v6226_v23 = vsel %vm2252_vm5, %v6188_v2, %v6189_v42  ;;  %v6253_v29 = vsel %vm493_vm6, %v6227_v20, 0.0 }
 0xb7a   : > { %10325 = vmatprep.subr.bf16.mxu0 %v11303_v34  ;;  %v6255_v41 = vsel %vm493_vm6, %v6225_v48, 0.0  ;;  %v6223_v22 = vsel %vm2252_vm5, %v6191_v51, %v6192_v63  ;;  %v6224_v36 = vsel %vm2252_vm5, %v6190_v1, %v6191_v51  ;;  %v14368_v10 = vpack.c.bf16 %v6253_v29, %v6228_v31 }
 0xb7b   : > { %v14370_v39 = vpack.c.bf16 %v6255_v41, %v6226_v23  ;;  %v6257_v2 = vsel %vm493_vm6, %v6223_v22, 0.0  ;;  %v6193_v42 = vrot.slane %v14135_v13, 1  ;;  %v6194_v20 = vrot.slane %v14156_v59, 1 }
 0xb7c   : > { %v14376_v58 = vpack.c.bf16 %v6257_v2, %v6224_v36  ;;  %v6195_v48 = vrot.slane %v14159_v37, 1  ;;  %v6196_v1 = vrot.slane %v14162_v54, 1  ;;  %v6197_v31 = vrot.slane %v14167_v30, 1 }
 0xb7d   : > { %10326 = vmatpush3.bf16.msra.mxu0 %v11303_v34  ;;  %v6222_v34 = vsel %vm2252_vm5, %v6192_v63, %v6193_v42  ;;  %v6198_v51 = vrot.slane %v14170_v8, 1  ;;  %v6199_v23 = vrot.slane %v14176_v27, 1  ;;  %v6221_v29 = vsel %vm2252_vm5, %v6193_v42, %v6194_v20 }
 0xb7e   : > { %10359 = vmatprep.subr.bf16.mxu0 %v14344_v26  ;;  %10272 = vmatmul.mubr.msk.bf16.gmra.mrb[60].mxu1 %vm4669_vm7, %v14275_v12  ;;  %v6219_v41 = vsel %vm2252_vm5, %v6195_v48, %v6196_v1  ;;  %v6220_v63 = vsel %vm2252_vm5, %v6194_v20, %v6195_v48  ;;  %v6200_v22 = vrot.slane %v14196_v11, 1  ;;  %v6259_v36 = vsel %vm493_vm6, %v6221_v29, 0.0 }
 0xb7f   : > { %10275 = vmatprep.mubr.msk.bf16.mxu1 %vm4669_vm7, %v14279_v17  ;;  %v6261_v2 = vsel %vm493_vm6, %v6219_v41, 0.0  ;;  %v6217_v42 = vsel %vm2252_vm5, %v6197_v31, %v6198_v51  ;;  %v6218_v38 = vsel %vm2252_vm5, %v6196_v1, %v6197_v31  ;;  %v14409_v7 = vpack.c.bf16 %v6259_v36, %v6222_v34 }
 0xb80   : > { %10296 = vmatmul.mubr.msk.bf16.gmra.mrb[20].mxu0 %vm4669_vm7, %v14173_v45  ;;  %v14411_v20 = vpack.c.bf16 %v6261_v2, %v6220_v63  ;;  %v6263_v48 = vsel %vm493_vm6, %v6217_v42, 0.0  ;;  %v6215_v19 = vsel %vm2252_vm5, %v6199_v23, %v6200_v22  ;;  %v6216_v41 = vsel %vm2252_vm5, %v6198_v51, %v6199_v23 }
 0xb81   : > { %10299 = vmatprep.mubr.msk.bf16.mxu0 %vm4669_vm7, %v14178_v62  ;;  %v14417_v29 = vpack.c.bf16 %v6263_v48, %v6218_v38  ;;  %v6265_v6 = vsel %vm493_vm6, %v6215_v19, 0.0  ;;  %v6201_v1 = vrot.slane %v14199_v0, 1  ;;  %v6202_v31 = vrot.slane %v14208_v14, 1 }
 0xb82   : > { %v14424_v34 = vpack.c.bf16 %v6265_v6, %v6216_v41  ;;  %v6203_v63 = vrot.slane %v14211_v16, 1  ;;  %v6204_v36 = vrot.slane %v14223_v40, 1  ;;  %v6205_v2 = vrot.slane %v14226_v24, 1 }
 0xb83   : > { %v6214_v38 = vsel %vm2252_vm5, %v6200_v22, %v6201_v1  ;;  %v6206_v51 = vrot.slane %v14248_v53, 1  ;;  %v5563_v23 = vrot.slane %v14248_v53, 7  ;;  %v6213_v19 = vsel %vm2252_vm5, %v6201_v1, %v6202_v31 }
 0xb84   : > { %v6211_v6 = vsel %vm2252_vm5, %v6203_v63, %v6204_v36  ;;  %v6212_v42 = vsel %vm2252_vm5, %v6202_v31, %v6203_v63  ;;  %v14442_v48 = vpack.c.bf16 %v14146_v56, %v14248_v53  ;;  %v6267_v22 = vsel %vm493_vm6, %v6213_v19, 0.0 }
 0xb85   : > { %v6269_v41 = vsel %vm493_vm6, %v6211_v6, 0.0  ;;  %v6209_v1 = vsel %vm2252_vm5, %v6205_v2, %v6206_v51  ;;  %v6210_v17 = vsel %vm2252_vm5, %v6204_v36, %v6205_v2  ;;  %v14456_v53 = vpack.c.bf16 %v6267_v22, %v6214_v38 }
 0xb86   : > { %15225 = vst [vmem:[#allocation4_spill] sm:$0xff] %v14442_v48  ;;  %10276 = vmatmul.mubr.msk.bf16.gmra.mrb[64].mxu1 %vm4669_vm7, %v14285_v9  ;;  %v14458_v31 = vpack.c.bf16 %v6269_v41, %v6212_v42  ;;  %v6271_v63 = vsel %vm493_vm6, %v6209_v1, 0.0  ;;  %v15226_v19 = vrot.slane %v14146_v56, 7  ;;  %v15227_v36 = vrot.slane %v14156_v59, 7 }
 0xb87   : > { %v15228_v2 = vrot.slane %v14135_v13, 7  ;;  %v14474_v42 = vpack.c.bf16 %v6271_v63, %v6210_v17  ;;  %v15229_v22 = vrot.slane %v14226_v24, 7  ;;  %v6207_v1 = vrot.slane %v14146_v56, 1 }
 0xb88   : > { %10300 = vmatmul.mubr.msk.bf16.gmra.mrb[24].mxu0 %vm4669_vm7, %v14228_v61  ;;  %v5565_v6 = vsel %vm1512_vm3, %v5563_v23, %v15226_v19  ;;  %v15231_v48 = vrot.slane %v14124_v15, 7  ;;  %v5615_v17 = vsel %vm490_vm4, %v14243_v33, 0.0  ;;  %v15232_v56 = vrot.slane %v13966_v52, 1 }
 0xb89   : > { %10303 = vmatprep.mubr.msk.bf16.mxu0 %vm4669_vm7, %v14230_v55  ;;  %v5578_v38 = vsel %vm1512_vm3, %v15228_v2, %v15227_v36  ;;  %v5566_v41 = vsel %vm1512_vm3, %v15229_v22, %v5563_v23  ;;  %v15230_v19 = vmov %v15228_v2  ;;  %v6208_v23 = vsel %vm2252_vm5, %v6206_v51, %v6207_v1 }
 0xb8a   : > { %v5579_v9 = vsel %vm1512_vm3, %v15231_v48, %v15230_v19  ;;  %v6592_v12 = vsel %vm490_vm4, %v5566_v41, 0.0  ;;  %v6239_v13 = vsel %vm2252_vm5, %v6207_v1, %v15232_v56  ;;  %v15233_v15 = vrot.slane %v14159_v37, 7 }
 0xb8b   : > { %v14492_v63 = vpack.c.bf16 %v5565_v6, %v6592_v12  ;;  %v15234_v48 = vmov %v15227_v36  ;;  %v5617_v33 = vsel %vm490_vm4, %v5578_v38, 0.0  ;;  %v5553_v12 = vrot.slane %v14162_v54, 7 }
 0xb8c   : > { %v5577_v36 = vsel %vm1512_vm3, %v15234_v48, %v15233_v15  ;;  %v7205_v51 = vsel %vm493_vm6, %v6239_v13, 0.0  ;;  %v5554_v52 = vrot.slane %v14167_v30, 7  ;;  %v5555_v6 = vrot.slane %v14170_v8, 7 }
 0xb8d   : > { %v14513_v2 = vpack.c.bf16 %v7205_v51, %v6208_v23  ;;  %v14515_v22 = vpack.c.bf16 %v5579_v9, %v5615_v17  ;;  %v14517_v59 = vpack.c.bf16 %v5577_v36, %v5617_v33  ;;  %v15235_v38 = vmov %v15233_v15 }
 0xb8e   : > { %v5576_v54 = vsel %vm1512_vm3, %v15235_v38, %v5553_v12  ;;  %v5574_v30 = vsel %vm1512_vm3, %v5554_v52, %v5555_v6  ;;  %v5575_v8 = vsel %vm1512_vm3, %v5553_v12, %v5554_v52  ;;  %v5573_v37 = vsel %vm1512_vm3, %v5555_v6, %v5556_v18 }
 0xb8f   : > { %v5619_v9 = vsel %vm490_vm4, %v5576_v54, 0.0  ;;  %v5621_v41 = vsel %vm490_vm4, %v5574_v30, 0.0  ;;  %v5557_v27 = vrot.slane %v14196_v11, 7  ;;  %v5558_v1 = vrot.slane %v14199_v0, 7  ;;  %v11305_v54 = vld [vmem:[%s15103_s6 + $0x68] sm:$0xff]   ;;  %v11310_v30 = vld [vmem:[%s15103_s6 + $0x90] sm:$0xff]  }
 0xb90   : > { %10304 = vmatmul.mubr.msk.bf16.gmra.mrb[28].mxu0 %vm4669_vm7, %v14515_v22  ;;  %v5559_v19 = vrot.slane %v14208_v14, 7  ;;  %v14541_v17 = vpack.c.bf16 %v5575_v8, %v5619_v9  ;;  %v14543_v23 = vpack.c.bf16 %v5573_v37, %v5621_v41  ;;  %v5560_v13 = vrot.slane %v14211_v16, 7  ;;  %v11312_v8 = vld [vmem:[%s15103_s6 + $0xa0] sm:$0xff]  }
 0xb91   : > { %10307 = vmatprep.mubr.msk.bf16.mxu0 %vm4669_vm7, %v14517_v59  ;;  %v5572_v56 = vsel %vm1512_vm3, %v5556_v18, %v5557_v27  ;;  %v5571_v0 = vsel %vm1512_vm3, %v5557_v27, %v5558_v1  ;;  %v5561_v16 = vrot.slane %v14223_v40, 7  ;;  %v15236_v51 = vrot.slane %v14226_v24, 7  ;;  %v11307_v24 = vld [vmem:[%s15103_s6 + $0x78] sm:$0xff]   ;;  %v11309_v18 = vld [vmem:[%s15103_s6 + $0x88] sm:$0xff]  }
 0xb92   : > { %v5570_v11 = vsel %vm1512_vm3, %v5558_v1, %v5559_v19  ;;  %v5623_v14 = vsel %vm490_vm4, %v5572_v56, 0.0  ;;  %v5569_v15 = vsel %vm1512_vm3, %v5559_v19, %v5560_v13  ;;  %v15237_v38 = vmov 0.0|0.0   ;;  %v15238_v1 = vld [vmem:[#allocation6_spill] sm:$0xff] }
 0xb93   : > { %v5625_v48 = vsel %vm490_vm4, %v5570_v11, 0.0  ;;  %v14563_v36 = vpack.c.bf16 %v5571_v0, %v5623_v14  ;;  %v5568_v12 = vsel %vm1512_vm3, %v5560_v13, %v5561_v16  ;;  %v5567_v52 = vsel %vm1512_vm3, %v5561_v16, %v15236_v51  ;;  %v11313_v0 = vld [vmem:[%s15103_s6 + $0xa8] sm:$0xff]   ;;  %v11314_v16 = vld [vmem:[%s15103_s6 + $0xb0] sm:$0xff]  }
 0xb94   : > { %v14565_v33 = vpack.c.bf16 %v5569_v15, %v5625_v48  ;;  %v5627_v40 = vsel %vm490_vm4, %v5568_v12, 0.0  ;;  %v15239_v14 = vld [vmem:[#allocation7_spill] sm:$0xff]  ;;  %v15240_v15 = vld [vmem:[#allocation8_spill] sm:$0xff] }
 0xb95   : > { %v14579_v6 = vpack.c.bf16 %v5567_v52, %v5627_v40  ;;  %v11315_v40 = vld [vmem:[%s15103_s6 + $0xb8] sm:$0xff]  }
 0xb98   : > { %10308 = vmatmul.mubr.msk.bf16.gmra.mrb[32].mxu0 %vm4669_vm7, %v14541_v17 }
 0xb99   : > { %10311 = vmatprep.mubr.msk.bf16.mxu0 %vm4669_vm7, %v14543_v23 }
 0xba0   : > { %10312 = vmatmul.mubr.msk.bf16.gmra.mrb[36].mxu0 %vm4669_vm7, %v14563_v36 }
 0xba1   : > { %10315 = vmatprep.mubr.msk.bf16.mxu0 %vm4669_vm7, %v14565_v33 }
 0xba8   : > { %10316 = vmatmul.mubr.msk.bf16.gmra.mrb[40].mxu0 %vm4669_vm7, %v14579_v6 }
 0xba9   : > { %10327 = vmatprep.mubr.bf16.mxu0 %v15237_v38 }
 0xbb0   : > { %10328 = vmatmul.mubr.msk.bf16.vlgmr.msra.gmra.mrb[12].mxu0 %vm4669_vm7, %v14281_v35 }
 0xbb1   : > { %10360 = vmatpush3.bf16.msra.mxu0 %v14344_v26  ;;  %10331 = vmatprep.mubr.msk.bf16.mxu0 %vm4669_vm7, %v14316_v43  ;;  %v11308_v26 = vld [vmem:[%s15103_s6 + $0x80] sm:$0xff]  }
 0xbb2   : > { %10361 = vmatprep.subr.bf16.mxu0 %v11305_v54 }
 0xbb5   : > { %10362 = vmatpush3.bf16.msra.mxu0 %v11305_v54  ;;  %v15242_v54 = vld [vmem:[#allocation9_spill] sm:$0xff] }
 0xbb6   : > { %10363 = vmatprep.subr.bf16.mxu0 %v11306_v44 }
 0xbb8   : > { %10332 = vmatmul.mubr.msk.bf16.gmra.mrb[16].mxu0 %vm4669_vm7, %v14327_v3 }
 0xbb9   : > { %10335 = vmatprep.mubr.msk.bf16.mxu0 %vm4669_vm7, %v14329_v50  ;;  %10364 = vmatpush3.bf16.msra.mxu0 %v11306_v44  ;;  %v15243_v44 = vld [vmem:[#allocation11_spill] sm:$0xff] }
 0xbba   : > { %10365 = vmatprep.subr.bf16.mxu0 %v11307_v24 }
 0xbbd   : > { %10366 = vmatpush3.bf16.msra.mxu0 %v11307_v24 }
 0xbbe   : > { %10399 = vmatprep.subr.bf16.mxu0 %v11308_v26 }
 0xbc0   : > { %10336 = vmatmul.mubr.msk.bf16.gmra.mrb[20].mxu0 %vm4669_vm7, %v14352_v46 }
 0xbc1   : > { %10339 = vmatprep.mubr.msk.bf16.mxu0 %vm4669_vm7, %v14368_v10 }
 0xbc8   : > { %10340 = vmatmul.mubr.msk.bf16.gmra.mrb[24].mxu0 %vm4669_vm7, %v14370_v39 }
 0xbc9   : > { %10343 = vmatprep.mubr.msk.bf16.mxu0 %vm4669_vm7, %v14376_v58 }
 0xbd0   : > { %10344 = vmatmul.mubr.msk.bf16.gmra.mrb[28].mxu0 %vm4669_vm7, %v14409_v7 }
 0xbd1   : > { %10347 = vmatprep.mubr.msk.bf16.mxu0 %vm4669_vm7, %v14411_v20 }
 0xbd8   : > { %10348 = vmatmul.mubr.msk.bf16.gmra.mrb[32].mxu0 %vm4669_vm7, %v14417_v29 }
 0xbd9   : > { %10351 = vmatprep.mubr.msk.bf16.mxu0 %vm4669_vm7, %v14424_v34 }
 0xbe0   : > { %10352 = vmatmul.mubr.msk.bf16.gmra.mrb[36].mxu0 %vm4669_vm7, %v14456_v53 }
 0xbe1   : > { %10355 = vmatprep.mubr.msk.bf16.mxu0 %vm4669_vm7, %v14458_v31 }
 0xbe8   : > { %10356 = vmatmul.mubr.msk.bf16.gmra.mrb[40].mxu0 %vm4669_vm7, %v14474_v42 }
 0xbe9   : > { %10367 = vmatprep.mubr.msk.bf16.mxu0 %vm4669_vm7, %v14213_v32  ;;  %v11311_v32 = vld [vmem:[%s15103_s6 + $0x98] sm:$0xff]  }
 0xbf0   : > { %10368 = vmatmul.mubr.msk.bf16.vlgmr.msra.gmra.mrb[12].mxu0 %vm4669_vm7, %v14110_v4 }
 0xbf1   : > { %10400 = vmatpush3.bf16.msra.mxu0 %v11308_v26  ;;  %10371 = vmatprep.mubr.msk.bf16.mxu0 %vm4669_vm7, %v14126_v47  ;;  %v11316_v26 = vld [vmem:[%s15103_s6 + $0xc0] sm:$0xff]  }
 0xbf2   : > { %10401 = vmatprep.subr.bf16.mxu0 %v11309_v18 }
 0xbf5   : > { %10402 = vmatpush3.bf16.msra.mxu0 %v11309_v18 }
 0xbf6   : > { %10403 = vmatprep.subr.bf16.mxu0 %v11310_v30 }
 0xbf8   : > { %10372 = vmatmul.mubr.msk.bf16.gmra.mrb[16].mxu0 %vm4669_vm7, %v14128_v28 }
 0xbf9   : > { %10375 = vmatprep.mubr.msk.bf16.mxu0 %vm4669_vm7, %v14173_v45  ;;  %10404 = vmatpush3.bf16.msra.mxu0 %v11310_v30 }
 0xbfa   : > { %10405 = vmatprep.subr.bf16.mxu0 %v11311_v32 }
 0xbfd   : > { %10406 = vmatpush3.bf16.msra.mxu0 %v11311_v32 }
 0xbfe   : > { %10439 = vmatprep.subr.bf16.mxu0 %v11312_v8 }
 0xc00   : > { %10376 = vmatmul.mubr.msk.bf16.gmra.mrb[20].mxu0 %vm4669_vm7, %v14178_v62 }
 0xc01   : > { %10379 = vmatprep.mubr.msk.bf16.mxu0 %vm4669_vm7, %v14228_v61 }
 0xc08   : > { %10380 = vmatmul.mubr.msk.bf16.gmra.mrb[24].mxu0 %vm4669_vm7, %v14230_v55 }
 0xc09   : > { %10383 = vmatprep.mubr.msk.bf16.mxu0 %vm4669_vm7, %v14515_v22 }
 0xc10   : > { %10384 = vmatmul.mubr.msk.bf16.gmra.mrb[28].mxu0 %vm4669_vm7, %v14517_v59 }
 0xc11   : > { %10387 = vmatprep.mubr.msk.bf16.mxu0 %vm4669_vm7, %v14541_v17 }
 0xc18   : > { %10388 = vmatmul.mubr.msk.bf16.gmra.mrb[32].mxu0 %vm4669_vm7, %v14543_v23 }
 0xc19   : > { %10391 = vmatprep.mubr.msk.bf16.mxu0 %vm4669_vm7, %v14563_v36 }
 0xc20   : > { %10392 = vmatmul.mubr.msk.bf16.gmra.mrb[36].mxu0 %vm4669_vm7, %v14565_v33 }
 0xc21   : > { %10395 = vmatprep.mubr.msk.bf16.mxu0 %vm4669_vm7, %v14579_v6  ;;  %v14669_v9 = vpop.f32.mrb[36].mxu1 }
 0xc22   : > { %v14671_v37 = vpop.f32.mrb[37].mxu1 }
 0xc23   : > { %v14673_v41 = vpop.f32.mrb[38].mxu1 }
 0xc24   : > { %v14675_v27 = vpop.f32.mrb[39].mxu1 }
 0xc28   : > { %10396 = vmatmul.mubr.msk.bf16.gmra.mrb[40].mxu0 %vm4669_vm7, %v14492_v63 }
 0xc29   : > { %10407 = vmatprep.mubr.msk.bf16.mxu0 %vm4669_vm7, %v15238_v1  ;;  %v14681_v19 = vpop.f32.mrb[40].mxu1 }
 0xc2a   : > { %v14683_v56 = vpop.f32.mrb[41].mxu1 }
 0xc2b   : > { %v14685_v13 = vpop.f32.mrb[42].mxu1 }
 0xc2c   : > { %v14687_v11 = vpop.f32.mrb[43].mxu1 }
 0xc30   : > { %10408 = vmatmul.mubr.msk.bf16.vlgmr.msra.gmra.mrb[12].mxu0 %vm4669_vm7, %v15239_v14 }
 0xc31   : > { %10440 = vmatpush3.bf16.msra.mxu0 %v11312_v8  ;;  %10411 = vmatprep.mubr.msk.bf16.mxu0 %vm4669_vm7, %v15240_v15  ;;  %v14696_v48 = vpop.f32.mrb[44].mxu1  ;;  %v15248_v8 = vld [vmem:[#allocation12_spill] sm:$0xff] }
 0xc32   : > { %10441 = vmatprep.subr.bf16.mxu0 %v11313_v0  ;;  %v14701_v12 = vpop.f32.mrb[45].mxu1 }
 0xc33   : > { %v14703_v51 = vpop.f32.mrb[46].mxu1 }
 0xc34   : > { %v14705_v52 = vpop.f32.mrb[47].mxu1 }
 0xc35   : > { %10442 = vmatpush3.bf16.msra.mxu0 %v11313_v0  ;;  %15241 = vst [vmem:[#allocation10_spill] sm:$0xff] %v14705_v52 }
 0xc36   : > { %10443 = vmatprep.subr.bf16.mxu0 %v11314_v16 }
 0xc38   : > { %10412 = vmatmul.mubr.msk.bf16.gmra.mrb[16].mxu0 %vm4669_vm7, %v15242_v54 }
 0xc39   : > { %10415 = vmatprep.mubr.msk.bf16.mxu0 %vm4669_vm7, %v15243_v44  ;;  %10444 = vmatpush3.bf16.msra.mxu0 %v11314_v16  ;;  %v14714_v24 = vpop.f32.mrb[48].mxu1 }
 0xc3a   : > { %15244 = vst [vmem:[#allocation13_spill] sm:$0xff] %v14714_v24  ;;  %10445 = vmatprep.subr.bf16.mxu0 %v11315_v40  ;;  %v14719_v18 = vpop.f32.mrb[49].mxu1 }
 0xc3b   : > { %15245 = vst [vmem:[#allocation14_spill] sm:$0xff] %v14719_v18  ;;  %v14721_v30 = vpop.f32.mrb[50].mxu1 }
 0xc3c   : > { %15246 = vst [vmem:[#allocation6_spill] sm:$0xff] %v14721_v30  ;;  %v14723_v32 = vpop.f32.mrb[51].mxu1 }
 0xc3d   : > { %15247 = vst [vmem:[#allocation7_spill] sm:$0xff] %v14723_v32  ;;  %10446 = vmatpush3.bf16.msra.mxu0 %v11315_v40 }
 0xc3e   : > { %10479 = vmatprep.subr.bf16.mxu0 %v11316_v26 }
 0xc40   : > { %10416 = vmatmul.mubr.msk.bf16.gmra.mrb[20].mxu0 %vm4669_vm7, %v15248_v8 }
 0xc41   : > { %10419 = vmatprep.mubr.msk.bf16.mxu0 %vm4669_vm7, %v14119_v60  ;;  %v14729_v1 = vpop.f32.mrb[52].mxu1 }
 0xc42   : > { %15249 = vst [vmem:[#allocation8_spill] sm:$0xff] %v14729_v1  ;;  %v14731_v0 = vpop.f32.mrb[53].mxu1 }
 0xc43   : > { %15250 = vst [vmem:[#allocation9_spill] sm:$0xff] %v14731_v0  ;;  %v14733_v16 = vpop.f32.mrb[54].mxu1 }
 0xc44   : > { %15251 = vst [vmem:[#allocation11_spill] sm:$0xff] %v14733_v16  ;;  %v14735_v24 = vpop.f32.mrb[55].mxu1 }
 0xc45   : > { %15252 = vst [vmem:[#allocation12_spill] sm:$0xff] %v14735_v24 }
 0xc48   : > { %10420 = vmatmul.mubr.msk.bf16.gmra.mrb[24].mxu0 %vm4669_vm7, %v14132_v25 }
 0xc49   : > { %10423 = vmatprep.mubr.msk.bf16.mxu0 %vm4669_vm7, %v14205_v21  ;;  %v14741_v40 = vpop.f32.mrb[56].mxu1 }
 0xc4a   : > { %15253 = vst [vmem:[#allocation15_spill] sm:$0xff] %v14741_v40  ;;  %v14743_v32 = vpop.f32.mrb[57].mxu1 }
 0xc4b   : > { %15254 = vst [vmem:[#allocation16_spill] sm:$0xff] %v14743_v32  ;;  %v14745_v30 = vpop.f32.mrb[58].mxu1 }
 0xc4c   : > { %15255 = vst [vmem:[#allocation17_spill] sm:$0xff] %v14745_v30  ;;  %v14747_v18 = vpop.f32.mrb[59].mxu1  ;;  %v15260_v30 = vld [vmem:[#allocation2_spill] sm:$0xff] }
 0xc4d   : > { %15256 = vst [vmem:[#allocation18_spill] sm:$0xff] %v14747_v18 }
 0xc50   : > { %10424 = vmatmul.mubr.msk.bf16.gmra.mrb[28].mxu0 %vm4669_vm7, %v14220_v49 }
 0xc51   : > { %10427 = vmatprep.mubr.msk.bf16.mxu0 %vm4669_vm7, %v14255_v57  ;;  %v14753_v24 = vpop.f32.mrb[60].mxu1 }
 0xc52   : > { %15257 = vst [vmem:[#allocation19_spill] sm:$0xff] %v14753_v24  ;;  %v14755_v16 = vpop.f32.mrb[61].mxu1  ;;  %v15263_v24 = vld [vmem:[#allocation3_spill] sm:$0xff] }
 0xc53   : > { %v14757_v0 = vpop.f32.mrb[62].mxu1 }
 0xc54   : > { %15258 = vst [vmem:[#allocation20_spill] sm:$0xff] %v14757_v0  ;;  %v14759_v1 = vpop.f32.mrb[63].mxu1  ;;  %v15264_v0 = vld [vmem:[#allocation5_spill] sm:$0xff] }
 0xc55   : > { %15259 = vst [vmem:[#allocation21_spill] sm:$0xff] %v14759_v1  ;;  %v15265_v1 = vld [vmem:[#allocation4_spill] sm:$0xff] }
 0xc58   : > { %10428 = vmatmul.mubr.msk.bf16.gmra.mrb[32].mxu0 %vm4669_vm7, %v14271_v5 }
 0xc59   : > { %10431 = vmatprep.mubr.msk.bf16.mxu0 %vm4669_vm7, %v15260_v30  ;;  %v14765_v18 = vpop.f32.mrb[64].mxu1 }
 0xc5a   : > { %v14767_v32 = vpop.f32.mrb[65].mxu1 }
 0xc5b   : > { %15261 = vst [vmem:[#allocation2_spill] sm:$0xff] %v14767_v32  ;;  %v14769_v40 = vpop.f32.mrb[66].mxu1  ;;  %v11317_v32 = vld [vmem:[%s15103_s6 + $0xc8] sm:$0xff]  }
 0xc5c   : > { %v14771_v52 = vpop.f32.mrb[67].mxu1 }
 0xc5d   : > { %15262 = vst [vmem:[#allocation22_spill] sm:$0xff] %v14771_v52  ;;  %v11318_v52 = vld [vmem:[%s15103_s6 + $0xd0] sm:$0xff]  }
 0xc60   : > { %10432 = vmatmul.mubr.msk.bf16.gmra.mrb[36].mxu0 %vm4669_vm7, %v15263_v24 }
 0xc61   : > { %10435 = vmatprep.mubr.msk.bf16.mxu0 %vm4669_vm7, %v15264_v0 }
 0xc68   : > { %10436 = vmatmul.mubr.msk.bf16.gmra.mrb[40].mxu0 %vm4669_vm7, %v15265_v1 }
 0xc69   : > { %10447 = vmatprep.mubr.msk.bf16.mxu0 %vm4669_vm7, %v14281_v35  ;;  %v11319_v35 = vld [vmem:[%s15103_s6 + $0xd8] sm:$0xff]  }
 0xc70   : > { %10448 = vmatmul.mubr.msk.bf16.vlgmr.msra.gmra.mrb[12].mxu0 %vm4669_vm7, %v14316_v43 }
 0xc71   : > { %10480 = vmatpush3.bf16.msra.mxu0 %v11316_v26  ;;  %10451 = vmatprep.mubr.msk.bf16.mxu0 %vm4669_vm7, %v14327_v3  ;;  %v11320_v26 = vld [vmem:[%s15103_s6 + $0xe0] sm:$0xff]  }
 0xc72   : > { %10481 = vmatprep.subr.bf16.mxu0 %v11317_v32 }
 0xc75   : > { %10482 = vmatpush3.bf16.msra.mxu0 %v11317_v32  ;;  %v11322_v32 = vld [vmem:[%s15103_s6 + $0xf0] sm:$0xff]  }
 0xc76   : > { %10483 = vmatprep.subr.bf16.mxu0 %v11318_v52 }
 0xc78   : > { %10452 = vmatmul.mubr.msk.bf16.gmra.mrb[16].mxu0 %vm4669_vm7, %v14329_v50 }
 0xc79   : > { %10455 = vmatprep.mubr.msk.bf16.mxu0 %vm4669_vm7, %v14352_v46  ;;  %10484 = vmatpush3.bf16.msra.mxu0 %v11318_v52  ;;  %v11321_v52 = vld [vmem:[%s15103_s6 + $0xe8] sm:$0xff]  }
 0xc7a   : > { %10485 = vmatprep.subr.bf16.mxu0 %v11319_v35 }
 0xc7d   : > { %10486 = vmatpush3.bf16.msra.mxu0 %v11319_v35  ;;  %v11616_v35 = vld [vmem:[%s11738_s26 + $0xd0] sm:$0xff] }
 0xc7e   : > { %10519 = vmatprep.subr.bf16.mxu0 %v11320_v26 }
 0xc80   : > { %10456 = vmatmul.mubr.msk.bf16.gmra.mrb[20].mxu0 %vm4669_vm7, %v14368_v10 }
 0xc81   : > { %10459 = vmatprep.mubr.msk.bf16.mxu0 %vm4669_vm7, %v14370_v39 }
 0xc88   : > { %10460 = vmatmul.mubr.msk.bf16.gmra.mrb[24].mxu0 %vm4669_vm7, %v14376_v58 }
 0xc89   : > { %10463 = vmatprep.mubr.msk.bf16.mxu0 %vm4669_vm7, %v14409_v7 }
 0xc90   : > { %10464 = vmatmul.mubr.msk.bf16.gmra.mrb[28].mxu0 %vm4669_vm7, %v14411_v20 }
 0xc91   : > { %10467 = vmatprep.mubr.msk.bf16.mxu0 %vm4669_vm7, %v14417_v29 }
 0xc98   : > { %10468 = vmatmul.mubr.msk.bf16.gmra.mrb[32].mxu0 %vm4669_vm7, %v14424_v34 }
 0xc99   : > { %10471 = vmatprep.mubr.msk.bf16.mxu0 %vm4669_vm7, %v14456_v53 }
 0xca0   : > { %10472 = vmatmul.mubr.msk.bf16.gmra.mrb[36].mxu0 %vm4669_vm7, %v14458_v31 }
 0xca1   : > { %10475 = vmatprep.mubr.msk.bf16.mxu0 %vm4669_vm7, %v14474_v42 }
 0xca8   : > { %10476 = vmatmul.mubr.msk.bf16.gmra.mrb[40].mxu0 %vm4669_vm7, %v14513_v2 }
 0xca9   : > { %10487 = vmatprep.mubr.msk.bf16.mxu0 %vm4669_vm7, %v14110_v4  ;;  %v11323_v4 = vld [vmem:[%s15103_s6 + $0xf8] sm:$0xff]  }
 0xcb0   : > { %10488 = vmatmul.mubr.msk.bf16.vlgmr.msra.gmra.mrb[12].mxu0 %vm4669_vm7, %v14126_v47  ;;  %v11324_v47 = vld [vmem:[%s15103_s6 + $0x100] sm:$0xff]  }
 0xcb1   : > { %10520 = vmatpush3.bf16.msra.mxu0 %v11320_v26  ;;  %10491 = vmatprep.mubr.msk.bf16.mxu0 %vm4669_vm7, %v14128_v28  ;;  %v11325_v28 = vld [vmem:[%s15103_s6 + $0x108] sm:$0xff]   ;;  %v11617_v26 = vld [vmem:[%s11738_s26 + $0xd8] sm:$0xff] }
 0xcb2   : > { %10521 = vmatprep.subr.bf16.mxu0 %v11321_v52 }
 0xcb5   : > { %10522 = vmatpush3.bf16.msra.mxu0 %v11321_v52  ;;  %v8475_v52 = vpack.c.bf16 %v11617_v26, %v11616_v35  ;;  %v15276_v26 = vld [vmem:[#allocation16_spill] sm:$0xff] }
 0xcb6   : > { %10523 = vmatprep.subr.bf16.mxu0 %v11322_v32 }
 0xcb8   : > { %10492 = vmatmul.mubr.msk.bf16.gmra.mrb[16].mxu0 %vm4669_vm7, %v14173_v45  ;;  %v11326_v45 = vld [vmem:[%s15103_s6 + $0x110] sm:$0xff]  }
 0xcb9   : > { %10495 = vmatprep.mubr.msk.bf16.mxu0 %vm4669_vm7, %v14178_v62  ;;  %10524 = vmatpush3.bf16.msra.mxu0 %v11322_v32  ;;  %v11327_v62 = vld [vmem:[%s15103_s6 + $0x118] sm:$0xff]   ;;  %v11618_v32 = vld [vmem:[%s11738_s26 + $0xe0] sm:$0xff] }
 0xcba   : > { %10525 = vmatprep.subr.bf16.mxu0 %v11323_v4 }
 0xcbd   : > { %10526 = vmatpush3.bf16.msra.mxu0 %v11323_v4  ;;  %v11619_v4 = vld [vmem:[%s11738_s26 + $0xe8] sm:$0xff] }
 0xcbe   : > { %10559 = vmatprep.subr.bf16.mxu0 %v11324_v47 }
 0xcc0   : > { %10496 = vmatmul.mubr.msk.bf16.gmra.mrb[20].mxu0 %vm4669_vm7, %v14228_v61  ;;  %v11328_v61 = vld [vmem:[%s15104_s7] sm:$0xff]  }
 0xcc1   : > { %10499 = vmatprep.mubr.msk.bf16.mxu0 %vm4669_vm7, %v14230_v55  ;;  %v11592_v55 = vld [vmem:[%s11738_s26 + $0x10] sm:$0xff] }
 0xcc8   : > { %10500 = vmatmul.mubr.msk.bf16.gmra.mrb[24].mxu0 %vm4669_vm7, %v14515_v22  ;;  %v11605_v22 = vld [vmem:[%s11738_s26 + $0x78] sm:$0xff] }
 0xcc9   : > { %10503 = vmatprep.mubr.msk.bf16.mxu0 %vm4669_vm7, %v14517_v59 }
 0xcd0   : > { %10504 = vmatmul.mubr.msk.bf16.gmra.mrb[28].mxu0 %vm4669_vm7, %v14541_v17  ;;  %v11606_v17 = vld [vmem:[%s11738_s26 + $0x80] sm:$0xff] }
 0xcd1   : > { %10507 = vmatprep.mubr.msk.bf16.mxu0 %vm4669_vm7, %v14543_v23  ;;  %v11607_v23 = vld [vmem:[%s11738_s26 + $0x88] sm:$0xff] }
 0xcd8   : > { %10508 = vmatmul.mubr.msk.bf16.gmra.mrb[32].mxu0 %vm4669_vm7, %v14563_v36  ;;  %v8470_v36 = vpack.c.bf16 %v11607_v23, %v11606_v17  ;;  %v15271_v23 = vld [vmem:[#allocation8_spill] sm:$0xff] }
 0xcd9   : > { %10511 = vmatprep.mubr.msk.bf16.mxu0 %vm4669_vm7, %v14565_v33  ;;  %v11608_v33 = vld [vmem:[%s11738_s26 + $0x90] sm:$0xff] }
 0xce0   : > { %10512 = vmatmul.mubr.msk.bf16.gmra.mrb[36].mxu0 %vm4669_vm7, %v14579_v6  ;;  %v11609_v6 = vld [vmem:[%s11738_s26 + $0x98] sm:$0xff] }
 0xce1   : > { %10515 = vmatprep.mubr.msk.bf16.mxu0 %vm4669_vm7, %v14492_v63 }
 0xce8   : > { %10516 = vmatmul.mubr.bf16.gmra.mrb[40].mxu0 %v15237_v38 }
 0xce9   : > { %10527 = vmatprep.mubr.msk.bf16.mxu0 %vm4669_vm7, %v15239_v14  ;;  %v11610_v14 = vld [vmem:[%s11738_s26 + $0xa0] sm:$0xff] }
 0xcf0   : > { %10528 = vmatmul.mubr.msk.bf16.vlgmr.msra.gmra.mrb[12].mxu0 %vm4669_vm7, %v15240_v15  ;;  %v11611_v15 = vld [vmem:[%s11738_s26 + $0xa8] sm:$0xff] }
 0xcf1   : > { %10560 = vmatpush3.bf16.msra.mxu0 %v11324_v47  ;;  %10531 = vmatprep.mubr.msk.bf16.mxu0 %vm4669_vm7, %v15242_v54  ;;  %v8472_v54 = vpack.c.bf16 %v11611_v15, %v11610_v14  ;;  %v8476_v47 = vpack.c.bf16 %v11619_v4, %v11618_v32  ;;  %v15273_v15 = vld [vmem:[#allocation11_spill] sm:$0xff]  ;;  %v15277_v4 = vld [vmem:[#allocation17_spill] sm:$0xff] }
 0xcf2   : > { %10561 = vmatprep.subr.bf16.mxu0 %v11325_v28 }
 0xcf5   : > { %10562 = vmatpush3.bf16.msra.mxu0 %v11325_v28  ;;  %v11620_v28 = vld [vmem:[%s11738_s26 + $0xf0] sm:$0xff] }
 0xcf6   : > { %10563 = vmatprep.subr.bf16.mxu0 %v11326_v45 }
 0xcf8   : > { %10532 = vmatmul.mubr.msk.bf16.gmra.mrb[16].mxu0 %vm4669_vm7, %v15243_v44  ;;  %v11612_v44 = vld [vmem:[%s11738_s26 + $0xb0] sm:$0xff] }
 0xcf9   : > { %10535 = vmatprep.mubr.msk.bf16.mxu0 %vm4669_vm7, %v15248_v8  ;;  %10564 = vmatpush3.bf16.msra.mxu0 %v11326_v45  ;;  %v11614_v8 = vld [vmem:[%s11738_s26 + $0xc0] sm:$0xff]  ;;  %v11621_v45 = vld [vmem:[%s11738_s26 + $0xf8] sm:$0xff] }
 0xcfa   : > { %10565 = vmatprep.subr.bf16.mxu0 %v11327_v62 }
 0xcfd   : > { %10566 = vmatpush3.bf16.msra.mxu0 %v11327_v62  ;;  %v8477_v62 = vpack.c.bf16 %v11621_v45, %v11620_v28  ;;  %v15278_v45 = vld [vmem:[#allocation18_spill] sm:$0xff] }
 0xcfe   : > { %10599 = vmatprep.subr.bf16.mxu0 %v11328_v61 }
 0xd00   : > { %10536 = vmatmul.mubr.msk.bf16.gmra.mrb[20].mxu0 %vm4669_vm7, %v14119_v60  ;;  %v11590_v60 = vld [vmem:[%s11738_s26] sm:$0xff] }
 0xd01   : > { %10539 = vmatprep.mubr.msk.bf16.mxu0 %vm4669_vm7, %v14132_v25  ;;  %v11329_v25 = vld [vmem:[%s15104_s7 + $0x8] sm:$0xff]  }
 0xd08   : > { %10540 = vmatmul.mubr.msk.bf16.gmra.mrb[24].mxu0 %vm4669_vm7, %v14205_v21  ;;  %v11591_v21 = vld [vmem:[%s11738_s26 + $0x8] sm:$0xff] }
 0xd09   : > { %10543 = vmatprep.mubr.msk.bf16.mxu0 %vm4669_vm7, %v14220_v49  ;;  %v8462_v49 = vpack.c.bf16 %v11591_v21, %v11590_v60 }
 0xd10   : > { %10544 = vmatmul.mubr.msk.bf16.gmra.mrb[28].mxu0 %vm4669_vm7, %v14255_v57 }
 0xd11   : > { %10547 = vmatprep.mubr.msk.bf16.mxu0 %vm4669_vm7, %v14271_v5  ;;  %v11594_v5 = vld [vmem:[%s11738_s26 + $0x20] sm:$0xff] }
 0xd18   : > { %10548 = vmatmul.mubr.msk.bf16.gmra.mrb[32].mxu0 %vm4669_vm7, %v15260_v30 }
 0xd19   : > { %10551 = vmatprep.mubr.msk.bf16.mxu0 %vm4669_vm7, %v15263_v24  ;;  %v11613_v24 = vld [vmem:[%s11738_s26 + $0xb8] sm:$0xff] }
 0xd1a   : > { %v8473_v30 = vpack.c.bf16 %v11613_v24, %v11612_v44  ;;  %v15274_v24 = vld [vmem:[#allocation12_spill] sm:$0xff] }
 0xd20   : > { %10552 = vmatmul.mubr.msk.bf16.gmra.mrb[36].mxu0 %vm4669_vm7, %v15264_v0 }
 0xd21   : > { %10555 = vmatprep.mubr.msk.bf16.mxu0 %vm4669_vm7, %v15265_v1  ;;  %v11615_v1 = vld [vmem:[%s11738_s26 + $0xc8] sm:$0xff] }
 0xd22   : > { %v8474_v0 = vpack.c.bf16 %v11615_v1, %v11614_v8  ;;  %v15275_v1 = vld [vmem:[#allocation15_spill] sm:$0xff] }
 0xd28   : > { %10556 = vmatmul.mubr.bf16.gmra.mrb[40].mxu0 %v15237_v38 }
 0xd29   : > { %10567 = vmatprep.mubr.msk.bf16.mxu0 %vm4669_vm7, %v14316_v43  ;;  %v11595_v43 = vld [vmem:[%s11738_s26 + $0x28] sm:$0xff] }
 0xd30   : > { %10568 = vmatmul.mubr.msk.bf16.vlgmr.msra.gmra.mrb[12].mxu0 %vm4669_vm7, %v14327_v3  ;;  %v8464_v3 = vpack.c.bf16 %v11595_v43, %v11594_v5 }
 0xd31   : > { %10600 = vmatpush3.bf16.msra.mxu0 %v11328_v61  ;;  %10571 = vmatprep.mubr.msk.bf16.mxu0 %vm4669_vm7, %v14329_v50  ;;  %v11596_v50 = vld [vmem:[%s11738_s26 + $0x30] sm:$0xff] }
 0xd32   : > { %10601 = vmatprep.subr.bf16.mxu0 %v11329_v25 }
 0xd35   : > { %10602 = vmatpush3.bf16.msra.mxu0 %v11329_v25 }
 0xd38   : > { %10572 = vmatmul.mubr.msk.bf16.gmra.mrb[16].mxu0 %vm4669_vm7, %v14352_v46  ;;  %v11597_v46 = vld [vmem:[%s11738_s26 + $0x38] sm:$0xff] }
 0xd39   : > { %10575 = vmatprep.mubr.msk.bf16.mxu0 %vm4669_vm7, %v14368_v10  ;;  %v8465_v10 = vpack.c.bf16 %v11597_v46, %v11596_v50 }
 0xd40   : > { %10576 = vmatmul.mubr.msk.bf16.gmra.mrb[20].mxu0 %vm4669_vm7, %v14370_v39  ;;  %v11598_v39 = vld [vmem:[%s11738_s26 + $0x40] sm:$0xff] }
 0xd41   : > { %10579 = vmatprep.mubr.msk.bf16.mxu0 %vm4669_vm7, %v14376_v58  ;;  %v11599_v58 = vld [vmem:[%s11738_s26 + $0x48] sm:$0xff] }
 0xd48   : > { %10580 = vmatmul.mubr.msk.bf16.gmra.mrb[24].mxu0 %vm4669_vm7, %v14409_v7  ;;  %v11593_v7 = vld [vmem:[%s11738_s26 + $0x18] sm:$0xff] }
 0xd49   : > { %10583 = vmatprep.mubr.msk.bf16.mxu0 %vm4669_vm7, %v14411_v20  ;;  %v8463_v57 = vpack.c.bf16 %v11593_v7, %v11592_v55  ;;  %v8466_v20 = vpack.c.bf16 %v11599_v58, %v11598_v39 }
 0xd50   : > { %10584 = vmatmul.mubr.msk.bf16.gmra.mrb[28].mxu0 %vm4669_vm7, %v14417_v29  ;;  %v11600_v29 = vld [vmem:[%s11738_s26 + $0x50] sm:$0xff] }
 0xd51   : > { %10587 = vmatprep.mubr.msk.bf16.mxu0 %vm4669_vm7, %v14424_v34  ;;  %v11601_v34 = vld [vmem:[%s11738_s26 + $0x58] sm:$0xff] }
 0xd58   : > { %10588 = vmatmul.mubr.msk.bf16.gmra.mrb[32].mxu0 %vm4669_vm7, %v14456_v53  ;;  %v8467_v53 = vpack.c.bf16 %v11601_v34, %v11600_v29  ;;  %v15267_v29 = vld [vmem:[#allocation13_spill] sm:$0xff] }
 0xd59   : > { %10591 = vmatprep.mubr.msk.bf16.mxu0 %vm4669_vm7, %v14458_v31  ;;  %v11602_v31 = vld [vmem:[%s11738_s26 + $0x60] sm:$0xff] }
 0xd60   : > { %10592 = vmatmul.mubr.msk.bf16.gmra.mrb[36].mxu0 %vm4669_vm7, %v14474_v42  ;;  %v11603_v42 = vld [vmem:[%s11738_s26 + $0x68] sm:$0xff] }
 0xd61   : > { %10595 = vmatprep.mubr.msk.bf16.mxu0 %vm4669_vm7, %v14513_v2  ;;  %v8468_v63 = vpack.c.bf16 %v11603_v42, %v11602_v31  ;;  %v11604_v2 = vld [vmem:[%s11738_s26 + $0x70] sm:$0xff] }
 0xd62   : > { %v8469_v59 = vpack.c.bf16 %v11605_v22, %v11604_v2  ;;  %v15270_v22 = vld [vmem:[#allocation7_spill] sm:$0xff] }
 0xd68   : > { %10596 = vmatmul.mubr.bf16.gmra.mrb[40].mxu0 %v15237_v38  ;;  %v8471_v38 = vpack.c.bf16 %v11609_v6, %v11608_v33  ;;  %v15272_v6 = vld [vmem:[#allocation9_spill] sm:$0xff] }
 0xd69   : > { %10603 = vmatprep.mubr.msk.bf16.mxu0 %vm628_vm1, %v8462_v49 }
 0xd70   : > { %10604 = vmatmul.mubr.msk.bf16.vlgmr.msra.gmra.mrb[12].mxu0 %vm628_vm1, %v8463_v57 }
 0xd71   : > { %10607 = vmatprep.mubr.msk.bf16.mxu0 %vm628_vm1, %v8464_v3 }
 0xd78   : > { %10608 = vmatmul.mubr.msk.bf16.gmra.mrb[16].mxu0 %vm628_vm1, %v8465_v10 }
 0xd79   : > { %10611 = vmatprep.mubr.msk.bf16.mxu0 %vm628_vm1, %v8466_v20 }
 0xd80   : > { %10612 = vmatmul.mubr.msk.bf16.gmra.mrb[20].mxu0 %vm628_vm1, %v8467_v53  ;;  %v15268_v53 = vld [vmem:[#allocation14_spill] sm:$0xff] }
 0xd81   : > { %10615 = vmatprep.mubr.msk.bf16.mxu0 %vm628_vm1, %v8468_v63 }
 0xd88   : > { %10616 = vmatmul.mubr.msk.bf16.gmra.mrb[24].mxu0 %vm628_vm1, %v8469_v59 }
 0xd89   : > { %10619 = vmatprep.mubr.msk.bf16.mxu0 %vm628_vm1, %v8470_v36 }
 0xd90   : > { %10620 = vmatmul.mubr.msk.bf16.gmra.mrb[28].mxu0 %vm628_vm1, %v8471_v38 }
 0xd91   : > { %10623 = vmatprep.mubr.msk.bf16.mxu0 %vm628_vm1, %v8472_v54 }
 0xd98   : > { %10624 = vmatmul.mubr.msk.bf16.gmra.mrb[32].mxu0 %vm628_vm1, %v8473_v30 }
 0xd99   : > { %10627 = vmatprep.mubr.msk.bf16.mxu0 %vm628_vm1, %v8474_v0 }
 0xda0   : > { %10628 = vmatmul.mubr.msk.bf16.gmra.mrb[36].mxu0 %vm628_vm1, %v8475_v52 }
 0xda1   : > { %10631 = vmatprep.mubr.msk.bf16.mxu0 %vm628_vm1, %v8476_v47 }
 0xda8   : > { %10632 = vmatmul.mubr.msk.bf16.gmra.mrb[40].mxu0 %vm628_vm1, %v8477_v62 }
 0xe43   : > { %v10605_v61 = vpop.f32.mrb[12].mxu0 }
 0xe44   : > { %v10719_v25 = vadd.f32 %v10605_v61, %v14669_v9  ;;  %v8576_v60 = vpop.f32.mrb[13].mxu0 }
 0xe45   : > { %v10720_v21 = vadd.f32 %v8576_v60, %v14671_v37  ;;  %v10606_v49 = vpop.f32.mrb[14].mxu0 }
 0xe46   : > { %8737 = vst.msk [vmem:[%s14996_s19 + $0x10] sm:$0xff] %vm4669_vm7, %v10719_v25  ;;  %v10721_v55 = vadd.f32 %v10606_v49, %v14673_v41  ;;  %v8579_v7 = vpop.f32.mrb[15].mxu0  ;;  %v15279_v25 = vld [vmem:[#allocation19_spill] sm:$0xff] }
 0xe47   : > { %8735 = vst.msk [vmem:[%s14996_s19] sm:$0xff] %vm4669_vm7, %v10720_v21  ;;  %v10722_v57 = vadd.f32 %v8579_v7, %v14675_v27  ;;  %v15280_v7 = vld [vmem:[#allocation20_spill] sm:$0xff] }
 0xe48   : > { %8738 = vst.msk [vmem:[%s14996_s19 + $0x18] sm:$0xff] %vm4669_vm7, %v10721_v55 }
 0xe49   : > { %8736 = vst.msk [vmem:[%s14996_s19 + $0x8] sm:$0xff] %vm4669_vm7, %v10722_v57 }
 0xe4b   : > { %v10609_v9 = vpop.f32.mrb[16].mxu0 }
 0xe4c   : > { %v10723_v37 = vadd.f32 %v10609_v9, %v14681_v19  ;;  %v8592_v5 = vpop.f32.mrb[17].mxu0 }
 0xe4d   : > { %v10724_v43 = vadd.f32 %v8592_v5, %v14683_v56  ;;  %v10610_v3 = vpop.f32.mrb[18].mxu0 }
 0xe4e   : > { %8741 = vst.msk [vmem:[%s14996_s19 + $0x30] sm:$0xff] %vm4669_vm7, %v10723_v37  ;;  %v10725_v41 = vadd.f32 %v10610_v3, %v14685_v13  ;;  %v8595_v50 = vpop.f32.mrb[19].mxu0  ;;  %v15281_v37 = vld [vmem:[#allocation21_spill] sm:$0xff] }
 0xe4f   : > { %8739 = vst.msk [vmem:[%s14996_s19 + $0x20] sm:$0xff] %vm4669_vm7, %v10724_v43  ;;  %v10726_v27 = vadd.f32 %v8595_v50, %v14687_v11  ;;  %v15266_v11 = vld [vmem:[#allocation10_spill] sm:$0xff] }
 0xe50   : > { %8742 = vst.msk [vmem:[%s14996_s19 + $0x38] sm:$0xff] %vm4669_vm7, %v10725_v41  ;;  %v15282_v41 = vld [vmem:[#allocation2_spill] sm:$0xff] }
 0xe51   : > { %8740 = vst.msk [vmem:[%s14996_s19 + $0x28] sm:$0xff] %vm4669_vm7, %v10726_v27 }
 0xe53   : > { %v10613_v19 = vpop.f32.mrb[20].mxu0 }
 0xe54   : > { %v10727_v56 = vadd.f32 %v10613_v19, %v14696_v48  ;;  %v8608_v46 = vpop.f32.mrb[21].mxu0 }
 0xe55   : > { %v10728_v10 = vadd.f32 %v8608_v46, %v14701_v12  ;;  %v10614_v39 = vpop.f32.mrb[22].mxu0  ;;  %v15283_v46 = vld [vmem:[#allocation22_spill] sm:$0xff] }
 0xe56   : > { %8745 = vst.msk [vmem:[%s14996_s19 + $0x50] sm:$0xff] %vm4669_vm7, %v10727_v56  ;;  %v10729_v13 = vadd.f32 %v10614_v39, %v14703_v51  ;;  %v8611_v58 = vpop.f32.mrb[23].mxu0  ;;  %v15269_v51 = vld [vmem:[#allocation6_spill] sm:$0xff] }
 0xe57   : > { %8743 = vst.msk [vmem:[%s14996_s19 + $0x40] sm:$0xff] %vm4669_vm7, %v10728_v10  ;;  %v10730_v20 = vadd.f32 %v8611_v58, %v15266_v11 }
 0xe58   : > { %8746 = vst.msk [vmem:[%s14996_s19 + $0x58] sm:$0xff] %vm4669_vm7, %v10729_v13 }
 0xe59   : > { %8744 = vst.msk [vmem:[%s14996_s19 + $0x48] sm:$0xff] %vm4669_vm7, %v10730_v20 }
 0xe5b   : > { %v10617_v48 = vpop.f32.mrb[24].mxu0 }
 0xe5c   : > { %v10731_v12 = vadd.f32 %v10617_v48, %v15267_v29  ;;  %v8624_v34 = vpop.f32.mrb[25].mxu0 }
 0xe5d   : > { %v10732_v31 = vadd.f32 %v8624_v34, %v15268_v53  ;;  %v10618_v42 = vpop.f32.mrb[26].mxu0 }
 0xe5e   : > { %8749 = vst.msk [vmem:[%s14996_s19 + $0x70] sm:$0xff] %vm4669_vm7, %v10731_v12  ;;  %v10733_v63 = vadd.f32 %v10618_v42, %v15269_v51  ;;  %v8627_v2 = vpop.f32.mrb[27].mxu0 }
 0xe5f   : > { %8747 = vst.msk [vmem:[%s14996_s19 + $0x60] sm:$0xff] %vm4669_vm7, %v10732_v31  ;;  %v10734_v59 = vadd.f32 %v8627_v2, %v15270_v22 }
 0xe60   : > { %8750 = vst.msk [vmem:[%s14996_s19 + $0x78] sm:$0xff] %vm4669_vm7, %v10733_v63 }
 0xe61   : > { %8748 = vst.msk [vmem:[%s14996_s19 + $0x68] sm:$0xff] %vm4669_vm7, %v10734_v59 }
 0xe63   : > { %v10621_v17 = vpop.f32.mrb[28].mxu0 }
 0xe64   : > { %v10735_v36 = vadd.f32 %v10621_v17, %v15271_v23  ;;  %v8640_v33 = vpop.f32.mrb[29].mxu0 }
 0xe65   : > { %v10736_v38 = vadd.f32 %v8640_v33, %v15272_v6  ;;  %v10622_v14 = vpop.f32.mrb[30].mxu0 }
 0xe66   : > { %8753 = vst.msk [vmem:[%s14996_s19 + $0x90] sm:$0xff] %vm4669_vm7, %v10735_v36  ;;  %v10737_v54 = vadd.f32 %v10622_v14, %v15273_v15  ;;  %v8643_v44 = vpop.f32.mrb[31].mxu0 }
 0xe67   : > { %8751 = vst.msk [vmem:[%s14996_s19 + $0x80] sm:$0xff] %vm4669_vm7, %v10736_v38  ;;  %v10738_v30 = vadd.f32 %v8643_v44, %v15274_v24 }
 0xe68   : > { %8754 = vst.msk [vmem:[%s14996_s19 + $0x98] sm:$0xff] %vm4669_vm7, %v10737_v54 }
 0xe69   : > { %8752 = vst.msk [vmem:[%s14996_s19 + $0x88] sm:$0xff] %vm4669_vm7, %v10738_v30 }
 0xe6b   : > { %v10625_v8 = vpop.f32.mrb[32].mxu0 }
 0xe6c   : > { %v10739_v0 = vadd.f32 %v10625_v8, %v15275_v1  ;;  %v8656_v35 = vpop.f32.mrb[33].mxu0 }
 0xe6d   : > { %v10740_v52 = vadd.f32 %v8656_v35, %v15276_v26  ;;  %v10626_v32 = vpop.f32.mrb[34].mxu0 }
 0xe6e   : > { %8757 = vst.msk [vmem:[%s14996_s19 + $0xb0] sm:$0xff] %vm4669_vm7, %v10739_v0  ;;  %v10741_v47 = vadd.f32 %v10626_v32, %v15277_v4  ;;  %v8659_v28 = vpop.f32.mrb[35].mxu0 }
 0xe6f   : > { %8755 = vst.msk [vmem:[%s14996_s19 + $0xa0] sm:$0xff] %vm4669_vm7, %v10740_v52  ;;  %v10742_v62 = vadd.f32 %v8659_v28, %v15278_v45 }
 0xe70   : > { %8758 = vst.msk [vmem:[%s14996_s19 + $0xb8] sm:$0xff] %vm4669_vm7, %v10741_v47 }
 0xe71   : > { %8756 = vst.msk [vmem:[%s14996_s19 + $0xa8] sm:$0xff] %vm4669_vm7, %v10742_v62 }
 0xe73   : > { %v10629_v61 = vpop.f32.mrb[36].mxu0 }
 0xe74   : > { %v10743_v60 = vadd.f32 %v10629_v61, %v15279_v25  ;;  %v8672_v21 = vpop.f32.mrb[37].mxu0 }
 0xe75   : > { %v10744_v49 = vadd.f32 %v8672_v21, %v14755_v16  ;;  %v10630_v55 = vpop.f32.mrb[38].mxu0 }
 0xe76   : > { %8761 = vst.msk [vmem:[%s14996_s19 + $0xd0] sm:$0xff] %vm4669_vm7, %v10743_v60  ;;  %v10745_v57 = vadd.f32 %v10630_v55, %v15280_v7  ;;  %v8675_v9 = vpop.f32.mrb[39].mxu0 }
 0xe77   : > { %8759 = vst.msk [vmem:[%s14996_s19 + $0xc0] sm:$0xff] %vm4669_vm7, %v10744_v49  ;;  %v10746_v5 = vadd.f32 %v8675_v9, %v15281_v37 }
 0xe78   : > { %8762 = vst.msk [vmem:[%s14996_s19 + $0xd8] sm:$0xff] %vm4669_vm7, %v10745_v57 }
 0xe79   : > { %8760 = vst.msk [vmem:[%s14996_s19 + $0xc8] sm:$0xff] %vm4669_vm7, %v10746_v5 }
 0xe7b   : > { %v10633_v43 = vpop.f32.mrb[40].mxu0 }
 0xe7c   : > { %v10747_v16 = vadd.f32 %v10633_v43, %v14765_v18  ;;  %v8688_v3 = vpop.f32.mrb[41].mxu0 }
 0xe7d   : > { %v10748_v50 = vadd.f32 %v8688_v3, %v15282_v41  ;;  %v10634_v27 = vpop.f32.mrb[42].mxu0 }
 0xe7e   : > { %8765 = vst.msk [vmem:[%s14996_s19 + $0xf0] sm:$0xff] %vm4669_vm7, %v10747_v16  ;;  %v10749_v19 = vadd.f32 %v10634_v27, %v14769_v40  ;;  %v8691_v56 = vpop.f32.mrb[43].mxu0 }
 0xe7f   : > { %8763 = vst.msk [vmem:[%s14996_s19 + $0xe0] sm:$0xff] %vm4669_vm7, %v10748_v50  ;;  %v10750_v10 = vadd.f32 %v8691_v56, %v15283_v46 }
 0xe80   : > { %8766 = vst.msk [vmem:[%s14996_s19 + $0xf8] sm:$0xff] %vm4669_vm7, %v10749_v19 }
 0xe81   : > { %8764 = vst.msk [vmem:[%s14996_s19 + $0xe8] sm:$0xff] %vm4669_vm7, %v10750_v10 }
 0xe82 PF: > { %s20_s13 = sadd.s32 1, %s11628_s13  }
 0xe83   : > { %p17_p4 = scmp.ge.s32.totalorder %s20_s13, 4  }
 0xe85   :  { %19 = sbr.rel (!%p17_p4) target bundleno = 1 (0x1), region = 106 }

// kernel: tpu_custom_call.1
= control target key start
LH: loop header
LB: loop body
LE: loop exit
PB: predicated region body
PF: predicated region fallthrough
CT: control target
= control target key end

     0   :  { %s11688_s13 = smov 0   ;;  %s15097_s0 = inlined_call_operand.vmem [shape: f32[2,256,32], index: 0, kind: input, shape index: {}]   ;;  %s15098_s1 = inlined_call_operand.vmem [shape: f32[1,32], index: 1, kind: input, shape index: {}]   ;;  %s15099_s2 = inlined_call_operand.vmem [shape: f32[1,32], index: 2, kind: input, shape index: {}]   ;;  %s15100_s3 = inlined_call_operand.vmem [shape: f32[1,64], index: 3, kind: input, shape index: {}]   ;;  %s15101_s4 = inlined_call_operand.vmem [shape: f32[1,64], index: 4, kind: input, shape index: {}]   ;;  %s15102_s5 = inlined_call_operand.vmem [shape: bf16[9,32,64], index: 5, kind: input, shape index: {}]   ;;  %s15103_s6 = inlined_call_operand.vmem [shape: bf16[9,64,64], index: 6, kind: input, shape index: {}]   ;;  %s15104_s7 = inlined_call_operand.vmem [shape: bf16[32,64], index: 7, kind: input, shape index: {}]   ;;  %s15105_s8 = inlined_call_operand.vmem [shape: f32[32,32], index: 8, kind: input, shape index: {}]   ;;  %s15106_s9 = inlined_call_operand.vmem [shape: f32[64,32], index: 9, kind: input, shape index: {}]   ;;  %s15107_s10 = inlined_call_operand.vmem [shape: f32[2,256,64], index: 10, kind: output, shape index: {}]  }
   0x1 LB: > { %s8822_s14 = sadd.s32 4294967295, %s11628_s13   ;;  %p8826_p0 = scmp.ge.s32.totalorder %s11628_s13, 1  ;;  %s11628_s13 = sphi %s11688_s13, %s20_s13  }
   0x2   : > { %p312_p1 = scmp.lt.s32.totalorder %s11628_s13, 3 }
   0x4   : > { %p313_p2 = pnand %p8826_p0, %p312_p1 }
   0x6   : > { %316 = sbr.rel (%p313_p2) target bundleno = 3714 (0xe82), region = 60 }
   0xd   : > { %v624_v0 = vld [vmem:[%s15105_s8] sm:$0xff]  ;;  %v625_v1 = vld [vmem:[%s15105_s8 + $0x8] sm:$0xff]  ;;  %v626_v2 = vld [vmem:[%s15105_s8 + $0x10] sm:$0xff]  ;;  %v15111_v3 = vmov 0.0|0.0   ;;  %vm11631_vm0 = vmmov 0   ;;  %v15108_v6 = vmov 0.0  }
   0xe   : > { %10635 = vmatprep.subr.bf16.mxu0 %v15111_v3  ;;  %v11706_v4 = vpack.c.bf16 %v625_v1, %v624_v0  ;;  %v627_v5 = vld [vmem:[%s15105_s8 + $0x18] sm:$0xff]  ;;  %9803 = vmatprep.mubr.msk.f32.mxu0 %vm11631_vm0, %v15108_v6  ;;  %p350_p3 = scmp.lt.s32.totalorder %s8822_s14, 1  ;;  %vm628_vm1 = vcmask 261120   ;;  %v15169_v8 = vmov 0  ;;  %vm4669_vm7 = vcmask 523264  }
   0xf   : > { %10641 = vmatprep.subr.bf16.mxu1 %v15111_v3  ;;  %9814 = vmatprep.mubr.msk.f32.mxu1 %vm11631_vm0, %v15108_v6  ;;  %v11717_v7 = vpack.c.bf16 %v627_v5, %v626_v2  ;;  %vm11723_vm2 = vmpackc.low %vm628_vm1, %vm628_vm1 }
  0x10   : > { %10637 = vmatpush3.bf16.msra.mxu0 %v11706_v4  ;;  %s15285_s14 = smov (!%p350_p3, %s8822_s14), 1  ;;  %v15170_v8 = vsel %vm11723_vm2, 4294967295, %v15169_v8  ;;  %10644 = vmatpush3.bf16.xpose.msk.msra.mxu1 %vm11723_vm2, %v11706_v4 }
  0x11   : > { %15171 = vst [vmem:[#allocation2_spill] sm:$0xff] %v15170_v8  ;;  %10638 = vmatprep.subr.bf16.mxu0 %v15111_v3  ;;  %s9377_s23 = sshll.u32 %s15285_s14, 8  ;;  %10645 = vmatprep.subr.bf16.mxu1 %v15111_v3 }
  0x12   : > { %s11738_s26 = scalar_lea.vmem %s15097_s0, %s9377_s23  ;;  %s14996_s19 = scalar_lea.vmem %s15107_s10, %s9377_s23 }
  0x13   : > { %v11742_v9 = vld [vmem:[%s11738_s26] sm:$0xff]  ;;  %v11745_v10 = vld [vmem:[%s11738_s26 + $0x8] sm:$0xff]  ;;  %v11748_v11 = vld [vmem:[%s11738_s26 + $0x10] sm:$0xff] }
  0x14   : > { %10640 = vmatpush3.bf16.msra.mxu0 %v11717_v7  ;;  %v11751_v12 = vld [vmem:[%s11738_s26 + $0x18] sm:$0xff]  ;;  %v629_v13 = vsel %vm628_vm1, %v11742_v9, 0.0  ;;  %v630_v14 = vsel %vm628_vm1, %v11745_v10, 0.0  ;;  %v632_v15 = vsel %vm628_vm1, %v11748_v11, 0.0  ;;  %v11761_v16 = vld [vmem:[%s11738_s26 + $0x20] sm:$0xff]  ;;  %v11764_v17 = vld [vmem:[%s11738_s26 + $0x28] sm:$0xff] }
  0x15   : > { %10649 = vmatprep.subr.bf16.mxu0 %v15111_v3  ;;  %v11767_v18 = vld [vmem:[%s11738_s26 + $0x30] sm:$0xff]  ;;  %v631_v19 = vadd.f32 %v630_v14, %v629_v13  ;;  %v11770_v20 = vld [vmem:[%s11738_s26 + $0x38] sm:$0xff]  ;;  %v11773_v21 = vld [vmem:[%s11738_s26 + $0x40] sm:$0xff]  ;;  %v634_v23 = vsel %vm628_vm1, %v11751_v12, 0.0  ;;  %v636_v31 = vsel %vm628_vm1, %v11761_v16, 0.0  ;;  %v638_v32 = vsel %vm628_vm1, %v11764_v17, 0.0 }
  0x16   : > { %v11776_v22 = vld [vmem:[%s11738_s26 + $0x48] sm:$0xff]  ;;  %v11781_v24 = vld [vmem:[%s11738_s26 + $0x50] sm:$0xff]  ;;  %v11784_v25 = vld [vmem:[%s11738_s26 + $0x58] sm:$0xff]  ;;  %v640_v37 = vsel %vm628_vm1, %v11767_v18, 0.0  ;;  %v642_v38 = vsel %vm628_vm1, %v11770_v20, 0.0  ;;  %v644_v39 = vsel %vm628_vm1, %v11773_v21, 0.0 }
  0x17   : > { %v11787_v26 = vld [vmem:[%s11738_s26 + $0x60] sm:$0xff]  ;;  %v633_v27 = vadd.f32 %v632_v15, %v631_v19  ;;  %v11790_v28 = vld [vmem:[%s11738_s26 + $0x68] sm:$0xff]  ;;  %v11793_v29 = vld [vmem:[%s11738_s26 + $0x70] sm:$0xff]  ;;  %v646_v43 = vsel %vm628_vm1, %v11776_v22, 0.0  ;;  %v648_v44 = vsel %vm628_vm1, %v11781_v24, 0.0  ;;  %v650_v45 = vsel %vm628_vm1, %v11784_v25, 0.0 }
  0x18   : > { %v11796_v30 = vld [vmem:[%s11738_s26 + $0x78] sm:$0xff]  ;;  %10648 = vmatpush3.bf16.xpose.msk.msra.mxu1 %vm11723_vm2, %v11717_v7  ;;  %v11806_v33 = vld [vmem:[%s11738_s26 + $0x80] sm:$0xff]  ;;  %v11809_v34 = vld [vmem:[%s11738_s26 + $0x88] sm:$0xff]  ;;  %v652_v49 = vsel %vm628_vm1, %v11787_v26, 0.0  ;;  %v654_v50 = vsel %vm628_vm1, %v11790_v28, 0.0  ;;  %v656_v51 = vsel %vm628_vm1, %v11793_v29, 0.0 }
  0x19   : > { %v11812_v35 = vld [vmem:[%s11738_s26 + $0x90] sm:$0xff]  ;;  %v635_v36 = vadd.f32 %v634_v23, %v633_v27  ;;  %v11821_v40 = vld [vmem:[%s11738_s26 + $0x98] sm:$0xff]  ;;  %v11824_v41 = vld [vmem:[%s11738_s26 + $0xa0] sm:$0xff]  ;;  %v658_v52 = vsel %vm628_vm1, %v11796_v30, 0.0  ;;  %v660_v53 = vsel %vm628_vm1, %v11806_v33, 0.0  ;;  %v662_v54 = vsel %vm628_vm1, %v11809_v34, 0.0 }
  0x1a   : > { %v11827_v42 = vld [vmem:[%s11738_s26 + $0xa8] sm:$0xff]  ;;  %v11836_v46 = vld [vmem:[%s11738_s26 + $0xb0] sm:$0xff]  ;;  %v11839_v47 = vld [vmem:[%s11738_s26 + $0xb8] sm:$0xff]  ;;  %v664_v55 = vsel %vm628_vm1, %v11812_v35, 0.0  ;;  %v666_v57 = vsel %vm628_vm1, %v11821_v40, 0.0  ;;  %v668_v58 = vsel %vm628_vm1, %v11824_v41, 0.0 }
  0x1b   : > { %v637_v48 = vadd.f32 %v636_v31, %v635_v36  ;;  %v670_v59 = vsel %vm628_vm1, %v11827_v42, 0.0  ;;  %v672_v60 = vsel %vm628_vm1, %v11836_v46, 0.0  ;;  %v674_v61 = vsel %vm628_vm1, %v11839_v47, 0.0  ;;  %v11866_v36 = vld [vmem:[%s11738_s26 + $0xc0] sm:$0xff] }
  0x1d   : > { %v639_v56 = vadd.f32 %v638_v32, %v637_v48 }
  0x1f   : > { %v641_v62 = vadd.f32 %v640_v37, %v639_v56  ;;  %v11889_v56 = vld [vmem:[%s11738_s26 + $0xe8] sm:$0xff] }
  0x21   : > { %v643_v63 = vadd.f32 %v642_v38, %v641_v62  ;;  %v11899_v62 = vld [vmem:[%s11738_s26 + $0xf8] sm:$0xff] }
  0x23   : > { %v645_v0 = vadd.f32 %v644_v39, %v643_v63  ;;  %v11869_v39 = vld [vmem:[%s11738_s26 + $0xc8] sm:$0xff] }
  0x25   : > { %v647_v1 = vadd.f32 %v646_v43, %v645_v0 }
  0x27   : > { %v649_v2 = vadd.f32 %v648_v44, %v647_v1  ;;  %v676_v44 = vsel %vm628_vm1, %v11866_v36, 0.0 }
  0x29   : > { %v651_v5 = vadd.f32 %v650_v45, %v649_v2  ;;  %v11874_v45 = vld [vmem:[%s11738_s26 + $0xd0] sm:$0xff]  ;;  %v690_v2 = vsel %vm628_vm1, %v11899_v62, 0.0 }
  0x2b   : > { %v653_v13 = vadd.f32 %v652_v49, %v651_v5  ;;  %v678_v49 = vsel %vm628_vm1, %v11869_v39, 0.0 }
  0x2d   : > { %v655_v14 = vadd.f32 %v654_v50, %v653_v13  ;;  %v11879_v50 = vld [vmem:[%s11738_s26 + $0xd8] sm:$0xff] }
  0x2f   : > { %v657_v15 = vadd.f32 %v656_v51, %v655_v14 }
  0x31   : > { %v659_v19 = vadd.f32 %v658_v52, %v657_v15  ;;  %v680_v52 = vsel %vm628_vm1, %v11874_v45, 0.0 }
  0x33   : > { %v661_v23 = vadd.f32 %v660_v53, %v659_v19  ;;  %v11884_v53 = vld [vmem:[%s11738_s26 + $0xe0] sm:$0xff] }
  0x35   : > { %v663_v27 = vadd.f32 %v662_v54, %v661_v23 }
  0x37   : > { %v665_v31 = vadd.f32 %v664_v55, %v663_v27  ;;  %v682_v55 = vsel %vm628_vm1, %v11879_v50, 0.0 }
  0x39   : > { %v667_v32 = vadd.f32 %v666_v57, %v665_v31 }
  0x3b   : > { %v669_v37 = vadd.f32 %v668_v58, %v667_v32  ;;  %v684_v58 = vsel %vm628_vm1, %v11884_v53, 0.0 }
  0x3d   : > { %v671_v38 = vadd.f32 %v670_v59, %v669_v37  ;;  %v11894_v59 = vld [vmem:[%s11738_s26 + $0xf0] sm:$0xff] }
  0x3e   : > { %v688_v0 = vsel %vm628_vm1, %v11894_v59, 0.0 }
  0x3f   : > { %v673_v43 = vadd.f32 %v672_v60, %v671_v38 }
  0x41   : > { %v675_v48 = vadd.f32 %v674_v61, %v673_v43  ;;  %v686_v61 = vsel %vm628_vm1, %v11889_v56, 0.0  ;;  %v393_v43 = vlaneseq }
  0x43   : > { %v677_v51 = vadd.f32 %v676_v44, %v675_v48  ;;  %v11914_v44 = vshrl.u32 %v393_v43, 7 }
  0x45   : > { %v679_v54 = vadd.f32 %v678_v49, %v677_v51  ;;  %v11917_v51 = vsub.s32 0, %v11914_v44  ;;  %vm1512_vm3 = vcmp.lt.s32.totalorder %v11914_v44, 1  ;;  %vm490_vm4 = vcmp.ge.s32.totalorder %v11914_v44, 1 }
  0x46   : > { %vm2252_vm5 = vcmp.lt.s32.totalorder %v11914_v44, 7 }
  0x47   : > { %v681_v57 = vadd.f32 %v680_v52, %v679_v54  ;;  %15172 = vst [vmem:[#allocation3_spill] sm:$0xff] %v11917_v51 }
  0x49   : > { %v683_v60 = vadd.f32 %v682_v55, %v681_v57 }
  0x4b   : > { %v685_v63 = vadd.f32 %v684_v58, %v683_v60 }
  0x4d   : > { %v687_v1 = vadd.f32 %v686_v61, %v685_v63 }
  0x4f   : > { %v689_v5 = vadd.f32 %v688_v0, %v687_v1 }
  0x51   : > { %v691_v13 = vadd.f32 %v690_v2, %v689_v5 }
  0x53   : > { %v692_v14 = vrot.slane %v691_v13, 4 }
  0x55   : > { %v693_v15 = vadd.f32 %v692_v14, %v691_v13 }
  0x57   : > { %v694_v19 = vrot.slane %v693_v15, 2 }
  0x59   : > { %v695_v23 = vadd.f32 %v694_v19, %v693_v15 }
  0x5b   : > { %v696_v27 = vrot.slane %v695_v23, 1 }
  0x5d   : > { %v697_v31 = vadd.f32 %v696_v27, %v695_v23 }
  0x5f   : > { %9804 = vmatmul.mubr.msk.f32.vlgmr.msra.gmra.mrb[0].mxu0 %vm628_vm1, %v697_v31 }
  0x60   : > { %10651 = vmatpush3.bf16.msra.mxu0 %v11706_v4  ;;  %9825 = vmatprep.mubr.msk.f32.mxu0 %vm11631_vm0, %v15108_v6 }
  0x61   : > { %10652 = vmatprep.subr.bf16.mxu0 %v15111_v3 }
  0x64   : > { %10654 = vmatpush3.bf16.msra.mxu0 %v11717_v7 }
  0x65   : > { %10655 = vmatprep.subr.bf16.mxu0 %v15111_v3 }
 0x132   : > { %v767_v32 = vpop.f32.mrb[0].mxu0 }
 0x133   : > { %v772_v37 = vmul.f32 0.00390625, %v767_v32  ;;  %v9805_v38 = vpop.f32.mrb[1].mxu0 }
 0x135   : > { %9815 = vmatmul.mubr.msk.f32.vlgmr.msra.gmra.mrb[0].mxu1 %vm628_vm1, %v772_v37 }
 0x136   : > { %9843 = vmatprep.mubr.bf16.mxu1 %v15111_v3 }
 0x208   : > { %v854_v48 = vpop.f32.mrb[0].mxu1 }
 0x209   : > { %v9816_v49 = vpop.f32.mrb[1].mxu1  ;;  %v11920_v52 = vrot.slane %v854_v48, %v11917_v51 }
 0x20b   : > { %v11924_v54 = vsub.f32 %v11742_v9, %v11920_v52  ;;  %v11928_v55 = vsub.f32 %v11745_v10, %v11920_v52  ;;  %v11932_v57 = vsub.f32 %v11748_v11, %v11920_v52  ;;  %v11936_v58 = vsub.f32 %v11751_v12, %v11920_v52 }
 0x20c   : > { %v11944_v9 = vsub.f32 %v11761_v16, %v11920_v52  ;;  %v11950_v11 = vsub.f32 %v11764_v17, %v11920_v52  ;;  %v11958_v2 = vsub.f32 %v11767_v18, %v11920_v52  ;;  %v11965_v17 = vsub.f32 %v11770_v20, %v11920_v52 }
 0x20d   : > { %v894_v60 = vmul.f32 %v11924_v54, %v11924_v54  ;;  %v895_v61 = vmul.f32 %v11928_v55, %v11928_v55  ;;  %v896_v10 = vmul.f32 %v11932_v57, %v11932_v57  ;;  %v897_v12 = vmul.f32 %v11936_v58, %v11936_v58 }
 0x20e   : > { %v898_v16 = vmul.f32 %v11944_v9, %v11944_v9  ;;  %v899_v14 = vmul.f32 %v11950_v11, %v11950_v11  ;;  %v11972_v18 = vsub.f32 %v11773_v21, %v11920_v52  ;;  %v900_v23 = vmul.f32 %v11958_v2, %v11958_v2 }
 0x20f   : > { %v926_v63 = vsel %vm628_vm1, %v894_v60, 0.0  ;;  %v927_v0 = vsel %vm628_vm1, %v895_v61, 0.0  ;;  %v929_v5 = vsel %vm628_vm1, %v896_v10, 0.0  ;;  %v931_v15 = vsel %vm628_vm1, %v897_v12, 0.0 }
 0x210   : > { %v928_v1 = vadd.f32 %v927_v0, %v926_v63  ;;  %v933_v27 = vsel %vm628_vm1, %v898_v16, 0.0  ;;  %v11979_v20 = vsub.f32 %v11776_v22, %v11920_v52  ;;  %v901_v32 = vmul.f32 %v11965_v17, %v11965_v17 }
 0x211   : > { %v935_v37 = vsel %vm628_vm1, %v899_v14, 0.0  ;;  %v11986_v21 = vsub.f32 %v11781_v24, %v11920_v52  ;;  %v902_v43 = vmul.f32 %v11972_v18, %v11972_v18  ;;  %v937_v48 = vsel %vm628_vm1, %v900_v23, 0.0 }
 0x212   : > { %v930_v13 = vadd.f32 %v929_v5, %v928_v1  ;;  %v11993_v22 = vsub.f32 %v11784_v25, %v11920_v52  ;;  %v903_v60 = vmul.f32 %v11979_v20, %v11979_v20  ;;  %v939_v61 = vsel %vm628_vm1, %v901_v32, 0.0 }
 0x213   : > { %v12000_v24 = vsub.f32 %v11787_v26, %v11920_v52  ;;  %v904_v12 = vmul.f32 %v11986_v21, %v11986_v21  ;;  %v941_v63 = vsel %vm628_vm1, %v902_v43, 0.0  ;;  %v12007_v25 = vsub.f32 %v11790_v28, %v11920_v52 }
 0x214   : > { %v932_v19 = vadd.f32 %v931_v15, %v930_v13  ;;  %v905_v1 = vmul.f32 %v11993_v22, %v11993_v22  ;;  %v943_v16 = vsel %vm628_vm1, %v903_v60, 0.0  ;;  %v12014_v26 = vsub.f32 %v11793_v29, %v11920_v52 }
 0x215   : > { %v906_v13 = vmul.f32 %v12000_v24, %v12000_v24  ;;  %v945_v14 = vsel %vm628_vm1, %v904_v12, 0.0  ;;  %v12021_v28 = vsub.f32 %v11796_v30, %v11920_v52  ;;  %v12028_v29 = vsub.f32 %v11806_v33, %v11920_v52 }
 0x216   : > { %v934_v31 = vadd.f32 %v933_v27, %v932_v19  ;;  %v907_v19 = vmul.f32 %v12007_v25, %v12007_v25  ;;  %v947_v23 = vsel %vm628_vm1, %v905_v1, 0.0  ;;  %v12035_v30 = vsub.f32 %v11809_v34, %v11920_v52 }
 0x217   : > { %v949_v32 = vsel %vm628_vm1, %v906_v13, 0.0  ;;  %v12042_v33 = vsub.f32 %v11812_v35, %v11920_v52  ;;  %v12049_v34 = vsub.f32 %v11821_v40, %v11920_v52  ;;  %v12056_v35 = vsub.f32 %v11824_v41, %v11920_v52 }
 0x218   : > { %v936_v38 = vadd.f32 %v935_v37, %v934_v31  ;;  %v908_v31 = vmul.f32 %v12014_v26, %v12014_v26  ;;  %v951_v43 = vsel %vm628_vm1, %v907_v19, 0.0  ;;  %v12063_v40 = vsub.f32 %v11827_v42, %v11920_v52 }
 0x219   : > { %v12070_v41 = vsub.f32 %v11836_v46, %v11920_v52  ;;  %v12077_v42 = vsub.f32 %v11839_v47, %v11920_v52  ;;  %v12084_v46 = vsub.f32 %v11866_v36, %v11920_v52  ;;  %v12091_v47 = vsub.f32 %v11869_v39, %v11920_v52 }
 0x21a   : > { %v938_v49 = vadd.f32 %v937_v48, %v936_v38  ;;  %v909_v38 = vmul.f32 %v12021_v28, %v12021_v28  ;;  %v953_v60 = vsel %vm628_vm1, %v908_v31, 0.0  ;;  %v12098_v36 = vsub.f32 %v11874_v45, %v11920_v52 }
 0x21b   : > { %v12105_v39 = vsub.f32 %v11879_v50, %v11920_v52  ;;  %v12112_v45 = vsub.f32 %v11884_v53, %v11920_v52  ;;  %v12119_v50 = vsub.f32 %v11889_v56, %v11920_v52  ;;  %v12126_v53 = vsub.f32 %v11894_v59, %v11920_v52 }
 0x21c   : > { %v940_v10 = vadd.f32 %v939_v61, %v938_v49  ;;  %v910_v49 = vmul.f32 %v12028_v29, %v12028_v29  ;;  %v955_v12 = vsel %vm628_vm1, %v909_v38, 0.0  ;;  %v893_v56 = vsub.f32 %v11899_v62, %v11920_v52 }
 0x21e   : > { %v942_v0 = vadd.f32 %v941_v63, %v940_v10  ;;  %v911_v10 = vmul.f32 %v12035_v30, %v12035_v30  ;;  %v957_v1 = vsel %vm628_vm1, %v910_v49, 0.0 }
 0x220   : > { %v944_v5 = vadd.f32 %v943_v16, %v942_v0  ;;  %v912_v0 = vmul.f32 %v12042_v33, %v12042_v33  ;;  %v959_v13 = vsel %vm628_vm1, %v911_v10, 0.0 }
 0x222   : > { %v946_v15 = vadd.f32 %v945_v14, %v944_v5  ;;  %v913_v5 = vmul.f32 %v12049_v34, %v12049_v34  ;;  %v961_v19 = vsel %vm628_vm1, %v912_v0, 0.0 }
 0x224   : > { %v948_v27 = vadd.f32 %v947_v23, %v946_v15  ;;  %v914_v15 = vmul.f32 %v12056_v35, %v12056_v35  ;;  %v963_v31 = vsel %vm628_vm1, %v913_v5, 0.0 }
 0x226   : > { %v950_v37 = vadd.f32 %v949_v32, %v948_v27  ;;  %v915_v27 = vmul.f32 %v12063_v40, %v12063_v40  ;;  %v965_v38 = vsel %vm628_vm1, %v914_v15, 0.0 }
 0x228   : > { %v952_v48 = vadd.f32 %v951_v43, %v950_v37  ;;  %v916_v37 = vmul.f32 %v12070_v41, %v12070_v41  ;;  %v967_v49 = vsel %vm628_vm1, %v915_v27, 0.0 }
 0x22a   : > { %v954_v61 = vadd.f32 %v953_v60, %v952_v48  ;;  %v917_v48 = vmul.f32 %v12077_v42, %v12077_v42  ;;  %v969_v10 = vsel %vm628_vm1, %v916_v37, 0.0 }
 0x22c   : > { %v956_v63 = vadd.f32 %v955_v12, %v954_v61  ;;  %v918_v61 = vmul.f32 %v12084_v46, %v12084_v46  ;;  %v971_v0 = vsel %vm628_vm1, %v917_v48, 0.0 }
 0x22e   : > { %v958_v16 = vadd.f32 %v957_v1, %v956_v63  ;;  %v919_v63 = vmul.f32 %v12091_v47, %v12091_v47  ;;  %v973_v5 = vsel %vm628_vm1, %v918_v61, 0.0 }
 0x230   : > { %v960_v14 = vadd.f32 %v959_v13, %v958_v16  ;;  %v920_v16 = vmul.f32 %v12098_v36, %v12098_v36  ;;  %v975_v15 = vsel %vm628_vm1, %v919_v63, 0.0 }
 0x232   : > { %v962_v23 = vadd.f32 %v961_v19, %v960_v14  ;;  %v921_v14 = vmul.f32 %v12105_v39, %v12105_v39  ;;  %v977_v27 = vsel %vm628_vm1, %v920_v16, 0.0 }
 0x234   : > { %v964_v32 = vadd.f32 %v963_v31, %v962_v23  ;;  %v922_v23 = vmul.f32 %v12112_v45, %v12112_v45  ;;  %v979_v37 = vsel %vm628_vm1, %v921_v14, 0.0 }
 0x236   : > { %v966_v43 = vadd.f32 %v965_v38, %v964_v32  ;;  %v923_v32 = vmul.f32 %v12119_v50, %v12119_v50  ;;  %v981_v59 = vsel %vm628_vm1, %v922_v23, 0.0 }
 0x238   : > { %v968_v60 = vadd.f32 %v967_v49, %v966_v43  ;;  %v924_v43 = vmul.f32 %v12126_v53, %v12126_v53  ;;  %v925_v49 = vmul.f32 %v893_v56, %v893_v56 }
 0x23a   : > { %v970_v12 = vadd.f32 %v969_v10, %v968_v60  ;;  %v983_v60 = vsel %vm628_vm1, %v923_v32, 0.0  ;;  %v985_v10 = vsel %vm628_vm1, %v924_v43, 0.0  ;;  %v987_v62 = vsel %vm628_vm1, %v925_v49, 0.0  ;;  %v12174_v43 = vld [vmem:[%s15098_s1] ss:$0 sm:$0xff] }
 0x23c   : > { %v972_v1 = vadd.f32 %v971_v0, %v970_v12 }
 0x23e   : > { %v974_v13 = vadd.f32 %v973_v5, %v972_v1 }
 0x240   : > { %v976_v19 = vadd.f32 %v975_v15, %v974_v13 }
 0x242   : > { %v978_v31 = vadd.f32 %v977_v27, %v976_v19 }
 0x244   : > { %v980_v38 = vadd.f32 %v979_v37, %v978_v31  ;;  %v12165_v31 = vld [vmem:[%s15102_s5] sm:$0xff]  }
 0x246   : > { %v982_v48 = vadd.f32 %v981_v59, %v980_v38 }
 0x248   : > { %v984_v61 = vadd.f32 %v983_v60, %v982_v48  ;;  %v12184_v60 = vld [vmem:[%s15099_s2] ss:$0 sm:$0xff] }
 0x24a   : > { %v986_v12 = vadd.f32 %v985_v10, %v984_v61 }
 0x24c   : > { %v988_v52 = vadd.f32 %v987_v62, %v986_v12 }
 0x24e   : > { %v989_v63 = vrot.slane %v988_v52, 4 }
 0x250   : > { %v990_v0 = vadd.f32 %v989_v63, %v988_v52 }
 0x252   : > { %v991_v1 = vrot.slane %v990_v0, 2 }
 0x254   : > { %v992_v16 = vadd.f32 %v991_v1, %v990_v0 }
 0x256   : > { %v993_v5 = vrot.slane %v992_v16, 1 }
 0x258   : > { %v994_v13 = vadd.f32 %v993_v5, %v992_v16 }
 0x25a   : > { %9826 = vmatmul.mubr.msk.f32.vlgmr.msra.gmra.mrb[2].mxu0 %vm628_vm1, %v994_v13 }
 0x25b   : > { %10658 = vmatpush3.bf16.xpose.msk.msra.mxu0 %vm11723_vm2, %v11706_v4  ;;  %9836 = vmatprep.mubr.msk.f32.mxu0 %vm11631_vm0, %v15108_v6  ;;  %v11274_v4 = vld [vmem:[%s15102_s5 + $0x10] sm:$0xff]  }
 0x25c   : > { %10659 = vmatprep.subr.bf16.mxu0 %v15111_v3  ;;  %9839 = vmatprep.subr.bf16.mxu1 %v11274_v4 }
 0x25d   : > { %9840 = vmatpush3.bf16.msra.mxu1 %v11274_v4 }
 0x263   : > { %10662 = vmatpush3.bf16.xpose.msk.msra.mxu0 %vm11723_vm2, %v11717_v7  ;;  %v11275_v7 = vld [vmem:[%s15102_s5 + $0x18] sm:$0xff]  }
 0x264   : > { %10663 = vmatprep.subr.bf16.mxu0 %v15111_v3  ;;  %9841 = vmatprep.subr.bf16.mxu1 %v11275_v7 }
 0x265   : > { %9842 = vmatpush3.bf16.msra.mxu1 %v11275_v7 }
 0x266   : > { %9875 = vmatprep.subr.bf16.mxu1 %v12165_v31 }
 0x32d   : > { %v1064_v14 = vpop.f32.mrb[2].mxu0 }
 0x32e   : > { %v1068_v15 = vmul.f32 0.00390625, %v1064_v14  ;;  %v9827_v19 = vpop.f32.mrb[3].mxu0 }
 0x330   : > { %v1069_v23 = vadd.f32 1e-06, %v1068_v15 }
 0x332   : > { %11330 = vrsqrt.f32 %v1069_v23 }
 0x33c   : > { %v11331_v27 = vpop.eup %11330 }
 0x33d   : > { %9837 = vmatmul.mubr.msk.f32.vlgmr.msra.gmra.mrb[4].mxu0 %vm628_vm1, %v11331_v27 }
 0x33e   : > { %10179 = vmatprep.mubr.msk.f32.mxu0 %vm11631_vm0, %v15108_v6 }
 0x410   : > { %v1140_v32 = vpop.f32.mrb[4].mxu0 }
 0x411   : > { %v12169_v37 = vrot.slane %v1140_v32, %v11917_v51  ;;  %v9838_v38 = vpop.f32.mrb[5].mxu0 }
 0x413   : > { %v1179_v59 = vmul.f32 %v12169_v37, %v893_v56  ;;  %v1148_v48 = vmul.f32 %v12169_v37, %v11924_v54  ;;  %v1149_v49 = vmul.f32 %v12169_v37, %v11928_v55  ;;  %v1150_v61 = vmul.f32 %v12169_v37, %v11932_v57 }
 0x414   : > { %v1151_v10 = vmul.f32 %v12169_v37, %v11936_v58  ;;  %v1152_v56 = vmul.f32 %v12169_v37, %v11944_v9  ;;  %v1153_v54 = vmul.f32 %v12169_v37, %v11950_v11  ;;  %v1154_v52 = vmul.f32 %v12169_v37, %v11958_v2 }
 0x415   : > { %v1217_v12 = vmul.f32 %v12174_v43, %v1179_v59  ;;  %v1186_v55 = vmul.f32 %v12174_v43, %v1148_v48  ;;  %v1187_v62 = vmul.f32 %v12174_v43, %v1149_v49  ;;  %v1188_v57 = vmul.f32 %v12174_v43, %v1150_v61 }
 0x416   : > { %v1189_v63 = vmul.f32 %v12174_v43, %v1151_v10  ;;  %v1190_v58 = vmul.f32 %v12174_v43, %v1152_v56  ;;  %v1191_v9 = vmul.f32 %v12174_v43, %v1153_v54  ;;  %v1155_v2 = vmul.f32 %v12169_v37, %v11965_v17 }
 0x417   : > { %v12204_v0 = vadd.f32 %v12184_v60, %v1217_v12  ;;  %v12207_v11 = vadd.f32 %v12184_v60, %v1186_v55  ;;  %v12210_v1 = vadd.f32 %v12184_v60, %v1187_v62  ;;  %v12215_v16 = vadd.f32 %v12184_v60, %v1188_v57 }
 0x418   : > { %v12218_v5 = vadd.f32 %v12184_v60, %v1189_v63  ;;  %v12221_v13 = vadd.f32 %v12184_v60, %v1190_v58  ;;  %v12224_v14 = vadd.f32 %v12184_v60, %v1191_v9  ;;  %v1192_v17 = vmul.f32 %v12174_v43, %v1154_v52 }
 0x419   : > { %v8876_v15 = vmul.f32 -1.442695, %v12204_v0  ;;  %v8845_v19 = vmul.f32 -1.442695, %v12207_v11  ;;  %v8846_v23 = vmul.f32 -1.442695, %v12210_v1  ;;  %v1193_v32 = vmul.f32 %v12174_v43, %v1155_v2 }
 0x41a   : > { %v8847_v27 = vmul.f32 -1.442695, %v12215_v16  ;;  %v8848_v4 = vmul.f32 -1.442695, %v12218_v5  ;;  %v8849_v7 = vmul.f32 -1.442695, %v12221_v13  ;;  %v12236_v59 = vadd.f32 %v12184_v60, %v1192_v17 }
 0x41b   : > { %11332 = vpow2.f32 %v8876_v15  ;;  %v8850_v38 = vmul.f32 -1.442695, %v12224_v14  ;;  %v1156_v48 = vmul.f32 %v12169_v37, %v11972_v18  ;;  %v12241_v49 = vadd.f32 %v12184_v60, %v1193_v32 }
 0x41c   : > { %11334 = vpow2.f32 %v8845_v19  ;;  %v1157_v61 = vmul.f32 %v12169_v37, %v11979_v20  ;;  %v1158_v10 = vmul.f32 %v12169_v37, %v11986_v21  ;;  %v8851_v56 = vmul.f32 -1.442695, %v12236_v59 }
 0x41d   : > { %11336 = vpow2.f32 %v8846_v23  ;;  %v1194_v54 = vmul.f32 %v12174_v43, %v1156_v48  ;;  %v1159_v12 = vmul.f32 %v12169_v37, %v11993_v22  ;;  %v8852_v18 = vmul.f32 -1.442695, %v12241_v49 }
 0x41e   : > { %11338 = vpow2.f32 %v8847_v27  ;;  %v1195_v55 = vmul.f32 %v12174_v43, %v1157_v61  ;;  %v1196_v62 = vmul.f32 %v12174_v43, %v1158_v10  ;;  %v1160_v52 = vmul.f32 %v12169_v37, %v12000_v24 }
 0x41f   : > { %11340 = vpow2.f32 %v8848_v4  ;;  %v12255_v20 = vadd.f32 %v12184_v60, %v1194_v54  ;;  %v1197_v21 = vmul.f32 %v12174_v43, %v1159_v12  ;;  %v1161_v63 = vmul.f32 %v12169_v37, %v12007_v25 }
 0x420   : > { %11342 = vpow2.f32 %v8849_v7  ;;  %v12261_v57 = vadd.f32 %v12184_v60, %v1195_v55  ;;  %v12264_v22 = vadd.f32 %v12184_v60, %v1196_v62  ;;  %v1198_v2 = vmul.f32 %v12174_v43, %v1160_v52 }
 0x421   : > { %11344 = vpow2.f32 %v8850_v38  ;;  %v8853_v58 = vmul.f32 -1.442695, %v12255_v20  ;;  %v12270_v9 = vadd.f32 %v12184_v60, %v1197_v21  ;;  %v1199_v19 = vmul.f32 %v12174_v43, %v1161_v63 }
 0x422   : > { %11346 = vpow2.f32 %v8851_v56  ;;  %v8854_v24 = vmul.f32 -1.442695, %v12261_v57  ;;  %v8855_v15 = vmul.f32 -1.442695, %v12264_v22  ;;  %v1162_v25 = vmul.f32 %v12169_v37, %v12014_v26 }
 0x423   : > { %11348 = vpow2.f32 %v8852_v18  ;;  %v8856_v23 = vmul.f32 -1.442695, %v12270_v9  ;;  %v1163_v17 = vmul.f32 %v12169_v37, %v12021_v28  ;;  %v1164_v27 = vmul.f32 %v12169_v37, %v12028_v29 }
 0x424   : > { %11350 = vpow2.f32 %v8853_v58  ;;  %v12284_v7 = vadd.f32 %v12184_v60, %v1198_v2  ;;  %v12287_v32 = vadd.f32 %v12184_v60, %v1199_v19  ;;  %v1200_v38 = vmul.f32 %v12174_v43, %v1162_v25 }
 0x425   : > { %v11333_v4 = vpop.eup %11332  ;;  %11352 = vpow2.f32 %v8854_v24  ;;  %v1201_v26 = vmul.f32 %v12174_v43, %v1163_v17  ;;  %v1165_v28 = vmul.f32 %v12169_v37, %v12035_v30  ;;  %v1202_v18 = vmul.f32 %v12174_v43, %v1164_v27 }
 0x426   : > { %v11335_v48 = vpop.eup %11334  ;;  %v1383_v61 = vadd.f32 1.0, %v11333_v4  ;;  %11354 = vpow2.f32 %v8855_v15  ;;  %v12294_v56 = vadd.f32 %v12184_v60, %v1200_v38  ;;  %v8857_v21 = vmul.f32 -1.442695, %v12284_v7 }
 0x427   : > { %v11337_v10 = vpop.eup %11336  ;;  %v1352_v29 = vadd.f32 1.0, %v11335_v48  ;;  %11356 = vpow2.f32 %v8856_v23  ;;  %v12299_v52 = vmul.f32 -1.442695, %v12287_v32  ;;  %v12302_v58 = vadd.f32 %v12184_v60, %v1201_v26 }
 0x428   : > { %v11339_v54 = vpop.eup %11338  ;;  %11358 = vrcp.f32 %v1383_v61  ;;  %v1353_v12 = vadd.f32 1.0, %v11337_v10  ;;  %v1203_v2 = vmul.f32 %v12174_v43, %v1165_v28  ;;  %v12306_v19 = vmul.f32 -1.442695, %v12294_v56 }
 0x429   : > { %v11341_v55 = vpop.eup %11340  ;;  %11360 = vrcp.f32 %v1352_v29  ;;  %v1354_v62 = vadd.f32 1.0, %v11339_v54  ;;  %v1166_v23 = vmul.f32 %v12169_v37, %v12042_v33  ;;  %v12311_v27 = vadd.f32 %v12184_v60, %v1202_v18 }
 0x42a   : > { %v11343_v30 = vpop.eup %11342  ;;  %11362 = vrcp.f32 %v1353_v12  ;;  %v1355_v63 = vadd.f32 1.0, %v11341_v55  ;;  %v1167_v4 = vmul.f32 %v12169_v37, %v12049_v34  ;;  %v1168_v26 = vmul.f32 %v12169_v37, %v12056_v35 }
 0x42b   : > { %v11345_v24 = vpop.eup %11344  ;;  %11364 = vrcp.f32 %v1354_v62  ;;  %v1356_v15 = vadd.f32 1.0, %v11343_v30  ;;  %v1204_v61 = vmul.f32 %v12174_v43, %v1166_v23  ;;  %v1169_v29 = vmul.f32 %v12169_v37, %v12063_v40 }
 0x42c   : > { %v11347_v25 = vpop.eup %11346  ;;  %11366 = vrcp.f32 %v1355_v63  ;;  %v1357_v17 = vadd.f32 1.0, %v11345_v24  ;;  %v1205_v10 = vmul.f32 %v12174_v43, %v1167_v4  ;;  %v12322_v34 = vadd.f32 %v12184_v60, %v1203_v2 }
 0x42d   : > { %v11349_v38 = vpop.eup %11348  ;;  %11368 = vrcp.f32 %v1356_v15  ;;  %v1358_v48 = vadd.f32 1.0, %v11347_v25  ;;  %v1206_v18 = vmul.f32 %v12174_v43, %v1168_v26  ;;  %v12326_v35 = vadd.f32 %v12184_v60, %v1204_v61 }
 0x42e   : > { %v11351_v28 = vpop.eup %11350  ;;  %11370 = vrcp.f32 %v1357_v17  ;;  %v1359_v33 = vadd.f32 1.0, %v11349_v38  ;;  %v1207_v30 = vmul.f32 %v12174_v43, %v1169_v29  ;;  %v8860_v40 = vmul.f32 -1.442695, %v12302_v58 }
 0x42f   : > { %v11353_v54 = vpop.eup %11352  ;;  %11372 = vrcp.f32 %v1358_v48  ;;  %v1360_v12 = vadd.f32 1.0, %v11351_v28  ;;  %v12331_v15 = vadd.f32 %v12184_v60, %v1205_v10  ;;  %v8861_v25 = vmul.f32 -1.442695, %v12311_v27 }
 0x430   : > { %v11355_v55 = vpop.eup %11354  ;;  %11374 = vrcp.f32 %v1359_v33  ;;  %v1361_v62 = vadd.f32 1.0, %v11353_v54  ;;  %v12335_v17 = vadd.f32 %v12184_v60, %v1206_v18  ;;  %v8862_v38 = vmul.f32 -1.442695, %v12322_v34 }
 0x431   : > { %v11357_v63 = vpop.eup %11356  ;;  %11376 = vrcp.f32 %v1360_v12  ;;  %v1362_v24 = vadd.f32 1.0, %v11355_v55  ;;  %v12339_v48 = vadd.f32 %v12184_v60, %v1207_v30  ;;  %v1170_v61 = vmul.f32 %v12169_v37, %v12070_v41 }
 0x432   : > { %v11359_v2 = vpop.eup %11358  ;;  %11378 = vrcp.f32 %v1361_v62  ;;  %v1363_v23 = vadd.f32 1.0, %v11357_v63  ;;  %v8863_v33 = vmul.f32 -1.442695, %v12326_v35  ;;  %v1171_v10 = vmul.f32 %v12169_v37, %v12077_v42 }
 0x433   : > { %v11361_v4 = vpop.eup %11360  ;;  %11380 = vrcp.f32 %v1362_v24  ;;  %v8864_v12 = vmul.f32 -1.442695, %v12331_v15  ;;  %v1208_v18 = vmul.f32 %v12174_v43, %v1170_v61  ;;  %v12355_v55 = vmul.f32 %v11359_v2, %v12204_v0  ;;  %v11277_v0 = vld [vmem:[%s15102_s5 + $0x8] sm:$0xff]  }
 0x434   : > { %v11363_v26 = vpop.eup %11362  ;;  %v12344_v28 = vmul.f32 %v11361_v4, %v12207_v11  ;;  %11382 = vrcp.f32 %v1363_v23  ;;  %v8865_v42 = vmul.f32 -1.442695, %v12335_v17  ;;  %v8866_v30 = vmul.f32 -1.442695, %v12339_v48 }
 0x435   : > { %v11365_v29 = vpop.eup %11364  ;;  %v12350_v54 = vmul.f32 %v11363_v26, %v12210_v1  ;;  %11384 = vpow2.f32 %v8857_v21  ;;  %v12391_v4 = vadd.f32 %v12184_v60, %v1208_v18  ;;  %v1173_v26 = vmul.f32 %v12169_v37, %v12091_v47  ;;  %v12415_v47 = vld [vmem:[%s15102_s5 + $0x20] sm:$0xff]  }
 0x436   : > { %v11367_v41 = vpop.eup %11366  ;;  %v12358_v11 = vmul.f32 %v11365_v29, %v12215_v16  ;;  %11386 = vpow2.f32 %v12299_v52  ;;  %v1172_v16 = vmul.f32 %v12169_v37, %v12084_v46  ;;  %v1480_v63 = vrot.slane %v12344_v28, 7 }
 0x437   : > { %v11369_v62 = vpop.eup %11368  ;;  %v12364_v1 = vpack.c.bf16 %v12350_v54, %v12344_v28  ;;  %v12367_v21 = vmul.f32 %v11367_v41, %v12218_v5  ;;  %11388 = vpow2.f32 %v12306_v19  ;;  %v1209_v5 = vmul.f32 %v12174_v43, %v1171_v10 }
 0x438   : > { %v11371_v52 = vpop.eup %11370  ;;  %v12377_v24 = vmul.f32 %v11369_v62, %v12221_v13  ;;  %11390 = vpow2.f32 %v8860_v40  ;;  %v15113_v19 = vrot.slane %v12350_v54, 7  ;;  %v8867_v18 = vmul.f32 -1.442695, %v12391_v4 }
 0x439   : > { %v11373_v2 = vpop.eup %11372  ;;  %9844 = vmatmul.mubr.msk.bf16.vlgmr.msra.gmra.mrb[4].mxu1 %vm628_vm1, %v12364_v1  ;;  %v12385_v23 = vpack.c.bf16 %v12367_v21, %v12358_v11  ;;  %v12388_v46 = vmul.f32 %v11371_v52, %v12224_v14  ;;  %11392 = vpow2.f32 %v8861_v25  ;;  %v12396_v61 = vadd.f32 %v12184_v60, %v1209_v5 }
 0x43a   : > { %v11375_v13 = vpop.eup %11374  ;;  %9876 = vmatpush3.bf16.msra.mxu1 %v12165_v31  ;;  %v12407_v40 = vmul.f32 %v11373_v2, %v12236_v59  ;;  %11394 = vpow2.f32 %v8862_v38  ;;  %v1210_v59 = vmul.f32 %v12174_v43, %v1172_v16  ;;  %v1211_v62 = vmul.f32 %v12174_v43, %v1173_v26 }
 0x43b   : > { %v11377_v10 = vpop.eup %11376  ;;  %9847 = vmatprep.mubr.msk.bf16.mxu1 %vm628_vm1, %v12385_v23  ;;  %v12404_v14 = vpack.c.bf16 %v12388_v46, %v12377_v24  ;;  %v12410_v31 = vmul.f32 %v11375_v13, %v12241_v49  ;;  %9877 = vmatprep.subr.bf16.mxu1 %v11277_v0  ;;  %11396 = vpow2.f32 %v8863_v33  ;;  %v8868_v38 = vmul.f32 -1.442695, %v12396_v61 }
 0x43c   : > { %v11379_v25 = vpop.eup %11378  ;;  %v12418_v29 = vmul.f32 %v11377_v10, %v12255_v20  ;;  %11398 = vpow2.f32 %v8864_v12  ;;  %v12432_v33 = vadd.f32 %v12184_v60, %v1210_v59  ;;  %v1174_v16 = vmul.f32 %v12169_v37, %v12098_v36 }
 0x43d   : > { %15173 = vst [vmem:[#allocation4_spill] sm:$0xff] %v12404_v14  ;;  %v11381_v41 = vpop.eup %11380  ;;  %v12424_v49 = vmul.f32 %v11379_v25, %v12261_v57  ;;  %11400 = vpow2.f32 %v8865_v42  ;;  %v12438_v57 = vpack.c.bf16 %v12410_v31, %v12407_v40  ;;  %v1175_v2 = vmul.f32 %v12169_v37, %v12105_v39 }
 0x43e   : > { %v11383_v52 = vpop.eup %11382  ;;  %v12429_v20 = vmul.f32 %v11381_v41, %v12264_v22  ;;  %9878 = vmatpush3.bf16.msra.mxu1 %v11277_v0  ;;  %11402 = vpow2.f32 %v8866_v30  ;;  %v8869_v36 = vmul.f32 -1.442695, %v12432_v33  ;;  %v12459_v13 = vadd.f32 %v12184_v60, %v1211_v62 }
 0x43f   : > { %v11385_v5 = vpop.eup %11384  ;;  %15174 = vst [vmem:[#allocation5_spill] sm:$0xff] %v12438_v57  ;;  %v12442_v12 = vpack.c.bf16 %v12424_v49, %v12418_v29  ;;  %v12445_v22 = vmul.f32 %v11383_v52, %v12270_v9  ;;  %9911 = vmatprep.subr.bf16.mxu1 %v12415_v47  ;;  %11404 = vpow2.f32 %v8867_v18  ;;  %v1212_v10 = vmul.f32 %v12174_v43, %v1174_v16 }
 0x440   : > { %v11387_v42 = vpop.eup %11386  ;;  %v1364_v0 = vadd.f32 1.0, %v11385_v5  ;;  %11406 = vpow2.f32 %v8868_v38  ;;  %v1213_v39 = vmul.f32 %v12174_v43, %v1175_v2  ;;  %v1176_v25 = vmul.f32 %v12169_v37, %v12112_v45 }
 0x441   : > { %15175 = vst [vmem:[#allocation6_spill] sm:$0xff] %v12442_v12  ;;  %9848 = vmatmul.mubr.msk.bf16.gmra.mrb[8].mxu1 %vm628_vm1, %v12404_v14  ;;  %v12456_v9 = vpack.c.bf16 %v12445_v22, %v12429_v20  ;;  %v1365_v30 = vadd.f32 1.0, %v11387_v42  ;;  %v11389_v26 = vpop.eup %11388  ;;  %v1177_v41 = vmul.f32 %v12169_v37, %v12119_v50  ;;  %v15110_v38 = vrot.slane %v12355_v55, 7 }
 0x442   : > { %9851 = vmatprep.mubr.msk.bf16.mxu1 %vm628_vm1, %v12438_v57  ;;  %11408 = vrcp.f32 %v1364_v0  ;;  %v11391_v18 = vpop.eup %11390  ;;  %v1366_v59 = vadd.f32 1.0, %v11389_v26  ;;  %v12471_v5 = vadd.f32 %v12184_v60, %v1212_v10  ;;  %v12474_v16 = vadd.f32 %v12184_v60, %v1213_v39 }
 0x443   : > { %15176 = vst [vmem:[#allocation7_spill] sm:$0xff] %v12456_v9  ;;  %11410 = vrcp.f32 %v1365_v30  ;;  %v11393_v62 = vpop.eup %11392  ;;  %v1367_v52 = vadd.f32 1.0, %v11391_v18  ;;  %v1214_v0 = vmul.f32 %v12174_v43, %v1176_v25  ;;  %v1215_v2 = vmul.f32 %v12174_v43, %v1177_v41 }
 0x444   : > { %11412 = vpow2.f32 %v8869_v36  ;;  %v11395_v42 = vpop.eup %11394  ;;  %v1368_v45 = vadd.f32 1.0, %v11393_v62  ;;  %v8870_v26 = vmul.f32 -1.442695, %v12459_v13  ;;  %v8871_v36 = vmul.f32 -1.442695, %v12471_v5 }
 0x445   : > { %11414 = vrcp.f32 %v1366_v59  ;;  %v11397_v30 = vpop.eup %11396  ;;  %v1369_v50 = vadd.f32 1.0, %v11395_v42  ;;  %v8872_v39 = vmul.f32 -1.442695, %v12474_v16  ;;  %v12482_v6 = vadd.f32 %v12184_v60, %v1214_v0 }
 0x446   : > { %11416 = vrcp.f32 %v1367_v52  ;;  %v11399_v18 = vpop.eup %11398  ;;  %v1370_v10 = vadd.f32 1.0, %v11397_v30  ;;  %v1543_v41 = vsel %vm1512_vm3, %v1480_v63, %v15113_v19  ;;  %v1544_v62 = vsel %vm1512_vm3, %v15110_v38, %v1480_v63 }
 0x447   : > { %11418 = vrcp.f32 %v1368_v45  ;;  %v11401_v59 = vpop.eup %11400  ;;  %v1371_v25 = vadd.f32 1.0, %v11399_v18  ;;  %v12499_v45 = vadd.f32 %v12184_v60, %v1215_v2  ;;  %v8873_v0 = vmul.f32 -1.442695, %v12482_v6 }
 0x448   : > { %11420 = vrcp.f32 %v1369_v50  ;;  %v11403_v52 = vpop.eup %11402  ;;  %v1372_v42 = vadd.f32 1.0, %v11401_v59  ;;  %v1611_v63 = vsel %vm490_vm4, %v1544_v62, 0.0  ;;  %v1482_v18 = vrot.slane %v12358_v11, 7 }
 0x449   : > { %9852 = vmatmul.mubr.msk.bf16.gmra.mrb[12].mxu1 %vm628_vm1, %v12442_v12  ;;  %11422 = vrcp.f32 %v1370_v10  ;;  %v11405_v30 = vpop.eup %11404  ;;  %v1373_v50 = vadd.f32 1.0, %v11403_v52  ;;  %v12507_v59 = vpack.c.bf16 %v1543_v41, %v1611_v63  ;;  %v1483_v2 = vrot.slane %v12367_v21, 7 }
 0x44a   : > { %9855 = vmatprep.mubr.msk.bf16.mxu1 %vm628_vm1, %v12456_v9  ;;  %11424 = vrcp.f32 %v1371_v25  ;;  %v11407_v38 = vpop.eup %11406  ;;  %v1374_v10 = vadd.f32 1.0, %v11405_v30  ;;  %v15177_v51 = vrot.slane %v12350_v54, 7  ;;  %v1484_v52 = vrot.slane %v12377_v24, 7 }
 0x44b   : > { %11426 = vrcp.f32 %v1372_v42  ;;  %v1375_v19 = vadd.f32 1.0, %v11407_v38  ;;  %v1541_v41 = vsel %vm1512_vm3, %v1482_v18, %v1483_v2 }
 0x44c   : > { %v11409_v3 = vpop.eup %11408  ;;  %11428 = vrcp.f32 %v1373_v50  ;;  %v1542_v25 = vsel %vm1512_vm3, %v15177_v51, %v1482_v18  ;;  %v1485_v51 = vrot.slane %v12388_v46, 7  ;;  %v1486_v18 = vrot.slane %v12407_v40, 7 }
 0x44d   : > { %v11411_v62 = vpop.eup %11410  ;;  %v12516_v8 = vmul.f32 %v11409_v3, %v12284_v7  ;;  %11430 = vrcp.f32 %v1374_v10  ;;  %v1613_v42 = vsel %vm490_vm4, %v1542_v25, 0.0  ;;  %v8874_v3 = vmul.f32 -1.442695, %v12499_v45 }
 0x44e   : > { %v11413_v30 = vpop.eup %11412  ;;  %v12523_v38 = vmul.f32 %v11411_v62, %v12287_v32  ;;  %11432 = vrcp.f32 %v1375_v19  ;;  %v12525_v50 = vpack.c.bf16 %v1541_v41, %v1613_v42  ;;  %v1540_v7 = vsel %vm1512_vm3, %v1483_v2, %v1484_v52 }
 0x44f   : > { %v11415_v63 = vpop.eup %11414  ;;  %11434 = vpow2.f32 %v8870_v26  ;;  %v1539_v19 = vsel %vm1512_vm3, %v1484_v52, %v1485_v51  ;;  %v1615_v2 = vsel %vm490_vm4, %v1540_v7, 0.0  ;;  %v1487_v41 = vrot.slane %v12410_v31, 7 }
 0x450   : > { %v11417_v10 = vpop.eup %11416  ;;  %v12534_v25 = vpack.c.bf16 %v12523_v38, %v12516_v8  ;;  %v12537_v32 = vmul.f32 %v11415_v63, %v12294_v56  ;;  %11436 = vpow2.f32 %v8871_v36  ;;  %v1376_v9 = vadd.f32 1.0, %v11413_v30 }
 0x451   : > { %v11419_v26 = vpop.eup %11418  ;;  %v12542_v62 = vmul.f32 %v11417_v10, %v12302_v58  ;;  %11438 = vpow2.f32 %v8872_v39  ;;  %v12549_v56 = vpack.c.bf16 %v1539_v19, %v1615_v2  ;;  %v1538_v36 = vsel %vm1512_vm3, %v1485_v51, %v1486_v18 }
 0x452   : > { %15178 = vst [vmem:[#allocation8_spill] sm:$0xff] %v12534_v25  ;;  %v11421_v42 = vpop.eup %11420  ;;  %9856 = vmatmul.mubr.msk.bf16.gmra.mrb[16].mxu1 %vm628_vm1, %v12534_v25  ;;  %v12558_v63 = vmul.f32 %v11419_v26, %v12311_v27  ;;  %11440 = vpow2.f32 %v8873_v0  ;;  %v1537_v7 = vsel %vm1512_vm3, %v1486_v18, %v1487_v41  ;;  %v1617_v30 = vsel %vm490_vm4, %v1538_v36, 0.0 }
 0x453   : > { %v11423_v52 = vpop.eup %11422  ;;  %v12555_v58 = vpack.c.bf16 %v12542_v62, %v12537_v32  ;;  %v12563_v39 = vmul.f32 %v11421_v42, %v12322_v34  ;;  %11442 = vpow2.f32 %v8874_v3  ;;  %v1488_v51 = vrot.slane %v12418_v29, 7 }
 0x454   : > { %v11425_v10 = vpop.eup %11424  ;;  %v12571_v27 = vmul.f32 %v11423_v52, %v12326_v35  ;;  %v12576_v18 = vpack.c.bf16 %v1537_v7, %v1617_v30  ;;  %v1489_v34 = vrot.slane %v12424_v49, 7  ;;  %v1490_v2 = vrot.slane %v12429_v20, 7 }
 0x455   : > { %15179 = vst [vmem:[#allocation9_spill] sm:$0xff] %v12555_v58  ;;  %v11427_v19 = vpop.eup %11426  ;;  %9859 = vmatprep.mubr.msk.bf16.mxu1 %vm628_vm1, %v12555_v58  ;;  %v12574_v0 = vmul.f32 %v11425_v10, %v12331_v15  ;;  %v1536_v26 = vsel %vm1512_vm3, %v1487_v41, %v1488_v51  ;;  %v1491_v42 = vrot.slane %v12445_v22, 7  ;;  %11444 = vrcp.f32 %v1376_v9 }
 0x456   : > { %v11429_v3 = vpop.eup %11428  ;;  %v1535_v35 = vsel %vm1512_vm3, %v1488_v51, %v1489_v34  ;;  %v1619_v15 = vsel %vm490_vm4, %v1536_v26, 0.0  ;;  %v12589_v7 = vpack.c.bf16 %v12563_v39, %v12558_v63  ;;  %v1534_v30 = vsel %vm1512_vm3, %v1489_v34, %v1490_v2 }
 0x457   : > { %v11431_v36 = vpop.eup %11430  ;;  %v12591_v10 = vpack.c.bf16 %v1535_v35, %v1619_v15  ;;  %v1533_v41 = vsel %vm1512_vm3, %v1490_v2, %v1491_v42  ;;  %v12599_v51 = vpack.c.bf16 %v12574_v0, %v12571_v27  ;;  %v1621_v26 = vsel %vm490_vm4, %v1534_v30, 0.0 }
 0x458   : > { %v11433_v52 = vpop.eup %11432  ;;  %v1492_v58 = vrot.slane %v12516_v8, 7  ;;  %v12606_v15 = vpack.c.bf16 %v1533_v41, %v1621_v26  ;;  %v15130_v12 = vrot.slane %v12523_v38, 7  ;;  %v12612_v34 = vmul.f32 %v11427_v19, %v12335_v17 }
 0x459   : > { %v11435_v9 = vpop.eup %11434  ;;  %v12615_v2 = vmul.f32 %v11429_v3, %v12339_v48  ;;  %v12629_v48 = vmul.f32 %v11433_v52, %v12396_v61  ;;  %v12634_v26 = vadd.s32 8, %v11914_v44  ;;  %v15131_v52 = vrot.slane %v12344_v28, 1  ;;  %v11306_v44 = vld [vmem:[%s15103_s6 + $0x70] sm:$0xff]  }
 0x45a   : > { %v11437_v25 = vpop.eup %11436  ;;  %9860 = vmatmul.mubr.msk.bf16.gmra.mrb[20].mxu1 %vm628_vm1, %v12589_v7  ;;  %v1377_v35 = vadd.f32 1.0, %v11435_v9  ;;  %v1532_v57 = vsel %vm1512_vm3, %v1491_v42, %v1492_v58  ;;  %v12620_v9 = vmul.f32 %v11431_v36, %v12391_v4  ;;  %v1531_v41 = vsel %vm1512_vm3, %v1492_v58, %v15130_v12 }
 0x45b   : > { %9863 = vmatprep.mubr.msk.bf16.mxu1 %vm628_vm1, %v12599_v51  ;;  %v1378_v30 = vadd.f32 1.0, %v11437_v25  ;;  %v11439_v14 = vpop.eup %11438  ;;  %v1623_v17 = vsel %vm490_vm4, %v1532_v57, 0.0  ;;  %15180 = vst [vmem:[#allocation10_spill] sm:$0xff] %v12634_v26  ;;  %v2221_v58 = vrot.slane %v12350_v54, 1  ;;  %v12640_v57 = vpack.c.bf16 %v12615_v2, %v12612_v34 }
 0x45c   : > { %11446 = vrcp.f32 %v1377_v35  ;;  %v11441_v19 = vpop.eup %11440  ;;  %v1379_v25 = vadd.f32 1.0, %v11439_v14  ;;  %v12631_v3 = vpack.c.bf16 %v1531_v41, %v1623_v17  ;;  %v2222_v35 = vrot.slane %v12358_v11, 1 }
 0x45d   : > { %11448 = vrcp.f32 %v1378_v30  ;;  %v11443_v42 = vpop.eup %11442  ;;  %v1380_v4 = vadd.f32 1.0, %v11441_v19  ;;  %v12645_v14 = vpack.c.bf16 %v12629_v48, %v12620_v9  ;;  %vm493_vm6 = vcmp.le.s32.totalorder %v12634_v26, 14 }
 0x45e   : > { %11450 = vrcp.f32 %v1379_v25  ;;  %v1381_v36 = vadd.f32 1.0, %v11443_v42  ;;  %v2282_v54 = vsel %vm2252_vm5, %v2221_v58, %v2222_v35  ;;  %v2283_v41 = vsel %vm2252_vm5, %v15131_v52, %v2221_v58 }
 0x45f   : > { %11452 = vrcp.f32 %v1380_v4  ;;  %v11445_v61 = vpop.eup %11444  ;;  %15181 = vst [vmem:[#allocation11_spill] sm:$0xff] %v12645_v14  ;;  %v2352_v25 = vsel %vm493_vm6, %v2282_v54, 0.0  ;;  %v2223_v42 = vrot.slane %v12367_v21, 1  ;;  %v2226_v54 = vrot.slane %v12407_v40, 1 }
 0x460   : > { %11454 = vrcp.f32 %v1381_v36  ;;  %v12656_v11 = vmul.f32 %v11445_v61, %v12432_v33  ;;  %v12671_v33 = vpack.c.bf16 %v2352_v25, %v2283_v41  ;;  %v2224_v36 = vrot.slane %v12377_v24, 1 }
 0x461   : > { %v2225_v61 = vrot.slane %v12388_v46, 1 }
 0x462   : > { %9864 = vmatmul.mubr.msk.bf16.gmra.mrb[24].mxu1 %vm628_vm1, %v12640_v57 }
 0x463   : > { %9867 = vmatprep.mubr.msk.bf16.mxu1 %vm628_vm1, %v12645_v14  ;;  %v2279_v24 = vsel %vm2252_vm5, %v2224_v36, %v2225_v61  ;;  %v2278_v40 = vsel %vm2252_vm5, %v2225_v61, %v2226_v54  ;;  %v12716_v61 = vmul.f32 %v12169_v37, %v12126_v53  ;;  %v2232_v37 = vrot.slane %v12516_v8, 1 }
 0x464   : > { %v2356_v25 = vsel %vm493_vm6, %v2278_v40, 0.0 }
 0x466   : > { %v11447_v30 = vpop.eup %11446 }
 0x467   : > { %v11449_v17 = vpop.eup %11448  ;;  %v12663_v19 = vmul.f32 %v11447_v30, %v12459_v13  ;;  %v2281_v13 = vsel %vm2252_vm5, %v2222_v35, %v2223_v42  ;;  %v2280_v30 = vsel %vm2252_vm5, %v2223_v42, %v2224_v36  ;;  %v12711_v42 = vpack.c.bf16 %v2356_v25, %v2279_v24 }
 0x468   : > { %v12669_v4 = vmul.f32 %v11449_v17, %v12471_v5  ;;  %v11451_v12 = vpop.eup %11450  ;;  %v2354_v41 = vsel %vm493_vm6, %v2280_v30, 0.0  ;;  %v2227_v36 = vrot.slane %v12410_v31, 1  ;;  %v2230_v30 = vrot.slane %v12429_v20, 1 }
 0x469   : > { %v12677_v58 = vpack.c.bf16 %v12663_v19, %v12656_v11  ;;  %v11453_v21 = vpop.eup %11452  ;;  %v12683_v5 = vmul.f32 %v11451_v12, %v12474_v16  ;;  %v12705_v17 = vpack.c.bf16 %v2354_v41, %v2281_v13  ;;  %v2231_v24 = vrot.slane %v12445_v22, 1 }
 0x46a   : > { %v11455_v46 = vpop.eup %11454  ;;  %v12700_v16 = vmul.f32 %v11453_v21, %v12482_v6  ;;  %v2228_v6 = vrot.slane %v12418_v29, 1  ;;  %v2277_v21 = vsel %vm2252_vm5, %v2226_v54, %v2227_v36  ;;  %v2233_v29 = vrot.slane %v12523_v38, 1 }
 0x46b   : > { %15182 = vst [vmem:[#allocation12_spill] sm:$0xff] %v12677_v58  ;;  %9868 = vmatmul.mubr.msk.bf16.gmra.mrb[28].mxu1 %vm628_vm1, %v12677_v58  ;;  %v12697_v12 = vpack.c.bf16 %v12683_v5, %v12669_v4  ;;  %v12703_v35 = vmul.f32 %v11455_v46, %v12499_v45  ;;  %v2229_v45 = vrot.slane %v12424_v49, 1  ;;  %v2273_v22 = vsel %vm2252_vm5, %v2230_v30, %v2231_v24 }
 0x46c   : > { %v2276_v31 = vsel %vm2252_vm5, %v2227_v36, %v2228_v6  ;;  %v2234_v54 = vrot.slane %v12537_v32, 1  ;;  %v15185_v46 = vmov 0.0|0.0   ;;  %v2272_v40 = vsel %vm2252_vm5, %v2231_v24, %v2232_v37 }
 0x46d   : > { %15183 = vst [vmem:[#allocation13_spill] sm:$0xff] %v12697_v12  ;;  %9871 = vmatprep.mubr.msk.bf16.mxu1 %vm628_vm1, %v12697_v12  ;;  %v12722_v13 = vpack.c.bf16 %v12703_v35, %v12700_v16  ;;  %v2275_v53 = vsel %vm2252_vm5, %v2228_v6, %v2229_v45  ;;  %v2358_v49 = vsel %vm493_vm6, %v2276_v31, 0.0  ;;  %v2274_v20 = vsel %vm2252_vm5, %v2229_v45, %v2230_v30 }
 0x46e   : > { %v12744_v41 = vpack.c.bf16 %v2358_v49, %v2277_v21  ;;  %v2360_v8 = vsel %vm493_vm6, %v2274_v20, 0.0  ;;  %v2271_v25 = vsel %vm2252_vm5, %v2232_v37, %v2233_v29  ;;  %v2362_v6 = vsel %vm493_vm6, %v2272_v40, 0.0 }
 0x46f   : > { %15184 = vst [vmem:[#allocation14_spill] sm:$0xff] %v12722_v13  ;;  %v12752_v36 = vpack.c.bf16 %v2360_v8, %v2275_v53  ;;  %v2270_v45 = vsel %vm2252_vm5, %v2233_v29, %v2234_v54  ;;  %v2235_v21 = vrot.slane %v12542_v62, 1  ;;  %v12759_v30 = vpack.c.bf16 %v2362_v6, %v2273_v22 }
 0x470   : > { %v2364_v31 = vsel %vm493_vm6, %v2270_v45, 0.0  ;;  %v2236_v24 = vrot.slane %v12558_v63, 1  ;;  %v2237_v49 = vrot.slane %v12563_v39, 1  ;;  %v2238_v20 = vrot.slane %v12571_v27, 1 }
 0x471   : > { %v12765_v37 = vpack.c.bf16 %v2364_v31, %v2271_v25  ;;  %v2269_v53 = vsel %vm2252_vm5, %v2234_v54, %v2235_v21  ;;  %v2239_v29 = vrot.slane %v12574_v0, 1  ;;  %v2240_v40 = vrot.slane %v12612_v34, 1  ;;  %v11279_v25 = vld [vmem:[%s15102_s5 + $0x28] sm:$0xff]  }
 0x472   : > { %v2268_v22 = vsel %vm2252_vm5, %v2235_v21, %v2236_v24  ;;  %v2267_v8 = vsel %vm2252_vm5, %v2236_v24, %v2237_v49  ;;  %v2241_v6 = vrot.slane %v12615_v2, 1  ;;  %v2266_v45 = vsel %vm2252_vm5, %v2237_v49, %v2238_v20 }
 0x473   : > { %9872 = vmatmul.mubr.msk.bf16.gmra.mrb[32].mxu1 %vm628_vm1, %v12722_v13  ;;  %v2366_v54 = vsel %vm493_vm6, %v2268_v22, 0.0  ;;  %v2265_v21 = vsel %vm2252_vm5, %v2238_v20, %v2239_v29  ;;  %v2242_v31 = vrot.slane %v12620_v9, 1  ;;  %v2368_v52 = vsel %vm493_vm6, %v2266_v45, 0.0 }
 0x474   : > { %9879 = vmatprep.mubr.bf16.mxu1 %v15185_v46  ;;  %v12787_v24 = vpack.c.bf16 %v2366_v54, %v2269_v53  ;;  %v2264_v13 = vsel %vm2252_vm5, %v2239_v29, %v2240_v40  ;;  %v2263_v12 = vsel %vm2252_vm5, %v2240_v40, %v2241_v6  ;;  %v12797_v49 = vpack.c.bf16 %v2368_v52, %v2267_v8 }
 0x475   : > { %v2370_v20 = vsel %vm493_vm6, %v2264_v13, 0.0  ;;  %v2262_v53 = vsel %vm2252_vm5, %v2241_v6, %v2242_v31  ;;  %v2243_v22 = vrot.slane %v12629_v48, 1  ;;  %v2244_v52 = vrot.slane %v12656_v11, 1  ;;  %v12816_v13 = vld [vmem:[%s15102_s5 + $0x30] sm:$0xff]  }
 0x476   : > { %v12807_v29 = vpack.c.bf16 %v2370_v20, %v2265_v21  ;;  %v2372_v40 = vsel %vm493_vm6, %v2262_v53, 0.0  ;;  %v2245_v8 = vrot.slane %v12663_v19, 1  ;;  %v2246_v54 = vrot.slane %v12669_v4, 1 }
 0x477   : > { %v12818_v6 = vpack.c.bf16 %v2372_v40, %v2263_v12  ;;  %v2247_v45 = vrot.slane %v12683_v5, 1  ;;  %v2260_v21 = vsel %vm2252_vm5, %v2243_v22, %v2244_v52  ;;  %v2248_v53 = vrot.slane %v12700_v16, 1 }
 0x478   : > { %v2259_v20 = vsel %vm2252_vm5, %v2244_v52, %v2245_v8  ;;  %v1216_v58 = vmul.f32 %v12174_v43, %v12716_v61  ;;  %v2374_v12 = vsel %vm493_vm6, %v2260_v21, 0.0  ;;  %v2249_v14 = vrot.slane %v12703_v35, 1 }
 0x479   : > { %v2257_v40 = vsel %vm2252_vm5, %v2246_v54, %v2247_v45  ;;  %v2256_v43 = vsel %vm2252_vm5, %v2247_v45, %v2248_v53  ;;  %v15186_v45 = vrot.slane %v12523_v38, 7 }
 0x47a   : > { %v1254_v61 = vadd.f32 %v12184_v60, %v1216_v58  ;;  %v1494_v60 = vrot.slane %v12537_v32, 7  ;;  %v1495_v58 = vrot.slane %v12542_v62, 7  ;;  %v1497_v62 = vrot.slane %v12563_v39, 7 }
 0x47b   : > { %9880 = vmatmul.mubr.msk.bf16.vlgmr.msra.gmra.mrb[4].mxu1 %vm628_vm1, %v12507_v59 }
 0x47c   : > { %9912 = vmatpush3.bf16.msra.mxu1 %v12415_v47  ;;  %9883 = vmatprep.mubr.msk.bf16.mxu1 %vm628_vm1, %v12525_v50  ;;  %v2261_v47 = vsel %vm2252_vm5, %v2242_v31, %v2243_v22  ;;  %v2258_v31 = vsel %vm2252_vm5, %v2245_v8, %v2246_v54  ;;  %v2378_v8 = vsel %vm493_vm6, %v2256_v43, 0.0  ;;  %v8875_v54 = vmul.f32 -1.442695, %v1254_v61 }
 0x47d   : > { %9913 = vmatprep.subr.bf16.mxu1 %v11279_v25  ;;  %v12838_v22 = vpack.c.bf16 %v2374_v12, %v2261_v47  ;;  %v2376_v52 = vsel %vm493_vm6, %v2258_v31, 0.0  ;;  %v12856_v47 = vpack.c.bf16 %v2378_v8, %v2257_v40  ;;  %v1529_v12 = vsel %vm1512_vm3, %v1494_v60, %v1495_v58 }
 0x47e   : > { %v12846_v21 = vpack.c.bf16 %v2376_v52, %v2259_v20  ;;  %11456 = vpow2.f32 %v8875_v54  ;;  %v1530_v20 = vsel %vm1512_vm3, %v15186_v45, %v1494_v60  ;;  %v1496_v31 = vrot.slane %v12558_v63, 7 }
 0x47f   : > { %v1625_v32 = vsel %vm490_vm4, %v1530_v20, 0.0  ;;  %v1498_v52 = vrot.slane %v12571_v27, 7  ;;  %v1499_v8 = vrot.slane %v12574_v0, 7  ;;  %v1500_v0 = vrot.slane %v12612_v34, 7 }
 0x480   : > { %9914 = vmatpush3.bf16.msra.mxu1 %v11279_v25  ;;  %v12854_v25 = vsel %vm2252_vm5, %v2248_v53, %v2249_v14  ;;  %v12879_v43 = vpack.c.bf16 %v1529_v12, %v1625_v32  ;;  %v1528_v38 = vsel %vm1512_vm3, %v1495_v58, %v1496_v31  ;;  %v1527_v39 = vsel %vm1512_vm3, %v1496_v31, %v1497_v62 }
 0x481   : > { %9947 = vmatprep.subr.bf16.mxu1 %v12816_v13  ;;  %v1526_v63 = vsel %vm1512_vm3, %v1497_v62, %v1498_v52  ;;  %v1627_v27 = vsel %vm490_vm4, %v1528_v38, 0.0  ;;  %v1525_v54 = vsel %vm1512_vm3, %v1498_v52, %v1499_v8  ;;  %v2251_v58 = vrot.slane %v12355_v55, 1 }
 0x482   : > { %v1629_v60 = vsel %vm490_vm4, %v1526_v63, 0.0  ;;  %v1501_v45 = vrot.slane %v12615_v2, 7  ;;  %v1502_v20 = vrot.slane %v12620_v9, 7  ;;  %v1524_v31 = vsel %vm1512_vm3, %v1499_v8, %v1500_v0 }
 0x483   : > { %9884 = vmatmul.mubr.msk.bf16.gmra.mrb[8].mxu1 %vm628_vm1, %v12549_v56  ;;  %v12904_v12 = vpack.c.bf16 %v1525_v54, %v1629_v60  ;;  %v15187_v34 = vrot.slane %v12344_v28, 1  ;;  %v1509_v62 = vrot.slane %v12703_v35, 7  ;;  %v1631_v28 = vsel %vm490_vm4, %v1524_v31, 0.0 }
 0x484   : > { %9887 = vmatprep.mubr.msk.bf16.mxu1 %vm628_vm1, %v12576_v18  ;;  %v1522_v9 = vsel %vm1512_vm3, %v1501_v45, %v1502_v20  ;;  %v1523_v38 = vsel %vm1512_vm3, %v1500_v0, %v1501_v45  ;;  %v1505_v54 = vrot.slane %v12663_v19, 7  ;;  %v15188_v0 = vrot.slane %v12355_v55, 7 }
 0x485   : > { %v2284_v2 = vsel %vm2252_vm5, %v2251_v58, %v15187_v34  ;;  %v12949_v31 = vpack.c.bf16 %v1523_v38, %v1631_v28 }
 0x488   : > { %v11457_v53 = vpop.eup %11456 }
 0x489   : > { %v1382_v40 = vadd.f32 1.0, %v11457_v53  ;;  %v12902_v53 = vpack.c.bf16 %v1527_v39, %v1627_v27  ;;  %v3274_v39 = vsel %vm493_vm6, %v2284_v2, 0.0 }
 0x48b   : > { %9888 = vmatmul.mubr.msk.bf16.gmra.mrb[12].mxu1 %vm628_vm1, %v12591_v10  ;;  %11458 = vrcp.f32 %v1382_v40  ;;  %v1503_v40 = vrot.slane %v12629_v48, 7  ;;  %v1504_v48 = vrot.slane %v12656_v11, 7  ;;  %v1506_v11 = vrot.slane %v12669_v4, 7 }
 0x48c   : > { %9891 = vmatprep.mubr.msk.bf16.mxu1 %vm628_vm1, %v12606_v15 }
 0x48d   : > { %v1521_v27 = vsel %vm1512_vm3, %v1502_v20, %v1503_v40  ;;  %v1518_v38 = vsel %vm1512_vm3, %v1505_v54, %v1506_v11 }
 0x493   : > { %9892 = vmatmul.mubr.msk.bf16.gmra.mrb[16].mxu1 %vm628_vm1, %v12631_v3 }
 0x494   : > { %9895 = vmatprep.mubr.msk.bf16.mxu1 %vm628_vm1, %v12879_v43 }
 0x495   : > { %v11459_v32 = vpop.eup %11458 }
 0x496   : > { %v12920_v52 = vmul.f32 %v11459_v32, %v1254_v61  ;;  %v1633_v61 = vsel %vm490_vm4, %v1522_v9, 0.0  ;;  %v1507_v9 = vrot.slane %v12683_v5, 7  ;;  %v1508_v5 = vrot.slane %v12700_v16, 7 }
 0x497   : > { %v12957_v35 = vpack.c.bf16 %v1521_v27, %v1633_v61 }
 0x498   : > { %v2250_v8 = vrot.slane %v12920_v52, 1  ;;  %v1510_v63 = vrot.slane %v12920_v52, 7  ;;  %v1515_v27 = vsel %vm1512_vm3, %v1508_v5, %v1509_v62 }
 0x49a   : > { %v2254_v60 = vsel %vm2252_vm5, %v2249_v14, %v2250_v8  ;;  %v1513_v45 = vsel %vm1512_vm3, %v1510_v63, %v15188_v0  ;;  %v1514_v20 = vsel %vm1512_vm3, %v1509_v62, %v1510_v63  ;;  %v2253_v32 = vsel %vm2252_vm5, %v2250_v8, %v2251_v58  ;;  %v11282_v62 = vld [vmem:[%s15102_s5 + $0x40] sm:$0xff]  }
 0x49b   : > { %9896 = vmatmul.mubr.msk.bf16.gmra.mrb[20].mxu1 %vm628_vm1, %v12902_v53  ;;  %v2380_v19 = vsel %vm493_vm6, %v2254_v60, 0.0  ;;  %v2689_v4 = vsel %vm490_vm4, %v1514_v20, 0.0  ;;  %v12955_v14 = vpack.c.bf16 %v3274_v39, %v2253_v32  ;;  %v1520_v58 = vsel %vm1512_vm3, %v1503_v40, %v1504_v48  ;;  %v15189_v60 = vld [vmem:[#allocation4_spill] sm:$0xff]  ;;  %v11286_v0 = vld [vmem:[%s15102_s5 + $0x60] sm:$0xff]   ;;  %v15192_v20 = vld [vmem:[#allocation7_spill] sm:$0xff] }
 0x49c   : > { %9899 = vmatprep.mubr.msk.bf16.mxu1 %vm628_vm1, %v12904_v12  ;;  %v12960_v34 = vpack.c.bf16 %v2380_v19, %v12854_v25  ;;  %v12962_v2 = vpack.c.bf16 %v1513_v45, %v2689_v4  ;;  %v1519_v25 = vsel %vm1512_vm3, %v1504_v48, %v1505_v54  ;;  %v1635_v28 = vsel %vm490_vm4, %v1520_v58, 0.0  ;;  %v11281_v54 = vld [vmem:[%s15102_s5 + $0x38] sm:$0xff]   ;;  %v15193_v32 = vld [vmem:[#allocation8_spill] sm:$0xff]  ;;  %v15195_v4 = vld [vmem:[#allocation11_spill] sm:$0xff] }
 0x49d   : > { %v1517_v8 = vsel %vm1512_vm3, %v1506_v11, %v1507_v9  ;;  %v1637_v40 = vsel %vm490_vm4, %v1518_v38, 0.0  ;;  %v12982_v63 = vpack.c.bf16 %v1519_v25, %v1635_v28  ;;  %v1516_v48 = vsel %vm1512_vm3, %v1507_v9, %v1508_v5  ;;  %v11284_v11 = vld [vmem:[%s15102_s5 + $0x50] sm:$0xff]   ;;  %v15190_v45 = vld [vmem:[#allocation5_spill] sm:$0xff]  ;;  %v15198_v38 = vld [vmem:[#allocation14_spill] sm:$0xff] }
 0x49e   : > { %v12984_v39 = vpack.c.bf16 %v1517_v8, %v1637_v40  ;;  %v1639_v61 = vsel %vm490_vm4, %v1516_v48, 0.0  ;;  %v15194_v19 = vld [vmem:[#allocation9_spill] sm:$0xff]  ;;  %v15196_v58 = vld [vmem:[#allocation12_spill] sm:$0xff]  ;;  %v13114_v25 = vpack.c.bf16 %v12355_v55, %v12920_v52  ;;  %v11287_v28 = vld [vmem:[%s15102_s5 + $0x68] sm:$0xff]  }
 0x49f   : > { %v12996_v16 = vpack.c.bf16 %v1515_v27, %v1639_v61  ;;  %v15197_v9 = vld [vmem:[#allocation13_spill] sm:$0xff]  ;;  %v11288_v55 = vld [vmem:[%s15102_s5 + $0x70] sm:$0xff]   ;;  %v11290_v52 = vld [vmem:[%s15102_s5 + $0x80] sm:$0xff]  }
 0x4a3   : > { %9900 = vmatmul.mubr.msk.bf16.gmra.mrb[24].mxu1 %vm628_vm1, %v12949_v31 }
 0x4a4   : > { %9903 = vmatprep.mubr.msk.bf16.mxu1 %vm628_vm1, %v12957_v35 }
 0x4ab   : > { %9904 = vmatmul.mubr.msk.bf16.gmra.mrb[28].mxu1 %vm628_vm1, %v12982_v63 }
 0x4ac   : > { %9907 = vmatprep.mubr.msk.bf16.mxu1 %vm628_vm1, %v12984_v39 }
 0x4b3   : > { %9908 = vmatmul.mubr.msk.bf16.gmra.mrb[32].mxu1 %vm628_vm1, %v12996_v16 }
 0x4b4   : > { %9915 = vmatprep.mubr.bf16.mxu1 %v15185_v46 }
 0x4bb   : > { %9916 = vmatmul.mubr.msk.bf16.vlgmr.msra.gmra.mrb[4].mxu1 %vm628_vm1, %v12671_v33 }
 0x4bc   : > { %9948 = vmatpush3.bf16.msra.mxu1 %v12816_v13  ;;  %9919 = vmatprep.mubr.msk.bf16.mxu1 %vm628_vm1, %v12705_v17  ;;  %v11283_v13 = vld [vmem:[%s15102_s5 + $0x48] sm:$0xff]  }
 0x4bd   : > { %9949 = vmatprep.subr.bf16.mxu1 %v11281_v54 }
 0x4c0   : > { %9950 = vmatpush3.bf16.msra.mxu1 %v11281_v54 }
 0x4c1   : > { %9983 = vmatprep.subr.bf16.mxu1 %v11282_v62 }
 0x4c3   : > { %9920 = vmatmul.mubr.msk.bf16.gmra.mrb[8].mxu1 %vm628_vm1, %v12711_v42 }
 0x4c4   : > { %9923 = vmatprep.mubr.msk.bf16.mxu1 %vm628_vm1, %v12744_v41 }
 0x4cb   : > { %9924 = vmatmul.mubr.msk.bf16.gmra.mrb[12].mxu1 %vm628_vm1, %v12752_v36 }
 0x4cc   : > { %9927 = vmatprep.mubr.msk.bf16.mxu1 %vm628_vm1, %v12759_v30 }
 0x4d3   : > { %9928 = vmatmul.mubr.msk.bf16.gmra.mrb[16].mxu1 %vm628_vm1, %v12765_v37 }
 0x4d4   : > { %9931 = vmatprep.mubr.msk.bf16.mxu1 %vm628_vm1, %v12787_v24 }
 0x4db   : > { %9932 = vmatmul.mubr.msk.bf16.gmra.mrb[20].mxu1 %vm628_vm1, %v12797_v49 }
 0x4dc   : > { %9935 = vmatprep.mubr.msk.bf16.mxu1 %vm628_vm1, %v12807_v29 }
 0x4e3   : > { %9936 = vmatmul.mubr.msk.bf16.gmra.mrb[24].mxu1 %vm628_vm1, %v12818_v6 }
 0x4e4   : > { %9939 = vmatprep.mubr.msk.bf16.mxu1 %vm628_vm1, %v12838_v22 }
 0x4eb   : > { %9940 = vmatmul.mubr.msk.bf16.gmra.mrb[28].mxu1 %vm628_vm1, %v12846_v21 }
 0x4ec   : > { %9943 = vmatprep.mubr.msk.bf16.mxu1 %vm628_vm1, %v12856_v47 }
 0x4f3   : > { %9944 = vmatmul.mubr.msk.bf16.gmra.mrb[32].mxu1 %vm628_vm1, %v12960_v34 }
 0x4f4   : > { %9951 = vmatprep.mubr.msk.bf16.mxu1 %vm628_vm1, %v12507_v59  ;;  %v11285_v59 = vld [vmem:[%s15102_s5 + $0x58] sm:$0xff]  }
 0x4fb   : > { %9952 = vmatmul.mubr.msk.bf16.vlgmr.msra.gmra.mrb[4].mxu1 %vm628_vm1, %v12525_v50 }
 0x4fc   : > { %9984 = vmatpush3.bf16.msra.mxu1 %v11282_v62  ;;  %9955 = vmatprep.mubr.msk.bf16.mxu1 %vm628_vm1, %v12549_v56 }
 0x4fd   : > { %9985 = vmatprep.subr.bf16.mxu1 %v11283_v13 }
 0x500   : > { %9986 = vmatpush3.bf16.msra.mxu1 %v11283_v13 }
 0x501   : > { %10019 = vmatprep.subr.bf16.mxu1 %v11284_v11 }
 0x503   : > { %9956 = vmatmul.mubr.msk.bf16.gmra.mrb[8].mxu1 %vm628_vm1, %v12576_v18 }
 0x504   : > { %9959 = vmatprep.mubr.msk.bf16.mxu1 %vm628_vm1, %v12591_v10 }
 0x50b   : > { %9960 = vmatmul.mubr.msk.bf16.gmra.mrb[12].mxu1 %vm628_vm1, %v12606_v15 }
 0x50c   : > { %9963 = vmatprep.mubr.msk.bf16.mxu1 %vm628_vm1, %v12631_v3 }
 0x513   : > { %9964 = vmatmul.mubr.msk.bf16.gmra.mrb[16].mxu1 %vm628_vm1, %v12879_v43 }
 0x514   : > { %9967 = vmatprep.mubr.msk.bf16.mxu1 %vm628_vm1, %v12902_v53 }
 0x51b   : > { %9968 = vmatmul.mubr.msk.bf16.gmra.mrb[20].mxu1 %vm628_vm1, %v12904_v12 }
 0x51c   : > { %9971 = vmatprep.mubr.msk.bf16.mxu1 %vm628_vm1, %v12949_v31 }
 0x523   : > { %9972 = vmatmul.mubr.msk.bf16.gmra.mrb[24].mxu1 %vm628_vm1, %v12957_v35 }
 0x524   : > { %9975 = vmatprep.mubr.msk.bf16.mxu1 %vm628_vm1, %v12982_v63 }
 0x52b   : > { %9976 = vmatmul.mubr.msk.bf16.gmra.mrb[28].mxu1 %vm628_vm1, %v12984_v39 }
 0x52c   : > { %9979 = vmatprep.mubr.msk.bf16.mxu1 %vm628_vm1, %v12996_v16 }
 0x533   : > { %9980 = vmatmul.mubr.msk.bf16.gmra.mrb[32].mxu1 %vm628_vm1, %v12962_v2 }
 0x534   : > { %9987 = vmatprep.mubr.msk.bf16.mxu1 %vm628_vm1, %v12364_v1  ;;  %v15191_v1 = vld [vmem:[#allocation6_spill] sm:$0xff] }
 0x53b   : > { %9988 = vmatmul.mubr.msk.bf16.vlgmr.msra.gmra.mrb[4].mxu1 %vm628_vm1, %v12385_v23 }
 0x53c   : > { %10020 = vmatpush3.bf16.msra.mxu1 %v11284_v11  ;;  %9991 = vmatprep.mubr.msk.bf16.mxu1 %vm628_vm1, %v15189_v60 }
 0x53d   : > { %10021 = vmatprep.subr.bf16.mxu1 %v11285_v59 }
 0x540   : > { %10022 = vmatpush3.bf16.msra.mxu1 %v11285_v59 }
 0x541   : > { %10055 = vmatprep.subr.bf16.mxu1 %v11286_v0 }
 0x543   : > { %9992 = vmatmul.mubr.msk.bf16.gmra.mrb[8].mxu1 %vm628_vm1, %v15190_v45 }
 0x544   : > { %9995 = vmatprep.mubr.msk.bf16.mxu1 %vm628_vm1, %v15191_v1 }
 0x54b   : > { %9996 = vmatmul.mubr.msk.bf16.gmra.mrb[12].mxu1 %vm628_vm1, %v15192_v20 }
 0x54c   : > { %9999 = vmatprep.mubr.msk.bf16.mxu1 %vm628_vm1, %v15193_v32 }
 0x553   : > { %10000 = vmatmul.mubr.msk.bf16.gmra.mrb[16].mxu1 %vm628_vm1, %v15194_v19 }
 0x554   : > { %10003 = vmatprep.mubr.msk.bf16.mxu1 %vm628_vm1, %v12589_v7 }
 0x55b   : > { %10004 = vmatmul.mubr.msk.bf16.gmra.mrb[20].mxu1 %vm628_vm1, %v12599_v51 }
 0x55c   : > { %10007 = vmatprep.mubr.msk.bf16.mxu1 %vm628_vm1, %v12640_v57 }
 0x563   : > { %10008 = vmatmul.mubr.msk.bf16.gmra.mrb[24].mxu1 %vm628_vm1, %v15195_v4 }
 0x564   : > { %10011 = vmatprep.mubr.msk.bf16.mxu1 %vm628_vm1, %v15196_v58 }
 0x56b   : > { %10012 = vmatmul.mubr.msk.bf16.gmra.mrb[28].mxu1 %vm628_vm1, %v15197_v9 }
 0x56c   : > { %10015 = vmatprep.mubr.msk.bf16.mxu1 %vm628_vm1, %v15198_v38 }
 0x573   : > { %10016 = vmatmul.mubr.msk.bf16.gmra.mrb[32].mxu1 %vm628_vm1, %v13114_v25 }
 0x574   : > { %10023 = vmatprep.mubr.msk.bf16.mxu1 %vm628_vm1, %v12671_v33  ;;  %v11289_v33 = vld [vmem:[%s15102_s5 + $0x78] sm:$0xff]  }
 0x57b   : > { %10024 = vmatmul.mubr.msk.bf16.vlgmr.msra.gmra.mrb[4].mxu1 %vm628_vm1, %v12705_v17 }
 0x57c   : > { %10056 = vmatpush3.bf16.msra.mxu1 %v11286_v0  ;;  %10027 = vmatprep.mubr.msk.bf16.mxu1 %vm628_vm1, %v12711_v42 }
 0x57d   : > { %10057 = vmatprep.subr.bf16.mxu1 %v11287_v28 }
 0x580   : > { %10058 = vmatpush3.bf16.msra.mxu1 %v11287_v28 }
 0x581   : > { %10091 = vmatprep.subr.bf16.mxu1 %v11288_v55 }
 0x583   : > { %10028 = vmatmul.mubr.msk.bf16.gmra.mrb[8].mxu1 %vm628_vm1, %v12744_v41 }
 0x584   : > { %10031 = vmatprep.mubr.msk.bf16.mxu1 %vm628_vm1, %v12752_v36 }
 0x58b   : > { %10032 = vmatmul.mubr.msk.bf16.gmra.mrb[12].mxu1 %vm628_vm1, %v12759_v30 }
 0x58c   : > { %10035 = vmatprep.mubr.msk.bf16.mxu1 %vm628_vm1, %v12765_v37 }
 0x593   : > { %10036 = vmatmul.mubr.msk.bf16.gmra.mrb[16].mxu1 %vm628_vm1, %v12787_v24 }
 0x594   : > { %10039 = vmatprep.mubr.msk.bf16.mxu1 %vm628_vm1, %v12797_v49 }
 0x59b   : > { %10040 = vmatmul.mubr.msk.bf16.gmra.mrb[20].mxu1 %vm628_vm1, %v12807_v29 }
 0x59c   : > { %10043 = vmatprep.mubr.msk.bf16.mxu1 %vm628_vm1, %v12818_v6 }
 0x5a3   : > { %10044 = vmatmul.mubr.msk.bf16.gmra.mrb[24].mxu1 %vm628_vm1, %v12838_v22 }
 0x5a4   : > { %10047 = vmatprep.mubr.msk.bf16.mxu1 %vm628_vm1, %v12846_v21 }
 0x5ab   : > { %10048 = vmatmul.mubr.msk.bf16.gmra.mrb[28].mxu1 %vm628_vm1, %v12856_v47 }
 0x5ac   : > { %10051 = vmatprep.mubr.msk.bf16.mxu1 %vm628_vm1, %v12960_v34 }
 0x5b3   : > { %10052 = vmatmul.mubr.msk.bf16.gmra.mrb[32].mxu1 %vm628_vm1, %v12955_v14 }
 0x5b4   : > { %10059 = vmatprep.mubr.msk.bf16.mxu1 %vm628_vm1, %v12525_v50  ;;  %v11291_v50 = vld [vmem:[%s15102_s5 + $0x88] sm:$0xff]  }
 0x5bb   : > { %10060 = vmatmul.mubr.msk.bf16.vlgmr.msra.gmra.mrb[4].mxu1 %vm628_vm1, %v12549_v56  ;;  %v4661_v56 = vld [vmem:[%s15106_s9] sm:$0xff] }
 0x5bc   : > { %10092 = vmatpush3.bf16.msra.mxu1 %v11288_v55  ;;  %10063 = vmatprep.mubr.msk.bf16.mxu1 %vm628_vm1, %v12576_v18  ;;  %v4662_v18 = vld [vmem:[%s15106_s9 + $0x8] sm:$0xff] }
 0x5bd   : > { %10093 = vmatprep.subr.bf16.mxu1 %v11289_v33 }
 0x5c0   : > { %10094 = vmatpush3.bf16.msra.mxu1 %v11289_v33 }
 0x5c1   : > { %10127 = vmatprep.subr.bf16.mxu1 %v11290_v52 }
 0x5c3   : > { %10064 = vmatmul.mubr.msk.bf16.gmra.mrb[8].mxu1 %vm628_vm1, %v12591_v10  ;;  %v13270_v10 = vpack.c.bf16 %v4662_v18, %v4661_v56 }
 0x5c4   : > { %10067 = vmatprep.mubr.msk.bf16.mxu1 %vm628_vm1, %v12606_v15 }
 0x5c5   : > { %10665 = vmatpush3.bf16.msra.mxu0 %v13270_v10 }
 0x5c6   : > { %10666 = vmatprep.subr.bf16.mxu0 %v15185_v46 }
 0x5cb   : > { %10068 = vmatmul.mubr.msk.bf16.gmra.mrb[12].mxu1 %vm628_vm1, %v12631_v3  ;;  %v11294_v3 = vld [vmem:[%s15103_s6 + $0x28] sm:$0xff]  }
 0x5cc   : > { %10071 = vmatprep.mubr.msk.bf16.mxu1 %vm628_vm1, %v12879_v43 }
 0x5d3   : > { %10072 = vmatmul.mubr.msk.bf16.gmra.mrb[16].mxu1 %vm628_vm1, %v12902_v53 }
 0x5d4   : > { %10075 = vmatprep.mubr.msk.bf16.mxu1 %vm628_vm1, %v12904_v12 }
 0x5db   : > { %10076 = vmatmul.mubr.msk.bf16.gmra.mrb[20].mxu1 %vm628_vm1, %v12949_v31 }
 0x5dc   : > { %10079 = vmatprep.mubr.msk.bf16.mxu1 %vm628_vm1, %v12957_v35 }
 0x5e3   : > { %10080 = vmatmul.mubr.msk.bf16.gmra.mrb[24].mxu1 %vm628_vm1, %v12982_v63 }
 0x5e4   : > { %10083 = vmatprep.mubr.msk.bf16.mxu1 %vm628_vm1, %v12984_v39 }
 0x5eb   : > { %10084 = vmatmul.mubr.msk.bf16.gmra.mrb[28].mxu1 %vm628_vm1, %v12996_v16 }
 0x5ec   : > { %10087 = vmatprep.mubr.msk.bf16.mxu1 %vm628_vm1, %v12962_v2 }
 0x5f3   : > { %10088 = vmatmul.mubr.bf16.gmra.mrb[32].mxu1 %v15185_v46 }
 0x5f4   : > { %10095 = vmatprep.mubr.msk.bf16.mxu1 %vm628_vm1, %v12385_v23  ;;  %v15199_v23 = vmov 0.0  }
 0x5fb   : > { %10096 = vmatmul.mubr.msk.bf16.vlgmr.msra.gmra.mrb[4].mxu1 %vm628_vm1, %v15189_v60 }
 0x5fc   : > { %10128 = vmatpush3.bf16.msra.mxu1 %v11290_v52  ;;  %10099 = vmatprep.mubr.msk.bf16.mxu1 %vm628_vm1, %v15190_v45 }
 0x5fd   : > { %10129 = vmatprep.subr.bf16.mxu1 %v11291_v50 }
 0x600   : > { %10130 = vmatpush3.bf16.msra.mxu1 %v11291_v50 }
 0x601   : > { %10675 = vmatprep.subr.bf16.mxu1 %v15185_v46 }
 0x603   : > { %10100 = vmatmul.mubr.msk.bf16.gmra.mrb[8].mxu1 %vm628_vm1, %v15191_v1 }
 0x604   : > { %10103 = vmatprep.mubr.msk.bf16.mxu1 %vm628_vm1, %v15192_v20 }
 0x60b   : > { %10104 = vmatmul.mubr.msk.bf16.gmra.mrb[12].mxu1 %vm628_vm1, %v15193_v32 }
 0x60c   : > { %10107 = vmatprep.mubr.msk.bf16.mxu1 %vm628_vm1, %v15194_v19 }
 0x613   : > { %10108 = vmatmul.mubr.msk.bf16.gmra.mrb[16].mxu1 %vm628_vm1, %v12589_v7  ;;  %v4663_v7 = vld [vmem:[%s15106_s9 + $0x10] sm:$0xff] }
 0x614   : > { %10111 = vmatprep.mubr.msk.bf16.mxu1 %vm628_vm1, %v12599_v51  ;;  %v4664_v51 = vld [vmem:[%s15106_s9 + $0x18] sm:$0xff] }
 0x615   : > { %v13276_v15 = vpack.c.bf16 %v4664_v51, %v4663_v7 }
 0x617   : > { %10668 = vmatpush3.bf16.msra.mxu0 %v13276_v15 }
 0x618   : > { %10669 = vmatprep.subr.bf16.mxu0 %v15185_v46 }
 0x61b   : > { %10112 = vmatmul.mubr.msk.bf16.gmra.mrb[20].mxu1 %vm628_vm1, %v12640_v57  ;;  %v4665_v57 = vld [vmem:[%s15106_s9 + $0x20] sm:$0xff] }
 0x61c   : > { %10115 = vmatprep.mubr.msk.bf16.mxu1 %vm628_vm1, %v15195_v4 }
 0x623   : > { %10116 = vmatmul.mubr.msk.bf16.gmra.mrb[24].mxu1 %vm628_vm1, %v15196_v58 }
 0x624   : > { %10119 = vmatprep.mubr.msk.bf16.mxu1 %vm628_vm1, %v15197_v9 }
 0x62b   : > { %10120 = vmatmul.mubr.msk.bf16.gmra.mrb[28].mxu1 %vm628_vm1, %v15198_v38 }
 0x62c   : > { %10123 = vmatprep.mubr.msk.bf16.mxu1 %vm628_vm1, %v13114_v25 }
 0x633   : > { %10124 = vmatmul.mubr.bf16.gmra.mrb[32].mxu1 %v15185_v46 }
 0x634   : > { %10131 = vmatprep.mubr.msk.bf16.mxu1 %vm628_vm1, %v12705_v17  ;;  %v4666_v17 = vld [vmem:[%s15106_s9 + $0x28] sm:$0xff] }
 0x63b   : > { %10132 = vmatmul.mubr.msk.bf16.vlgmr.msra.gmra.mrb[4].mxu1 %vm628_vm1, %v12711_v42  ;;  %v13290_v42 = vpack.c.bf16 %v4666_v17, %v4665_v57 }
 0x63c   : > { %10135 = vmatprep.mubr.msk.bf16.mxu1 %vm628_vm1, %v12744_v41  ;;  %10678 = vmatpush3.bf16.xpose.msk.msra.mxu1 %vm11723_vm2, %v13270_v10  ;;  %v4667_v41 = vld [vmem:[%s15106_s9 + $0x30] sm:$0xff] }
 0x63d   : > { %10679 = vmatprep.subr.bf16.mxu1 %v15185_v46  ;;  %10671 = vmatpush3.bf16.msra.mxu0 %v13290_v42 }
 0x63e   : > { %10672 = vmatprep.subr.bf16.mxu0 %v15185_v46 }
 0x643   : > { %10136 = vmatmul.mubr.msk.bf16.gmra.mrb[8].mxu1 %vm628_vm1, %v12752_v36  ;;  %v4668_v36 = vld [vmem:[%s15106_s9 + $0x38] sm:$0xff] }
 0x644   : > { %10139 = vmatprep.mubr.msk.bf16.mxu1 %vm628_vm1, %v12759_v30  ;;  %v13300_v30 = vpack.c.bf16 %v4668_v36, %v4667_v41  ;;  %10682 = vmatpush3.bf16.xpose.msk.msra.mxu1 %vm11723_vm2, %v13276_v15 }
 0x645   : > { %10683 = vmatprep.subr.bf16.mxu1 %v15185_v46 }
 0x646   : > { %10674 = vmatpush3.bf16.msra.mxu0 %v13300_v30 }
 0x647   : > { %10691 = vmatprep.subr.bf16.mxu0 %v15185_v46 }
 0x64b   : > { %10140 = vmatmul.mubr.msk.bf16.gmra.mrb[12].mxu1 %vm628_vm1, %v12765_v37 }
 0x64c   : > { %10143 = vmatprep.mubr.msk.bf16.mxu1 %vm628_vm1, %v12787_v24  ;;  %10686 = vmatpush3.bf16.xpose.msk.msra.mxu1 %vm11723_vm2, %v13290_v42 }
 0x64d   : > { %10687 = vmatprep.subr.bf16.mxu1 %v15185_v46 }
 0x653   : > { %10144 = vmatmul.mubr.msk.bf16.gmra.mrb[16].mxu1 %vm628_vm1, %v12797_v49 }
 0x654   : > { %10147 = vmatprep.mubr.msk.bf16.mxu1 %vm628_vm1, %v12807_v29  ;;  %10690 = vmatpush3.bf16.xpose.msk.msra.mxu1 %vm11723_vm2, %v13300_v30 }
 0x65b   : > { %10148 = vmatmul.mubr.msk.bf16.gmra.mrb[20].mxu1 %vm628_vm1, %v12818_v6 }
 0x65c   : > { %10151 = vmatprep.mubr.msk.bf16.mxu1 %vm628_vm1, %v12838_v22 }
 0x663   : > { %10152 = vmatmul.mubr.msk.bf16.gmra.mrb[24].mxu1 %vm628_vm1, %v12846_v21 }
 0x664   : > { %10155 = vmatprep.mubr.msk.bf16.mxu1 %vm628_vm1, %v12856_v47 }
 0x66b   : > { %10156 = vmatmul.mubr.msk.bf16.gmra.mrb[28].mxu1 %vm628_vm1, %v12960_v34 }
 0x66c   : > { %10159 = vmatprep.mubr.msk.bf16.mxu1 %vm628_vm1, %v12955_v14 }
 0x673   : > { %10160 = vmatmul.mubr.bf16.gmra.mrb[32].mxu1 %v15185_v46 }
 0x674   : > { %10198 = vmatprep.mubr.msk.f32.mxu1 %vm11631_vm0, %v15199_v23 }
 0x70e   : > { %v13316_v37 = vpop.f32.mrb[4].mxu1 }
 0x70f   : > { %v13318_v24 = vpop.f32.mrb[5].mxu1  ;;  %v4673_v47 = vsel %vm4669_vm7, %v13316_v37, 0.0 }
 0x710   : > { %v13320_v49 = vpop.f32.mrb[6].mxu1  ;;  %v4670_v6 = vsel %vm4669_vm7, %v13318_v24, 0.0 }
 0x711   : > { %v13322_v29 = vpop.f32.mrb[7].mxu1  ;;  %v4675_v53 = vsel %vm4669_vm7, %v13320_v49, 0.0 }
 0x712   : > { %v4671_v22 = vsel %vm4669_vm7, %v13322_v29, 0.0 }
 0x713   : > { %v4672_v21 = vadd.f32 %v4671_v22, %v4670_v6 }
 0x715   : > { %v4674_v43 = vadd.f32 %v4673_v47, %v4672_v21 }
 0x716   : > { %v13332_v12 = vpop.f32.mrb[8].mxu1 }
 0x717   : > { %v13334_v31 = vpop.f32.mrb[9].mxu1  ;;  %v4676_v14 = vadd.f32 %v4675_v53, %v4674_v43  ;;  %v4681_v63 = vsel %vm4669_vm7, %v13332_v12, 0.0 }
 0x718   : > { %v4677_v35 = vsel %vm4669_vm7, %v13334_v31, 0.0  ;;  %v13338_v34 = vpop.f32.mrb[10].mxu1 }
 0x719   : > { %v4678_v2 = vadd.f32 %v4677_v35, %v4676_v14  ;;  %v13340_v8 = vpop.f32.mrb[11].mxu1  ;;  %v4683_v48 = vsel %vm4669_vm7, %v13338_v34, 0.0 }
 0x71a   : > { %v4679_v40 = vsel %vm4669_vm7, %v13340_v8, 0.0 }
 0x71b   : > { %v4680_v5 = vadd.f32 %v4679_v40, %v4678_v2 }
 0x71d   : > { %v4682_v39 = vadd.f32 %v4681_v63, %v4680_v5 }
 0x71e   : > { %v13348_v27 = vpop.f32.mrb[12].mxu1 }
 0x71f   : > { %v13350_v61 = vpop.f32.mrb[13].mxu1  ;;  %v4684_v16 = vadd.f32 %v4683_v48, %v4682_v39  ;;  %v4689_v0 = vsel %vm4669_vm7, %v13348_v27, 0.0 }
 0x720   : > { %v4685_v54 = vsel %vm4669_vm7, %v13350_v61, 0.0  ;;  %v13354_v62 = vpop.f32.mrb[14].mxu1 }
 0x721   : > { %v4686_v13 = vadd.f32 %v4685_v54, %v4684_v16  ;;  %v13356_v11 = vpop.f32.mrb[15].mxu1  ;;  %v4691_v1 = vsel %vm4669_vm7, %v13354_v62, 0.0 }
 0x722   : > { %v4687_v59 = vsel %vm4669_vm7, %v13356_v11, 0.0 }
 0x723   : > { %v4688_v60 = vadd.f32 %v4687_v59, %v4686_v13 }
 0x725   : > { %v4690_v45 = vadd.f32 %v4689_v0, %v4688_v60 }
 0x726   : > { %v13364_v20 = vpop.f32.mrb[16].mxu1 }
 0x727   : > { %v13366_v32 = vpop.f32.mrb[17].mxu1  ;;  %v4692_v19 = vadd.f32 %v4691_v1, %v4690_v45  ;;  %v4697_v55 = vsel %vm4669_vm7, %v13364_v20, 0.0 }
 0x728   : > { %v4693_v4 = vsel %vm4669_vm7, %v13366_v32, 0.0  ;;  %v13370_v58 = vpop.f32.mrb[18].mxu1 }
 0x729   : > { %v4694_v9 = vadd.f32 %v4693_v4, %v4692_v19  ;;  %v13372_v38 = vpop.f32.mrb[19].mxu1  ;;  %v4699_v52 = vsel %vm4669_vm7, %v13370_v58, 0.0 }
 0x72a   : > { %v4695_v25 = vsel %vm4669_vm7, %v13372_v38, 0.0 }
 0x72b   : > { %v4696_v28 = vadd.f32 %v4695_v25, %v4694_v9 }
 0x72d   : > { %v4698_v33 = vadd.f32 %v4697_v55, %v4696_v28 }
 0x72e   : > { %v13380_v50 = vpop.f32.mrb[20].mxu1 }
 0x72f   : > { %v13382_v56 = vpop.f32.mrb[21].mxu1  ;;  %v4700_v18 = vadd.f32 %v4699_v52, %v4698_v33  ;;  %v4705_v6 = vsel %vm4669_vm7, %v13380_v50, 0.0 }
 0x730   : > { %v4701_v7 = vsel %vm4669_vm7, %v13382_v56, 0.0  ;;  %v13386_v51 = vpop.f32.mrb[22].mxu1 }
 0x731   : > { %v4702_v57 = vadd.f32 %v4701_v7, %v4700_v18  ;;  %v13388_v17 = vpop.f32.mrb[23].mxu1  ;;  %v4707_v21 = vsel %vm4669_vm7, %v13386_v51, 0.0 }
 0x732   : > { %v4703_v41 = vsel %vm4669_vm7, %v13388_v17, 0.0 }
 0x733   : > { %v4704_v36 = vadd.f32 %v4703_v41, %v4702_v57 }
 0x735   : > { %v4706_v22 = vadd.f32 %v4705_v6, %v4704_v36 }
 0x736   : > { %v13396_v47 = vpop.f32.mrb[24].mxu1 }
 0x737   : > { %v13398_v43 = vpop.f32.mrb[25].mxu1  ;;  %v4708_v53 = vadd.f32 %v4707_v21, %v4706_v22  ;;  %v4713_v39 = vsel %vm4669_vm7, %v13396_v47, 0.0 }
 0x738   : > { %v4709_v14 = vsel %vm4669_vm7, %v13398_v43, 0.0  ;;  %v13402_v35 = vpop.f32.mrb[26].mxu1 }
 0x739   : > { %v4710_v2 = vadd.f32 %v4709_v14, %v4708_v53  ;;  %v13404_v40 = vpop.f32.mrb[27].mxu1  ;;  %v4715_v16 = vsel %vm4669_vm7, %v13402_v35, 0.0 }
 0x73a   : > { %v4711_v5 = vsel %vm4669_vm7, %v13404_v40, 0.0 }
 0x73b   : > { %v4712_v63 = vadd.f32 %v4711_v5, %v4710_v2 }
 0x73d   : > { %v4714_v48 = vadd.f32 %v4713_v39, %v4712_v63 }
 0x73e   : > { %v13412_v54 = vpop.f32.mrb[28].mxu1 }
 0x73f   : > { %v13414_v13 = vpop.f32.mrb[29].mxu1  ;;  %v4716_v59 = vadd.f32 %v4715_v16, %v4714_v48  ;;  %v4721_v9 = vsel %vm4669_vm7, %v13412_v54, 0.0 }
 0x740   : > { %v4717_v60 = vsel %vm4669_vm7, %v13414_v13, 0.0  ;;  %v13418_v0 = vpop.f32.mrb[30].mxu1 }
 0x741   : > { %v4718_v45 = vadd.f32 %v4717_v60, %v4716_v59  ;;  %v13420_v1 = vpop.f32.mrb[31].mxu1  ;;  %v4723_v28 = vsel %vm4669_vm7, %v13418_v0, 0.0 }
 0x742   : > { %v4719_v19 = vsel %vm4669_vm7, %v13420_v1, 0.0 }
 0x743   : > { %v4720_v4 = vadd.f32 %v4719_v19, %v4718_v45 }
 0x745   : > { %v4722_v25 = vadd.f32 %v4721_v9, %v4720_v4  ;;  %v15201_v4 = vld [vmem:[#allocation3_spill] sm:$0xff] }
 0x746   : > { %v13428_v55 = vpop.f32.mrb[32].mxu1 }
 0x747   : > { %v13430_v33 = vpop.f32.mrb[33].mxu1  ;;  %v4724_v52 = vadd.f32 %v4723_v28, %v4722_v25  ;;  %v4729_v22 = vsel %vm4669_vm7, %v13428_v55, 0.0 }
 0x748   : > { %v4725_v18 = vsel %vm4669_vm7, %v13430_v33, 0.0  ;;  %v13434_v7 = vpop.f32.mrb[34].mxu1 }
 0x749   : > { %v4726_v57 = vadd.f32 %v4725_v18, %v4724_v52  ;;  %v4615_v41 = vpop.f32.mrb[35].mxu1  ;;  %v4731_v53 = vsel %vm4669_vm7, %v13434_v7, 0.0 }
 0x74a   : > { %v4727_v36 = vsel %vm4669_vm7, %v4615_v41, 0.0 }
 0x74b   : > { %v4728_v6 = vadd.f32 %v4727_v36, %v4726_v57 }
 0x74d   : > { %v4730_v21 = vadd.f32 %v4729_v22, %v4728_v6 }
 0x74f   : > { %v4732_v14 = vadd.f32 %v4731_v53, %v4730_v21 }
 0x751   : > { %v4733_v2 = vrot.slane %v4732_v14, 4 }
 0x753   : > { %v4734_v5 = vadd.f32 %v4733_v2, %v4732_v14 }
 0x755   : > { %v4735_v63 = vrot.slane %v4734_v5, 2 }
 0x757   : > { %v4736_v39 = vadd.f32 %v4735_v63, %v4734_v5 }
 0x759   : > { %v4737_v48 = vrot.slane %v4736_v39, 1 }
 0x75b   : > { %v4738_v16 = vadd.f32 %v4737_v48, %v4736_v39 }
 0x75d   : > { %10180 = vmatmul.mubr.msk.f32.vlgmr.msra.gmra.mrb[6].mxu0 %vm4669_vm7, %v4738_v16 }
 0x75e   : > { %10693 = vmatpush3.bf16.msra.mxu0 %v13270_v10  ;;  %10217 = vmatprep.mubr.msk.f32.mxu0 %vm11631_vm0, %v15199_v23 }
 0x75f   : > { %10694 = vmatprep.subr.bf16.mxu0 %v15185_v46 }
 0x762   : > { %10696 = vmatpush3.bf16.msra.mxu0 %v13276_v15 }
 0x763   : > { %10697 = vmatprep.subr.bf16.mxu0 %v15185_v46 }
 0x766   : > { %10699 = vmatpush3.bf16.msra.mxu0 %v13290_v42 }
 0x767   : > { %10700 = vmatprep.subr.bf16.mxu0 %v15185_v46 }
 0x76a   : > { %10702 = vmatpush3.bf16.msra.mxu0 %v13300_v30 }
 0x76b   : > { %10703 = vmatprep.subr.bf16.mxu0 %v15185_v46 }
 0x830   : > { %v4808_v59 = vpop.f32.mrb[6].mxu0 }
 0x831   : > { %v4813_v60 = vmul.f32 0.001953125, %v4808_v59  ;;  %v10181_v45 = vpop.f32.mrb[7].mxu0 }
 0x833   : > { %10199 = vmatmul.mubr.msk.f32.vlgmr.msra.gmra.mrb[2].mxu1 %vm628_vm1, %v4813_v60 }
 0x834   : > { %10247 = vmatprep.mubr.bf16.mxu1 %v15185_v46 }
 0x906   : > { %v4907_v19 = vpop.f32.mrb[2].mxu1 }
 0x907   : > { %v4914_v9 = vrot.slane %v4907_v19, %v15201_v4  ;;  %v10200_v25 = vpop.f32.mrb[3].mxu1 }
 0x909   : > { %v13456_v28 = vsub.f32 %v13318_v24, %v4914_v9  ;;  %v13459_v52 = vsub.f32 %v13322_v29, %v4914_v9  ;;  %v13462_v18 = vsub.f32 %v13316_v37, %v4914_v9  ;;  %v13465_v57 = vsub.f32 %v13320_v49, %v4914_v9 }
 0x90a   : > { %v13468_v36 = vsub.f32 %v13334_v31, %v4914_v9  ;;  %v13471_v6 = vsub.f32 %v13340_v8, %v4914_v9  ;;  %v13474_v22 = vsub.f32 %v13332_v12, %v4914_v9  ;;  %v13477_v24 = vsub.f32 %v13338_v34, %v4914_v9 }
 0x90b   : > { %v13480_v29 = vsub.f32 %v13350_v61, %v4914_v9  ;;  %v13483_v37 = vsub.f32 %v13356_v11, %v4914_v9  ;;  %v13486_v49 = vsub.f32 %v13348_v27, %v4914_v9  ;;  %v13489_v31 = vsub.f32 %v13354_v62, %v4914_v9 }
 0x90c   : > { %v13492_v8 = vsub.f32 %v13366_v32, %v4914_v9  ;;  %v13495_v12 = vsub.f32 %v13372_v38, %v4914_v9  ;;  %v13498_v34 = vsub.f32 %v13364_v20, %v4914_v9  ;;  %v13501_v61 = vsub.f32 %v13370_v58, %v4914_v9 }
 0x90d   : > { %v13504_v11 = vsub.f32 %v13382_v56, %v4914_v9  ;;  %v13507_v27 = vsub.f32 %v13388_v17, %v4914_v9  ;;  %v13510_v62 = vsub.f32 %v13380_v50, %v4914_v9  ;;  %v13513_v32 = vsub.f32 %v13386_v51, %v4914_v9 }
 0x90e   : > { %v13516_v38 = vsub.f32 %v13398_v43, %v4914_v9  ;;  %v13519_v20 = vsub.f32 %v13404_v40, %v4914_v9  ;;  %v13522_v58 = vsub.f32 %v13396_v47, %v4914_v9  ;;  %v13525_v56 = vsub.f32 %v13402_v35, %v4914_v9 }
 0x90f   : > { %v13528_v17 = vsub.f32 %v13414_v13, %v4914_v9  ;;  %v13531_v50 = vsub.f32 %v13420_v1, %v4914_v9  ;;  %v13534_v51 = vsub.f32 %v13412_v54, %v4914_v9  ;;  %v13537_v43 = vsub.f32 %v13418_v0, %v4914_v9 }
 0x910   : > { %v13540_v40 = vsub.f32 %v13430_v33, %v4914_v9  ;;  %v13542_v47 = vsub.f32 %v4615_v41, %v4914_v9  ;;  %v13545_v35 = vsub.f32 %v13428_v55, %v4914_v9  ;;  %v13548_v13 = vsub.f32 %v13434_v7, %v4914_v9 }
 0x911   : > { %v4947_v1 = vmul.f32 %v13456_v28, %v13456_v28  ;;  %v4948_v54 = vmul.f32 %v13459_v52, %v13459_v52  ;;  %v4949_v0 = vmul.f32 %v13462_v18, %v13462_v18  ;;  %v4950_v33 = vmul.f32 %v13465_v57, %v13465_v57 }
 0x912   : > { %v4951_v7 = vmul.f32 %v13468_v36, %v13468_v36  ;;  %v4952_v2 = vmul.f32 %v13471_v6, %v13471_v6  ;;  %v4953_v39 = vmul.f32 %v13474_v22, %v13474_v22  ;;  %v4954_v59 = vmul.f32 %v13477_v24, %v13477_v24 }
 0x913   : > { %v4979_v41 = vsel %vm4669_vm7, %v4947_v1, 0.0  ;;  %v4980_v55 = vsel %vm4669_vm7, %v4948_v54, 0.0  ;;  %v4982_v53 = vsel %vm4669_vm7, %v4949_v0, 0.0  ;;  %v4984_v5 = vsel %vm4669_vm7, %v4950_v33, 0.0 }
 0x914   : > { %v4981_v21 = vadd.f32 %v4980_v55, %v4979_v41  ;;  %v4986_v48 = vsel %vm4669_vm7, %v4951_v7, 0.0  ;;  %v4988_v60 = vsel %vm4669_vm7, %v4952_v2, 0.0  ;;  %v4955_v19 = vmul.f32 %v13480_v29, %v13480_v29 }
 0x915   : > { %v4990_v9 = vsel %vm4669_vm7, %v4953_v39, 0.0  ;;  %v4956_v1 = vmul.f32 %v13483_v37, %v13483_v37  ;;  %v4992_v54 = vsel %vm4669_vm7, %v4954_v59, 0.0  ;;  %v4957_v33 = vmul.f32 %v13486_v49, %v13486_v49 }
 0x916   : > { %v4983_v14 = vadd.f32 %v4982_v53, %v4981_v21  ;;  %v4994_v41 = vsel %vm4669_vm7, %v4955_v19, 0.0  ;;  %v4958_v21 = vmul.f32 %v13489_v31, %v13489_v31 }
 0x917   : > { %v4996_v7 = vsel %vm4669_vm7, %v4956_v1, 0.0  ;;  %v4998_v2 = vsel %vm4669_vm7, %v4957_v33, 0.0 }
 0x918   : > { %v4985_v63 = vadd.f32 %v4984_v5, %v4983_v14  ;;  %v4959_v14 = vmul.f32 %v13492_v8, %v13492_v8  ;;  %v5000_v39 = vsel %vm4669_vm7, %v4958_v21, 0.0 }
 0x91a   : > { %v4987_v16 = vadd.f32 %v4986_v48, %v4985_v63  ;;  %v4960_v63 = vmul.f32 %v13495_v12, %v13495_v12  ;;  %v5002_v59 = vsel %vm4669_vm7, %v4959_v14, 0.0 }
 0x91c   : > { %v4989_v45 = vadd.f32 %v4988_v60, %v4987_v16  ;;  %v4961_v16 = vmul.f32 %v13498_v34, %v13498_v34  ;;  %v5004_v19 = vsel %vm4669_vm7, %v4960_v63, 0.0 }
 0x91e   : > { %v4991_v25 = vadd.f32 %v4990_v9, %v4989_v45  ;;  %v4962_v45 = vmul.f32 %v13501_v61, %v13501_v61  ;;  %v5006_v1 = vsel %vm4669_vm7, %v4961_v16, 0.0 }
 0x920   : > { %v4993_v0 = vadd.f32 %v4992_v54, %v4991_v25  ;;  %v4963_v25 = vmul.f32 %v13504_v11, %v13504_v11  ;;  %v5008_v33 = vsel %vm4669_vm7, %v4962_v45, 0.0 }
 0x922   : > { %v4995_v55 = vadd.f32 %v4994_v41, %v4993_v0  ;;  %v4964_v0 = vmul.f32 %v13507_v27, %v13507_v27  ;;  %v5010_v21 = vsel %vm4669_vm7, %v4963_v25, 0.0 }
 0x924   : > { %v4997_v53 = vadd.f32 %v4996_v7, %v4995_v55  ;;  %v4965_v55 = vmul.f32 %v13510_v62, %v13510_v62  ;;  %v5012_v14 = vsel %vm4669_vm7, %v4964_v0, 0.0 }
 0x926   : > { %v4999_v5 = vadd.f32 %v4998_v2, %v4997_v53  ;;  %v4966_v53 = vmul.f32 %v13513_v32, %v13513_v32  ;;  %v5014_v63 = vsel %vm4669_vm7, %v4965_v55, 0.0 }
 0x928   : > { %v5001_v48 = vadd.f32 %v5000_v39, %v4999_v5  ;;  %v4967_v5 = vmul.f32 %v13516_v38, %v13516_v38  ;;  %v5016_v16 = vsel %vm4669_vm7, %v4966_v53, 0.0 }
 0x92a   : > { %v5003_v60 = vadd.f32 %v5002_v59, %v5001_v48  ;;  %v4968_v48 = vmul.f32 %v13519_v20, %v13519_v20  ;;  %v5018_v45 = vsel %vm4669_vm7, %v4967_v5, 0.0 }
 0x92c   : > { %v5005_v9 = vadd.f32 %v5004_v19, %v5003_v60  ;;  %v4969_v60 = vmul.f32 %v13522_v58, %v13522_v58  ;;  %v5020_v25 = vsel %vm4669_vm7, %v4968_v48, 0.0 }
 0x92e   : > { %v5007_v54 = vadd.f32 %v5006_v1, %v5005_v9  ;;  %v4970_v9 = vmul.f32 %v13525_v56, %v13525_v56  ;;  %v5022_v0 = vsel %vm4669_vm7, %v4969_v60, 0.0 }
 0x930   : > { %v5009_v41 = vadd.f32 %v5008_v33, %v5007_v54  ;;  %v4971_v54 = vmul.f32 %v13528_v17, %v13528_v17  ;;  %v5024_v55 = vsel %vm4669_vm7, %v4970_v9, 0.0 }
 0x932   : > { %v5011_v7 = vadd.f32 %v5010_v21, %v5009_v41  ;;  %v4972_v41 = vmul.f32 %v13531_v50, %v13531_v50  ;;  %v5026_v53 = vsel %vm4669_vm7, %v4971_v54, 0.0 }
 0x934   : > { %v5013_v2 = vadd.f32 %v5012_v14, %v5011_v7  ;;  %v4973_v7 = vmul.f32 %v13534_v51, %v13534_v51  ;;  %v5028_v5 = vsel %vm4669_vm7, %v4972_v41, 0.0 }
 0x936   : > { %v5015_v39 = vadd.f32 %v5014_v63, %v5013_v2  ;;  %v4974_v2 = vmul.f32 %v13537_v43, %v13537_v43  ;;  %v5030_v48 = vsel %vm4669_vm7, %v4973_v7, 0.0 }
 0x938   : > { %v5017_v59 = vadd.f32 %v5016_v16, %v5015_v39  ;;  %v4975_v39 = vmul.f32 %v13540_v40, %v13540_v40  ;;  %v5032_v60 = vsel %vm4669_vm7, %v4974_v2, 0.0 }
 0x93a   : > { %v5019_v19 = vadd.f32 %v5018_v45, %v5017_v59  ;;  %v4976_v59 = vmul.f32 %v13542_v47, %v13542_v47  ;;  %v5034_v9 = vsel %vm4669_vm7, %v4975_v39, 0.0 }
 0x93c   : > { %v5021_v1 = vadd.f32 %v5020_v25, %v5019_v19  ;;  %v4977_v19 = vmul.f32 %v13545_v35, %v13545_v35  ;;  %v5036_v54 = vsel %vm4669_vm7, %v4976_v59, 0.0  ;;  %v11296_v59 = vld [vmem:[%s15103_s6 + $0x30] sm:$0xff]  }
 0x93e   : > { %v5023_v33 = vadd.f32 %v5022_v0, %v5021_v1  ;;  %v4978_v1 = vmul.f32 %v13548_v13, %v13548_v13 }
 0x940   : > { %v5025_v21 = vadd.f32 %v5024_v55, %v5023_v33  ;;  %v5038_v33 = vsel %vm4669_vm7, %v4977_v19, 0.0  ;;  %v5040_v55 = vsel %vm4669_vm7, %v4978_v1, 0.0  ;;  %v11299_v19 = vld [vmem:[%s15103_s6 + $0x18] sm:$0xff]  }
 0x942   : > { %v5027_v14 = vadd.f32 %v5026_v53, %v5025_v21 }
 0x944   : > { %v5029_v63 = vadd.f32 %v5028_v5, %v5027_v14 }
 0x946   : > { %v5031_v16 = vadd.f32 %v5030_v48, %v5029_v63 }
 0x948   : > { %v5033_v45 = vadd.f32 %v5032_v60, %v5031_v16  ;;  %v11297_v60 = vld [vmem:[%s15103_s6 + $0x10] sm:$0xff]  }
 0x94a   : > { %v5035_v25 = vadd.f32 %v5034_v9, %v5033_v45  ;;  %v11298_v45 = vld [vmem:[%s15103_s6 + $0x38] sm:$0xff]   ;;  %v13693_v9 = vld [vmem:[%s15103_s6 + $0x40] sm:$0xff]  }
 0x94b   : > { %15202 = vst [vmem:[#allocation4_spill] sm:$0xff] %v13693_v9 }
 0x94c   : > { %v5037_v0 = vadd.f32 %v5036_v54, %v5035_v25 }
 0x94e   : > { %v5039_v41 = vadd.f32 %v5038_v33, %v5037_v0  ;;  %v13704_v33 = vld [vmem:[%s15100_s3] ss:$0 sm:$0xff] }
 0x950   : > { %v5041_v21 = vadd.f32 %v5040_v55, %v5039_v41 }
 0x952   : > { %v5042_v7 = vrot.slane %v5041_v21, 4 }
 0x954   : > { %v5043_v53 = vadd.f32 %v5042_v7, %v5041_v21 }
 0x956   : > { %v5044_v14 = vrot.slane %v5043_v53, 2 }
 0x958   : > { %v5045_v2 = vadd.f32 %v5044_v14, %v5043_v53 }
 0x95a   : > { %v5046_v5 = vrot.slane %v5045_v2, 1 }
 0x95c   : > { %v5047_v63 = vadd.f32 %v5046_v5, %v5045_v2 }
 0x95e   : > { %10218 = vmatmul.mubr.msk.f32.vlgmr.msra.gmra.mrb[8].mxu0 %vm4669_vm7, %v5047_v63 }
 0x95f   : > { %10706 = vmatpush3.bf16.xpose.msk.msra.mxu0 %vm11723_vm2, %v13270_v10  ;;  %10236 = vmatprep.mubr.msk.f32.mxu0 %vm11631_vm0, %v15199_v23 }
 0x960   : > { %10707 = vmatprep.subr.bf16.mxu0 %v15185_v46 }
 0x967   : > { %10710 = vmatpush3.bf16.xpose.msk.msra.mxu0 %vm11723_vm2, %v13276_v15  ;;  %v11292_v15 = vld [vmem:[%s15103_s6 + $0x20] sm:$0xff]  }
 0x968   : > { %10711 = vmatprep.subr.bf16.mxu0 %v15185_v46  ;;  %10239 = vmatprep.subr.bf16.mxu1 %v11292_v15 }
 0x969   : > { %10240 = vmatpush3.bf16.msra.mxu1 %v11292_v15 }
 0x96a   : > { %10241 = vmatprep.subr.bf16.mxu1 %v11294_v3 }
 0x96d   : > { %10242 = vmatpush3.bf16.msra.mxu1 %v11294_v3 }
 0x96e   : > { %10243 = vmatprep.subr.bf16.mxu1 %v11296_v59 }
 0x96f   : > { %10714 = vmatpush3.bf16.xpose.msk.msra.mxu0 %vm11723_vm2, %v13290_v42  ;;  %v11293_v42 = vld [vmem:[%s15103_s6] sm:$0xff]  }
 0x970   : > { %10715 = vmatprep.subr.bf16.mxu0 %v15185_v46 }
 0x971   : > { %10244 = vmatpush3.bf16.msra.mxu1 %v11296_v59 }
 0x972   : > { %10245 = vmatprep.subr.bf16.mxu1 %v11298_v45 }
 0x975   : > { %10246 = vmatpush3.bf16.msra.mxu1 %v11298_v45 }
 0x977   : > { %10718 = vmatpush3.bf16.xpose.msk.msra.mxu0 %vm11723_vm2, %v13300_v30  ;;  %v11295_v30 = vld [vmem:[%s15103_s6 + $0x8] sm:$0xff]  }
 0x978   : > { %10279 = vmatprep.subr.bf16.mxu0 %v11293_v42 }
 0xa31   : > { %v5117_v10 = vpop.f32.mrb[8].mxu0 }
 0xa32   : > { %v5121_v23 = vmul.f32 0.001953125, %v5117_v10  ;;  %v10219_v39 = vpop.f32.mrb[9].mxu0 }
 0xa34   : > { %v5122_v48 = vadd.f32 1e-06, %v5121_v23 }
 0xa36   : > { %11460 = vrsqrt.f32 %v5122_v48 }
 0xa40   : > { %v11461_v16 = vpop.eup %11460 }
 0xa41   : > { %10237 = vmatmul.mubr.msk.f32.vlgmr.msra.gmra.mrb[10].mxu0 %vm628_vm1, %v11461_v16 }
 0xa42   : > { %10287 = vmatprep.mubr.bf16.mxu0 %v15185_v46  ;;  %10280 = vmatpush3.bf16.msra.mxu0 %v11293_v42 }
 0xa43   : > { %10281 = vmatprep.subr.bf16.mxu0 %v11295_v30 }
 0xa46   : > { %10282 = vmatpush3.bf16.msra.mxu0 %v11295_v30 }
 0xa47   : > { %10283 = vmatprep.subr.bf16.mxu0 %v11297_v60 }
 0xa4a   : > { %10284 = vmatpush3.bf16.msra.mxu0 %v11297_v60 }
 0xa4b   : > { %10285 = vmatprep.subr.bf16.mxu0 %v11299_v19 }
 0xa4e   : > { %10286 = vmatpush3.bf16.msra.mxu0 %v11299_v19 }
 0xa4f   : > { %10319 = vmatprep.subr.bf16.mxu0 %v13693_v9 }
 0xb14   : > { %v5193_v25 = vpop.f32.mrb[10].mxu0 }
 0xb15   : > { %v10238_v1 = vpop.f32.mrb[11].mxu0  ;;  %v13697_v54 = vrot.slane %v5193_v25, %v15201_v4 }
 0xb17   : > { %v5231_v0 = vmul.f32 %v13697_v54, %v13545_v35  ;;  %v5201_v55 = vmul.f32 %v13697_v54, %v13456_v28  ;;  %v5202_v21 = vmul.f32 %v13697_v54, %v13459_v52  ;;  %v5203_v4 = vmul.f32 %v13697_v54, %v13462_v18  ;;  %v13718_v35 = vld [vmem:[%s15101_s4] ss:$0 sm:$0xff] }
 0xb18   : > { %v5204_v7 = vmul.f32 %v13697_v54, %v13465_v57  ;;  %v5205_v53 = vmul.f32 %v13697_v54, %v13468_v36  ;;  %v5206_v28 = vmul.f32 %v13697_v54, %v13471_v6  ;;  %v5207_v52 = vmul.f32 %v13697_v54, %v13474_v22 }
 0xb19   : > { %v5269_v41 = vmul.f32 %v13704_v33, %v5231_v0  ;;  %v5239_v14 = vmul.f32 %v13704_v33, %v5201_v55  ;;  %v5208_v18 = vmul.f32 %v13697_v54, %v13477_v24  ;;  %v5209_v57 = vmul.f32 %v13697_v54, %v13480_v29 }
 0xb1a   : > { %v5240_v2 = vmul.f32 %v13704_v33, %v5202_v21  ;;  %v5210_v5 = vmul.f32 %v13697_v54, %v13483_v37  ;;  %v5211_v36 = vmul.f32 %v13697_v54, %v13486_v49  ;;  %v5212_v6 = vmul.f32 %v13697_v54, %v13489_v31 }
 0xb1b   : > { %v5241_v63 = vmul.f32 %v13704_v33, %v5203_v4  ;;  %v5213_v22 = vmul.f32 %v13697_v54, %v13492_v8  ;;  %v5214_v24 = vmul.f32 %v13697_v54, %v13495_v12  ;;  %v5242_v29 = vmul.f32 %v13704_v33, %v5204_v7 }
 0xb1c   : > { %v13745_v10 = vadd.f32 %v13718_v35, %v5269_v41  ;;  %v5215_v37 = vmul.f32 %v13697_v54, %v13498_v34  ;;  %v5216_v49 = vmul.f32 %v13697_v54, %v13501_v61  ;;  %v5243_v31 = vmul.f32 %v13704_v33, %v5205_v53 }
 0xb1d   : > { %v13753_v23 = vadd.f32 %v13718_v35, %v5239_v14  ;;  %v5217_v8 = vmul.f32 %v13697_v54, %v13504_v11  ;;  %v5218_v12 = vmul.f32 %v13697_v54, %v13507_v27  ;;  %v5244_v39 = vmul.f32 %v13704_v33, %v5206_v28 }
 0xb1e   : > { %v13761_v48 = vadd.f32 %v13718_v35, %v5240_v2  ;;  %v5219_v34 = vmul.f32 %v13697_v54, %v13510_v62  ;;  %v5220_v61 = vmul.f32 %v13697_v54, %v13513_v32  ;;  %v5245_v16 = vmul.f32 %v13704_v33, %v5207_v52 }
 0xb1f   : > { %v13769_v15 = vadd.f32 %v13718_v35, %v5241_v63  ;;  %v5221_v11 = vmul.f32 %v13697_v54, %v13516_v38  ;;  %v5222_v27 = vmul.f32 %v13697_v54, %v13519_v20  ;;  %v5246_v42 = vmul.f32 %v13704_v33, %v5208_v18 }
 0xb20   : > { %v13777_v3 = vadd.f32 %v13718_v35, %v5242_v29  ;;  %v5223_v62 = vmul.f32 %v13697_v54, %v13522_v58  ;;  %v5247_v32 = vmul.f32 %v13704_v33, %v5209_v57  ;;  %v13783_v30 = vadd.f32 %v13718_v35, %v5243_v31 }
 0xb21   : > { %v9087_v59 = vmul.f32 -1.442695, %v13753_v23  ;;  %v5224_v38 = vmul.f32 %v13697_v54, %v13525_v56  ;;  %v5248_v20 = vmul.f32 %v13704_v33, %v5210_v5  ;;  %v13790_v60 = vadd.f32 %v13718_v35, %v5244_v39 }
 0xb22   : > { %v9088_v45 = vmul.f32 -1.442695, %v13761_v48  ;;  %v5225_v58 = vmul.f32 %v13697_v54, %v13528_v17  ;;  %v5249_v19 = vmul.f32 %v13704_v33, %v5211_v36  ;;  %v13797_v25 = vadd.f32 %v13718_v35, %v5245_v16 }
 0xb23   : > { %v9089_v1 = vmul.f32 -1.442695, %v13769_v15  ;;  %v5226_v56 = vmul.f32 %v13697_v54, %v13531_v50  ;;  %v5250_v0 = vmul.f32 %v13704_v33, %v5212_v6  ;;  %v13804_v41 = vadd.f32 %v13718_v35, %v5246_v42 }
 0xb24   : > { %v9090_v55 = vmul.f32 -1.442695, %v13777_v3  ;;  %v5251_v21 = vmul.f32 %v13704_v33, %v5213_v22  ;;  %v13809_v17 = vadd.f32 %v13718_v35, %v5247_v32  ;;  %11462 = vpow2.f32 %v9087_v59 }
 0xb25   : > { %v9091_v4 = vmul.f32 -1.442695, %v13783_v30  ;;  %v5252_v7 = vmul.f32 %v13704_v33, %v5214_v24  ;;  %v13814_v53 = vadd.f32 %v13718_v35, %v5248_v20  ;;  %11464 = vpow2.f32 %v9088_v45 }
 0xb26   : > { %v9092_v50 = vmul.f32 -1.442695, %v13790_v60  ;;  %v5253_v28 = vmul.f32 %v13704_v33, %v5215_v37  ;;  %v13819_v14 = vadd.f32 %v13718_v35, %v5249_v19  ;;  %11466 = vpow2.f32 %v9089_v1 }
 0xb27   : > { %v9093_v52 = vmul.f32 -1.442695, %v13797_v25  ;;  %v5254_v18 = vmul.f32 %v13704_v33, %v5216_v49  ;;  %v13824_v57 = vadd.f32 %v13718_v35, %v5250_v0  ;;  %11468 = vpow2.f32 %v9090_v55 }
 0xb28   : > { %v9094_v2 = vmul.f32 -1.442695, %v13804_v41  ;;  %v5255_v5 = vmul.f32 %v13704_v33, %v5217_v8  ;;  %v13829_v36 = vadd.f32 %v13718_v35, %v5251_v21  ;;  %11470 = vpow2.f32 %v9091_v4 }
 0xb29   : > { %v9095_v6 = vmul.f32 -1.442695, %v13809_v17  ;;  %v5256_v63 = vmul.f32 %v13704_v33, %v5218_v12  ;;  %v13834_v22 = vadd.f32 %v13718_v35, %v5252_v7  ;;  %11472 = vpow2.f32 %v9092_v50 }
 0xb2a   : > { %v9096_v24 = vmul.f32 -1.442695, %v13814_v53  ;;  %v5257_v29 = vmul.f32 %v13704_v33, %v5219_v34  ;;  %v13839_v37 = vadd.f32 %v13718_v35, %v5253_v28  ;;  %11474 = vpow2.f32 %v9093_v52 }
 0xb2b   : > { %v9097_v49 = vmul.f32 -1.442695, %v13819_v14  ;;  %v5258_v31 = vmul.f32 %v13704_v33, %v5220_v61  ;;  %v13844_v8 = vadd.f32 %v13718_v35, %v5254_v18  ;;  %11476 = vpow2.f32 %v9094_v2 }
 0xb2c   : > { %v9098_v12 = vmul.f32 -1.442695, %v13824_v57  ;;  %v5259_v39 = vmul.f32 %v13704_v33, %v5221_v11  ;;  %v13849_v16 = vadd.f32 %v13718_v35, %v5255_v5  ;;  %11478 = vpow2.f32 %v9095_v6 }
 0xb2d   : > { %v9099_v34 = vmul.f32 -1.442695, %v13829_v36  ;;  %v5260_v42 = vmul.f32 %v13704_v33, %v5222_v27  ;;  %v13854_v32 = vadd.f32 %v13718_v35, %v5256_v63  ;;  %11480 = vpow2.f32 %v9096_v24 }
 0xb2e   : > { %v9100_v61 = vmul.f32 -1.442695, %v13834_v22  ;;  %v11463_v59 = vpop.eup %11462  ;;  %v5261_v20 = vmul.f32 %v13704_v33, %v5223_v62  ;;  %v13859_v45 = vadd.f32 %v13718_v35, %v5257_v29  ;;  %11482 = vpow2.f32 %v9097_v49 }
 0xb2f   : > { %v9101_v11 = vmul.f32 -1.442695, %v13839_v37  ;;  %v11465_v19 = vpop.eup %11464  ;;  %v5262_v1 = vmul.f32 %v13704_v33, %v5224_v38  ;;  %v13864_v27 = vadd.f32 %v13718_v35, %v5258_v31  ;;  %11484 = vpow2.f32 %v9098_v12 }
 0xb30   : > { %v9102_v0 = vmul.f32 -1.442695, %v13844_v8  ;;  %v11467_v55 = vpop.eup %11466  ;;  %v5263_v21 = vmul.f32 %v13704_v33, %v5225_v58  ;;  %v13869_v62 = vadd.f32 %v13718_v35, %v5259_v39  ;;  %11486 = vpow2.f32 %v9099_v34 }
 0xb31   : > { %v9103_v4 = vmul.f32 -1.442695, %v13849_v16  ;;  %v11469_v7 = vpop.eup %11468  ;;  %v5264_v50 = vmul.f32 %v13704_v33, %v5226_v56  ;;  %v13874_v38 = vadd.f32 %v13718_v35, %v5260_v42  ;;  %11488 = vpow2.f32 %v9100_v61 }
 0xb32   : > { %v9104_v28 = vmul.f32 -1.442695, %v13854_v32  ;;  %v11471_v52 = vpop.eup %11470  ;;  %v13878_v18 = vadd.f32 %v13718_v35, %v5261_v20  ;;  %11490 = vpow2.f32 %v9101_v11  ;;  %v9105_v58 = vmul.f32 -1.442695, %v13859_v45 }
 0xb33   : > { %v11473_v2 = vpop.eup %11472  ;;  %v13882_v5 = vadd.f32 %v13718_v35, %v5262_v1  ;;  %11492 = vpow2.f32 %v9102_v0  ;;  %v9106_v56 = vmul.f32 -1.442695, %v13864_v27  ;;  %v13886_v63 = vadd.f32 %v13718_v35, %v5263_v21 }
 0xb34   : > { %v11475_v6 = vpop.eup %11474  ;;  %11494 = vpow2.f32 %v9103_v4  ;;  %v9107_v24 = vmul.f32 -1.442695, %v13869_v62  ;;  %v13890_v49 = vadd.f32 %v13718_v35, %v5264_v50  ;;  %v9108_v31 = vmul.f32 -1.442695, %v13874_v38 }
 0xb35   : > { %v11477_v29 = vpop.eup %11476  ;;  %11496 = vpow2.f32 %v9104_v28  ;;  %v5227_v39 = vmul.f32 %v13697_v54, %v13534_v51  ;;  %v9109_v34 = vmul.f32 -1.442695, %v13878_v18  ;;  %v5228_v61 = vmul.f32 %v13697_v54, %v13537_v43 }
 0xb36   : > { %v13893_v12 = vpop.eup %11478  ;;  %11498 = vpow2.f32 %v9105_v58  ;;  %v9110_v20 = vmul.f32 -1.442695, %v13882_v5  ;;  %v5229_v1 = vmul.f32 %v13697_v54, %v13540_v40  ;;  %v9111_v0 = vmul.f32 -1.442695, %v13886_v63 }
 0xb37   : > { %v13898_v42 = vpop.eup %11480  ;;  %11500 = vpow2.f32 %v9106_v56  ;;  %v5232_v51 = vmul.f32 %v13697_v54, %v13548_v13  ;;  %v9112_v4 = vmul.f32 -1.442695, %v13890_v49  ;;  %v5265_v43 = vmul.f32 %v13704_v33, %v5227_v39 }
 0xb38   : > { %v11483_v11 = vpop.eup %11482  ;;  %11502 = vpow2.f32 %v9107_v24  ;;  %v5405_v28 = vadd.f32 1.0, %v11463_v59  ;;  %v5266_v40 = vmul.f32 %v13704_v33, %v5228_v61  ;;  %v5406_v56 = vadd.f32 1.0, %v11465_v19 }
 0xb39   : > { %v11485_v21 = vpop.eup %11484  ;;  %11504 = vpow2.f32 %v9108_v31  ;;  %v5267_v46 = vmul.f32 %v13704_v33, %v5229_v1  ;;  %v5407_v13 = vadd.f32 1.0, %v11467_v55  ;;  %v5270_v26 = vmul.f32 %v13704_v33, %v5232_v51 }
 0xb3a   : > { %v13909_v50 = vpop.eup %11486  ;;  %11506 = vpow2.f32 %v9109_v34  ;;  %v5408_v39 = vadd.f32 1.0, %v11469_v7  ;;  %v5230_v59 = vmul.f32 %v13697_v54, %v13542_v47  ;;  %v13926_v61 = vadd.f32 %v13718_v35, %v5265_v43 }
 0xb3b   : > { %v13912_v58 = vpop.eup %11488  ;;  %11508 = vpow2.f32 %v9110_v20  ;;  %v5409_v19 = vadd.f32 1.0, %v11471_v52  ;;  %v13931_v55 = vadd.f32 %v13718_v35, %v5266_v40  ;;  %v5410_v1 = vadd.f32 1.0, %v11473_v2 }
 0xb3c   : > { %v13915_v24 = vpop.eup %11490  ;;  %11510 = vpow2.f32 %v9111_v0  ;;  %v13936_v7 = vadd.f32 %v13718_v35, %v5267_v46  ;;  %v5411_v51 = vadd.f32 1.0, %v11475_v6  ;;  %v13941_v54 = vadd.f32 %v13718_v35, %v5270_v26 }
 0xb3d   : > { %v13918_v31 = vpop.eup %11492  ;;  %11512 = vpow2.f32 %v9112_v4  ;;  %v5412_v52 = vadd.f32 1.0, %v11477_v29  ;;  %v5268_v43 = vmul.f32 %v13704_v33, %v5230_v59  ;;  %v9113_v2 = vmul.f32 -1.442695, %v13926_v61 }
 0xb3e   : > { %v13921_v34 = vpop.eup %11494  ;;  %11514 = vrcp.f32 %v5405_v28  ;;  %15203 = vst [vmem:[#allocation5_spill] sm:$0xff] %v13936_v7  ;;  %v9114_v46 = vmul.f32 -1.442695, %v13931_v55  ;;  %v9115_v40 = vmul.f32 -1.442695, %v13936_v7  ;;  %v5414_v59 = vadd.f32 1.0, %v13898_v42 }
 0xb3f   : > { %v13928_v20 = vpop.eup %11496  ;;  %11516 = vrcp.f32 %v5406_v56  ;;  %v9118_v29 = vmul.f32 -1.442695, %v13941_v54  ;;  %v13959_v33 = vadd.f32 %v13718_v35, %v5268_v43  ;;  %v5416_v9 = vadd.f32 1.0, %v11485_v21 }
 0xb40   : > { %v13933_v0 = vpop.eup %11498  ;;  %11518 = vrcp.f32 %v5407_v13  ;;  %v5413_v13 = vadd.f32 1.0, %v13893_v12  ;;  %v5417_v21 = vadd.f32 1.0, %v13909_v50  ;;  %v5419_v50 = vadd.f32 1.0, %v13915_v24 }
 0xb41   : > { %v13938_v47 = vpop.eup %11500  ;;  %11520 = vrcp.f32 %v5408_v39  ;;  %v9116_v35 = vmul.f32 -1.442695, %v13959_v33  ;;  %v5421_v24 = vadd.f32 1.0, %v13921_v34 }
 0xb42   : > { %v13943_v4 = vpop.eup %11502  ;;  %11522 = vrcp.f32 %v5409_v19 }
 0xb43   : > { %v13947_v28 = vpop.eup %11504  ;;  %11524 = vrcp.f32 %v5410_v1  ;;  %v5415_v1 = vadd.f32 1.0, %v11483_v11 }
 0xb44   : > { %v13950_v6 = vpop.eup %11506  ;;  %11526 = vrcp.f32 %v5411_v51 }
 0xb45   : > { %v13953_v26 = vpop.eup %11508  ;;  %11528 = vrcp.f32 %v5412_v52 }
 0xb46   : > { %v13956_v56 = vpop.eup %11510  ;;  %11530 = vpow2.f32 %v9113_v2  ;;  %v9117_v2 = vmul.f32 -1.442695, %v13745_v10 }
 0xb47   : > { %v13962_v39 = vpop.eup %11512  ;;  %11532 = vpow2.f32 %v9114_v46 }
 0xb48   : > { %v11515_v19 = vpop.eup %11514  ;;  %11534 = vpow2.f32 %v9115_v40 }
 0xb49   : > { %v11517_v51 = vpop.eup %11516  ;;  %11536 = vpow2.f32 %v9118_v29  ;;  %v13966_v52 = vmul.f32 %v11515_v19, %v13753_v23 }
 0xb4a   : > { %v11519_v7 = vpop.eup %11518  ;;  %11538 = vrcp.f32 %v5413_v13  ;;  %v13970_v12 = vmul.f32 %v11517_v51, %v13761_v48  ;;  %v5418_v48 = vadd.f32 1.0, %v13912_v58 }
 0xb4b   : > { %v11521_v43 = vpop.eup %11520  ;;  %11540 = vrcp.f32 %v5414_v59  ;;  %v13974_v42 = vmul.f32 %v11519_v7, %v13769_v15  ;;  %v5420_v59 = vadd.f32 1.0, %v13918_v31  ;;  %v5422_v31 = vadd.f32 1.0, %v13928_v20 }
 0xb4c   : > { %v11523_v11 = vpop.eup %11522  ;;  %11542 = vrcp.f32 %v5415_v1  ;;  %v13978_v23 = vmul.f32 %v11521_v43, %v13777_v3  ;;  %v15146_v46 = vrot.slane %v13970_v12, 1  ;;  %v13985_v13 = vpack.c.bf16 %v13970_v12, %v13966_v52 }
 0xb4d   : > { %v11525_v40 = vpop.eup %11524  ;;  %11544 = vrcp.f32 %v5416_v9  ;;  %v15145_v29 = vrot.slane %v13974_v42, 1  ;;  %v14008_v1 = vmul.f32 %v11523_v11, %v13783_v30  ;;  %v5423_v43 = vadd.f32 1.0, %v13933_v0 }
 0xb4e   : > { %15204 = vst [vmem:[#allocation6_spill] sm:$0xff] %v13985_v13  ;;  %v11527_v15 = vpop.eup %11526  ;;  %11546 = vpow2.f32 %v9116_v35  ;;  %v13990_v3 = vpack.c.bf16 %v13978_v23, %v13974_v42  ;;  %10248 = vmatmul.mubr.msk.bf16.vlgmr.msra.gmra.mrb[36].mxu1 %vm4669_vm7, %v13985_v13  ;;  %v14011_v51 = vmul.f32 %v11525_v40, %v13790_v60  ;;  %v5424_v20 = vadd.f32 1.0, %v13938_v47 }
 0xb4f   : > { %v11529_v7 = vpop.eup %11528  ;;  %11548 = vpow2.f32 %v9117_v2  ;;  %v13999_v9 = vsel %vm2252_vm5, %v15146_v46, %v15145_v29  ;;  %v14015_v34 = vmul.f32 %v11527_v15, %v13797_v25  ;;  %v5425_v30 = vadd.f32 1.0, %v13943_v4 }
 0xb50   : > { %15205 = vst [vmem:[#allocation7_spill] sm:$0xff] %v13990_v3  ;;  %v11531_v58 = vpop.eup %11530  ;;  %11550 = vrcp.f32 %v5417_v21  ;;  %10251 = vmatprep.mubr.msk.bf16.mxu1 %vm4669_vm7, %v13990_v3  ;;  %v14018_v2 = vmul.f32 %v11529_v7, %v13804_v41  ;;  %v5426_v11 = vadd.f32 1.0, %v13947_v28  ;;  %v5427_v0 = vadd.f32 1.0, %v13950_v6 }
 0xb51   : > { %v11533_v19 = vpop.eup %11532  ;;  %11552 = vrcp.f32 %v5418_v48  ;;  %v14026_v25 = vpack.c.bf16 %v14011_v51, %v14008_v1  ;;  %v5428_v40 = vadd.f32 1.0, %v13953_v26  ;;  %v5429_v47 = vadd.f32 1.0, %v13956_v56 }
 0xb52   : > { %v11535_v35 = vpop.eup %11534  ;;  %11554 = vrcp.f32 %v5419_v50  ;;  %v14032_v4 = vpack.c.bf16 %v14018_v2, %v14015_v34  ;;  %v5430_v28 = vadd.f32 1.0, %v13962_v39  ;;  %v5534_v6 = vrot.slane %v13970_v12, 7 }
 0xb53   : > { %v11537_v21 = vpop.eup %11536  ;;  %11556 = vrcp.f32 %v5420_v59  ;;  %15206 = vst [vmem:[#allocation8_spill] sm:$0xff] %v14026_v25  ;;  %v5535_v50 = vrot.slane %v13974_v42, 7  ;;  %v5431_v26 = vadd.f32 1.0, %v11531_v58  ;;  %v5432_v59 = vadd.f32 1.0, %v11533_v19 }
 0xb54   : > { %v11539_v48 = vpop.eup %11538  ;;  %11558 = vrcp.f32 %v5421_v24  ;;  %15207 = vst [vmem:[#allocation9_spill] sm:$0xff] %v14032_v4  ;;  %v5433_v56 = vadd.f32 1.0, %v11535_v35  ;;  %v5536_v19 = vrot.slane %v13978_v23, 7 }
 0xb55   : > { %v11541_v60 = vpop.eup %11540  ;;  %11560 = vrcp.f32 %v5422_v31  ;;  %v5436_v31 = vadd.f32 1.0, %v11537_v21  ;;  %v14042_v39 = vmul.f32 %v11539_v48, %v13809_v17  ;;  %v5594_v17 = vsel %vm1512_vm3, %v5534_v6, %v5535_v50 }
 0xb56   : > { %v11543_v41 = vpop.eup %11542  ;;  %11562 = vrcp.f32 %v5423_v43  ;;  %10252 = vmatmul.mubr.msk.bf16.gmra.mrb[40].mxu1 %vm4669_vm7, %v14026_v25  ;;  %v14045_v43 = vmul.f32 %v11541_v60, %v13814_v53  ;;  %v5537_v21 = vrot.slane %v14008_v1, 7  ;;  %v5538_v60 = vrot.slane %v14011_v51, 7 }
 0xb57   : > { %v11545_v15 = vpop.eup %11544  ;;  %11564 = vrcp.f32 %v5424_v20  ;;  %10255 = vmatprep.mubr.msk.bf16.mxu1 %vm4669_vm7, %v14032_v4  ;;  %v14048_v29 = vmul.f32 %v11543_v41, %v13819_v14  ;;  %v5539_v14 = vrot.slane %v14015_v34, 7 }
 0xb58   : > { %v11547_v7 = vpop.eup %11546  ;;  %11566 = vrcp.f32 %v5425_v30  ;;  %v14051_v58 = vmul.f32 %v11545_v15, %v13824_v57  ;;  %v14063_v41 = vpack.c.bf16 %v14045_v43, %v14042_v39  ;;  %v5593_v15 = vsel %vm1512_vm3, %v5535_v50, %v5536_v19 }
 0xb59   : > { %v11549_v24 = vpop.eup %11548  ;;  %11568 = vrcp.f32 %v5426_v11  ;;  %v5434_v30 = vadd.f32 1.0, %v11547_v7  ;;  %v5590_v46 = vsel %vm1512_vm3, %v5538_v60, %v5539_v14 }
 0xb5a   : > { %v11551_v20 = vpop.eup %11550  ;;  %11570 = vrcp.f32 %v5427_v0  ;;  %v5435_v48 = vadd.f32 1.0, %v11549_v24  ;;  %15208 = vst [vmem:[#allocation11_spill] sm:$0xff] %v14063_v41  ;;  %v14071_v7 = vpack.c.bf16 %v14051_v58, %v14048_v29  ;;  %v5592_v0 = vsel %vm1512_vm3, %v5536_v19, %v5537_v21 }
 0xb5b   : > { %v11553_v35 = vpop.eup %11552  ;;  %11572 = vrcp.f32 %v5428_v40  ;;  %v5542_v19 = vrot.slane %v14045_v43, 7 }
 0xb5c   : > { %v11555_v53 = vpop.eup %11554  ;;  %11574 = vrcp.f32 %v5429_v47  ;;  %v5601_v47 = vsel %vm490_vm4, %v5594_v17, 0.0  ;;  %15209 = vst [vmem:[#allocation12_spill] sm:$0xff] %v14071_v7  ;;  %v14082_v17 = vmul.f32 %v11553_v35, %v13834_v22  ;;  %v15212_v35 = vrot.slane %v13966_v52, 7 }
 0xb5d   : > { %v11557_v11 = vpop.eup %11556  ;;  %11576 = vrcp.f32 %v5436_v31  ;;  %v14074_v31 = vmul.f32 %v11551_v20, %v13829_v36  ;;  %v5541_v36 = vrot.slane %v14042_v39, 7  ;;  %v14090_v20 = vmul.f32 %v11555_v53, %v13839_v37 }
 0xb5e   : > { %v11559_v40 = vpop.eup %11558  ;;  %11578 = vrcp.f32 %v5430_v28  ;;  %v5540_v28 = vrot.slane %v14018_v2, 7  ;;  %10256 = vmatmul.mubr.msk.bf16.gmra.mrb[44].mxu1 %vm4669_vm7, %v14063_v41  ;;  %15211 = vst [vmem:[#allocation14_spill] sm:$0xff] %v14082_v17  ;;  %v14095_v22 = vmul.f32 %v11557_v11, %v13844_v8  ;;  %v5591_v37 = vsel %vm1512_vm3, %v5537_v21, %v5538_v60 }
 0xb5f   : > { %v11561_v24 = vpop.eup %11560  ;;  %11580 = vrcp.f32 %v5431_v26  ;;  %15210 = vst [vmem:[#allocation13_spill] sm:$0xff] %v14074_v31  ;;  %10259 = vmatprep.mubr.msk.bf16.mxu1 %vm4669_vm7, %v14071_v7  ;;  %v5595_v7 = vsel %vm1512_vm3, %v15212_v35, %v5534_v6  ;;  %v5544_v8 = vrot.slane %v14051_v58, 7  ;;  %v14110_v4 = vpack.c.bf16 %v5593_v15, %v5601_v47 }
 0xb60   : > { %v11563_v50 = vpop.eup %11562  ;;  %11582 = vrcp.f32 %v5432_v59  ;;  %v5543_v59 = vrot.slane %v14048_v29, 7  ;;  %v5589_v53 = vsel %vm1512_vm3, %v5539_v14, %v5540_v28  ;;  %v5588_v6 = vsel %vm1512_vm3, %v5540_v28, %v5541_v36 }
 0xb61   : > { %v11565_v26 = vpop.eup %11564  ;;  %11584 = vrcp.f32 %v5433_v56  ;;  %v5603_v56 = vsel %vm490_vm4, %v5592_v0, 0.0  ;;  %v5545_v0 = vrot.slane %v14074_v31, 7  ;;  %v14119_v60 = vpack.c.bf16 %v14082_v17, %v14074_v31 }
 0xb62   : > { %v11567_v57 = vpop.eup %11566  ;;  %11586 = vrcp.f32 %v5434_v30  ;;  %v5605_v30 = vsel %vm490_vm4, %v5590_v46, 0.0  ;;  %v5586_v21 = vsel %vm1512_vm3, %v5542_v19, %v5543_v59  ;;  %v5546_v46 = vrot.slane %v14082_v17, 7 }
 0xb63   : > { %v11569_v41 = vpop.eup %11568  ;;  %11588 = vrcp.f32 %v5435_v48  ;;  %v5547_v14 = vrot.slane %v14090_v20, 7  ;;  %v14124_v15 = vmul.f32 %v11559_v40, %v13849_v16  ;;  %v14126_v47 = vpack.c.bf16 %v5591_v37, %v5603_v56 }
 0xb64   : > { %v11571_v11 = vpop.eup %11570  ;;  %v14128_v28 = vpack.c.bf16 %v5589_v53, %v5605_v30  ;;  %v14132_v25 = vpack.c.bf16 %v14095_v22, %v14090_v20  ;;  %v14135_v13 = vmul.f32 %v11561_v24, %v13854_v32  ;;  %v5587_v17 = vsel %vm1512_vm3, %v5541_v36, %v5542_v19 }
 0xb65   : > { %v11573_v35 = vpop.eup %11572  ;;  %v5607_v31 = vsel %vm490_vm4, %v5588_v6, 0.0  ;;  %v5585_v16 = vsel %vm1512_vm3, %v5543_v59, %v5544_v8  ;;  %v5609_v32 = vsel %vm490_vm4, %v5586_v21, 0.0  ;;  %v5584_v24 = vsel %vm1512_vm3, %v5544_v8, %v5545_v0 }
 0xb66   : > { %v11575_v48 = vpop.eup %11574  ;;  %10260 = vmatmul.mubr.msk.bf16.gmra.mrb[48].mxu1 %vm4669_vm7, %v14119_v60  ;;  %v5548_v36 = vrot.slane %v14095_v22, 7  ;;  %v14156_v59 = vmul.f32 %v11563_v50, %v13859_v45  ;;  %v14159_v37 = vmul.f32 %v11565_v26, %v13864_v27  ;;  %v14167_v30 = vmul.f32 %v11569_v41, %v13874_v38 }
 0xb67   : > { %v11577_v3 = vpop.eup %11576  ;;  %10263 = vmatprep.mubr.msk.bf16.mxu1 %vm4669_vm7, %v14132_v25  ;;  %v14170_v8 = vmul.f32 %v11571_v11, %v13878_v18  ;;  %v14173_v45 = vpack.c.bf16 %v5587_v17, %v5607_v31  ;;  %v14176_v27 = vmul.f32 %v11573_v35, %v13882_v5  ;;  %v5611_v38 = vsel %vm490_vm4, %v5584_v24, 0.0 }
 0xb68   : > { %v11579_v40 = vpop.eup %11578  ;;  %v14146_v56 = vmul.f32 %v11577_v3, %v13941_v54  ;;  %v14162_v54 = vmul.f32 %v11567_v57, %v13869_v62  ;;  %v5582_v3 = vsel %vm1512_vm3, %v5546_v46, %v5547_v14  ;;  %v14178_v62 = vpack.c.bf16 %v5585_v16, %v5609_v32 }
 0xb69   : > { %v11581_v19 = vpop.eup %11580  ;;  %v5583_v57 = vsel %vm1512_vm3, %v5545_v0, %v5546_v46  ;;  %v15213_v18 = vrot.slane %v13966_v52, 7  ;;  %v5581_v5 = vsel %vm1512_vm3, %v5547_v14, %v5548_v36  ;;  %v5613_v17 = vsel %vm490_vm4, %v5582_v3, 0.0 }
 0xb6a   : > { %v11583_v53 = vpop.eup %11582  ;;  %v15161_v6 = vrot.slane %v14146_v56, 7  ;;  %v15160_v26 = vrot.slane %v14124_v15, 7  ;;  %v14196_v11 = vmul.f32 %v11575_v48, %v13886_v63  ;;  %v14199_v0 = vmul.f32 %v11579_v40, %v13890_v49  ;;  %v11301_v63 = vld [vmem:[%s15103_s6 + $0x48] sm:$0xff]   ;;  %v15214_v48 = vld [vmem:[#allocation5_spill] sm:$0xff] }
 0xb6b   : > { %v11585_v50 = vpop.eup %11584  ;;  %v14205_v21 = vpack.c.bf16 %v14135_v13, %v14124_v15  ;;  %v14208_v14 = vmul.f32 %v11581_v19, %v13926_v61  ;;  %v14211_v16 = vmul.f32 %v11583_v53, %v13931_v55  ;;  %v14220_v49 = vpack.c.bf16 %v14159_v37, %v14156_v59 }
 0xb6c   : > { %v11587_v41 = vpop.eup %11586  ;;  %v5596_v31 = vsel %vm1512_vm3, %v15161_v6, %v15213_v18  ;;  %v14223_v40 = vmul.f32 %v11585_v50, %v15214_v48  ;;  %v14228_v61 = vpack.c.bf16 %v5583_v57, %v5611_v38  ;;  %v14230_v55 = vpack.c.bf16 %v5581_v5, %v5613_v17  ;;  %v15215_v50 = vld [vmem:[#allocation4_spill] sm:$0xff] }
 0xb6d   : > { %v5599_v35 = vsel %vm490_vm4, %v5596_v31, 0.0  ;;  %v11589_v46 = vpop.eup %11588  ;;  %v14226_v24 = vmul.f32 %v11587_v41, %v13959_v33  ;;  %v14243_v33 = vsel %vm1512_vm3, %v5548_v36, %v15160_v26  ;;  %v14255_v57 = vpack.c.bf16 %v14167_v30, %v14162_v54  ;;  %v11302_v31 = vld [vmem:[%s15103_s6 + $0x50] sm:$0xff]  }
 0xb6e   : > { %v14213_v32 = vpack.c.bf16 %v5595_v7, %v5599_v35  ;;  %10264 = vmatmul.mubr.msk.bf16.gmra.mrb[52].mxu1 %vm4669_vm7, %v14205_v21  ;;  %v14248_v53 = vmul.f32 %v11589_v46, %v13745_v10  ;;  %v15216_v38 = vrot.slane %v13970_v12, 1  ;;  %v15217_v36 = vrot.slane %v13966_v52, 1 }
 0xb6f   : > { %10267 = vmatprep.mubr.msk.bf16.mxu1 %vm4669_vm7, %v14220_v49  ;;  %v6243_v10 = vsel %vm493_vm6, %v13999_v9, 0.0  ;;  %v14271_v5 = vpack.c.bf16 %v14176_v27, %v14170_v8  ;;  %v14275_v12 = vpack.c.bf16 %v14199_v0, %v14196_v11  ;;  %v14279_v17 = vpack.c.bf16 %v14211_v16, %v14208_v14 }
 0xb70   : > { %10288 = vmatmul.mubr.msk.bf16.vlgmr.msra.gmra.mrb[12].mxu0 %vm4669_vm7, %v14213_v32  ;;  %v6238_v41 = vsel %vm2252_vm5, %v15217_v36, %v15216_v38  ;;  %v14285_v9 = vpack.c.bf16 %v14226_v24, %v14223_v40  ;;  %v6179_v46 = vrot.slane %v13978_v23, 1  ;;  %v6180_v48 = vrot.slane %v14008_v1, 1 }
 0xb71   : > { %10320 = vmatpush3.bf16.msra.mxu0 %v15215_v50  ;;  %10291 = vmatprep.mubr.msk.bf16.mxu0 %vm4669_vm7, %v14110_v4  ;;  %15219 = vst [vmem:[#allocation2_spill] sm:$0xff] %v14275_v12  ;;  %15220 = vst [vmem:[#allocation3_spill] sm:$0xff] %v14279_v17  ;;  %v14281_v35 = vpack.c.bf16 %v6243_v10, %v6238_v41  ;;  %v6181_v50 = vrot.slane %v14011_v51, 1  ;;  %v6182_v36 = vrot.slane %v14015_v34, 1  ;;  %v6183_v3 = vrot.slane %v14018_v2, 1  ;;  %v11303_v34 = vld [vmem:[%s15103_s6 + $0x58] sm:$0xff]  }
 0xb72   : > { %10321 = vmatprep.subr.bf16.mxu0 %v11301_v63  ;;  %15221 = vst [vmem:[#allocation5_spill] sm:$0xff] %v14285_v9  ;;  %v6184_v26 = vrot.slane %v14042_v39, 1  ;;  %v6235_v41 = vsel %vm2252_vm5, %v6179_v46, %v6180_v48  ;;  %v15222_v10 = vrot.slane %v13974_v42, 1  ;;  %v6185_v51 = vrot.slane %v14045_v43, 1 }
 0xb73   : > { %v6234_v1 = vsel %vm2252_vm5, %v6180_v48, %v6181_v50  ;;  %v6245_v2 = vsel %vm493_vm6, %v6235_v41, 0.0  ;;  %v6233_v39 = vsel %vm2252_vm5, %v6181_v50, %v6182_v36  ;;  %v6186_v41 = vrot.slane %v14048_v29, 1 }
 0xb74   : > { %v6236_v23 = vsel %vm2252_vm5, %v15222_v10, %v6179_v46  ;;  %v6231_v42 = vsel %vm2252_vm5, %v6183_v3, %v6184_v26  ;;  %v6247_v46 = vsel %vm493_vm6, %v6233_v39, 0.0  ;;  %v6187_v10 = vrot.slane %v14051_v58, 1  ;;  %v15224_v39 = vld [vmem:[#allocation14_spill] sm:$0xff] }
 0xb75   : > { %10322 = vmatpush3.bf16.msra.mxu0 %v11301_v63  ;;  %v6232_v63 = vsel %vm2252_vm5, %v6182_v36, %v6183_v3  ;;  %v14316_v43 = vpack.c.bf16 %v6245_v2, %v6236_v23  ;;  %v6249_v48 = vsel %vm493_vm6, %v6231_v42, 0.0  ;;  %v14327_v3 = vpack.c.bf16 %v6247_v46, %v6234_v1  ;;  %v15223_v23 = vld [vmem:[#allocation13_spill] sm:$0xff] }
 0xb76   : > { %10323 = vmatprep.subr.bf16.mxu0 %v11302_v31  ;;  %10268 = vmatmul.mubr.msk.bf16.gmra.mrb[56].mxu1 %vm4669_vm7, %v14255_v57  ;;  %v14329_v50 = vpack.c.bf16 %v6249_v48, %v6232_v63  ;;  %v6230_v36 = vsel %vm2252_vm5, %v6184_v26, %v6185_v51  ;;  %v6229_v29 = vsel %vm2252_vm5, %v6185_v51, %v6186_v41  ;;  %v6188_v2 = vrot.slane %v15223_v23, 1  ;;  %v14344_v26 = vld [vmem:[%s15103_s6 + $0x60] sm:$0xff]  }
 0xb77   : > { %10271 = vmatprep.mubr.msk.bf16.mxu1 %vm4669_vm7, %v14271_v5  ;;  %v6189_v42 = vrot.slane %v15224_v39, 1  ;;  %v6190_v1 = vrot.slane %v14090_v20, 1  ;;  %v6251_v58 = vsel %vm493_vm6, %v6229_v29, 0.0  ;;  %v6191_v51 = vrot.slane %v14095_v22, 1 }
 0xb78   : > { %10292 = vmatmul.mubr.msk.bf16.gmra.mrb[16].mxu0 %vm4669_vm7, %v14126_v47  ;;  %v6192_v63 = vrot.slane %v14124_v15, 1  ;;  %v14352_v46 = vpack.c.bf16 %v6251_v58, %v6230_v36  ;;  %v6227_v20 = vsel %vm2252_vm5, %v6187_v10, %v6188_v2  ;;  %v5556_v18 = vrot.slane %v14176_v27, 7 }
 0xb79   : > { %10295 = vmatprep.mubr.msk.bf16.mxu0 %vm4669_vm7, %v14128_v28  ;;  %10324 = vmatpush3.bf16.msra.mxu0 %v11302_v31  ;;  %v6228_v31 = vsel %vm2252_vm5, %v6186_v41, %v6187_v10  ;;  %v6225_v48 = vsel %vm2252_vm5, %v6189_v42, %v6190_v1  ;;  %v6226_v23 = vsel %vm2252_vm5, %v6188_v2, %v6189_v42  ;;  %v6253_v29 = vsel %vm493_vm6, %v6227_v20, 0.0 }
 0xb7a   : > { %10325 = vmatprep.subr.bf16.mxu0 %v11303_v34  ;;  %v6255_v41 = vsel %vm493_vm6, %v6225_v48, 0.0  ;;  %v6223_v22 = vsel %vm2252_vm5, %v6191_v51, %v6192_v63  ;;  %v6224_v36 = vsel %vm2252_vm5, %v6190_v1, %v6191_v51  ;;  %v14368_v10 = vpack.c.bf16 %v6253_v29, %v6228_v31 }
 0xb7b   : > { %v14370_v39 = vpack.c.bf16 %v6255_v41, %v6226_v23  ;;  %v6257_v2 = vsel %vm493_vm6, %v6223_v22, 0.0  ;;  %v6193_v42 = vrot.slane %v14135_v13, 1  ;;  %v6194_v20 = vrot.slane %v14156_v59, 1 }
 0xb7c   : > { %v14376_v58 = vpack.c.bf16 %v6257_v2, %v6224_v36  ;;  %v6195_v48 = vrot.slane %v14159_v37, 1  ;;  %v6196_v1 = vrot.slane %v14162_v54, 1  ;;  %v6197_v31 = vrot.slane %v14167_v30, 1 }
 0xb7d   : > { %10326 = vmatpush3.bf16.msra.mxu0 %v11303_v34  ;;  %v6222_v34 = vsel %vm2252_vm5, %v6192_v63, %v6193_v42  ;;  %v6198_v51 = vrot.slane %v14170_v8, 1  ;;  %v6199_v23 = vrot.slane %v14176_v27, 1  ;;  %v6221_v29 = vsel %vm2252_vm5, %v6193_v42, %v6194_v20 }
 0xb7e   : > { %10359 = vmatprep.subr.bf16.mxu0 %v14344_v26  ;;  %10272 = vmatmul.mubr.msk.bf16.gmra.mrb[60].mxu1 %vm4669_vm7, %v14275_v12  ;;  %v6219_v41 = vsel %vm2252_vm5, %v6195_v48, %v6196_v1  ;;  %v6220_v63 = vsel %vm2252_vm5, %v6194_v20, %v6195_v48  ;;  %v6200_v22 = vrot.slane %v14196_v11, 1  ;;  %v6259_v36 = vsel %vm493_vm6, %v6221_v29, 0.0 }
 0xb7f   : > { %10275 = vmatprep.mubr.msk.bf16.mxu1 %vm4669_vm7, %v14279_v17  ;;  %v6261_v2 = vsel %vm493_vm6, %v6219_v41, 0.0  ;;  %v6217_v42 = vsel %vm2252_vm5, %v6197_v31, %v6198_v51  ;;  %v6218_v38 = vsel %vm2252_vm5, %v6196_v1, %v6197_v31  ;;  %v14409_v7 = vpack.c.bf16 %v6259_v36, %v6222_v34 }
 0xb80   : > { %10296 = vmatmul.mubr.msk.bf16.gmra.mrb[20].mxu0 %vm4669_vm7, %v14173_v45  ;;  %v14411_v20 = vpack.c.bf16 %v6261_v2, %v6220_v63  ;;  %v6263_v48 = vsel %vm493_vm6, %v6217_v42, 0.0  ;;  %v6215_v19 = vsel %vm2252_vm5, %v6199_v23, %v6200_v22  ;;  %v6216_v41 = vsel %vm2252_vm5, %v6198_v51, %v6199_v23 }
 0xb81   : > { %10299 = vmatprep.mubr.msk.bf16.mxu0 %vm4669_vm7, %v14178_v62  ;;  %v14417_v29 = vpack.c.bf16 %v6263_v48, %v6218_v38  ;;  %v6265_v6 = vsel %vm493_vm6, %v6215_v19, 0.0  ;;  %v6201_v1 = vrot.slane %v14199_v0, 1  ;;  %v6202_v31 = vrot.slane %v14208_v14, 1 }
 0xb82   : > { %v14424_v34 = vpack.c.bf16 %v6265_v6, %v6216_v41  ;;  %v6203_v63 = vrot.slane %v14211_v16, 1  ;;  %v6204_v36 = vrot.slane %v14223_v40, 1  ;;  %v6205_v2 = vrot.slane %v14226_v24, 1 }
 0xb83   : > { %v6214_v38 = vsel %vm2252_vm5, %v6200_v22, %v6201_v1  ;;  %v6206_v51 = vrot.slane %v14248_v53, 1  ;;  %v5563_v23 = vrot.slane %v14248_v53, 7  ;;  %v6213_v19 = vsel %vm2252_vm5, %v6201_v1, %v6202_v31 }
 0xb84   : > { %v6211_v6 = vsel %vm2252_vm5, %v6203_v63, %v6204_v36  ;;  %v6212_v42 = vsel %vm2252_vm5, %v6202_v31, %v6203_v63  ;;  %v14442_v48 = vpack.c.bf16 %v14146_v56, %v14248_v53  ;;  %v6267_v22 = vsel %vm493_vm6, %v6213_v19, 0.0 }
 0xb85   : > { %v6269_v41 = vsel %vm493_vm6, %v6211_v6, 0.0  ;;  %v6209_v1 = vsel %vm2252_vm5, %v6205_v2, %v6206_v51  ;;  %v6210_v17 = vsel %vm2252_vm5, %v6204_v36, %v6205_v2  ;;  %v14456_v53 = vpack.c.bf16 %v6267_v22, %v6214_v38 }
 0xb86   : > { %15225 = vst [vmem:[#allocation4_spill] sm:$0xff] %v14442_v48  ;;  %10276 = vmatmul.mubr.msk.bf16.gmra.mrb[64].mxu1 %vm4669_vm7, %v14285_v9  ;;  %v14458_v31 = vpack.c.bf16 %v6269_v41, %v6212_v42  ;;  %v6271_v63 = vsel %vm493_vm6, %v6209_v1, 0.0  ;;  %v15226_v19 = vrot.slane %v14146_v56, 7  ;;  %v15227_v36 = vrot.slane %v14156_v59, 7 }
 0xb87   : > { %v15228_v2 = vrot.slane %v14135_v13, 7  ;;  %v14474_v42 = vpack.c.bf16 %v6271_v63, %v6210_v17  ;;  %v15229_v22 = vrot.slane %v14226_v24, 7  ;;  %v6207_v1 = vrot.slane %v14146_v56, 1 }
 0xb88   : > { %10300 = vmatmul.mubr.msk.bf16.gmra.mrb[24].mxu0 %vm4669_vm7, %v14228_v61  ;;  %v5565_v6 = vsel %vm1512_vm3, %v5563_v23, %v15226_v19  ;;  %v15231_v48 = vrot.slane %v14124_v15, 7  ;;  %v5615_v17 = vsel %vm490_vm4, %v14243_v33, 0.0  ;;  %v15232_v56 = vrot.slane %v13966_v52, 1 }
 0xb89   : > { %10303 = vmatprep.mubr.msk.bf16.mxu0 %vm4669_vm7, %v14230_v55  ;;  %v5578_v38 = vsel %vm1512_vm3, %v15228_v2, %v15227_v36  ;;  %v5566_v41 = vsel %vm1512_vm3, %v15229_v22, %v5563_v23  ;;  %v15230_v19 = vmov %v15228_v2  ;;  %v6208_v23 = vsel %vm2252_vm5, %v6206_v51, %v6207_v1 }
 0xb8a   : > { %v5579_v9 = vsel %vm1512_vm3, %v15231_v48, %v15230_v19  ;;  %v6592_v12 = vsel %vm490_vm4, %v5566_v41, 0.0  ;;  %v6239_v13 = vsel %vm2252_vm5, %v6207_v1, %v15232_v56  ;;  %v15233_v15 = vrot.slane %v14159_v37, 7 }
 0xb8b   : > { %v14492_v63 = vpack.c.bf16 %v5565_v6, %v6592_v12  ;;  %v15234_v48 = vmov %v15227_v36  ;;  %v5617_v33 = vsel %vm490_vm4, %v5578_v38, 0.0  ;;  %v5553_v12 = vrot.slane %v14162_v54, 7 }
 0xb8c   : > { %v5577_v36 = vsel %vm1512_vm3, %v15234_v48, %v15233_v15  ;;  %v7205_v51 = vsel %vm493_vm6, %v6239_v13, 0.0  ;;  %v5554_v52 = vrot.slane %v14167_v30, 7  ;;  %v5555_v6 = vrot.slane %v14170_v8, 7 }
 0xb8d   : > { %v14513_v2 = vpack.c.bf16 %v7205_v51, %v6208_v23  ;;  %v14515_v22 = vpack.c.bf16 %v5579_v9, %v5615_v17  ;;  %v14517_v59 = vpack.c.bf16 %v5577_v36, %v5617_v33  ;;  %v15235_v38 = vmov %v15233_v15 }
 0xb8e   : > { %v5576_v54 = vsel %vm1512_vm3, %v15235_v38, %v5553_v12  ;;  %v5574_v30 = vsel %vm1512_vm3, %v5554_v52, %v5555_v6  ;;  %v5575_v8 = vsel %vm1512_vm3, %v5553_v12, %v5554_v52  ;;  %v5573_v37 = vsel %vm1512_vm3, %v5555_v6, %v5556_v18 }
 0xb8f   : > { %v5619_v9 = vsel %vm490_vm4, %v5576_v54, 0.0  ;;  %v5621_v41 = vsel %vm490_vm4, %v5574_v30, 0.0  ;;  %v5557_v27 = vrot.slane %v14196_v11, 7  ;;  %v5558_v1 = vrot.slane %v14199_v0, 7  ;;  %v11305_v54 = vld [vmem:[%s15103_s6 + $0x68] sm:$0xff]   ;;  %v11310_v30 = vld [vmem:[%s15103_s6 + $0x90] sm:$0xff]  }
 0xb90   : > { %10304 = vmatmul.mubr.msk.bf16.gmra.mrb[28].mxu0 %vm4669_vm7, %v14515_v22  ;;  %v5559_v19 = vrot.slane %v14208_v14, 7  ;;  %v14541_v17 = vpack.c.bf16 %v5575_v8, %v5619_v9  ;;  %v14543_v23 = vpack.c.bf16 %v5573_v37, %v5621_v41  ;;  %v5560_v13 = vrot.slane %v14211_v16, 7  ;;  %v11312_v8 = vld [vmem:[%s15103_s6 + $0xa0] sm:$0xff]  }
 0xb91   : > { %10307 = vmatprep.mubr.msk.bf16.mxu0 %vm4669_vm7, %v14517_v59  ;;  %v5572_v56 = vsel %vm1512_vm3, %v5556_v18, %v5557_v27  ;;  %v5571_v0 = vsel %vm1512_vm3, %v5557_v27, %v5558_v1  ;;  %v5561_v16 = vrot.slane %v14223_v40, 7  ;;  %v15236_v51 = vrot.slane %v14226_v24, 7  ;;  %v11307_v24 = vld [vmem:[%s15103_s6 + $0x78] sm:$0xff]   ;;  %v11309_v18 = vld [vmem:[%s15103_s6 + $0x88] sm:$0xff]  }
 0xb92   : > { %v5570_v11 = vsel %vm1512_vm3, %v5558_v1, %v5559_v19  ;;  %v5623_v14 = vsel %vm490_vm4, %v5572_v56, 0.0  ;;  %v5569_v15 = vsel %vm1512_vm3, %v5559_v19, %v5560_v13  ;;  %v15237_v38 = vmov 0.0|0.0   ;;  %v15238_v1 = vld [vmem:[#allocation6_spill] sm:$0xff] }
 0xb93   : > { %v5625_v48 = vsel %vm490_vm4, %v5570_v11, 0.0  ;;  %v14563_v36 = vpack.c.bf16 %v5571_v0, %v5623_v14  ;;  %v5568_v12 = vsel %vm1512_vm3, %v5560_v13, %v5561_v16  ;;  %v5567_v52 = vsel %vm1512_vm3, %v5561_v16, %v15236_v51  ;;  %v11313_v0 = vld [vmem:[%s15103_s6 + $0xa8] sm:$0xff]   ;;  %v11314_v16 = vld [vmem:[%s15103_s6 + $0xb0] sm:$0xff]  }
 0xb94   : > { %v14565_v33 = vpack.c.bf16 %v5569_v15, %v5625_v48  ;;  %v5627_v40 = vsel %vm490_vm4, %v5568_v12, 0.0  ;;  %v15239_v14 = vld [vmem:[#allocation7_spill] sm:$0xff]  ;;  %v15240_v15 = vld [vmem:[#allocation8_spill] sm:$0xff] }
 0xb95   : > { %v14579_v6 = vpack.c.bf16 %v5567_v52, %v5627_v40  ;;  %v11315_v40 = vld [vmem:[%s15103_s6 + $0xb8] sm:$0xff]  }
 0xb98   : > { %10308 = vmatmul.mubr.msk.bf16.gmra.mrb[32].mxu0 %vm4669_vm7, %v14541_v17 }
 0xb99   : > { %10311 = vmatprep.mubr.msk.bf16.mxu0 %vm4669_vm7, %v14543_v23 }
 0xba0   : > { %10312 = vmatmul.mubr.msk.bf16.gmra.mrb[36].mxu0 %vm4669_vm7, %v14563_v36 }
 0xba1   : > { %10315 = vmatprep.mubr.msk.bf16.mxu0 %vm4669_vm7, %v14565_v33 }
 0xba8   : > { %10316 = vmatmul.mubr.msk.bf16.gmra.mrb[40].mxu0 %vm4669_vm7, %v14579_v6 }
 0xba9   : > { %10327 = vmatprep.mubr.bf16.mxu0 %v15237_v38 }
 0xbb0   : > { %10328 = vmatmul.mubr.msk.bf16.vlgmr.msra.gmra.mrb[12].mxu0 %vm4669_vm7, %v14281_v35 }
 0xbb1   : > { %10360 = vmatpush3.bf16.msra.mxu0 %v14344_v26  ;;  %10331 = vmatprep.mubr.msk.bf16.mxu0 %vm4669_vm7, %v14316_v43  ;;  %v11308_v26 = vld [vmem:[%s15103_s6 + $0x80] sm:$0xff]  }
 0xbb2   : > { %10361 = vmatprep.subr.bf16.mxu0 %v11305_v54 }
 0xbb5   : > { %10362 = vmatpush3.bf16.msra.mxu0 %v11305_v54  ;;  %v15242_v54 = vld [vmem:[#allocation9_spill] sm:$0xff] }
 0xbb6   : > { %10363 = vmatprep.subr.bf16.mxu0 %v11306_v44 }
 0xbb8   : > { %10332 = vmatmul.mubr.msk.bf16.gmra.mrb[16].mxu0 %vm4669_vm7, %v14327_v3 }
 0xbb9   : > { %10335 = vmatprep.mubr.msk.bf16.mxu0 %vm4669_vm7, %v14329_v50  ;;  %10364 = vmatpush3.bf16.msra.mxu0 %v11306_v44  ;;  %v15243_v44 = vld [vmem:[#allocation11_spill] sm:$0xff] }
 0xbba   : > { %10365 = vmatprep.subr.bf16.mxu0 %v11307_v24 }
 0xbbd   : > { %10366 = vmatpush3.bf16.msra.mxu0 %v11307_v24 }
 0xbbe   : > { %10399 = vmatprep.subr.bf16.mxu0 %v11308_v26 }
 0xbc0   : > { %10336 = vmatmul.mubr.msk.bf16.gmra.mrb[20].mxu0 %vm4669_vm7, %v14352_v46 }
 0xbc1   : > { %10339 = vmatprep.mubr.msk.bf16.mxu0 %vm4669_vm7, %v14368_v10 }
 0xbc8   : > { %10340 = vmatmul.mubr.msk.bf16.gmra.mrb[24].mxu0 %vm4669_vm7, %v14370_v39 }
 0xbc9   : > { %10343 = vmatprep.mubr.msk.bf16.mxu0 %vm4669_vm7, %v14376_v58 }
 0xbd0   : > { %10344 = vmatmul.mubr.msk.bf16.gmra.mrb[28].mxu0 %vm4669_vm7, %v14409_v7 }
 0xbd1   : > { %10347 = vmatprep.mubr.msk.bf16.mxu0 %vm4669_vm7, %v14411_v20 }
 0xbd8   : > { %10348 = vmatmul.mubr.msk.bf16.gmra.mrb[32].mxu0 %vm4669_vm7, %v14417_v29 }
 0xbd9   : > { %10351 = vmatprep.mubr.msk.bf16.mxu0 %vm4669_vm7, %v14424_v34 }
 0xbe0   : > { %10352 = vmatmul.mubr.msk.bf16.gmra.mrb[36].mxu0 %vm4669_vm7, %v14456_v53 }
 0xbe1   : > { %10355 = vmatprep.mubr.msk.bf16.mxu0 %vm4669_vm7, %v14458_v31 }
 0xbe8   : > { %10356 = vmatmul.mubr.msk.bf16.gmra.mrb[40].mxu0 %vm4669_vm7, %v14474_v42 }
 0xbe9   : > { %10367 = vmatprep.mubr.msk.bf16.mxu0 %vm4669_vm7, %v14213_v32  ;;  %v11311_v32 = vld [vmem:[%s15103_s6 + $0x98] sm:$0xff]  }
 0xbf0   : > { %10368 = vmatmul.mubr.msk.bf16.vlgmr.msra.gmra.mrb[12].mxu0 %vm4669_vm7, %v14110_v4 }
 0xbf1   : > { %10400 = vmatpush3.bf16.msra.mxu0 %v11308_v26  ;;  %10371 = vmatprep.mubr.msk.bf16.mxu0 %vm4669_vm7, %v14126_v47  ;;  %v11316_v26 = vld [vmem:[%s15103_s6 + $0xc0] sm:$0xff]  }
 0xbf2   : > { %10401 = vmatprep.subr.bf16.mxu0 %v11309_v18 }
 0xbf5   : > { %10402 = vmatpush3.bf16.msra.mxu0 %v11309_v18 }
 0xbf6   : > { %10403 = vmatprep.subr.bf16.mxu0 %v11310_v30 }
 0xbf8   : > { %10372 = vmatmul.mubr.msk.bf16.gmra.mrb[16].mxu0 %vm4669_vm7, %v14128_v28 }
 0xbf9   : > { %10375 = vmatprep.mubr.msk.bf16.mxu0 %vm4669_vm7, %v14173_v45  ;;  %10404 = vmatpush3.bf16.msra.mxu0 %v11310_v30 }
 0xbfa   : > { %10405 = vmatprep.subr.bf16.mxu0 %v11311_v32 }
 0xbfd   : > { %10406 = vmatpush3.bf16.msra.mxu0 %v11311_v32 }
 0xbfe   : > { %10439 = vmatprep.subr.bf16.mxu0 %v11312_v8 }
 0xc00   : > { %10376 = vmatmul.mubr.msk.bf16.gmra.mrb[20].mxu0 %vm4669_vm7, %v14178_v62 }
 0xc01   : > { %10379 = vmatprep.mubr.msk.bf16.mxu0 %vm4669_vm7, %v14228_v61 }
 0xc08   : > { %10380 = vmatmul.mubr.msk.bf16.gmra.mrb[24].mxu0 %vm4669_vm7, %v14230_v55 }
 0xc09   : > { %10383 = vmatprep.mubr.msk.bf16.mxu0 %vm4669_vm7, %v14515_v22 }
 0xc10   : > { %10384 = vmatmul.mubr.msk.bf16.gmra.mrb[28].mxu0 %vm4669_vm7, %v14517_v59 }
 0xc11   : > { %10387 = vmatprep.mubr.msk.bf16.mxu0 %vm4669_vm7, %v14541_v17 }
 0xc18   : > { %10388 = vmatmul.mubr.msk.bf16.gmra.mrb[32].mxu0 %vm4669_vm7, %v14543_v23 }
 0xc19   : > { %10391 = vmatprep.mubr.msk.bf16.mxu0 %vm4669_vm7, %v14563_v36 }
 0xc20   : > { %10392 = vmatmul.mubr.msk.bf16.gmra.mrb[36].mxu0 %vm4669_vm7, %v14565_v33 }
 0xc21   : > { %10395 = vmatprep.mubr.msk.bf16.mxu0 %vm4669_vm7, %v14579_v6  ;;  %v14669_v9 = vpop.f32.mrb[36].mxu1 }
 0xc22   : > { %v14671_v37 = vpop.f32.mrb[37].mxu1 }
 0xc23   : > { %v14673_v41 = vpop.f32.mrb[38].mxu1 }
 0xc24   : > { %v14675_v27 = vpop.f32.mrb[39].mxu1 }
 0xc28   : > { %10396 = vmatmul.mubr.msk.bf16.gmra.mrb[40].mxu0 %vm4669_vm7, %v14492_v63 }
 0xc29   : > { %10407 = vmatprep.mubr.msk.bf16.mxu0 %vm4669_vm7, %v15238_v1  ;;  %v14681_v19 = vpop.f32.mrb[40].mxu1 }
 0xc2a   : > { %v14683_v56 = vpop.f32.mrb[41].mxu1 }
 0xc2b   : > { %v14685_v13 = vpop.f32.mrb[42].mxu1 }
 0xc2c   : > { %v14687_v11 = vpop.f32.mrb[43].mxu1 }
 0xc30   : > { %10408 = vmatmul.mubr.msk.bf16.vlgmr.msra.gmra.mrb[12].mxu0 %vm4669_vm7, %v15239_v14 }
 0xc31   : > { %10440 = vmatpush3.bf16.msra.mxu0 %v11312_v8  ;;  %10411 = vmatprep.mubr.msk.bf16.mxu0 %vm4669_vm7, %v15240_v15  ;;  %v14696_v48 = vpop.f32.mrb[44].mxu1  ;;  %v15248_v8 = vld [vmem:[#allocation12_spill] sm:$0xff] }
 0xc32   : > { %10441 = vmatprep.subr.bf16.mxu0 %v11313_v0  ;;  %v14701_v12 = vpop.f32.mrb[45].mxu1 }
 0xc33   : > { %v14703_v51 = vpop.f32.mrb[46].mxu1 }
 0xc34   : > { %v14705_v52 = vpop.f32.mrb[47].mxu1 }
 0xc35   : > { %10442 = vmatpush3.bf16.msra.mxu0 %v11313_v0  ;;  %15241 = vst [vmem:[#allocation10_spill] sm:$0xff] %v14705_v52 }
 0xc36   : > { %10443 = vmatprep.subr.bf16.mxu0 %v11314_v16 }
 0xc38   : > { %10412 = vmatmul.mubr.msk.bf16.gmra.mrb[16].mxu0 %vm4669_vm7, %v15242_v54 }
 0xc39   : > { %10415 = vmatprep.mubr.msk.bf16.mxu0 %vm4669_vm7, %v15243_v44  ;;  %10444 = vmatpush3.bf16.msra.mxu0 %v11314_v16  ;;  %v14714_v24 = vpop.f32.mrb[48].mxu1 }
 0xc3a   : > { %15244 = vst [vmem:[#allocation13_spill] sm:$0xff] %v14714_v24  ;;  %10445 = vmatprep.subr.bf16.mxu0 %v11315_v40  ;;  %v14719_v18 = vpop.f32.mrb[49].mxu1 }
 0xc3b   : > { %15245 = vst [vmem:[#allocation14_spill] sm:$0xff] %v14719_v18  ;;  %v14721_v30 = vpop.f32.mrb[50].mxu1 }
 0xc3c   : > { %15246 = vst [vmem:[#allocation6_spill] sm:$0xff] %v14721_v30  ;;  %v14723_v32 = vpop.f32.mrb[51].mxu1 }
 0xc3d   : > { %15247 = vst [vmem:[#allocation7_spill] sm:$0xff] %v14723_v32  ;;  %10446 = vmatpush3.bf16.msra.mxu0 %v11315_v40 }
 0xc3e   : > { %10479 = vmatprep.subr.bf16.mxu0 %v11316_v26 }
 0xc40   : > { %10416 = vmatmul.mubr.msk.bf16.gmra.mrb[20].mxu0 %vm4669_vm7, %v15248_v8 }
 0xc41   : > { %10419 = vmatprep.mubr.msk.bf16.mxu0 %vm4669_vm7, %v14119_v60  ;;  %v14729_v1 = vpop.f32.mrb[52].mxu1 }
 0xc42   : > { %15249 = vst [vmem:[#allocation8_spill] sm:$0xff] %v14729_v1  ;;  %v14731_v0 = vpop.f32.mrb[53].mxu1 }
 0xc43   : > { %15250 = vst [vmem:[#allocation9_spill] sm:$0xff] %v14731_v0  ;;  %v14733_v16 = vpop.f32.mrb[54].mxu1 }
 0xc44   : > { %15251 = vst [vmem:[#allocation11_spill] sm:$0xff] %v14733_v16  ;;  %v14735_v24 = vpop.f32.mrb[55].mxu1 }
 0xc45   : > { %15252 = vst [vmem:[#allocation12_spill] sm:$0xff] %v14735_v24 }
 0xc48   : > { %10420 = vmatmul.mubr.msk.bf16.gmra.mrb[24].mxu0 %vm4669_vm7, %v14132_v25 }
 0xc49   : > { %10423 = vmatprep.mubr.msk.bf16.mxu0 %vm4669_vm7, %v14205_v21  ;;  %v14741_v40 = vpop.f32.mrb[56].mxu1 }
 0xc4a   : > { %15253 = vst [vmem:[#allocation15_spill] sm:$0xff] %v14741_v40  ;;  %v14743_v32 = vpop.f32.mrb[57].mxu1 }
 0xc4b   : > { %15254 = vst [vmem:[#allocation16_spill] sm:$0xff] %v14743_v32  ;;  %v14745_v30 = vpop.f32.mrb[58].mxu1 }
 0xc4c   : > { %15255 = vst [vmem:[#allocation17_spill] sm:$0xff] %v14745_v30  ;;  %v14747_v18 = vpop.f32.mrb[59].mxu1  ;;  %v15260_v30 = vld [vmem:[#allocation2_spill] sm:$0xff] }
 0xc4d   : > { %15256 = vst [vmem:[#allocation18_spill] sm:$0xff] %v14747_v18 }
 0xc50   : > { %10424 = vmatmul.mubr.msk.bf16.gmra.mrb[28].mxu0 %vm4669_vm7, %v14220_v49 }
 0xc51   : > { %10427 = vmatprep.mubr.msk.bf16.mxu0 %vm4669_vm7, %v14255_v57  ;;  %v14753_v24 = vpop.f32.mrb[60].mxu1 }
 0xc52   : > { %15257 = vst [vmem:[#allocation19_spill] sm:$0xff] %v14753_v24  ;;  %v14755_v16 = vpop.f32.mrb[61].mxu1  ;;  %v15263_v24 = vld [vmem:[#allocation3_spill] sm:$0xff] }
 0xc53   : > { %v14757_v0 = vpop.f32.mrb[62].mxu1 }
 0xc54   : > { %15258 = vst [vmem:[#allocation20_spill] sm:$0xff] %v14757_v0  ;;  %v14759_v1 = vpop.f32.mrb[63].mxu1  ;;  %v15264_v0 = vld [vmem:[#allocation5_spill] sm:$0xff] }
 0xc55   : > { %15259 = vst [vmem:[#allocation21_spill] sm:$0xff] %v14759_v1  ;;  %v15265_v1 = vld [vmem:[#allocation4_spill] sm:$0xff] }
 0xc58   : > { %10428 = vmatmul.mubr.msk.bf16.gmra.mrb[32].mxu0 %vm4669_vm7, %v14271_v5 }
 0xc59   : > { %10431 = vmatprep.mubr.msk.bf16.mxu0 %vm4669_vm7, %v15260_v30  ;;  %v14765_v18 = vpop.f32.mrb[64].mxu1 }
 0xc5a   : > { %v14767_v32 = vpop.f32.mrb[65].mxu1 }
 0xc5b   : > { %15261 = vst [vmem:[#allocation2_spill] sm:$0xff] %v14767_v32  ;;  %v14769_v40 = vpop.f32.mrb[66].mxu1  ;;  %v11317_v32 = vld [vmem:[%s15103_s6 + $0xc8] sm:$0xff]  }
 0xc5c   : > { %v14771_v52 = vpop.f32.mrb[67].mxu1 }
 0xc5d   : > { %15262 = vst [vmem:[#allocation22_spill] sm:$0xff] %v14771_v52  ;;  %v11318_v52 = vld [vmem:[%s15103_s6 + $0xd0] sm:$0xff]  }
 0xc60   : > { %10432 = vmatmul.mubr.msk.bf16.gmra.mrb[36].mxu0 %vm4669_vm7, %v15263_v24 }
 0xc61   : > { %10435 = vmatprep.mubr.msk.bf16.mxu0 %vm4669_vm7, %v15264_v0 }
 0xc68   : > { %10436 = vmatmul.mubr.msk.bf16.gmra.mrb[40].mxu0 %vm4669_vm7, %v15265_v1 }
 0xc69   : > { %10447 = vmatprep.mubr.msk.bf16.mxu0 %vm4669_vm7, %v14281_v35  ;;  %v11319_v35 = vld [vmem:[%s15103_s6 + $0xd8] sm:$0xff]  }
 0xc70   : > { %10448 = vmatmul.mubr.msk.bf16.vlgmr.msra.gmra.mrb[12].mxu0 %vm4669_vm7, %v14316_v43 }
 0xc71   : > { %10480 = vmatpush3.bf16.msra.mxu0 %v11316_v26  ;;  %10451 = vmatprep.mubr.msk.bf16.mxu0 %vm4669_vm7, %v14327_v3  ;;  %v11320_v26 = vld [vmem:[%s15103_s6 + $0xe0] sm:$0xff]  }
 0xc72   : > { %10481 = vmatprep.subr.bf16.mxu0 %v11317_v32 }
 0xc75   : > { %10482 = vmatpush3.bf16.msra.mxu0 %v11317_v32  ;;  %v11322_v32 = vld [vmem:[%s15103_s6 + $0xf0] sm:$0xff]  }
 0xc76   : > { %10483 = vmatprep.subr.bf16.mxu0 %v11318_v52 }
 0xc78   : > { %10452 = vmatmul.mubr.msk.bf16.gmra.mrb[16].mxu0 %vm4669_vm7, %v14329_v50 }
 0xc79   : > { %10455 = vmatprep.mubr.msk.bf16.mxu0 %vm4669_vm7, %v14352_v46  ;;  %10484 = vmatpush3.bf16.msra.mxu0 %v11318_v52  ;;  %v11321_v52 = vld [vmem:[%s15103_s6 + $0xe8] sm:$0xff]  }
 0xc7a   : > { %10485 = vmatprep.subr.bf16.mxu0 %v11319_v35 }
 0xc7d   : > { %10486 = vmatpush3.bf16.msra.mxu0 %v11319_v35  ;;  %v11616_v35 = vld [vmem:[%s11738_s26 + $0xd0] sm:$0xff] }
 0xc7e   : > { %10519 = vmatprep.subr.bf16.mxu0 %v11320_v26 }
 0xc80   : > { %10456 = vmatmul.mubr.msk.bf16.gmra.mrb[20].mxu0 %vm4669_vm7, %v14368_v10 }
 0xc81   : > { %10459 = vmatprep.mubr.msk.bf16.mxu0 %vm4669_vm7, %v14370_v39 }
 0xc88   : > { %10460 = vmatmul.mubr.msk.bf16.gmra.mrb[24].mxu0 %vm4669_vm7, %v14376_v58 }
 0xc89   : > { %10463 = vmatprep.mubr.msk.bf16.mxu0 %vm4669_vm7, %v14409_v7 }
 0xc90   : > { %10464 = vmatmul.mubr.msk.bf16.gmra.mrb[28].mxu0 %vm4669_vm7, %v14411_v20 }
 0xc91   : > { %10467 = vmatprep.mubr.msk.bf16.mxu0 %vm4669_vm7, %v14417_v29 }
 0xc98   : > { %10468 = vmatmul.mubr.msk.bf16.gmra.mrb[32].mxu0 %vm4669_vm7, %v14424_v34 }
 0xc99   : > { %10471 = vmatprep.mubr.msk.bf16.mxu0 %vm4669_vm7, %v14456_v53 }
 0xca0   : > { %10472 = vmatmul.mubr.msk.bf16.gmra.mrb[36].mxu0 %vm4669_vm7, %v14458_v31 }
 0xca1   : > { %10475 = vmatprep.mubr.msk.bf16.mxu0 %vm4669_vm7, %v14474_v42 }
 0xca8   : > { %10476 = vmatmul.mubr.msk.bf16.gmra.mrb[40].mxu0 %vm4669_vm7, %v14513_v2 }
 0xca9   : > { %10487 = vmatprep.mubr.msk.bf16.mxu0 %vm4669_vm7, %v14110_v4  ;;  %v11323_v4 = vld [vmem:[%s15103_s6 + $0xf8] sm:$0xff]  }
 0xcb0   : > { %10488 = vmatmul.mubr.msk.bf16.vlgmr.msra.gmra.mrb[12].mxu0 %vm4669_vm7, %v14126_v47  ;;  %v11324_v47 = vld [vmem:[%s15103_s6 + $0x100] sm:$0xff]  }
 0xcb1   : > { %10520 = vmatpush3.bf16.msra.mxu0 %v11320_v26  ;;  %10491 = vmatprep.mubr.msk.bf16.mxu0 %vm4669_vm7, %v14128_v28  ;;  %v11325_v28 = vld [vmem:[%s15103_s6 + $0x108] sm:$0xff]   ;;  %v11617_v26 = vld [vmem:[%s11738_s26 + $0xd8] sm:$0xff] }
 0xcb2   : > { %10521 = vmatprep.subr.bf16.mxu0 %v11321_v52 }
 0xcb5   : > { %10522 = vmatpush3.bf16.msra.mxu0 %v11321_v52  ;;  %v8475_v52 = vpack.c.bf16 %v11617_v26, %v11616_v35  ;;  %v15276_v26 = vld [vmem:[#allocation16_spill] sm:$0xff] }
 0xcb6   : > { %10523 = vmatprep.subr.bf16.mxu0 %v11322_v32 }
 0xcb8   : > { %10492 = vmatmul.mubr.msk.bf16.gmra.mrb[16].mxu0 %vm4669_vm7, %v14173_v45  ;;  %v11326_v45 = vld [vmem:[%s15103_s6 + $0x110] sm:$0xff]  }
 0xcb9   : > { %10495 = vmatprep.mubr.msk.bf16.mxu0 %vm4669_vm7, %v14178_v62  ;;  %10524 = vmatpush3.bf16.msra.mxu0 %v11322_v32  ;;  %v11327_v62 = vld [vmem:[%s15103_s6 + $0x118] sm:$0xff]   ;;  %v11618_v32 = vld [vmem:[%s11738_s26 + $0xe0] sm:$0xff] }
 0xcba   : > { %10525 = vmatprep.subr.bf16.mxu0 %v11323_v4 }
 0xcbd   : > { %10526 = vmatpush3.bf16.msra.mxu0 %v11323_v4  ;;  %v11619_v4 = vld [vmem:[%s11738_s26 + $0xe8] sm:$0xff] }
 0xcbe   : > { %10559 = vmatprep.subr.bf16.mxu0 %v11324_v47 }
 0xcc0   : > { %10496 = vmatmul.mubr.msk.bf16.gmra.mrb[20].mxu0 %vm4669_vm7, %v14228_v61  ;;  %v11328_v61 = vld [vmem:[%s15104_s7] sm:$0xff]  }
 0xcc1   : > { %10499 = vmatprep.mubr.msk.bf16.mxu0 %vm4669_vm7, %v14230_v55  ;;  %v11592_v55 = vld [vmem:[%s11738_s26 + $0x10] sm:$0xff] }
 0xcc8   : > { %10500 = vmatmul.mubr.msk.bf16.gmra.mrb[24].mxu0 %vm4669_vm7, %v14515_v22  ;;  %v11605_v22 = vld [vmem:[%s11738_s26 + $0x78] sm:$0xff] }
 0xcc9   : > { %10503 = vmatprep.mubr.msk.bf16.mxu0 %vm4669_vm7, %v14517_v59 }
 0xcd0   : > { %10504 = vmatmul.mubr.msk.bf16.gmra.mrb[28].mxu0 %vm4669_vm7, %v14541_v17  ;;  %v11606_v17 = vld [vmem:[%s11738_s26 + $0x80] sm:$0xff] }
 0xcd1   : > { %10507 = vmatprep.mubr.msk.bf16.mxu0 %vm4669_vm7, %v14543_v23  ;;  %v11607_v23 = vld [vmem:[%s11738_s26 + $0x88] sm:$0xff] }
 0xcd8   : > { %10508 = vmatmul.mubr.msk.bf16.gmra.mrb[32].mxu0 %vm4669_vm7, %v14563_v36  ;;  %v8470_v36 = vpack.c.bf16 %v11607_v23, %v11606_v17  ;;  %v15271_v23 = vld [vmem:[#allocation8_spill] sm:$0xff] }
 0xcd9   : > { %10511 = vmatprep.mubr.msk.bf16.mxu0 %vm4669_vm7, %v14565_v33  ;;  %v11608_v33 = vld [vmem:[%s11738_s26 + $0x90] sm:$0xff] }
 0xce0   : > { %10512 = vmatmul.mubr.msk.bf16.gmra.mrb[36].mxu0 %vm4669_vm7, %v14579_v6  ;;  %v11609_v6 = vld [vmem:[%s11738_s26 + $0x98] sm:$0xff] }
 0xce1   : > { %10515 = vmatprep.mubr.msk.bf16.mxu0 %vm4669_vm7, %v14492_v63 }
 0xce8   : > { %10516 = vmatmul.mubr.bf16.gmra.mrb[40].mxu0 %v15237_v38 }
 0xce9   : > { %10527 = vmatprep.mubr.msk.bf16.mxu0 %vm4669_vm7, %v15239_v14  ;;  %v11610_v14 = vld [vmem:[%s11738_s26 + $0xa0] sm:$0xff] }
 0xcf0   : > { %10528 = vmatmul.mubr.msk.bf16.vlgmr.msra.gmra.mrb[12].mxu0 %vm4669_vm7, %v15240_v15  ;;  %v11611_v15 = vld [vmem:[%s11738_s26 + $0xa8] sm:$0xff] }
 0xcf1   : > { %10560 = vmatpush3.bf16.msra.mxu0 %v11324_v47  ;;  %10531 = vmatprep.mubr.msk.bf16.mxu0 %vm4669_vm7, %v15242_v54  ;;  %v8472_v54 = vpack.c.bf16 %v11611_v15, %v11610_v14  ;;  %v8476_v47 = vpack.c.bf16 %v11619_v4, %v11618_v32  ;;  %v15273_v15 = vld [vmem:[#allocation11_spill] sm:$0xff]  ;;  %v15277_v4 = vld [vmem:[#allocation17_spill] sm:$0xff] }
 0xcf2   : > { %10561 = vmatprep.subr.bf16.mxu0 %v11325_v28 }
 0xcf5   : > { %10562 = vmatpush3.bf16.msra.mxu0 %v11325_v28  ;;  %v11620_v28 = vld [vmem:[%s11738_s26 + $0xf0] sm:$0xff] }
 0xcf6   : > { %10563 = vmatprep.subr.bf16.mxu0 %v11326_v45 }
 0xcf8   : > { %10532 = vmatmul.mubr.msk.bf16.gmra.mrb[16].mxu0 %vm4669_vm7, %v15243_v44  ;;  %v11612_v44 = vld [vmem:[%s11738_s26 + $0xb0] sm:$0xff] }
 0xcf9   : > { %10535 = vmatprep.mubr.msk.bf16.mxu0 %vm4669_vm7, %v15248_v8  ;;  %10564 = vmatpush3.bf16.msra.mxu0 %v11326_v45  ;;  %v11614_v8 = vld [vmem:[%s11738_s26 + $0xc0] sm:$0xff]  ;;  %v11621_v45 = vld [vmem:[%s11738_s26 + $0xf8] sm:$0xff] }
 0xcfa   : > { %10565 = vmatprep.subr.bf16.mxu0 %v11327_v62 }
 0xcfd   : > { %10566 = vmatpush3.bf16.msra.mxu0 %v11327_v62  ;;  %v8477_v62 = vpack.c.bf16 %v11621_v45, %v11620_v28  ;;  %v15278_v45 = vld [vmem:[#allocation18_spill] sm:$0xff] }
 0xcfe   : > { %10599 = vmatprep.subr.bf16.mxu0 %v11328_v61 }
 0xd00   : > { %10536 = vmatmul.mubr.msk.bf16.gmra.mrb[20].mxu0 %vm4669_vm7, %v14119_v60  ;;  %v11590_v60 = vld [vmem:[%s11738_s26] sm:$0xff] }
 0xd01   : > { %10539 = vmatprep.mubr.msk.bf16.mxu0 %vm4669_vm7, %v14132_v25  ;;  %v11329_v25 = vld [vmem:[%s15104_s7 + $0x8] sm:$0xff]  }
 0xd08   : > { %10540 = vmatmul.mubr.msk.bf16.gmra.mrb[24].mxu0 %vm4669_vm7, %v14205_v21  ;;  %v11591_v21 = vld [vmem:[%s11738_s26 + $0x8] sm:$0xff] }
 0xd09   : > { %10543 = vmatprep.mubr.msk.bf16.mxu0 %vm4669_vm7, %v14220_v49  ;;  %v8462_v49 = vpack.c.bf16 %v11591_v21, %v11590_v60 }
 0xd10   : > { %10544 = vmatmul.mubr.msk.bf16.gmra.mrb[28].mxu0 %vm4669_vm7, %v14255_v57 }
 0xd11   : > { %10547 = vmatprep.mubr.msk.bf16.mxu0 %vm4669_vm7, %v14271_v5  ;;  %v11594_v5 = vld [vmem:[%s11738_s26 + $0x20] sm:$0xff] }
 0xd18   : > { %10548 = vmatmul.mubr.msk.bf16.gmra.mrb[32].mxu0 %vm4669_vm7, %v15260_v30 }
 0xd19   : > { %10551 = vmatprep.mubr.msk.bf16.mxu0 %vm4669_vm7, %v15263_v24  ;;  %v11613_v24 = vld [vmem:[%s11738_s26 + $0xb8] sm:$0xff] }
 0xd1a   : > { %v8473_v30 = vpack.c.bf16 %v11613_v24, %v11612_v44  ;;  %v15274_v24 = vld [vmem:[#allocation12_spill] sm:$0xff] }
 0xd20   : > { %10552 = vmatmul.mubr.msk.bf16.gmra.mrb[36].mxu0 %vm4669_vm7, %v15264_v0 }
 0xd21   : > { %10555 = vmatprep.mubr.msk.bf16.mxu0 %vm4669_vm7, %v15265_v1  ;;  %v11615_v1 = vld [vmem:[%s11738_s26 + $0xc8] sm:$0xff] }
 0xd22   : > { %v8474_v0 = vpack.c.bf16 %v11615_v1, %v11614_v8  ;;  %v15275_v1 = vld [vmem:[#allocation15_spill] sm:$0xff] }
 0xd28   : > { %10556 = vmatmul.mubr.bf16.gmra.mrb[40].mxu0 %v15237_v38 }
 0xd29   : > { %10567 = vmatprep.mubr.msk.bf16.mxu0 %vm4669_vm7, %v14316_v43  ;;  %v11595_v43 = vld [vmem:[%s11738_s26 + $0x28] sm:$0xff] }
 0xd30   : > { %10568 = vmatmul.mubr.msk.bf16.vlgmr.msra.gmra.mrb[12].mxu0 %vm4669_vm7, %v14327_v3  ;;  %v8464_v3 = vpack.c.bf16 %v11595_v43, %v11594_v5 }
 0xd31   : > { %10600 = vmatpush3.bf16.msra.mxu0 %v11328_v61  ;;  %10571 = vmatprep.mubr.msk.bf16.mxu0 %vm4669_vm7, %v14329_v50  ;;  %v11596_v50 = vld [vmem:[%s11738_s26 + $0x30] sm:$0xff] }
 0xd32   : > { %10601 = vmatprep.subr.bf16.mxu0 %v11329_v25 }
 0xd35   : > { %10602 = vmatpush3.bf16.msra.mxu0 %v11329_v25 }
 0xd38   : > { %10572 = vmatmul.mubr.msk.bf16.gmra.mrb[16].mxu0 %vm4669_vm7, %v14352_v46  ;;  %v11597_v46 = vld [vmem:[%s11738_s26 + $0x38] sm:$0xff] }
 0xd39   : > { %10575 = vmatprep.mubr.msk.bf16.mxu0 %vm4669_vm7, %v14368_v10  ;;  %v8465_v10 = vpack.c.bf16 %v11597_v46, %v11596_v50 }
 0xd40   : > { %10576 = vmatmul.mubr.msk.bf16.gmra.mrb[20].mxu0 %vm4669_vm7, %v14370_v39  ;;  %v11598_v39 = vld [vmem:[%s11738_s26 + $0x40] sm:$0xff] }
 0xd41   : > { %10579 = vmatprep.mubr.msk.bf16.mxu0 %vm4669_vm7, %v14376_v58  ;;  %v11599_v58 = vld [vmem:[%s11738_s26 + $0x48] sm:$0xff] }
 0xd48   : > { %10580 = vmatmul.mubr.msk.bf16.gmra.mrb[24].mxu0 %vm4669_vm7, %v14409_v7  ;;  %v11593_v7 = vld [vmem:[%s11738_s26 + $0x18] sm:$0xff] }
 0xd49   : > { %10583 = vmatprep.mubr.msk.bf16.mxu0 %vm4669_vm7, %v14411_v20  ;;  %v8463_v57 = vpack.c.bf16 %v11593_v7, %v11592_v55  ;;  %v8466_v20 = vpack.c.bf16 %v11599_v58, %v11598_v39 }
 0xd50   : > { %10584 = vmatmul.mubr.msk.bf16.gmra.mrb[28].mxu0 %vm4669_vm7, %v14417_v29  ;;  %v11600_v29 = vld [vmem:[%s11738_s26 + $0x50] sm:$0xff] }
 0xd51   : > { %10587 = vmatprep.mubr.msk.bf16.mxu0 %vm4669_vm7, %v14424_v34  ;;  %v11601_v34 = vld [vmem:[%s11738_s26 + $0x58] sm:$0xff] }
 0xd58   : > { %10588 = vmatmul.mubr.msk.bf16.gmra.mrb[32].mxu0 %vm4669_vm7, %v14456_v53  ;;  %v8467_v53 = vpack.c.bf16 %v11601_v34, %v11600_v29  ;;  %v15267_v29 = vld [vmem:[#allocation13_spill] sm:$0xff] }
 0xd59   : > { %10591 = vmatprep.mubr.msk.bf16.mxu0 %vm4669_vm7, %v14458_v31  ;;  %v11602_v31 = vld [vmem:[%s11738_s26 + $0x60] sm:$0xff] }
 0xd60   : > { %10592 = vmatmul.mubr.msk.bf16.gmra.mrb[36].mxu0 %vm4669_vm7, %v14474_v42  ;;  %v11603_v42 = vld [vmem:[%s11738_s26 + $0x68] sm:$0xff] }
 0xd61   : > { %10595 = vmatprep.mubr.msk.bf16.mxu0 %vm4669_vm7, %v14513_v2  ;;  %v8468_v63 = vpack.c.bf16 %v11603_v42, %v11602_v31  ;;  %v11604_v2 = vld [vmem:[%s11738_s26 + $0x70] sm:$0xff] }
 0xd62   : > { %v8469_v59 = vpack.c.bf16 %v11605_v22, %v11604_v2  ;;  %v15270_v22 = vld [vmem:[#allocation7_spill] sm:$0xff] }
 0xd68   : > { %10596 = vmatmul.mubr.bf16.gmra.mrb[40].mxu0 %v15237_v38  ;;  %v8471_v38 = vpack.c.bf16 %v11609_v6, %v11608_v33  ;;  %v15272_v6 = vld [vmem:[#allocation9_spill] sm:$0xff] }
 0xd69   : > { %10603 = vmatprep.mubr.msk.bf16.mxu0 %vm628_vm1, %v8462_v49 }
 0xd70   : > { %10604 = vmatmul.mubr.msk.bf16.vlgmr.msra.gmra.mrb[12].mxu0 %vm628_vm1, %v8463_v57 }
 0xd71   : > { %10607 = vmatprep.mubr.msk.bf16.mxu0 %vm628_vm1, %v8464_v3 }
 0xd78   : > { %10608 = vmatmul.mubr.msk.bf16.gmra.mrb[16].mxu0 %vm628_vm1, %v8465_v10 }
 0xd79   : > { %10611 = vmatprep.mubr.msk.bf16.mxu0 %vm628_vm1, %v8466_v20 }
 0xd80   : > { %10612 = vmatmul.mubr.msk.bf16.gmra.mrb[20].mxu0 %vm628_vm1, %v8467_v53  ;;  %v15268_v53 = vld [vmem:[#allocation14_spill] sm:$0xff] }
 0xd81   : > { %10615 = vmatprep.mubr.msk.bf16.mxu0 %vm628_vm1, %v8468_v63 }
 0xd88   : > { %10616 = vmatmul.mubr.msk.bf16.gmra.mrb[24].mxu0 %vm628_vm1, %v8469_v59 }
 0xd89   : > { %10619 = vmatprep.mubr.msk.bf16.mxu0 %vm628_vm1, %v8470_v36 }
 0xd90   : > { %10620 = vmatmul.mubr.msk.bf16.gmra.mrb[28].mxu0 %vm628_vm1, %v8471_v38 }
 0xd91   : > { %10623 = vmatprep.mubr.msk.bf16.mxu0 %vm628_vm1, %v8472_v54 }
 0xd98   : > { %10624 = vmatmul.mubr.msk.bf16.gmra.mrb[32].mxu0 %vm628_vm1, %v8473_v30 }
 0xd99   : > { %10627 = vmatprep.mubr.msk.bf16.mxu0 %vm628_vm1, %v8474_v0 }
 0xda0   : > { %10628 = vmatmul.mubr.msk.bf16.gmra.mrb[36].mxu0 %vm628_vm1, %v8475_v52 }
 0xda1   : > { %10631 = vmatprep.mubr.msk.bf16.mxu0 %vm628_vm1, %v8476_v47 }
 0xda8   : > { %10632 = vmatmul.mubr.msk.bf16.gmra.mrb[40].mxu0 %vm628_vm1, %v8477_v62 }
 0xe43   : > { %v10605_v61 = vpop.f32.mrb[12].mxu0 }
 0xe44   : > { %v10719_v25 = vadd.f32 %v10605_v61, %v14669_v9  ;;  %v8576_v60 = vpop.f32.mrb[13].mxu0 }
 0xe45   : > { %v10720_v21 = vadd.f32 %v8576_v60, %v14671_v37  ;;  %v10606_v49 = vpop.f32.mrb[14].mxu0 }
 0xe46   : > { %8737 = vst.msk [vmem:[%s14996_s19 + $0x10] sm:$0xff] %vm4669_vm7, %v10719_v25  ;;  %v10721_v55 = vadd.f32 %v10606_v49, %v14673_v41  ;;  %v8579_v7 = vpop.f32.mrb[15].mxu0  ;;  %v15279_v25 = vld [vmem:[#allocation19_spill] sm:$0xff] }
 0xe47   : > { %8735 = vst.msk [vmem:[%s14996_s19] sm:$0xff] %vm4669_vm7, %v10720_v21  ;;  %v10722_v57 = vadd.f32 %v8579_v7, %v14675_v27  ;;  %v15280_v7 = vld [vmem:[#allocation20_spill] sm:$0xff] }
 0xe48   : > { %8738 = vst.msk [vmem:[%s14996_s19 + $0x18] sm:$0xff] %vm4669_vm7, %v10721_v55 }
 0xe49   : > { %8736 = vst.msk [vmem:[%s14996_s19 + $0x8] sm:$0xff] %vm4669_vm7, %v10722_v57 }
 0xe4b   : > { %v10609_v9 = vpop.f32.mrb[16].mxu0 }
 0xe4c   : > { %v10723_v37 = vadd.f32 %v10609_v9, %v14681_v19  ;;  %v8592_v5 = vpop.f32.mrb[17].mxu0 }
 0xe4d   : > { %v10724_v43 = vadd.f32 %v8592_v5, %v14683_v56  ;;  %v10610_v3 = vpop.f32.mrb[18].mxu0 }
 0xe4e   : > { %8741 = vst.msk [vmem:[%s14996_s19 + $0x30] sm:$0xff] %vm4669_vm7, %v10723_v37  ;;  %v10725_v41 = vadd.f32 %v10610_v3, %v14685_v13  ;;  %v8595_v50 = vpop.f32.mrb[19].mxu0  ;;  %v15281_v37 = vld [vmem:[#allocation21_spill] sm:$0xff] }
 0xe4f   : > { %8739 = vst.msk [vmem:[%s14996_s19 + $0x20] sm:$0xff] %vm4669_vm7, %v10724_v43  ;;  %v10726_v27 = vadd.f32 %v8595_v50, %v14687_v11  ;;  %v15266_v11 = vld [vmem:[#allocation10_spill] sm:$0xff] }
 0xe50   : > { %8742 = vst.msk [vmem:[%s14996_s19 + $0x38] sm:$0xff] %vm4669_vm7, %v10725_v41  ;;  %v15282_v41 = vld [vmem:[#allocation2_spill] sm:$0xff] }
 0xe51   : > { %8740 = vst.msk [vmem:[%s14996_s19 + $0x28] sm:$0xff] %vm4669_vm7, %v10726_v27 }
 0xe53   : > { %v10613_v19 = vpop.f32.mrb[20].mxu0 }
 0xe54   : > { %v10727_v56 = vadd.f32 %v10613_v19, %v14696_v48  ;;  %v8608_v46 = vpop.f32.mrb[21].mxu0 }
 0xe55   : > { %v10728_v10 = vadd.f32 %v8608_v46, %v14701_v12  ;;  %v10614_v39 = vpop.f32.mrb[22].mxu0  ;;  %v15283_v46 = vld [vmem:[#allocation22_spill] sm:$0xff] }
 0xe56   : > { %8745 = vst.msk [vmem:[%s14996_s19 + $0x50] sm:$0xff] %vm4669_vm7, %v10727_v56  ;;  %v10729_v13 = vadd.f32 %v10614_v39, %v14703_v51  ;;  %v8611_v58 = vpop.f32.mrb[23].mxu0  ;;  %v15269_v51 = vld [vmem:[#allocation6_spill] sm:$0xff] }
 0xe57   : > { %8743 = vst.msk [vmem:[%s14996_s19 + $0x40] sm:$0xff] %vm4669_vm7, %v10728_v10  ;;  %v10730_v20 = vadd.f32 %v8611_v58, %v15266_v11 }
 0xe58   : > { %8746 = vst.msk [vmem:[%s14996_s19 + $0x58] sm:$0xff] %vm4669_vm7, %v10729_v13 }
 0xe59   : > { %8744 = vst.msk [vmem:[%s14996_s19 + $0x48] sm:$0xff] %vm4669_vm7, %v10730_v20 }
 0xe5b   : > { %v10617_v48 = vpop.f32.mrb[24].mxu0 }
 0xe5c   : > { %v10731_v12 = vadd.f32 %v10617_v48, %v15267_v29  ;;  %v8624_v34 = vpop.f32.mrb[25].mxu0 }
 0xe5d   : > { %v10732_v31 = vadd.f32 %v8624_v34, %v15268_v53  ;;  %v10618_v42 = vpop.f32.mrb[26].mxu0 }
 0xe5e   : > { %8749 = vst.msk [vmem:[%s14996_s19 + $0x70] sm:$0xff] %vm4669_vm7, %v10731_v12  ;;  %v10733_v63 = vadd.f32 %v10618_v42, %v15269_v51  ;;  %v8627_v2 = vpop.f32.mrb[27].mxu0 }
 0xe5f   : > { %8747 = vst.msk [vmem:[%s14996_s19 + $0x60] sm:$0xff] %vm4669_vm7, %v10732_v31  ;;  %v10734_v59 = vadd.f32 %v8627_v2, %v15270_v22 }
 0xe60   : > { %8750 = vst.msk [vmem:[%s14996_s19 + $0x78] sm:$0xff] %vm4669_vm7, %v10733_v63 }
 0xe61   : > { %8748 = vst.msk [vmem:[%s14996_s19 + $0x68] sm:$0xff] %vm4669_vm7, %v10734_v59 }
 0xe63   : > { %v10621_v17 = vpop.f32.mrb[28].mxu0 }
 0xe64   : > { %v10735_v36 = vadd.f32 %v10621_v17, %v15271_v23  ;;  %v8640_v33 = vpop.f32.mrb[29].mxu0 }
 0xe65   : > { %v10736_v38 = vadd.f32 %v8640_v33, %v15272_v6  ;;  %v10622_v14 = vpop.f32.mrb[30].mxu0 }
 0xe66   : > { %8753 = vst.msk [vmem:[%s14996_s19 + $0x90] sm:$0xff] %vm4669_vm7, %v10735_v36  ;;  %v10737_v54 = vadd.f32 %v10622_v14, %v15273_v15  ;;  %v8643_v44 = vpop.f32.mrb[31].mxu0 }
 0xe67   : > { %8751 = vst.msk [vmem:[%s14996_s19 + $0x80] sm:$0xff] %vm4669_vm7, %v10736_v38  ;;  %v10738_v30 = vadd.f32 %v8643_v44, %v15274_v24 }
 0xe68   : > { %8754 = vst.msk [vmem:[%s14996_s19 + $0x98] sm:$0xff] %vm4669_vm7, %v10737_v54 }
 0xe69   : > { %8752 = vst.msk [vmem:[%s14996_s19 + $0x88] sm:$0xff] %vm4669_vm7, %v10738_v30 }
 0xe6b   : > { %v10625_v8 = vpop.f32.mrb[32].mxu0 }
 0xe6c   : > { %v10739_v0 = vadd.f32 %v10625_v8, %v15275_v1  ;;  %v8656_v35 = vpop.f32.mrb[33].mxu0 }
 0xe6d   : > { %v10740_v52 = vadd.f32 %v8656_v35, %v15276_v26  ;;  %v10626_v32 = vpop.f32.mrb[34].mxu0 }
 0xe6e   : > { %8757 = vst.msk [vmem:[%s14996_s19 + $0xb0] sm:$0xff] %vm4669_vm7, %v10739_v0  ;;  %v10741_v47 = vadd.f32 %v10626_v32, %v15277_v4  ;;  %v8659_v28 = vpop.f32.mrb[35].mxu0 }
 0xe6f   : > { %8755 = vst.msk [vmem:[%s14996_s19 + $0xa0] sm:$0xff] %vm4669_vm7, %v10740_v52  ;;  %v10742_v62 = vadd.f32 %v8659_v28, %v15278_v45 }
 0xe70   : > { %8758 = vst.msk [vmem:[%s14996_s19 + $0xb8] sm:$0xff] %vm4669_vm7, %v10741_v47 }
 0xe71   : > { %8756 = vst.msk [vmem:[%s14996_s19 + $0xa8] sm:$0xff] %vm4669_vm7, %v10742_v62 }
 0xe73   : > { %v10629_v61 = vpop.f32.mrb[36].mxu0 }
 0xe74   : > { %v10743_v60 = vadd.f32 %v10629_v61, %v15279_v25  ;;  %v8672_v21 = vpop.f32.mrb[37].mxu0 }
 0xe75   : > { %v10744_v49 = vadd.f32 %v8672_v21, %v14755_v16  ;;  %v10630_v55 = vpop.f32.mrb[38].mxu0 }
 0xe76   : > { %8761 = vst.msk [vmem:[%s14996_s19 + $0xd0] sm:$0xff] %vm4669_vm7, %v10743_v60  ;;  %v10745_v57 = vadd.f32 %v10630_v55, %v15280_v7  ;;  %v8675_v9 = vpop.f32.mrb[39].mxu0 }
 0xe77   : > { %8759 = vst.msk [vmem:[%s14996_s19 + $0xc0] sm:$0xff] %vm4669_vm7, %v10744_v49  ;;  %v10746_v5 = vadd.f32 %v8675_v9, %v15281_v37 }
 0xe78   : > { %8762 = vst.msk [vmem:[%s14996_s19 + $0xd8] sm:$0xff] %vm4669_vm7, %v10745_v57 }
 0xe79   : > { %8760 = vst.msk [vmem:[%s14996_s19 + $0xc8] sm:$0xff] %vm4669_vm7, %v10746_v5 }
 0xe7b   : > { %v10633_v43 = vpop.f32.mrb[40].mxu0 }
 0xe7c   : > { %v10747_v16 = vadd.f32 %v10633_v43, %v14765_v18  ;;  %v8688_v3 = vpop.f32.mrb[41].mxu0 }
 0xe7d   : > { %v10748_v50 = vadd.f32 %v8688_v3, %v15282_v41  ;;  %v10634_v27 = vpop.f32.mrb[42].mxu0 }
 0xe7e   : > { %8765 = vst.msk [vmem:[%s14996_s19 + $0xf0] sm:$0xff] %vm4669_vm7, %v10747_v16  ;;  %v10749_v19 = vadd.f32 %v10634_v27, %v14769_v40  ;;  %v8691_v56 = vpop.f32.mrb[43].mxu0 }
 0xe7f   : > { %8763 = vst.msk [vmem:[%s14996_s19 + $0xe0] sm:$0xff] %vm4669_vm7, %v10748_v50  ;;  %v10750_v10 = vadd.f32 %v8691_v56, %v15283_v46 }
 0xe80   : > { %8766 = vst.msk [vmem:[%s14996_s19 + $0xf8] sm:$0xff] %vm4669_vm7, %v10749_v19 }
 0xe81   : > { %8764 = vst.msk [vmem:[%s14996_s19 + $0xe8] sm:$0xff] %vm4669_vm7, %v10750_v10 }
 0xe82 PF: > { %s20_s13 = sadd.s32 1, %s11628_s13  }
 0xe83   : > { %p17_p4 = scmp.ge.s32.totalorder %s20_s13, 4  }
 0xe85   :  { %19 = sbr.rel (!%p17_p4) target bundleno = 1 (0x1), region = 106 }

</bundles_post_ra>
